<compile_context>
chip_gen: v7x
topology: tpu7x:2x2x1
jax: 0.10.0
libtpu: 0.0.40
codegen_flags: <defaults>
</compile_context>

<pallas_src>
import functools

import jax
import jax.numpy as jnp
from jax.experimental import pallas as pl
from jax.experimental.pallas import tpu as pltpu


def _round_up(n, m):
    return (n + m - 1) // m * m


# ----------------------------------------------------------------------------
# Fused Pallas kernel: conv1..conv4 (+ReLU) + output conv, one batch element.
# ----------------------------------------------------------------------------
def _fused_regression_kernel(x_ref,
                             w1_ref, b1_ref, w2_ref, b2_ref, w3_ref, b3_ref,
                             w4_ref, b4_ref, w5_ref, b5_ref,
                             o_ref, pad_ref, *, H, W, CP, CPO):
    # x_ref   : (1, H, W, CP)       bf16 input tile (channels already lane-padded)
    # w*_ref  : (9, CP, CP[ or CPO])  bf16 packed 3x3 weights (zero padded)
    # b*_ref  : (1, CP[ or CPO])      f32 bias (zero padded)
    # o_ref   : (1, H, W, CPO)      bf16 output (lane-dense)
    # pad_ref : (H+2, W, CP) VMEM   bf16 H-haloed activation scratch
    cdt = pad_ref.dtype            # bf16 compute dtype for MXU operands
    HW = H * W

    # ---- one-time setup per grid step --------------------------------------
    # Zero ONLY the two H-halo rows; they are never written afterwards.  The
    # interior rows (1..H) are fully overwritten (all CP lanes) every layer.
    zero_row = jnp.zeros((W, CP), cdt)
    pad_ref[0] = zero_row
    pad_ref[H + 1] = zero_row

    # Hoisted zero column used for the kw = -1 / +1 boundary (SAME padding).
    zcol = jnp.zeros((H, 1, CP), cdt)

    def conv3x3(w_ref, b_ref, relu):
        # 3x3 SAME conv of the activation resident in pad_ref rows 1..H,
        # expressed as 9 accumulating MXU dots (K = CP each) -- no im2col slab.
        acc = None
        for kh in range(3):
            # Leading-dim window: rows kh..kh+H -> tile-aligned, free offset.
            r3 = pad_ref[kh:kh + H, :, :]                         # (H, W, CP)
            # kw shifts on register values (sublane shifts, XLU); boundary
            # columns become zero directly -- no masks, no misaligned loads.
            left = jnp.concatenate([zcol, r3[:, :W - 1, :]], axis=1)   # x[w-1]
            right = jnp.concatenate([r3[:, 1:, :], zcol], axis=1)      # x[w+1]
            for kw, tap in ((0, left), (1, r3), (2, right)):
                d = jnp.dot(tap.reshape(HW, CP), w_ref[3 * kh + kw],
                            preferred_element_type=jnp.float32)
                acc = d if acc is None else acc + d
        y = acc + b_ref[...]                                      # f32 epilogue
        if relu:
            y = jnp.maximum(y, 0.0)
        return y                                                  # (HW, Cout_p)

    # Layer 1: stage the (channel-padded) bf16 input into the haloed scratch.
    pad_ref[1:H + 1, :, :] = x_ref[0]
    y = conv3x3(w1_ref, b1_ref, relu=True)

    # Layers 2..4 (+ReLU): activations stay in VMEM, re-staged into the scratch.
    for w_ref, b_ref in ((w2_ref, b2_ref), (w3_ref, b3_ref), (w4_ref, b4_ref)):
        pad_ref[1:H + 1, :, :] = y.reshape(H, W, CP).astype(cdt)
        y = conv3x3(w_ref, b_ref, relu=True)

    # Output conv (no ReLU), narrower padded Cout = CPO.
    pad_ref[1:H + 1, :, :] = y.reshape(H, W, CP).astype(cdt)
    y = conv3x3(w5_ref, b5_ref, relu=False)                       # (HW, CPO)

    o_ref[0] = y.reshape(H, W, CPO).astype(o_ref.dtype)


# ----------------------------------------------------------------------------
# Parameter packing (done once): pad channels, cast weights to bf16.
# Hidden layers pad Cin/Cout to CP; the output conv pads Cout to CPO only.
# ----------------------------------------------------------------------------
def pack_params(params, CP, CPO):
    packed = []
    n = len(params)
    for li, (w, b) in enumerate(params):
        _, _, cin, cout = w.shape
        cout_p = CPO if li == n - 1 else CP
        wf = jnp.zeros((9, CP, cout_p), jnp.float32)
        wf = wf.at[:, :cin, :cout].set(w.reshape(9, cin, cout))
        bf = jnp.zeros((1, cout_p), jnp.float32).at[0, :cout].set(b)
        packed.append((wf.astype(jnp.bfloat16), bf))
    return packed


# ----------------------------------------------------------------------------
# Forward pass (equivalent of RegressionModel.forward).  x_nchw: (B, Cin, H, W)
# ----------------------------------------------------------------------------
def regression_model_forward(packed_params, x_nchw, num_anchors):
    B, C0, H, W = x_nchw.shape
    CP = packed_params[0][0].shape[1]       # padded hidden channels
    CPO = packed_params[-1][0].shape[2]     # padded output channels

    # NHWC + bf16 + lane-pad input channels to CP in one fused XLA copy.
    x = jnp.transpose(x_nchw, (0, 2, 3, 1)).astype(jnp.bfloat16)
    if C0 < CP:
        x = jnp.pad(x, ((0, 0), (0, 0), (0, 0), (0, CP - C0)))

    kernel = functools.partial(
        _fused_regression_kernel, H=H, W=W, CP=CP, CPO=CPO)

    flat_wb = []
    in_specs = [pl.BlockSpec((1, H, W, CP), lambda b: (b, 0, 0, 0))]
    for (wp, bp) in packed_params:
        flat_wb += [wp, bp]
        # Constant index maps: the pipeliner never re-fetches these blocks.
        in_specs += [pl.BlockSpec(wp.shape, lambda b: (0, 0, 0)),
                     pl.BlockSpec(bp.shape, lambda b: (0, 0))]

    out = pl.pallas_call(
        kernel,
        out_shape=jax.ShapeDtypeStruct((B, H, W, CPO), jnp.bfloat16),
        grid_spec=pltpu.PrefetchScalarGridSpec(
            num_scalar_prefetch=0,
            grid=(B,),
            in_specs=in_specs,
            out_specs=pl.BlockSpec((1, H, W, CPO), lambda b: (b, 0, 0, 0)),
            scratch_shapes=[pltpu.VMEM((H + 2, W, CP), jnp.bfloat16)],
        ),
        compiler_params=pltpu.CompilerParams(
            dimension_semantics=("parallel",),
            vmem_limit_bytes=48 * 1024 * 1024),   # v7x-safe explicit limit
    )(x, *flat_wb)

    out = out[..., :num_anchors * 4].astype(jnp.float32)   # drop lane padding
    return out.reshape(B, H * W * num_anchors, 4)


# ----------------------------------------------------------------------------
# Pure-JAX f32 reference (for correctness check)
# ----------------------------------------------------------------------------
def reference_forward(params, x_nchw):
    out = x_nchw
    for i, (w, b) in enumerate(params):
        out = jax.lax.conv_general_dilated(
            out, w, window_strides=(1, 1), padding="SAME",
            dimension_numbers=("NCHW", "HWIO", "NCHW"))
        out = out + b[None, :, None, None]
        if i < len(params) - 1:
            out = jnp.maximum(out, 0.0)
    out = jnp.transpose(out, (0, 2, 3, 1))
    return out.reshape(x_nchw.shape[0], -1, 4)


def init_params(key, num_features_in, num_anchors, feature_size):
    dims = [
        (num_features_in, feature_size),
        (feature_size, feature_size),
        (feature_size, feature_size),
        (feature_size, feature_size),
        (feature_size, num_anchors * 4),
    ]
    params = []
    for cin, cout in dims:
        key, k1, k2 = jax.random.split(key, 3)
        fan_in = cin * 9
        w = jax.random.normal(k1, (3, 3, cin, cout), jnp.float32) / jnp.sqrt(fan_in)
        b = jax.random.normal(k2, (cout,), jnp.float32) * 0.01
        params.append((w, b))
    return params


# ----------------------------------------------------------------------------
if __name__ == "__main__":
    # Small shapes consistent with the module (channels reduced for speed).
    B, Cin, H, W = 2, 4, 16, 16
    feature_size = 32
    num_anchors = 9                      # module default -> 36 output channels

    key = jax.random.PRNGKey(0)
    key, kx = jax.random.split(key)
    x = jax.random.normal(kx, (B, Cin, H, W), jnp.float32)

    params = init_params(key, Cin, num_anchors, feature_size)
    # Round weights to bf16 (and back) once so the kernel-vs-reference diff
    # measures structural correctness rather than bf16 weight quantization.
    params = [(w.astype(jnp.bfloat16).astype(jnp.float32), b)
              for (w, b) in params]

    CP = _round_up(max(Cin, feature_size), 128)      # padded hidden channels
    CPO = _round_up(num_anchors * 4, 128)            # padded output channels
    packed = pack_params(params, CP, CPO)

    out = regression_model_forward(packed, x, num_anchors)
    out = jax.block_until_ready(out)

    ref = reference_forward(params, x)
    ref = jax.block_until_ready(ref)

    assert out.shape == (B, H * W * num_anchors, 4), out.shape
    max_err = float(jnp.max(jnp.abs(out - ref)))
    # bf16 activations between all five layers + bf16 output writeback
    # (f32 MXU accumulation throughout) -> a few e-2 tolerance.
    assert jnp.allclose(out, ref, rtol=4e-2, atol=4e-2), max_err

    print("KERNEL_OK")
</pallas_src>

<mosaic_0001>
module attributes {stable_mosaic.version = 11 : i64} {
  func.func @_fused_regression_kernel(%arg0: i32, %arg1: memref<1x16x16x128xbf16, #tpu.memory_space<vmem>>, %arg2: memref<9x128x128xbf16, #tpu.memory_space<vmem>>, %arg3: memref<1x128xf32, #tpu.memory_space<vmem>>, %arg4: memref<9x128x128xbf16, #tpu.memory_space<vmem>>, %arg5: memref<1x128xf32, #tpu.memory_space<vmem>>, %arg6: memref<9x128x128xbf16, #tpu.memory_space<vmem>>, %arg7: memref<1x128xf32, #tpu.memory_space<vmem>>, %arg8: memref<9x128x128xbf16, #tpu.memory_space<vmem>>, %arg9: memref<1x128xf32, #tpu.memory_space<vmem>>, %arg10: memref<9x128x128xbf16, #tpu.memory_space<vmem>>, %arg11: memref<1x128xf32, #tpu.memory_space<vmem>>, %arg12: memref<1x16x16x128xbf16, #tpu.memory_space<vmem>>, %arg13: memref<18x16x128xbf16, #tpu.memory_space<vmem>>) attributes {dimension_semantics = [#tpu.dimension_semantics<parallel>], iteration_bounds = array<i64: 2>, scalar_prefetch = 0 : i64, scratch_operands = 1 : i64, tpu.core_type = #tpu.core_type<tc>, window_params = [{transform_indices = @transform_0, window_bounds = array<i64: 1, 16, 16, 128>}, {pipeline_mode = #tpu.pipeline_mode<synchronous>, transform_indices = @transform_1, window_bounds = array<i64: 9, 128, 128>}, {pipeline_mode = #tpu.pipeline_mode<synchronous>, transform_indices = @transform_2, window_bounds = array<i64: 1, 128>}, {pipeline_mode = #tpu.pipeline_mode<synchronous>, transform_indices = @transform_3, window_bounds = array<i64: 9, 128, 128>}, {pipeline_mode = #tpu.pipeline_mode<synchronous>, transform_indices = @transform_4, window_bounds = array<i64: 1, 128>}, {pipeline_mode = #tpu.pipeline_mode<synchronous>, transform_indices = @transform_5, window_bounds = array<i64: 9, 128, 128>}, {pipeline_mode = #tpu.pipeline_mode<synchronous>, transform_indices = @transform_6, window_bounds = array<i64: 1, 128>}, {pipeline_mode = #tpu.pipeline_mode<synchronous>, transform_indices = @transform_7, window_bounds = array<i64: 9, 128, 128>}, {pipeline_mode = #tpu.pipeline_mode<synchronous>, transform_indices = @transform_8, window_bounds = array<i64: 1, 128>}, {pipeline_mode = #tpu.pipeline_mode<synchronous>, transform_indices = @transform_9, window_bounds = array<i64: 9, 128, 128>}, {pipeline_mode = #tpu.pipeline_mode<synchronous>, transform_indices = @transform_10, window_bounds = array<i64: 1, 128>}, {transform_indices = @transform_11, window_bounds = array<i64: 1, 16, 16, 128>}]} {
    %cst = arith.constant 0.000000e+00 : bf16
    %0 = vector.broadcast %cst : bf16 to vector<16x128xbf16>
    %c0 = arith.constant 0 : index
    %c0_0 = arith.constant 0 : index
    %c0_1 = arith.constant 0 : index
    %1 = vector.load %arg13[%c0, %c0_0, %c0_1] : memref<18x16x128xbf16, #tpu.memory_space<vmem>>, vector<1x16x128xbf16>
    %2 = vector.shape_cast %1 : vector<1x16x128xbf16> to vector<16x128xbf16>
    %3 = vector.shape_cast %0 : vector<16x128xbf16> to vector<1x16x128xbf16>
    tpu.vector_store %arg13[%c0, %c0_0, %c0_1], %3 {strides = array<i32>} : memref<18x16x128xbf16, #tpu.memory_space<vmem>>, vector<1x16x128xbf16>,
    %c17 = arith.constant 17 : index
    %c0_2 = arith.constant 0 : index
    %c0_3 = arith.constant 0 : index
    %4 = vector.load %arg13[%c17, %c0_2, %c0_3] : memref<18x16x128xbf16, #tpu.memory_space<vmem>>, vector<1x16x128xbf16>
    %5 = vector.shape_cast %4 : vector<1x16x128xbf16> to vector<16x128xbf16>
    %6 = vector.shape_cast %0 : vector<16x128xbf16> to vector<1x16x128xbf16>
    tpu.vector_store %arg13[%c17, %c0_2, %c0_3], %6 {strides = array<i32>} : memref<18x16x128xbf16, #tpu.memory_space<vmem>>, vector<1x16x128xbf16>,
    %cst_4 = arith.constant 0.000000e+00 : bf16
    %7 = vector.broadcast %cst_4 : bf16 to vector<16x1x128xbf16>
    %c0_5 = arith.constant 0 : index
    %c0_6 = arith.constant 0 : index
    %c0_7 = arith.constant 0 : index
    %c0_8 = arith.constant 0 : index
    %8 = vector.load %arg1[%c0_5, %c0_6, %c0_7, %c0_8] : memref<1x16x16x128xbf16, #tpu.memory_space<vmem>>, vector<1x16x16x128xbf16>
    %9 = vector.shape_cast %8 : vector<1x16x16x128xbf16> to vector<16x16x128xbf16>
    %c1 = arith.constant 1 : index
    %c0_9 = arith.constant 0 : index
    %c0_10 = arith.constant 0 : index
    %10 = vector.load %arg13[%c1, %c0_9, %c0_10] : memref<18x16x128xbf16, #tpu.memory_space<vmem>>, vector<16x16x128xbf16>
    tpu.vector_store %arg13[%c1, %c0_9, %c0_10], %9 {strides = array<i32>} : memref<18x16x128xbf16, #tpu.memory_space<vmem>>, vector<16x16x128xbf16>,
    %c0_11 = arith.constant 0 : index
    %c0_12 = arith.constant 0 : index
    %c0_13 = arith.constant 0 : index
    %11 = vector.load %arg13[%c0_11, %c0_12, %c0_13] : memref<18x16x128xbf16, #tpu.memory_space<vmem>>, vector<16x16x128xbf16>
    %12 = vector.extract_strided_slice %11 {offsets = [0, 0, 0], sizes = [16, 15, 128], strides = [1, 1, 1]} : vector<16x16x128xbf16> to vector<16x15x128xbf16>
    %13 = tpu.concatenate %7, %12 in 1 : vector<16x1x128xbf16>, vector<16x15x128xbf16> -> vector<16x16x128xbf16>
    %14 = vector.extract_strided_slice %11 {offsets = [0, 1, 0], sizes = [16, 15, 128], strides = [1, 1, 1]} : vector<16x16x128xbf16> to vector<16x15x128xbf16>
    %15 = tpu.concatenate %14, %7 in 1 : vector<16x15x128xbf16>, vector<16x1x128xbf16> -> vector<16x16x128xbf16>
    %16 = vector.shape_cast %13 : vector<16x16x128xbf16> to vector<256x128xbf16>
    %c0_14 = arith.constant 0 : index
    %c0_15 = arith.constant 0 : index
    %c0_16 = arith.constant 0 : index
    %17 = vector.load %arg2[%c0_14, %c0_15, %c0_16] : memref<9x128x128xbf16, #tpu.memory_space<vmem>>, vector<1x128x128xbf16>
    %18 = vector.shape_cast %17 : vector<1x128x128xbf16> to vector<128x128xbf16>
    %cst_17 = arith.constant dense<0.000000e+00> : vector<256x128xf32>
    %19 = tpu.matmul %16, %18, %cst_17 {dimension_numbers = #tpu.dot_dimension_numbers<[1], [0], [0], [1], [0, 0, 1, 1], [], []>} : vector<256x128xbf16>, vector<128x128xbf16>, vector<256x128xf32> -> vector<256x128xf32>
    %20 = vector.shape_cast %11 : vector<16x16x128xbf16> to vector<256x128xbf16>
    %c1_18 = arith.constant 1 : index
    %c0_19 = arith.constant 0 : index
    %c0_20 = arith.constant 0 : index
    %21 = vector.load %arg2[%c1_18, %c0_19, %c0_20] : memref<9x128x128xbf16, #tpu.memory_space<vmem>>, vector<1x128x128xbf16>
    %22 = vector.shape_cast %21 : vector<1x128x128xbf16> to vector<128x128xbf16>
    %cst_21 = arith.constant dense<0.000000e+00> : vector<256x128xf32>
    %23 = tpu.matmul %20, %22, %cst_21 {dimension_numbers = #tpu.dot_dimension_numbers<[1], [0], [0], [1], [0, 0, 1, 1], [], []>} : vector<256x128xbf16>, vector<128x128xbf16>, vector<256x128xf32> -> vector<256x128xf32>
    %24 = arith.addf %19, %23 : vector<256x128xf32>
    %25 = vector.shape_cast %15 : vector<16x16x128xbf16> to vector<256x128xbf16>
    %c2 = arith.constant 2 : index
    %c0_22 = arith.constant 0 : index
    %c0_23 = arith.constant 0 : index
    %26 = vector.load %arg2[%c2, %c0_22, %c0_23] : memref<9x128x128xbf16, #tpu.memory_space<vmem>>, vector<1x128x128xbf16>
    %27 = vector.shape_cast %26 : vector<1x128x128xbf16> to vector<128x128xbf16>
    %cst_24 = arith.constant dense<0.000000e+00> : vector<256x128xf32>
    %28 = tpu.matmul %25, %27, %cst_24 {dimension_numbers = #tpu.dot_dimension_numbers<[1], [0], [0], [1], [0, 0, 1, 1], [], []>} : vector<256x128xbf16>, vector<128x128xbf16>, vector<256x128xf32> -> vector<256x128xf32>
    %29 = arith.addf %24, %28 : vector<256x128xf32>
    %c1_25 = arith.constant 1 : index
    %c0_26 = arith.constant 0 : index
    %c0_27 = arith.constant 0 : index
    %30 = vector.load %arg13[%c1_25, %c0_26, %c0_27] : memref<18x16x128xbf16, #tpu.memory_space<vmem>>, vector<16x16x128xbf16>
    %31 = vector.extract_strided_slice %30 {offsets = [0, 0, 0], sizes = [16, 15, 128], strides = [1, 1, 1]} : vector<16x16x128xbf16> to vector<16x15x128xbf16>
    %32 = tpu.concatenate %7, %31 in 1 : vector<16x1x128xbf16>, vector<16x15x128xbf16> -> vector<16x16x128xbf16>
    %33 = vector.extract_strided_slice %30 {offsets = [0, 1, 0], sizes = [16, 15, 128], strides = [1, 1, 1]} : vector<16x16x128xbf16> to vector<16x15x128xbf16>
    %34 = tpu.concatenate %33, %7 in 1 : vector<16x15x128xbf16>, vector<16x1x128xbf16> -> vector<16x16x128xbf16>
    %35 = vector.shape_cast %32 : vector<16x16x128xbf16> to vector<256x128xbf16>
    %c3 = arith.constant 3 : index
    %c0_28 = arith.constant 0 : index
    %c0_29 = arith.constant 0 : index
    %36 = vector.load %arg2[%c3, %c0_28, %c0_29] : memref<9x128x128xbf16, #tpu.memory_space<vmem>>, vector<1x128x128xbf16>
    %37 = vector.shape_cast %36 : vector<1x128x128xbf16> to vector<128x128xbf16>
    %cst_30 = arith.constant dense<0.000000e+00> : vector<256x128xf32>
    %38 = tpu.matmul %35, %37, %cst_30 {dimension_numbers = #tpu.dot_dimension_numbers<[1], [0], [0], [1], [0, 0, 1, 1], [], []>} : vector<256x128xbf16>, vector<128x128xbf16>, vector<256x128xf32> -> vector<256x128xf32>
    %39 = arith.addf %29, %38 : vector<256x128xf32>
    %40 = vector.shape_cast %30 : vector<16x16x128xbf16> to vector<256x128xbf16>
    %c4 = arith.constant 4 : index
    %c0_31 = arith.constant 0 : index
    %c0_32 = arith.constant 0 : index
    %41 = vector.load %arg2[%c4, %c0_31, %c0_32] : memref<9x128x128xbf16, #tpu.memory_space<vmem>>, vector<1x128x128xbf16>
    %42 = vector.shape_cast %41 : vector<1x128x128xbf16> to vector<128x128xbf16>
    %cst_33 = arith.constant dense<0.000000e+00> : vector<256x128xf32>
    %43 = tpu.matmul %40, %42, %cst_33 {dimension_numbers = #tpu.dot_dimension_numbers<[1], [0], [0], [1], [0, 0, 1, 1], [], []>} : vector<256x128xbf16>, vector<128x128xbf16>, vector<256x128xf32> -> vector<256x128xf32>
    %44 = arith.addf %39, %43 : vector<256x128xf32>
    %45 = vector.shape_cast %34 : vector<16x16x128xbf16> to vector<256x128xbf16>
    %c5 = arith.constant 5 : index
    %c0_34 = arith.constant 0 : index
    %c0_35 = arith.constant 0 : index
    %46 = vector.load %arg2[%c5, %c0_34, %c0_35] : memref<9x128x128xbf16, #tpu.memory_space<vmem>>, vector<1x128x128xbf16>
    %47 = vector.shape_cast %46 : vector<1x128x128xbf16> to vector<128x128xbf16>
    %cst_36 = arith.constant dense<0.000000e+00> : vector<256x128xf32>
    %48 = tpu.matmul %45, %47, %cst_36 {dimension_numbers = #tpu.dot_dimension_numbers<[1], [0], [0], [1], [0, 0, 1, 1], [], []>} : vector<256x128xbf16>, vector<128x128xbf16>, vector<256x128xf32> -> vector<256x128xf32>
    %49 = arith.addf %44, %48 : vector<256x128xf32>
    %c2_37 = arith.constant 2 : index
    %c0_38 = arith.constant 0 : index
    %c0_39 = arith.constant 0 : index
    %50 = vector.load %arg13[%c2_37, %c0_38, %c0_39] : memref<18x16x128xbf16, #tpu.memory_space<vmem>>, vector<16x16x128xbf16>
    %51 = vector.extract_strided_slice %50 {offsets = [0, 0, 0], sizes = [16, 15, 128], strides = [1, 1, 1]} : vector<16x16x128xbf16> to vector<16x15x128xbf16>
    %52 = tpu.concatenate %7, %51 in 1 : vector<16x1x128xbf16>, vector<16x15x128xbf16> -> vector<16x16x128xbf16>
    %53 = vector.extract_strided_slice %50 {offsets = [0, 1, 0], sizes = [16, 15, 128], strides = [1, 1, 1]} : vector<16x16x128xbf16> to vector<16x15x128xbf16>
    %54 = tpu.concatenate %53, %7 in 1 : vector<16x15x128xbf16>, vector<16x1x128xbf16> -> vector<16x16x128xbf16>
    %55 = vector.shape_cast %52 : vector<16x16x128xbf16> to vector<256x128xbf16>
    %c6 = arith.constant 6 : index
    %c0_40 = arith.constant 0 : index
    %c0_41 = arith.constant 0 : index
    %56 = vector.load %arg2[%c6, %c0_40, %c0_41] : memref<9x128x128xbf16, #tpu.memory_space<vmem>>, vector<1x128x128xbf16>
    %57 = vector.shape_cast %56 : vector<1x128x128xbf16> to vector<128x128xbf16>
    %cst_42 = arith.constant dense<0.000000e+00> : vector<256x128xf32>
    %58 = tpu.matmul %55, %57, %cst_42 {dimension_numbers = #tpu.dot_dimension_numbers<[1], [0], [0], [1], [0, 0, 1, 1], [], []>} : vector<256x128xbf16>, vector<128x128xbf16>, vector<256x128xf32> -> vector<256x128xf32>
    %59 = arith.addf %49, %58 : vector<256x128xf32>
    %60 = vector.shape_cast %50 : vector<16x16x128xbf16> to vector<256x128xbf16>
    %c7 = arith.constant 7 : index
    %c0_43 = arith.constant 0 : index
    %c0_44 = arith.constant 0 : index
    %61 = vector.load %arg2[%c7, %c0_43, %c0_44] : memref<9x128x128xbf16, #tpu.memory_space<vmem>>, vector<1x128x128xbf16>
    %62 = vector.shape_cast %61 : vector<1x128x128xbf16> to vector<128x128xbf16>
    %cst_45 = arith.constant dense<0.000000e+00> : vector<256x128xf32>
    %63 = tpu.matmul %60, %62, %cst_45 {dimension_numbers = #tpu.dot_dimension_numbers<[1], [0], [0], [1], [0, 0, 1, 1], [], []>} : vector<256x128xbf16>, vector<128x128xbf16>, vector<256x128xf32> -> vector<256x128xf32>
    %64 = arith.addf %59, %63 : vector<256x128xf32>
    %65 = vector.shape_cast %54 : vector<16x16x128xbf16> to vector<256x128xbf16>
    %c8 = arith.constant 8 : index
    %c0_46 = arith.constant 0 : index
    %c0_47 = arith.constant 0 : index
    %66 = vector.load %arg2[%c8, %c0_46, %c0_47] : memref<9x128x128xbf16, #tpu.memory_space<vmem>>, vector<1x128x128xbf16>
    %67 = vector.shape_cast %66 : vector<1x128x128xbf16> to vector<128x128xbf16>
    %cst_48 = arith.constant dense<0.000000e+00> : vector<256x128xf32>
    %68 = tpu.matmul %65, %67, %cst_48 {dimension_numbers = #tpu.dot_dimension_numbers<[1], [0], [0], [1], [0, 0, 1, 1], [], []>} : vector<256x128xbf16>, vector<128x128xbf16>, vector<256x128xf32> -> vector<256x128xf32>
    %69 = arith.addf %64, %68 : vector<256x128xf32>
    %c0_49 = arith.constant 0 : index
    %c0_50 = arith.constant 0 : index
    %70 = vector.load %arg3[%c0_49, %c0_50] : memref<1x128xf32, #tpu.memory_space<vmem>>, vector<1x128xf32>
    %71 = vector.broadcast %70 : vector<1x128xf32> to vector<256x128xf32>
    %72 = arith.addf %69, %71 : vector<256x128xf32>
    %cst_51 = arith.constant 0.000000e+00 : f32
    %73 = vector.broadcast %cst_51 : f32 to vector<256x128xf32>
    %74 = arith.maximumf %72, %73 : vector<256x128xf32>
    %75 = vector.shape_cast %74 : vector<256x128xf32> to vector<16x16x128xf32>
    %76 = arith.truncf %75 : vector<16x16x128xf32> to vector<16x16x128xbf16>
    %c1_52 = arith.constant 1 : index
    %c0_53 = arith.constant 0 : index
    %c0_54 = arith.constant 0 : index
    %77 = vector.load %arg13[%c1_52, %c0_53, %c0_54] : memref<18x16x128xbf16, #tpu.memory_space<vmem>>, vector<16x16x128xbf16>
    tpu.vector_store %arg13[%c1_52, %c0_53, %c0_54], %76 {strides = array<i32>} : memref<18x16x128xbf16, #tpu.memory_space<vmem>>, vector<16x16x128xbf16>,
    %c0_55 = arith.constant 0 : index
    %c0_56 = arith.constant 0 : index
    %c0_57 = arith.constant 0 : index
    %78 = vector.load %arg13[%c0_55, %c0_56, %c0_57] : memref<18x16x128xbf16, #tpu.memory_space<vmem>>, vector<16x16x128xbf16>
    %79 = vector.extract_strided_slice %78 {offsets = [0, 0, 0], sizes = [16, 15, 128], strides = [1, 1, 1]} : vector<16x16x128xbf16> to vector<16x15x128xbf16>
    %80 = tpu.concatenate %7, %79 in 1 : vector<16x1x128xbf16>, vector<16x15x128xbf16> -> vector<16x16x128xbf16>
    %81 = vector.extract_strided_slice %78 {offsets = [0, 1, 0], sizes = [16, 15, 128], strides = [1, 1, 1]} : vector<16x16x128xbf16> to vector<16x15x128xbf16>
    %82 = tpu.concatenate %81, %7 in 1 : vector<16x15x128xbf16>, vector<16x1x128xbf16> -> vector<16x16x128xbf16>
    %83 = vector.shape_cast %80 : vector<16x16x128xbf16> to vector<256x128xbf16>
    %c0_58 = arith.constant 0 : index
    %c0_59 = arith.constant 0 : index
    %c0_60 = arith.constant 0 : index
    %84 = vector.load %arg4[%c0_58, %c0_59, %c0_60] : memref<9x128x128xbf16, #tpu.memory_space<vmem>>, vector<1x128x128xbf16>
    %85 = vector.shape_cast %84 : vector<1x128x128xbf16> to vector<128x128xbf16>
    %cst_61 = arith.constant dense<0.000000e+00> : vector<256x128xf32>
    %86 = tpu.matmul %83, %85, %cst_61 {dimension_numbers = #tpu.dot_dimension_numbers<[1], [0], [0], [1], [0, 0, 1, 1], [], []>} : vector<256x128xbf16>, vector<128x128xbf16>, vector<256x128xf32> -> vector<256x128xf32>
    %87 = vector.shape_cast %78 : vector<16x16x128xbf16> to vector<256x128xbf16>
    %c1_62 = arith.constant 1 : index
    %c0_63 = arith.constant 0 : index
    %c0_64 = arith.constant 0 : index
    %88 = vector.load %arg4[%c1_62, %c0_63, %c0_64] : memref<9x128x128xbf16, #tpu.memory_space<vmem>>, vector<1x128x128xbf16>
    %89 = vector.shape_cast %88 : vector<1x128x128xbf16> to vector<128x128xbf16>
    %cst_65 = arith.constant dense<0.000000e+00> : vector<256x128xf32>
    %90 = tpu.matmul %87, %89, %cst_65 {dimension_numbers = #tpu.dot_dimension_numbers<[1], [0], [0], [1], [0, 0, 1, 1], [], []>} : vector<256x128xbf16>, vector<128x128xbf16>, vector<256x128xf32> -> vector<256x128xf32>
    %91 = arith.addf %86, %90 : vector<256x128xf32>
    %92 = vector.shape_cast %82 : vector<16x16x128xbf16> to vector<256x128xbf16>
    %c2_66 = arith.constant 2 : index
    %c0_67 = arith.constant 0 : index
    %c0_68 = arith.constant 0 : index
    %93 = vector.load %arg4[%c2_66, %c0_67, %c0_68] : memref<9x128x128xbf16, #tpu.memory_space<vmem>>, vector<1x128x128xbf16>
    %94 = vector.shape_cast %93 : vector<1x128x128xbf16> to vector<128x128xbf16>
    %cst_69 = arith.constant dense<0.000000e+00> : vector<256x128xf32>
    %95 = tpu.matmul %92, %94, %cst_69 {dimension_numbers = #tpu.dot_dimension_numbers<[1], [0], [0], [1], [0, 0, 1, 1], [], []>} : vector<256x128xbf16>, vector<128x128xbf16>, vector<256x128xf32> -> vector<256x128xf32>
    %96 = arith.addf %91, %95 : vector<256x128xf32>
    %c1_70 = arith.constant 1 : index
    %c0_71 = arith.constant 0 : index
    %c0_72 = arith.constant 0 : index
    %97 = vector.load %arg13[%c1_70, %c0_71, %c0_72] : memref<18x16x128xbf16, #tpu.memory_space<vmem>>, vector<16x16x128xbf16>
    %98 = vector.extract_strided_slice %97 {offsets = [0, 0, 0], sizes = [16, 15, 128], strides = [1, 1, 1]} : vector<16x16x128xbf16> to vector<16x15x128xbf16>
    %99 = tpu.concatenate %7, %98 in 1 : vector<16x1x128xbf16>, vector<16x15x128xbf16> -> vector<16x16x128xbf16>
    %100 = vector.extract_strided_slice %97 {offsets = [0, 1, 0], sizes = [16, 15, 128], strides = [1, 1, 1]} : vector<16x16x128xbf16> to vector<16x15x128xbf16>
    %101 = tpu.concatenate %100, %7 in 1 : vector<16x15x128xbf16>, vector<16x1x128xbf16> -> vector<16x16x128xbf16>
    %102 = vector.shape_cast %99 : vector<16x16x128xbf16> to vector<256x128xbf16>
    %c3_73 = arith.constant 3 : index
    %c0_74 = arith.constant 0 : index
    %c0_75 = arith.constant 0 : index
    %103 = vector.load %arg4[%c3_73, %c0_74, %c0_75] : memref<9x128x128xbf16, #tpu.memory_space<vmem>>, vector<1x128x128xbf16>
    %104 = vector.shape_cast %103 : vector<1x128x128xbf16> to vector<128x128xbf16>
    %cst_76 = arith.constant dense<0.000000e+00> : vector<256x128xf32>
    %105 = tpu.matmul %102, %104, %cst_76 {dimension_numbers = #tpu.dot_dimension_numbers<[1], [0], [0], [1], [0, 0, 1, 1], [], []>} : vector<256x128xbf16>, vector<128x128xbf16>, vector<256x128xf32> -> vector<256x128xf32>
    %106 = arith.addf %96, %105 : vector<256x128xf32>
    %107 = vector.shape_cast %97 : vector<16x16x128xbf16> to vector<256x128xbf16>
    %c4_77 = arith.constant 4 : index
    %c0_78 = arith.constant 0 : index
    %c0_79 = arith.constant 0 : index
    %108 = vector.load %arg4[%c4_77, %c0_78, %c0_79] : memref<9x128x128xbf16, #tpu.memory_space<vmem>>, vector<1x128x128xbf16>
    %109 = vector.shape_cast %108 : vector<1x128x128xbf16> to vector<128x128xbf16>
    %cst_80 = arith.constant dense<0.000000e+00> : vector<256x128xf32>
    %110 = tpu.matmul %107, %109, %cst_80 {dimension_numbers = #tpu.dot_dimension_numbers<[1], [0], [0], [1], [0, 0, 1, 1], [], []>} : vector<256x128xbf16>, vector<128x128xbf16>, vector<256x128xf32> -> vector<256x128xf32>
    %111 = arith.addf %106, %110 : vector<256x128xf32>
    %112 = vector.shape_cast %101 : vector<16x16x128xbf16> to vector<256x128xbf16>
    %c5_81 = arith.constant 5 : index
    %c0_82 = arith.constant 0 : index
    %c0_83 = arith.constant 0 : index
    %113 = vector.load %arg4[%c5_81, %c0_82, %c0_83] : memref<9x128x128xbf16, #tpu.memory_space<vmem>>, vector<1x128x128xbf16>
    %114 = vector.shape_cast %113 : vector<1x128x128xbf16> to vector<128x128xbf16>
    %cst_84 = arith.constant dense<0.000000e+00> : vector<256x128xf32>
    %115 = tpu.matmul %112, %114, %cst_84 {dimension_numbers = #tpu.dot_dimension_numbers<[1], [0], [0], [1], [0, 0, 1, 1], [], []>} : vector<256x128xbf16>, vector<128x128xbf16>, vector<256x128xf32> -> vector<256x128xf32>
    %116 = arith.addf %111, %115 : vector<256x128xf32>
    %c2_85 = arith.constant 2 : index
    %c0_86 = arith.constant 0 : index
    %c0_87 = arith.constant 0 : index
    %117 = vector.load %arg13[%c2_85, %c0_86, %c0_87] : memref<18x16x128xbf16, #tpu.memory_space<vmem>>, vector<16x16x128xbf16>
    %118 = vector.extract_strided_slice %117 {offsets = [0, 0, 0], sizes = [16, 15, 128], strides = [1, 1, 1]} : vector<16x16x128xbf16> to vector<16x15x128xbf16>
    %119 = tpu.concatenate %7, %118 in 1 : vector<16x1x128xbf16>, vector<16x15x128xbf16> -> vector<16x16x128xbf16>
    %120 = vector.extract_strided_slice %117 {offsets = [0, 1, 0], sizes = [16, 15, 128], strides = [1, 1, 1]} : vector<16x16x128xbf16> to vector<16x15x128xbf16>
    %121 = tpu.concatenate %120, %7 in 1 : vector<16x15x128xbf16>, vector<16x1x128xbf16> -> vector<16x16x128xbf16>
    %122 = vector.shape_cast %119 : vector<16x16x128xbf16> to vector<256x128xbf16>
    %c6_88 = arith.constant 6 : index
    %c0_89 = arith.constant 0 : index
    %c0_90 = arith.constant 0 : index
    %123 = vector.load %arg4[%c6_88, %c0_89, %c0_90] : memref<9x128x128xbf16, #tpu.memory_space<vmem>>, vector<1x128x128xbf16>
    %124 = vector.shape_cast %123 : vector<1x128x128xbf16> to vector<128x128xbf16>
    %cst_91 = arith.constant dense<0.000000e+00> : vector<256x128xf32>
    %125 = tpu.matmul %122, %124, %cst_91 {dimension_numbers = #tpu.dot_dimension_numbers<[1], [0], [0], [1], [0, 0, 1, 1], [], []>} : vector<256x128xbf16>, vector<128x128xbf16>, vector<256x128xf32> -> vector<256x128xf32>
    %126 = arith.addf %116, %125 : vector<256x128xf32>
    %127 = vector.shape_cast %117 : vector<16x16x128xbf16> to vector<256x128xbf16>
    %c7_92 = arith.constant 7 : index
    %c0_93 = arith.constant 0 : index
    %c0_94 = arith.constant 0 : index
    %128 = vector.load %arg4[%c7_92, %c0_93, %c0_94] : memref<9x128x128xbf16, #tpu.memory_space<vmem>>, vector<1x128x128xbf16>
    %129 = vector.shape_cast %128 : vector<1x128x128xbf16> to vector<128x128xbf16>
    %cst_95 = arith.constant dense<0.000000e+00> : vector<256x128xf32>
    %130 = tpu.matmul %127, %129, %cst_95 {dimension_numbers = #tpu.dot_dimension_numbers<[1], [0], [0], [1], [0, 0, 1, 1], [], []>} : vector<256x128xbf16>, vector<128x128xbf16>, vector<256x128xf32> -> vector<256x128xf32>
    %131 = arith.addf %126, %130 : vector<256x128xf32>
    %132 = vector.shape_cast %121 : vector<16x16x128xbf16> to vector<256x128xbf16>
    %c8_96 = arith.constant 8 : index
    %c0_97 = arith.constant 0 : index
    %c0_98 = arith.constant 0 : index
    %133 = vector.load %arg4[%c8_96, %c0_97, %c0_98] : memref<9x128x128xbf16, #tpu.memory_space<vmem>>, vector<1x128x128xbf16>
    %134 = vector.shape_cast %133 : vector<1x128x128xbf16> to vector<128x128xbf16>
    %cst_99 = arith.constant dense<0.000000e+00> : vector<256x128xf32>
    %135 = tpu.matmul %132, %134, %cst_99 {dimension_numbers = #tpu.dot_dimension_numbers<[1], [0], [0], [1], [0, 0, 1, 1], [], []>} : vector<256x128xbf16>, vector<128x128xbf16>, vector<256x128xf32> -> vector<256x128xf32>
    %136 = arith.addf %131, %135 : vector<256x128xf32>
    %c0_100 = arith.constant 0 : index
    %c0_101 = arith.constant 0 : index
    %137 = vector.load %arg5[%c0_100, %c0_101] : memref<1x128xf32, #tpu.memory_space<vmem>>, vector<1x128xf32>
    %138 = vector.broadcast %137 : vector<1x128xf32> to vector<256x128xf32>
    %139 = arith.addf %136, %138 : vector<256x128xf32>
    %cst_102 = arith.constant 0.000000e+00 : f32
    %140 = vector.broadcast %cst_102 : f32 to vector<256x128xf32>
    %141 = arith.maximumf %139, %140 : vector<256x128xf32>
    %142 = vector.shape_cast %141 : vector<256x128xf32> to vector<16x16x128xf32>
    %143 = arith.truncf %142 : vector<16x16x128xf32> to vector<16x16x128xbf16>
    %c1_103 = arith.constant 1 : index
    %c0_104 = arith.constant 0 : index
    %c0_105 = arith.constant 0 : index
    %144 = vector.load %arg13[%c1_103, %c0_104, %c0_105] : memref<18x16x128xbf16, #tpu.memory_space<vmem>>, vector<16x16x128xbf16>
    tpu.vector_store %arg13[%c1_103, %c0_104, %c0_105], %143 {strides = array<i32>} : memref<18x16x128xbf16, #tpu.memory_space<vmem>>, vector<16x16x128xbf16>,
    %c0_106 = arith.constant 0 : index
    %c0_107 = arith.constant 0 : index
    %c0_108 = arith.constant 0 : index
    %145 = vector.load %arg13[%c0_106, %c0_107, %c0_108] : memref<18x16x128xbf16, #tpu.memory_space<vmem>>, vector<16x16x128xbf16>
    %146 = vector.extract_strided_slice %145 {offsets = [0, 0, 0], sizes = [16, 15, 128], strides = [1, 1, 1]} : vector<16x16x128xbf16> to vector<16x15x128xbf16>
    %147 = tpu.concatenate %7, %146 in 1 : vector<16x1x128xbf16>, vector<16x15x128xbf16> -> vector<16x16x128xbf16>
    %148 = vector.extract_strided_slice %145 {offsets = [0, 1, 0], sizes = [16, 15, 128], strides = [1, 1, 1]} : vector<16x16x128xbf16> to vector<16x15x128xbf16>
    %149 = tpu.concatenate %148, %7 in 1 : vector<16x15x128xbf16>, vector<16x1x128xbf16> -> vector<16x16x128xbf16>
    %150 = vector.shape_cast %147 : vector<16x16x128xbf16> to vector<256x128xbf16>
    %c0_109 = arith.constant 0 : index
    %c0_110 = arith.constant 0 : index
    %c0_111 = arith.constant 0 : index
    %151 = vector.load %arg6[%c0_109, %c0_110, %c0_111] : memref<9x128x128xbf16, #tpu.memory_space<vmem>>, vector<1x128x128xbf16>
    %152 = vector.shape_cast %151 : vector<1x128x128xbf16> to vector<128x128xbf16>
    %cst_112 = arith.constant dense<0.000000e+00> : vector<256x128xf32>
    %153 = tpu.matmul %150, %152, %cst_112 {dimension_numbers = #tpu.dot_dimension_numbers<[1], [0], [0], [1], [0, 0, 1, 1], [], []>} : vector<256x128xbf16>, vector<128x128xbf16>, vector<256x128xf32> -> vector<256x128xf32>
    %154 = vector.shape_cast %145 : vector<16x16x128xbf16> to vector<256x128xbf16>
    %c1_113 = arith.constant 1 : index
    %c0_114 = arith.constant 0 : index
    %c0_115 = arith.constant 0 : index
    %155 = vector.load %arg6[%c1_113, %c0_114, %c0_115] : memref<9x128x128xbf16, #tpu.memory_space<vmem>>, vector<1x128x128xbf16>
    %156 = vector.shape_cast %155 : vector<1x128x128xbf16> to vector<128x128xbf16>
    %cst_116 = arith.constant dense<0.000000e+00> : vector<256x128xf32>
    %157 = tpu.matmul %154, %156, %cst_116 {dimension_numbers = #tpu.dot_dimension_numbers<[1], [0], [0], [1], [0, 0, 1, 1], [], []>} : vector<256x128xbf16>, vector<128x128xbf16>, vector<256x128xf32> -> vector<256x128xf32>
    %158 = arith.addf %153, %157 : vector<256x128xf32>
    %159 = vector.shape_cast %149 : vector<16x16x128xbf16> to vector<256x128xbf16>
    %c2_117 = arith.constant 2 : index
    %c0_118 = arith.constant 0 : index
    %c0_119 = arith.constant 0 : index
    %160 = vector.load %arg6[%c2_117, %c0_118, %c0_119] : memref<9x128x128xbf16, #tpu.memory_space<vmem>>, vector<1x128x128xbf16>
    %161 = vector.shape_cast %160 : vector<1x128x128xbf16> to vector<128x128xbf16>
    %cst_120 = arith.constant dense<0.000000e+00> : vector<256x128xf32>
    %162 = tpu.matmul %159, %161, %cst_120 {dimension_numbers = #tpu.dot_dimension_numbers<[1], [0], [0], [1], [0, 0, 1, 1], [], []>} : vector<256x128xbf16>, vector<128x128xbf16>, vector<256x128xf32> -> vector<256x128xf32>
    %163 = arith.addf %158, %162 : vector<256x128xf32>
    %c1_121 = arith.constant 1 : index
    %c0_122 = arith.constant 0 : index
    %c0_123 = arith.constant 0 : index
    %164 = vector.load %arg13[%c1_121, %c0_122, %c0_123] : memref<18x16x128xbf16, #tpu.memory_space<vmem>>, vector<16x16x128xbf16>
    %165 = vector.extract_strided_slice %164 {offsets = [0, 0, 0], sizes = [16, 15, 128], strides = [1, 1, 1]} : vector<16x16x128xbf16> to vector<16x15x128xbf16>
    %166 = tpu.concatenate %7, %165 in 1 : vector<16x1x128xbf16>, vector<16x15x128xbf16> -> vector<16x16x128xbf16>
    %167 = vector.extract_strided_slice %164 {offsets = [0, 1, 0], sizes = [16, 15, 128], strides = [1, 1, 1]} : vector<16x16x128xbf16> to vector<16x15x128xbf16>
    %168 = tpu.concatenate %167, %7 in 1 : vector<16x15x128xbf16>, vector<16x1x128xbf16> -> vector<16x16x128xbf16>
    %169 = vector.shape_cast %166 : vector<16x16x128xbf16> to vector<256x128xbf16>
    %c3_124 = arith.constant 3 : index
    %c0_125 = arith.constant 0 : index
    %c0_126 = arith.constant 0 : index
    %170 = vector.load %arg6[%c3_124, %c0_125, %c0_126] : memref<9x128x128xbf16, #tpu.memory_space<vmem>>, vector<1x128x128xbf16>
    %171 = vector.shape_cast %170 : vector<1x128x128xbf16> to vector<128x128xbf16>
    %cst_127 = arith.constant dense<0.000000e+00> : vector<256x128xf32>
    %172 = tpu.matmul %169, %171, %cst_127 {dimension_numbers = #tpu.dot_dimension_numbers<[1], [0], [0], [1], [0, 0, 1, 1], [], []>} : vector<256x128xbf16>, vector<128x128xbf16>, vector<256x128xf32> -> vector<256x128xf32>
    %173 = arith.addf %163, %172 : vector<256x128xf32>
    %174 = vector.shape_cast %164 : vector<16x16x128xbf16> to vector<256x128xbf16>
    %c4_128 = arith.constant 4 : index
    %c0_129 = arith.constant 0 : index
    %c0_130 = arith.constant 0 : index
    %175 = vector.load %arg6[%c4_128, %c0_129, %c0_130] : memref<9x128x128xbf16, #tpu.memory_space<vmem>>, vector<1x128x128xbf16>
    %176 = vector.shape_cast %175 : vector<1x128x128xbf16> to vector<128x128xbf16>
    %cst_131 = arith.constant dense<0.000000e+00> : vector<256x128xf32>
    %177 = tpu.matmul %174, %176, %cst_131 {dimension_numbers = #tpu.dot_dimension_numbers<[1], [0], [0], [1], [0, 0, 1, 1], [], []>} : vector<256x128xbf16>, vector<128x128xbf16>, vector<256x128xf32> -> vector<256x128xf32>
    %178 = arith.addf %173, %177 : vector<256x128xf32>
    %179 = vector.shape_cast %168 : vector<16x16x128xbf16> to vector<256x128xbf16>
    %c5_132 = arith.constant 5 : index
    %c0_133 = arith.constant 0 : index
    %c0_134 = arith.constant 0 : index
    %180 = vector.load %arg6[%c5_132, %c0_133, %c0_134] : memref<9x128x128xbf16, #tpu.memory_space<vmem>>, vector<1x128x128xbf16>
    %181 = vector.shape_cast %180 : vector<1x128x128xbf16> to vector<128x128xbf16>
    %cst_135 = arith.constant dense<0.000000e+00> : vector<256x128xf32>
    %182 = tpu.matmul %179, %181, %cst_135 {dimension_numbers = #tpu.dot_dimension_numbers<[1], [0], [0], [1], [0, 0, 1, 1], [], []>} : vector<256x128xbf16>, vector<128x128xbf16>, vector<256x128xf32> -> vector<256x128xf32>
    %183 = arith.addf %178, %182 : vector<256x128xf32>
    %c2_136 = arith.constant 2 : index
    %c0_137 = arith.constant 0 : index
    %c0_138 = arith.constant 0 : index
    %184 = vector.load %arg13[%c2_136, %c0_137, %c0_138] : memref<18x16x128xbf16, #tpu.memory_space<vmem>>, vector<16x16x128xbf16>
    %185 = vector.extract_strided_slice %184 {offsets = [0, 0, 0], sizes = [16, 15, 128], strides = [1, 1, 1]} : vector<16x16x128xbf16> to vector<16x15x128xbf16>
    %186 = tpu.concatenate %7, %185 in 1 : vector<16x1x128xbf16>, vector<16x15x128xbf16> -> vector<16x16x128xbf16>
    %187 = vector.extract_strided_slice %184 {offsets = [0, 1, 0], sizes = [16, 15, 128], strides = [1, 1, 1]} : vector<16x16x128xbf16> to vector<16x15x128xbf16>
    %188 = tpu.concatenate %187, %7 in 1 : vector<16x15x128xbf16>, vector<16x1x128xbf16> -> vector<16x16x128xbf16>
    %189 = vector.shape_cast %186 : vector<16x16x128xbf16> to vector<256x128xbf16>
    %c6_139 = arith.constant 6 : index
    %c0_140 = arith.constant 0 : index
    %c0_141 = arith.constant 0 : index
    %190 = vector.load %arg6[%c6_139, %c0_140, %c0_141] : memref<9x128x128xbf16, #tpu.memory_space<vmem>>, vector<1x128x128xbf16>
    %191 = vector.shape_cast %190 : vector<1x128x128xbf16> to vector<128x128xbf16>
    %cst_142 = arith.constant dense<0.000000e+00> : vector<256x128xf32>
    %192 = tpu.matmul %189, %191, %cst_142 {dimension_numbers = #tpu.dot_dimension_numbers<[1], [0], [0], [1], [0, 0, 1, 1], [], []>} : vector<256x128xbf16>, vector<128x128xbf16>, vector<256x128xf32> -> vector<256x128xf32>
    %193 = arith.addf %183, %192 : vector<256x128xf32>
    %194 = vector.shape_cast %184 : vector<16x16x128xbf16> to vector<256x128xbf16>
    %c7_143 = arith.constant 7 : index
    %c0_144 = arith.constant 0 : index
    %c0_145 = arith.constant 0 : index
    %195 = vector.load %arg6[%c7_143, %c0_144, %c0_145] : memref<9x128x128xbf16, #tpu.memory_space<vmem>>, vector<1x128x128xbf16>
    %196 = vector.shape_cast %195 : vector<1x128x128xbf16> to vector<128x128xbf16>
    %cst_146 = arith.constant dense<0.000000e+00> : vector<256x128xf32>
    %197 = tpu.matmul %194, %196, %cst_146 {dimension_numbers = #tpu.dot_dimension_numbers<[1], [0], [0], [1], [0, 0, 1, 1], [], []>} : vector<256x128xbf16>, vector<128x128xbf16>, vector<256x128xf32> -> vector<256x128xf32>
    %198 = arith.addf %193, %197 : vector<256x128xf32>
    %199 = vector.shape_cast %188 : vector<16x16x128xbf16> to vector<256x128xbf16>
    %c8_147 = arith.constant 8 : index
    %c0_148 = arith.constant 0 : index
    %c0_149 = arith.constant 0 : index
    %200 = vector.load %arg6[%c8_147, %c0_148, %c0_149] : memref<9x128x128xbf16, #tpu.memory_space<vmem>>, vector<1x128x128xbf16>
    %201 = vector.shape_cast %200 : vector<1x128x128xbf16> to vector<128x128xbf16>
    %cst_150 = arith.constant dense<0.000000e+00> : vector<256x128xf32>
    %202 = tpu.matmul %199, %201, %cst_150 {dimension_numbers = #tpu.dot_dimension_numbers<[1], [0], [0], [1], [0, 0, 1, 1], [], []>} : vector<256x128xbf16>, vector<128x128xbf16>, vector<256x128xf32> -> vector<256x128xf32>
    %203 = arith.addf %198, %202 : vector<256x128xf32>
    %c0_151 = arith.constant 0 : index
    %c0_152 = arith.constant 0 : index
    %204 = vector.load %arg7[%c0_151, %c0_152] : memref<1x128xf32, #tpu.memory_space<vmem>>, vector<1x128xf32>
    %205 = vector.broadcast %204 : vector<1x128xf32> to vector<256x128xf32>
    %206 = arith.addf %203, %205 : vector<256x128xf32>
    %cst_153 = arith.constant 0.000000e+00 : f32
    %207 = vector.broadcast %cst_153 : f32 to vector<256x128xf32>
    %208 = arith.maximumf %206, %207 : vector<256x128xf32>
    %209 = vector.shape_cast %208 : vector<256x128xf32> to vector<16x16x128xf32>
    %210 = arith.truncf %209 : vector<16x16x128xf32> to vector<16x16x128xbf16>
    %c1_154 = arith.constant 1 : index
    %c0_155 = arith.constant 0 : index
    %c0_156 = arith.constant 0 : index
    %211 = vector.load %arg13[%c1_154, %c0_155, %c0_156] : memref<18x16x128xbf16, #tpu.memory_space<vmem>>, vector<16x16x128xbf16>
    tpu.vector_store %arg13[%c1_154, %c0_155, %c0_156], %210 {strides = array<i32>} : memref<18x16x128xbf16, #tpu.memory_space<vmem>>, vector<16x16x128xbf16>,
    %c0_157 = arith.constant 0 : index
    %c0_158 = arith.constant 0 : index
    %c0_159 = arith.constant 0 : index
    %212 = vector.load %arg13[%c0_157, %c0_158, %c0_159] : memref<18x16x128xbf16, #tpu.memory_space<vmem>>, vector<16x16x128xbf16>
    %213 = vector.extract_strided_slice %212 {offsets = [0, 0, 0], sizes = [16, 15, 128], strides = [1, 1, 1]} : vector<16x16x128xbf16> to vector<16x15x128xbf16>
    %214 = tpu.concatenate %7, %213 in 1 : vector<16x1x128xbf16>, vector<16x15x128xbf16> -> vector<16x16x128xbf16>
    %215 = vector.extract_strided_slice %212 {offsets = [0, 1, 0], sizes = [16, 15, 128], strides = [1, 1, 1]} : vector<16x16x128xbf16> to vector<16x15x128xbf16>
    %216 = tpu.concatenate %215, %7 in 1 : vector<16x15x128xbf16>, vector<16x1x128xbf16> -> vector<16x16x128xbf16>
    %217 = vector.shape_cast %214 : vector<16x16x128xbf16> to vector<256x128xbf16>
    %c0_160 = arith.constant 0 : index
    %c0_161 = arith.constant 0 : index
    %c0_162 = arith.constant 0 : index
    %218 = vector.load %arg8[%c0_160, %c0_161, %c0_162] : memref<9x128x128xbf16, #tpu.memory_space<vmem>>, vector<1x128x128xbf16>
    %219 = vector.shape_cast %218 : vector<1x128x128xbf16> to vector<128x128xbf16>
    %cst_163 = arith.constant dense<0.000000e+00> : vector<256x128xf32>
    %220 = tpu.matmul %217, %219, %cst_163 {dimension_numbers = #tpu.dot_dimension_numbers<[1], [0], [0], [1], [0, 0, 1, 1], [], []>} : vector<256x128xbf16>, vector<128x128xbf16>, vector<256x128xf32> -> vector<256x128xf32>
    %221 = vector.shape_cast %212 : vector<16x16x128xbf16> to vector<256x128xbf16>
    %c1_164 = arith.constant 1 : index
    %c0_165 = arith.constant 0 : index
    %c0_166 = arith.constant 0 : index
    %222 = vector.load %arg8[%c1_164, %c0_165, %c0_166] : memref<9x128x128xbf16, #tpu.memory_space<vmem>>, vector<1x128x128xbf16>
    %223 = vector.shape_cast %222 : vector<1x128x128xbf16> to vector<128x128xbf16>
    %cst_167 = arith.constant dense<0.000000e+00> : vector<256x128xf32>
    %224 = tpu.matmul %221, %223, %cst_167 {dimension_numbers = #tpu.dot_dimension_numbers<[1], [0], [0], [1], [0, 0, 1, 1], [], []>} : vector<256x128xbf16>, vector<128x128xbf16>, vector<256x128xf32> -> vector<256x128xf32>
    %225 = arith.addf %220, %224 : vector<256x128xf32>
    %226 = vector.shape_cast %216 : vector<16x16x128xbf16> to vector<256x128xbf16>
    %c2_168 = arith.constant 2 : index
    %c0_169 = arith.constant 0 : index
    %c0_170 = arith.constant 0 : index
    %227 = vector.load %arg8[%c2_168, %c0_169, %c0_170] : memref<9x128x128xbf16, #tpu.memory_space<vmem>>, vector<1x128x128xbf16>
    %228 = vector.shape_cast %227 : vector<1x128x128xbf16> to vector<128x128xbf16>
    %cst_171 = arith.constant dense<0.000000e+00> : vector<256x128xf32>
    %229 = tpu.matmul %226, %228, %cst_171 {dimension_numbers = #tpu.dot_dimension_numbers<[1], [0], [0], [1], [0, 0, 1, 1], [], []>} : vector<256x128xbf16>, vector<128x128xbf16>, vector<256x128xf32> -> vector<256x128xf32>
    %230 = arith.addf %225, %229 : vector<256x128xf32>
    %c1_172 = arith.constant 1 : index
    %c0_173 = arith.constant 0 : index
    %c0_174 = arith.constant 0 : index
    %231 = vector.load %arg13[%c1_172, %c0_173, %c0_174] : memref<18x16x128xbf16, #tpu.memory_space<vmem>>, vector<16x16x128xbf16>
    %232 = vector.extract_strided_slice %231 {offsets = [0, 0, 0], sizes = [16, 15, 128], strides = [1, 1, 1]} : vector<16x16x128xbf16> to vector<16x15x128xbf16>
    %233 = tpu.concatenate %7, %232 in 1 : vector<16x1x128xbf16>, vector<16x15x128xbf16> -> vector<16x16x128xbf16>
    %234 = vector.extract_strided_slice %231 {offsets = [0, 1, 0], sizes = [16, 15, 128], strides = [1, 1, 1]} : vector<16x16x128xbf16> to vector<16x15x128xbf16>
    %235 = tpu.concatenate %234, %7 in 1 : vector<16x15x128xbf16>, vector<16x1x128xbf16> -> vector<16x16x128xbf16>
    %236 = vector.shape_cast %233 : vector<16x16x128xbf16> to vector<256x128xbf16>
    %c3_175 = arith.constant 3 : index
    %c0_176 = arith.constant 0 : index
    %c0_177 = arith.constant 0 : index
    %237 = vector.load %arg8[%c3_175, %c0_176, %c0_177] : memref<9x128x128xbf16, #tpu.memory_space<vmem>>, vector<1x128x128xbf16>
    %238 = vector.shape_cast %237 : vector<1x128x128xbf16> to vector<128x128xbf16>
    %cst_178 = arith.constant dense<0.000000e+00> : vector<256x128xf32>
    %239 = tpu.matmul %236, %238, %cst_178 {dimension_numbers = #tpu.dot_dimension_numbers<[1], [0], [0], [1], [0, 0, 1, 1], [], []>} : vector<256x128xbf16>, vector<128x128xbf16>, vector<256x128xf32> -> vector<256x128xf32>
    %240 = arith.addf %230, %239 : vector<256x128xf32>
    %241 = vector.shape_cast %231 : vector<16x16x128xbf16> to vector<256x128xbf16>
    %c4_179 = arith.constant 4 : index
    %c0_180 = arith.constant 0 : index
    %c0_181 = arith.constant 0 : index
    %242 = vector.load %arg8[%c4_179, %c0_180, %c0_181] : memref<9x128x128xbf16, #tpu.memory_space<vmem>>, vector<1x128x128xbf16>
    %243 = vector.shape_cast %242 : vector<1x128x128xbf16> to vector<128x128xbf16>
    %cst_182 = arith.constant dense<0.000000e+00> : vector<256x128xf32>
    %244 = tpu.matmul %241, %243, %cst_182 {dimension_numbers = #tpu.dot_dimension_numbers<[1], [0], [0], [1], [0, 0, 1, 1], [], []>} : vector<256x128xbf16>, vector<128x128xbf16>, vector<256x128xf32> -> vector<256x128xf32>
    %245 = arith.addf %240, %244 : vector<256x128xf32>
    %246 = vector.shape_cast %235 : vector<16x16x128xbf16> to vector<256x128xbf16>
    %c5_183 = arith.constant 5 : index
    %c0_184 = arith.constant 0 : index
    %c0_185 = arith.constant 0 : index
    %247 = vector.load %arg8[%c5_183, %c0_184, %c0_185] : memref<9x128x128xbf16, #tpu.memory_space<vmem>>, vector<1x128x128xbf16>
    %248 = vector.shape_cast %247 : vector<1x128x128xbf16> to vector<128x128xbf16>
    %cst_186 = arith.constant dense<0.000000e+00> : vector<256x128xf32>
    %249 = tpu.matmul %246, %248, %cst_186 {dimension_numbers = #tpu.dot_dimension_numbers<[1], [0], [0], [1], [0, 0, 1, 1], [], []>} : vector<256x128xbf16>, vector<128x128xbf16>, vector<256x128xf32> -> vector<256x128xf32>
    %250 = arith.addf %245, %249 : vector<256x128xf32>
    %c2_187 = arith.constant 2 : index
    %c0_188 = arith.constant 0 : index
    %c0_189 = arith.constant 0 : index
    %251 = vector.load %arg13[%c2_187, %c0_188, %c0_189] : memref<18x16x128xbf16, #tpu.memory_space<vmem>>, vector<16x16x128xbf16>
    %252 = vector.extract_strided_slice %251 {offsets = [0, 0, 0], sizes = [16, 15, 128], strides = [1, 1, 1]} : vector<16x16x128xbf16> to vector<16x15x128xbf16>
    %253 = tpu.concatenate %7, %252 in 1 : vector<16x1x128xbf16>, vector<16x15x128xbf16> -> vector<16x16x128xbf16>
    %254 = vector.extract_strided_slice %251 {offsets = [0, 1, 0], sizes = [16, 15, 128], strides = [1, 1, 1]} : vector<16x16x128xbf16> to vector<16x15x128xbf16>
    %255 = tpu.concatenate %254, %7 in 1 : vector<16x15x128xbf16>, vector<16x1x128xbf16> -> vector<16x16x128xbf16>
    %256 = vector.shape_cast %253 : vector<16x16x128xbf16> to vector<256x128xbf16>
    %c6_190 = arith.constant 6 : index
    %c0_191 = arith.constant 0 : index
    %c0_192 = arith.constant 0 : index
    %257 = vector.load %arg8[%c6_190, %c0_191, %c0_192] : memref<9x128x128xbf16, #tpu.memory_space<vmem>>, vector<1x128x128xbf16>
    %258 = vector.shape_cast %257 : vector<1x128x128xbf16> to vector<128x128xbf16>
    %cst_193 = arith.constant dense<0.000000e+00> : vector<256x128xf32>
    %259 = tpu.matmul %256, %258, %cst_193 {dimension_numbers = #tpu.dot_dimension_numbers<[1], [0], [0], [1], [0, 0, 1, 1], [], []>} : vector<256x128xbf16>, vector<128x128xbf16>, vector<256x128xf32> -> vector<256x128xf32>
    %260 = arith.addf %250, %259 : vector<256x128xf32>
    %261 = vector.shape_cast %251 : vector<16x16x128xbf16> to vector<256x128xbf16>
    %c7_194 = arith.constant 7 : index
    %c0_195 = arith.constant 0 : index
    %c0_196 = arith.constant 0 : index
    %262 = vector.load %arg8[%c7_194, %c0_195, %c0_196] : memref<9x128x128xbf16, #tpu.memory_space<vmem>>, vector<1x128x128xbf16>
    %263 = vector.shape_cast %262 : vector<1x128x128xbf16> to vector<128x128xbf16>
    %cst_197 = arith.constant dense<0.000000e+00> : vector<256x128xf32>
    %264 = tpu.matmul %261, %263, %cst_197 {dimension_numbers = #tpu.dot_dimension_numbers<[1], [0], [0], [1], [0, 0, 1, 1], [], []>} : vector<256x128xbf16>, vector<128x128xbf16>, vector<256x128xf32> -> vector<256x128xf32>
    %265 = arith.addf %260, %264 : vector<256x128xf32>
    %266 = vector.shape_cast %255 : vector<16x16x128xbf16> to vector<256x128xbf16>
    %c8_198 = arith.constant 8 : index
    %c0_199 = arith.constant 0 : index
    %c0_200 = arith.constant 0 : index
    %267 = vector.load %arg8[%c8_198, %c0_199, %c0_200] : memref<9x128x128xbf16, #tpu.memory_space<vmem>>, vector<1x128x128xbf16>
    %268 = vector.shape_cast %267 : vector<1x128x128xbf16> to vector<128x128xbf16>
    %cst_201 = arith.constant dense<0.000000e+00> : vector<256x128xf32>
    %269 = tpu.matmul %266, %268, %cst_201 {dimension_numbers = #tpu.dot_dimension_numbers<[1], [0], [0], [1], [0, 0, 1, 1], [], []>} : vector<256x128xbf16>, vector<128x128xbf16>, vector<256x128xf32> -> vector<256x128xf32>
    %270 = arith.addf %265, %269 : vector<256x128xf32>
    %c0_202 = arith.constant 0 : index
    %c0_203 = arith.constant 0 : index
    %271 = vector.load %arg9[%c0_202, %c0_203] : memref<1x128xf32, #tpu.memory_space<vmem>>, vector<1x128xf32>
    %272 = vector.broadcast %271 : vector<1x128xf32> to vector<256x128xf32>
    %273 = arith.addf %270, %272 : vector<256x128xf32>
    %cst_204 = arith.constant 0.000000e+00 : f32
    %274 = vector.broadcast %cst_204 : f32 to vector<256x128xf32>
    %275 = arith.maximumf %273, %274 : vector<256x128xf32>
    %276 = vector.shape_cast %275 : vector<256x128xf32> to vector<16x16x128xf32>
    %277 = arith.truncf %276 : vector<16x16x128xf32> to vector<16x16x128xbf16>
    %c1_205 = arith.constant 1 : index
    %c0_206 = arith.constant 0 : index
    %c0_207 = arith.constant 0 : index
    %278 = vector.load %arg13[%c1_205, %c0_206, %c0_207] : memref<18x16x128xbf16, #tpu.memory_space<vmem>>, vector<16x16x128xbf16>
    tpu.vector_store %arg13[%c1_205, %c0_206, %c0_207], %277 {strides = array<i32>} : memref<18x16x128xbf16, #tpu.memory_space<vmem>>, vector<16x16x128xbf16>,
    %c0_208 = arith.constant 0 : index
    %c0_209 = arith.constant 0 : index
    %c0_210 = arith.constant 0 : index
    %279 = vector.load %arg13[%c0_208, %c0_209, %c0_210] : memref<18x16x128xbf16, #tpu.memory_space<vmem>>, vector<16x16x128xbf16>
    %280 = vector.extract_strided_slice %279 {offsets = [0, 0, 0], sizes = [16, 15, 128], strides = [1, 1, 1]} : vector<16x16x128xbf16> to vector<16x15x128xbf16>
    %281 = tpu.concatenate %7, %280 in 1 : vector<16x1x128xbf16>, vector<16x15x128xbf16> -> vector<16x16x128xbf16>
    %282 = vector.extract_strided_slice %279 {offsets = [0, 1, 0], sizes = [16, 15, 128], strides = [1, 1, 1]} : vector<16x16x128xbf16> to vector<16x15x128xbf16>
    %283 = tpu.concatenate %282, %7 in 1 : vector<16x15x128xbf16>, vector<16x1x128xbf16> -> vector<16x16x128xbf16>
    %284 = vector.shape_cast %281 : vector<16x16x128xbf16> to vector<256x128xbf16>
    %c0_211 = arith.constant 0 : index
    %c0_212 = arith.constant 0 : index
    %c0_213 = arith.constant 0 : index
    %285 = vector.load %arg10[%c0_211, %c0_212, %c0_213] : memref<9x128x128xbf16, #tpu.memory_space<vmem>>, vector<1x128x128xbf16>
    %286 = vector.shape_cast %285 : vector<1x128x128xbf16> to vector<128x128xbf16>
    %cst_214 = arith.constant dense<0.000000e+00> : vector<256x128xf32>
    %287 = tpu.matmul %284, %286, %cst_214 {dimension_numbers = #tpu.dot_dimension_numbers<[1], [0], [0], [1], [0, 0, 1, 1], [], []>} : vector<256x128xbf16>, vector<128x128xbf16>, vector<256x128xf32> -> vector<256x128xf32>
    %288 = vector.shape_cast %279 : vector<16x16x128xbf16> to vector<256x128xbf16>
    %c1_215 = arith.constant 1 : index
    %c0_216 = arith.constant 0 : index
    %c0_217 = arith.constant 0 : index
    %289 = vector.load %arg10[%c1_215, %c0_216, %c0_217] : memref<9x128x128xbf16, #tpu.memory_space<vmem>>, vector<1x128x128xbf16>
    %290 = vector.shape_cast %289 : vector<1x128x128xbf16> to vector<128x128xbf16>
    %cst_218 = arith.constant dense<0.000000e+00> : vector<256x128xf32>
    %291 = tpu.matmul %288, %290, %cst_218 {dimension_numbers = #tpu.dot_dimension_numbers<[1], [0], [0], [1], [0, 0, 1, 1], [], []>} : vector<256x128xbf16>, vector<128x128xbf16>, vector<256x128xf32> -> vector<256x128xf32>
    %292 = arith.addf %287, %291 : vector<256x128xf32>
    %293 = vector.shape_cast %283 : vector<16x16x128xbf16> to vector<256x128xbf16>
    %c2_219 = arith.constant 2 : index
    %c0_220 = arith.constant 0 : index
    %c0_221 = arith.constant 0 : index
    %294 = vector.load %arg10[%c2_219, %c0_220, %c0_221] : memref<9x128x128xbf16, #tpu.memory_space<vmem>>, vector<1x128x128xbf16>
    %295 = vector.shape_cast %294 : vector<1x128x128xbf16> to vector<128x128xbf16>
    %cst_222 = arith.constant dense<0.000000e+00> : vector<256x128xf32>
    %296 = tpu.matmul %293, %295, %cst_222 {dimension_numbers = #tpu.dot_dimension_numbers<[1], [0], [0], [1], [0, 0, 1, 1], [], []>} : vector<256x128xbf16>, vector<128x128xbf16>, vector<256x128xf32> -> vector<256x128xf32>
    %297 = arith.addf %292, %296 : vector<256x128xf32>
    %c1_223 = arith.constant 1 : index
    %c0_224 = arith.constant 0 : index
    %c0_225 = arith.constant 0 : index
    %298 = vector.load %arg13[%c1_223, %c0_224, %c0_225] : memref<18x16x128xbf16, #tpu.memory_space<vmem>>, vector<16x16x128xbf16>
    %299 = vector.extract_strided_slice %298 {offsets = [0, 0, 0], sizes = [16, 15, 128], strides = [1, 1, 1]} : vector<16x16x128xbf16> to vector<16x15x128xbf16>
    %300 = tpu.concatenate %7, %299 in 1 : vector<16x1x128xbf16>, vector<16x15x128xbf16> -> vector<16x16x128xbf16>
    %301 = vector.extract_strided_slice %298 {offsets = [0, 1, 0], sizes = [16, 15, 128], strides = [1, 1, 1]} : vector<16x16x128xbf16> to vector<16x15x128xbf16>
    %302 = tpu.concatenate %301, %7 in 1 : vector<16x15x128xbf16>, vector<16x1x128xbf16> -> vector<16x16x128xbf16>
    %303 = vector.shape_cast %300 : vector<16x16x128xbf16> to vector<256x128xbf16>
    %c3_226 = arith.constant 3 : index
    %c0_227 = arith.constant 0 : index
    %c0_228 = arith.constant 0 : index
    %304 = vector.load %arg10[%c3_226, %c0_227, %c0_228] : memref<9x128x128xbf16, #tpu.memory_space<vmem>>, vector<1x128x128xbf16>
    %305 = vector.shape_cast %304 : vector<1x128x128xbf16> to vector<128x128xbf16>
    %cst_229 = arith.constant dense<0.000000e+00> : vector<256x128xf32>
    %306 = tpu.matmul %303, %305, %cst_229 {dimension_numbers = #tpu.dot_dimension_numbers<[1], [0], [0], [1], [0, 0, 1, 1], [], []>} : vector<256x128xbf16>, vector<128x128xbf16>, vector<256x128xf32> -> vector<256x128xf32>
    %307 = arith.addf %297, %306 : vector<256x128xf32>
    %308 = vector.shape_cast %298 : vector<16x16x128xbf16> to vector<256x128xbf16>
    %c4_230 = arith.constant 4 : index
    %c0_231 = arith.constant 0 : index
    %c0_232 = arith.constant 0 : index
    %309 = vector.load %arg10[%c4_230, %c0_231, %c0_232] : memref<9x128x128xbf16, #tpu.memory_space<vmem>>, vector<1x128x128xbf16>
    %310 = vector.shape_cast %309 : vector<1x128x128xbf16> to vector<128x128xbf16>
    %cst_233 = arith.constant dense<0.000000e+00> : vector<256x128xf32>
    %311 = tpu.matmul %308, %310, %cst_233 {dimension_numbers = #tpu.dot_dimension_numbers<[1], [0], [0], [1], [0, 0, 1, 1], [], []>} : vector<256x128xbf16>, vector<128x128xbf16>, vector<256x128xf32> -> vector<256x128xf32>
    %312 = arith.addf %307, %311 : vector<256x128xf32>
    %313 = vector.shape_cast %302 : vector<16x16x128xbf16> to vector<256x128xbf16>
    %c5_234 = arith.constant 5 : index
    %c0_235 = arith.constant 0 : index
    %c0_236 = arith.constant 0 : index
    %314 = vector.load %arg10[%c5_234, %c0_235, %c0_236] : memref<9x128x128xbf16, #tpu.memory_space<vmem>>, vector<1x128x128xbf16>
    %315 = vector.shape_cast %314 : vector<1x128x128xbf16> to vector<128x128xbf16>
    %cst_237 = arith.constant dense<0.000000e+00> : vector<256x128xf32>
    %316 = tpu.matmul %313, %315, %cst_237 {dimension_numbers = #tpu.dot_dimension_numbers<[1], [0], [0], [1], [0, 0, 1, 1], [], []>} : vector<256x128xbf16>, vector<128x128xbf16>, vector<256x128xf32> -> vector<256x128xf32>
    %317 = arith.addf %312, %316 : vector<256x128xf32>
    %c2_238 = arith.constant 2 : index
    %c0_239 = arith.constant 0 : index
    %c0_240 = arith.constant 0 : index
    %318 = vector.load %arg13[%c2_238, %c0_239, %c0_240] : memref<18x16x128xbf16, #tpu.memory_space<vmem>>, vector<16x16x128xbf16>
    %319 = vector.extract_strided_slice %318 {offsets = [0, 0, 0], sizes = [16, 15, 128], strides = [1, 1, 1]} : vector<16x16x128xbf16> to vector<16x15x128xbf16>
    %320 = tpu.concatenate %7, %319 in 1 : vector<16x1x128xbf16>, vector<16x15x128xbf16> -> vector<16x16x128xbf16>
    %321 = vector.extract_strided_slice %318 {offsets = [0, 1, 0], sizes = [16, 15, 128], strides = [1, 1, 1]} : vector<16x16x128xbf16> to vector<16x15x128xbf16>
    %322 = tpu.concatenate %321, %7 in 1 : vector<16x15x128xbf16>, vector<16x1x128xbf16> -> vector<16x16x128xbf16>
    %323 = vector.shape_cast %320 : vector<16x16x128xbf16> to vector<256x128xbf16>
    %c6_241 = arith.constant 6 : index
    %c0_242 = arith.constant 0 : index
    %c0_243 = arith.constant 0 : index
    %324 = vector.load %arg10[%c6_241, %c0_242, %c0_243] : memref<9x128x128xbf16, #tpu.memory_space<vmem>>, vector<1x128x128xbf16>
    %325 = vector.shape_cast %324 : vector<1x128x128xbf16> to vector<128x128xbf16>
    %cst_244 = arith.constant dense<0.000000e+00> : vector<256x128xf32>
    %326 = tpu.matmul %323, %325, %cst_244 {dimension_numbers = #tpu.dot_dimension_numbers<[1], [0], [0], [1], [0, 0, 1, 1], [], []>} : vector<256x128xbf16>, vector<128x128xbf16>, vector<256x128xf32> -> vector<256x128xf32>
    %327 = arith.addf %317, %326 : vector<256x128xf32>
    %328 = vector.shape_cast %318 : vector<16x16x128xbf16> to vector<256x128xbf16>
    %c7_245 = arith.constant 7 : index
    %c0_246 = arith.constant 0 : index
    %c0_247 = arith.constant 0 : index
    %329 = vector.load %arg10[%c7_245, %c0_246, %c0_247] : memref<9x128x128xbf16, #tpu.memory_space<vmem>>, vector<1x128x128xbf16>
    %330 = vector.shape_cast %329 : vector<1x128x128xbf16> to vector<128x128xbf16>
    %cst_248 = arith.constant dense<0.000000e+00> : vector<256x128xf32>
    %331 = tpu.matmul %328, %330, %cst_248 {dimension_numbers = #tpu.dot_dimension_numbers<[1], [0], [0], [1], [0, 0, 1, 1], [], []>} : vector<256x128xbf16>, vector<128x128xbf16>, vector<256x128xf32> -> vector<256x128xf32>
    %332 = arith.addf %327, %331 : vector<256x128xf32>
    %333 = vector.shape_cast %322 : vector<16x16x128xbf16> to vector<256x128xbf16>
    %c8_249 = arith.constant 8 : index
    %c0_250 = arith.constant 0 : index
    %c0_251 = arith.constant 0 : index
    %334 = vector.load %arg10[%c8_249, %c0_250, %c0_251] : memref<9x128x128xbf16, #tpu.memory_space<vmem>>, vector<1x128x128xbf16>
    %335 = vector.shape_cast %334 : vector<1x128x128xbf16> to vector<128x128xbf16>
    %cst_252 = arith.constant dense<0.000000e+00> : vector<256x128xf32>
    %336 = tpu.matmul %333, %335, %cst_252 {dimension_numbers = #tpu.dot_dimension_numbers<[1], [0], [0], [1], [0, 0, 1, 1], [], []>} : vector<256x128xbf16>, vector<128x128xbf16>, vector<256x128xf32> -> vector<256x128xf32>
    %337 = arith.addf %332, %336 : vector<256x128xf32>
    %c0_253 = arith.constant 0 : index
    %c0_254 = arith.constant 0 : index
    %338 = vector.load %arg11[%c0_253, %c0_254] : memref<1x128xf32, #tpu.memory_space<vmem>>, vector<1x128xf32>
    %339 = vector.broadcast %338 : vector<1x128xf32> to vector<256x128xf32>
    %340 = arith.addf %337, %339 : vector<256x128xf32>
    %341 = vector.shape_cast %340 : vector<256x128xf32> to vector<16x16x128xf32>
    %342 = arith.truncf %341 : vector<16x16x128xf32> to vector<16x16x128xbf16>
    %c0_255 = arith.constant 0 : index
    %c0_256 = arith.constant 0 : index
    %c0_257 = arith.constant 0 : index
    %c0_258 = arith.constant 0 : index
    %343 = vector.load %arg12[%c0_255, %c0_256, %c0_257, %c0_258] : memref<1x16x16x128xbf16, #tpu.memory_space<vmem>>, vector<1x16x16x128xbf16>
    %344 = vector.shape_cast %343 : vector<1x16x16x128xbf16> to vector<16x16x128xbf16>
    %345 = vector.shape_cast %342 : vector<16x16x128xbf16> to vector<1x16x16x128xbf16>
    tpu.vector_store %arg12[%c0_255, %c0_256, %c0_257, %c0_258], %345 {strides = array<i32>} : memref<1x16x16x128xbf16, #tpu.memory_space<vmem>>, vector<1x16x16x128xbf16>,
    return
  }
  func.func @transform_0(%arg0: i32) -> (i32, i32, i32, i32) {
    %c0_i32 = arith.constant 0 : i32
    %c0_i32_0 = arith.constant 0 : i32
    %c0_i32_1 = arith.constant 0 : i32
    %c0_i32_2 = arith.constant 0 : i32
    return %arg0, %c0_i32, %c0_i32_0, %c0_i32_1 : i32, i32, i32, i32
  }
  func.func @transform_1(%arg0: i32) -> (i32, i32, i32) {
    %c0_i32 = arith.constant 0 : i32
    %c0_i32_0 = arith.constant 0 : i32
    %c0_i32_1 = arith.constant 0 : i32
    %c0_i32_2 = arith.constant 0 : i32
    return %c0_i32, %c0_i32_0, %c0_i32_1 : i32, i32, i32
  }
  func.func @transform_2(%arg0: i32) -> (i32, i32) {
    %c0_i32 = arith.constant 0 : i32
    %c0_i32_0 = arith.constant 0 : i32
    %c0_i32_1 = arith.constant 0 : i32
    return %c0_i32, %c0_i32_0 : i32, i32
  }
  func.func @transform_3(%arg0: i32) -> (i32, i32, i32) {
    %c0_i32 = arith.constant 0 : i32
    %c0_i32_0 = arith.constant 0 : i32
    %c0_i32_1 = arith.constant 0 : i32
    %c0_i32_2 = arith.constant 0 : i32
    return %c0_i32, %c0_i32_0, %c0_i32_1 : i32, i32, i32
  }
  func.func @transform_4(%arg0: i32) -> (i32, i32) {
    %c0_i32 = arith.constant 0 : i32
    %c0_i32_0 = arith.constant 0 : i32
    %c0_i32_1 = arith.constant 0 : i32
    return %c0_i32, %c0_i32_0 : i32, i32
  }
  func.func @transform_5(%arg0: i32) -> (i32, i32, i32) {
    %c0_i32 = arith.constant 0 : i32
    %c0_i32_0 = arith.constant 0 : i32
    %c0_i32_1 = arith.constant 0 : i32
    %c0_i32_2 = arith.constant 0 : i32
    return %c0_i32, %c0_i32_0, %c0_i32_1 : i32, i32, i32
  }
  func.func @transform_6(%arg0: i32) -> (i32, i32) {
    %c0_i32 = arith.constant 0 : i32
    %c0_i32_0 = arith.constant 0 : i32
    %c0_i32_1 = arith.constant 0 : i32
    return %c0_i32, %c0_i32_0 : i32, i32
  }
  func.func @transform_7(%arg0: i32) -> (i32, i32, i32) {
    %c0_i32 = arith.constant 0 : i32
    %c0_i32_0 = arith.constant 0 : i32
    %c0_i32_1 = arith.constant 0 : i32
    %c0_i32_2 = arith.constant 0 : i32
    return %c0_i32, %c0_i32_0, %c0_i32_1 : i32, i32, i32
  }
  func.func @transform_8(%arg0: i32) -> (i32, i32) {
    %c0_i32 = arith.constant 0 : i32
    %c0_i32_0 = arith.constant 0 : i32
    %c0_i32_1 = arith.constant 0 : i32
    return %c0_i32, %c0_i32_0 : i32, i32
  }
  func.func @transform_9(%arg0: i32) -> (i32, i32, i32) {
    %c0_i32 = arith.constant 0 : i32
    %c0_i32_0 = arith.constant 0 : i32
    %c0_i32_1 = arith.constant 0 : i32
    %c0_i32_2 = arith.constant 0 : i32
    return %c0_i32, %c0_i32_0, %c0_i32_1 : i32, i32, i32
  }
  func.func @transform_10(%arg0: i32) -> (i32, i32) {
    %c0_i32 = arith.constant 0 : i32
    %c0_i32_0 = arith.constant 0 : i32
    %c0_i32_1 = arith.constant 0 : i32
    return %c0_i32, %c0_i32_0 : i32, i32
  }
  func.func @transform_11(%arg0: i32) -> (i32, i32, i32, i32) {
    %c0_i32 = arith.constant 0 : i32
    %c0_i32_0 = arith.constant 0 : i32
    %c0_i32_1 = arith.constant 0 : i32
    %c0_i32_2 = arith.constant 0 : i32
    return %arg0, %c0_i32, %c0_i32_0, %c0_i32_1 : i32, i32, i32, i32
  }
}

</mosaic_0001>

<bundles_post_ra>
// kernel: tpu_custom_call.1
= control target key start
LH: loop header
LB: loop body
LE: loop exit
PB: predicated region body
PF: predicated region fallthrough
CT: control target
= control target key end

     0   :  { %s24865_s0 = inlined_call_operand.hbm [shape: bf16[2,16,16,128], index: 0, kind: input, shape index: {}]   ;;  %s24866_s1 = inlined_call_operand.hbm [shape: bf16[9,128,128], index: 1, kind: input, shape index: {}]   ;;  %s24867_s2 = inlined_call_operand.vmem [shape: f32[1,128], index: 2, kind: input, shape index: {}]   ;;  %s24868_s3 = inlined_call_operand.hbm [shape: bf16[9,128,128], index: 3, kind: input, shape index: {}]   ;;  %s24869_s4 = inlined_call_operand.vmem [shape: f32[1,128], index: 4, kind: input, shape index: {}]   ;;  %s24870_s5 = inlined_call_operand.hbm [shape: bf16[9,128,128], index: 5, kind: input, shape index: {}]   ;;  %s24871_s6 = inlined_call_operand.vmem [shape: f32[1,128], index: 6, kind: input, shape index: {}]   ;;  %s24872_s7 = inlined_call_operand.hbm [shape: bf16[9,128,128], index: 7, kind: input, shape index: {}]   ;;  %s24873_s8 = inlined_call_operand.vmem [shape: f32[1,128], index: 8, kind: input, shape index: {}]   ;;  %s24874_s9 = inlined_call_operand.hbm [shape: bf16[9,128,128], index: 9, kind: input, shape index: {}]   ;;  %s24875_s10 = inlined_call_operand.vmem [shape: f32[1,128], index: 10, kind: input, shape index: {}]   ;;  %s24876_s11 = inlined_call_operand.hbm [shape: bf16[2,16,16,128], index: 11, kind: output, shape index: {}]  }
   0x1   :  { %24937 = sst [smem:[#allocation20_spill]] %s24866_s1 }
   0x2   :  { %24938 = sst [smem:[#allocation21_spill]] %s24873_s8 }
   0x3   :  { %24939 = sst [smem:[#allocation22_spill]] %s24875_s10 }
   0x4   :  { %24940 = sst [smem:[#allocation23_spill]] %s24876_s11 }
   0x5   :  { %16 = vsyncpa [#allocation4], 0 }
   0x6   :  { %18 = vsyncpa [#allocation4 + $0x1], 0 }
   0x7   :  { %19 = vsyncpa [#allocation7], 0 }
   0x8   :  { %20 = vsyncpa [#allocation10], 0 }
   0x9   :  { %21 = vsyncpa [#allocation13], 0 }
   0xa   :  { %22 = vsyncpa [#allocation5], 0 }
   0xb   :  { %24 = vsyncpa [#allocation5 + $0x1], 0  ;;  %s21950_s17 = smov 0   ;;  %s21952_s18 = smov 0  }
   0xc   :  { %s21954_s19 = smov 0   ;;  %s21956_s20 = smov 0  }
   0xd LB: > { %s21878_s21 = smov [#allocation6]   ;;  %s21971_s23 = sadd.s32 4294967295, %s21876_s20   ;;  %s21876_s20 = sphi %s21956_s20, %s25025_s20   ;;  %s21872_s19 = sphi %s21954_s19, %s25024_s19   ;;  %s21868_s18 = sphi %s21952_s18, %s25023_s18   ;;  %s21864_s17 = sphi %s21950_s17, %s25022_s17  }
   0xe   : > { %s309_s22 = sshll.u32 %s21878_s21, 4  ;;  %p16026_p0 = scmp.ge.s32.totalorder %s21876_s20, 1  ;;  %s21976_s22 = int_to_ptr.vmem [resolvable:$true] %s309_s22 }
   0xf   : > { %p24878_p1 = scmp.eq.s32.totalorder %s21971_s23, 0  ;;  %p297_p2 = scmp.lt.s32.totalorder %s21876_s20, 3 }
  0x10   : > { %s21879_s25 = smov [#allocation9]   ;;  %s21880_s28 = smov [#allocation8]  }
  0x11   : > { %p21978_p3 = pnand %p16026_p0, %p297_p2  ;;  %s341_s26 = sshll.u32 %s21879_s25, 4  ;;  %s21991_s26 = int_to_ptr.vmem [resolvable:$true] %s341_s26 }
  0x12   : > { %s325_s29 = sshll.u32 %s21880_s28, 4  ;;  %s24943_s1 = sld [smem:[#allocation20_spill]]  ;;  %s21993_s29 = int_to_ptr.vmem [resolvable:$true] %s325_s29 }
  0x13   : > { %s24941_s24 = scalar_select %p21978_p3, 1, 0 }
  0x14   : > { %p21151_p5 = pneg %p21978_p3 }
  0x16   : > { %p21987_p6 = pnand %p21151_p5, %p24878_p1 }
  0x18   : > { %s21628_s13 = scalar_lea.hbm %s24943_s1, 9216  ;;  %p22003_p8 = pneg %p21987_p6 }
  0x19   : > { %p21629_p7 = scmp.ne.s32.totalorder %s24943_s1, %s21628_s13  ;;  %p21635_p11 = scmp.lt.u32.totalorder %s21628_s13, %s24943_s1 }
  0x1b   : > { %p21631_p9 = pnand %p22003_p8, %p21629_p7 }
  0x1d   : > { %p21632_p10 = pneg %p21631_p9 }
  0x1f   : > { %p21637_p12 = pnand %p21635_p11, %p21632_p10 }
  0x21   : > { %21640 = shalt.err (!%p21637_p12)
}
  0x22   : > { %s21641_s28 = scalar_lea.vmem %s21976_s22, 9216  ;;  %p21649_p5 = scmp.lt.s32.totalorder %s21976_s22, %s21976_s22 }
  0x23   : > { %p21642_p13 = scmp.ne.s32.totalorder %s21976_s22, %s21641_s28  ;;  %p21650_p4 = scmp.lt.s32.totalorder %s21641_s28, %s21641_s28 }
  0x25   : > { %p21644_p0 = pnand %p21642_p13, %p22003_p8  ;;  %p21651_p7 = por %p21650_p4, %p21649_p5 }
  0x27   : > { %p21645_p2 = pneg %p21644_p0 }
  0x29   : > { %p21652_p9 = pnand %p21651_p7, %p21645_p2 }
  0x2b   : > { %21655 = shalt.err (!%p21652_p9)
}
  0x2c   : > { %s24880_s30 = smov 64   ;;  %s21882_s12 = smov 4  }
  0x2d   : > { %21154 = dma.hbm_to_vmem [thread:$0]  (!%p21987_p6), %s24943_s1, 9216, %s21976_s22, [#allocation7], %s24880_s30, %s24880_s30, %s21882_s12  }
  0x2e   : > { %s21656_s25 = scalar_lea.hbm %s24870_s5, 9216 }
  0x2f   : > { %p21657_p4 = scmp.ne.s32.totalorder %s24870_s5, %s21656_s25  ;;  %p21663_p12 = scmp.lt.u32.totalorder %s21656_s25, %s24870_s5 }
  0x31   : > { %p21659_p10 = pnand %p21657_p4, %p22003_p8 }
  0x33   : > { %p21660_p11 = pneg %p21659_p10 }
  0x35   : > { %p21665_p13 = pnand %p21663_p12, %p21660_p11 }
  0x37   : > { %21668 = shalt.err (!%p21665_p13)
}
  0x38   : > { %s21669_s22 = scalar_lea.vmem %s21991_s26, 9216  ;;  %p21677_p7 = scmp.lt.s32.totalorder %s21991_s26, %s21991_s26 }
  0x39   : > { %p21670_p0 = scmp.ne.s32.totalorder %s21991_s26, %s21669_s22  ;;  %p21678_p9 = scmp.lt.s32.totalorder %s21669_s22, %s21669_s22 }
  0x3b   : > { %p21672_p2 = pnand %p21670_p0, %p22003_p8  ;;  %p21679_p4 = por %p21678_p9, %p21677_p7 }
  0x3d   : > { %p21673_p5 = pneg %p21672_p2 }
  0x3f   : > { %p21680_p10 = pnand %p21679_p4, %p21673_p5 }
  0x41   : > { %21683 = shalt.err (!%p21680_p10)
}
  0x42   : > { %21160 = dma.hbm_to_vmem [thread:$0]  (!%p21987_p6), %s24870_s5, 9216, %s21991_s26, [#allocation10], %s24880_s30, %s24880_s30, %s21882_s12  }
  0x43   : > { %s21684_s14 = scalar_lea.hbm %s24868_s3, 9216 }
  0x44   : > { %p21685_p11 = scmp.ne.s32.totalorder %s24868_s3, %s21684_s14  ;;  %p21691_p0 = scmp.lt.u32.totalorder %s21684_s14, %s24868_s3 }
  0x46   : > { %p21687_p12 = pnand %p21685_p11, %p22003_p8 }
  0x48   : > { %p21688_p13 = pneg %p21687_p12 }
  0x4a   : > { %p21693_p2 = pnand %p21691_p0, %p21688_p13 }
  0x4c   : > { %21696 = shalt.err (!%p21693_p2)
}
  0x4d   : > { %s21697_s26 = scalar_lea.vmem %s21993_s29, 9216  ;;  %p21705_p4 = scmp.lt.s32.totalorder %s21993_s29, %s21993_s29 }
  0x4e   : > { %p21698_p5 = scmp.ne.s32.totalorder %s21993_s29, %s21697_s26  ;;  %p21706_p10 = scmp.lt.s32.totalorder %s21697_s26, %s21697_s26 }
  0x50   : > { %p21700_p7 = pnand %p21698_p5, %p22003_p8  ;;  %p21707_p11 = por %p21706_p10, %p21705_p4 }
  0x52   : > { %p21701_p9 = pneg %p21700_p7 }
  0x54   : > { %p21708_p12 = pnand %p21707_p11, %p21701_p9 }
  0x56   : > { %21711 = shalt.err (!%p21708_p12)
}
  0x57   : > { %21157 = dma.hbm_to_vmem [thread:$0]  (!%p21987_p6), %s24868_s3, 9216, %s21993_s29, [#allocation7], %s24880_s30, %s24880_s30, %s21882_s12  }
  0x58   : > { %s21883_s10 = smov [#allocation11]   ;;  %s21884_s13 = smov [#allocation12]  }
  0x59   : > { %s357_s11 = sshll.u32 %s21883_s10, 4  ;;  %s373_s14 = sshll.u32 %s21884_s13, 4  ;;  %s358_s11 = int_to_ptr.vmem [resolvable:$true] %s357_s11  ;;  %s374_s14 = int_to_ptr.vmem [resolvable:$true] %s373_s14 }
  0x5a   : > { %s21712_s25 = scalar_lea.hbm %s24872_s7, 9216 }
  0x5b   : > { %p21713_p13 = scmp.ne.s32.totalorder %s24872_s7, %s21712_s25  ;;  %p21719_p5 = scmp.lt.u32.totalorder %s21712_s25, %s24872_s7 }
  0x5d   : > { %p21715_p0 = pnand %p21713_p13, %p22003_p8 }
  0x5f   : > { %p21716_p2 = pneg %p21715_p0 }
  0x61   : > { %p21721_p7 = pnand %p21719_p5, %p21716_p2 }
  0x63   : > { %21724 = shalt.err (!%p21721_p7)
}
  0x64   : > { %s21725_s29 = scalar_lea.vmem %s358_s11, 9216  ;;  %p21733_p11 = scmp.lt.s32.totalorder %s358_s11, %s358_s11 }
  0x65   : > { %p21726_p9 = scmp.ne.s32.totalorder %s358_s11, %s21725_s29  ;;  %p21734_p12 = scmp.lt.s32.totalorder %s21725_s29, %s21725_s29 }
  0x67   : > { %p21728_p4 = pnand %p21726_p9, %p22003_p8  ;;  %p21735_p1 = por %p21734_p12, %p21733_p11 }
  0x69   : > { %p21729_p10 = pneg %p21728_p4 }
  0x6b   : > { %p21736_p3 = pnand %p21735_p1, %p21729_p10 }
  0x6d   : > { %21739 = shalt.err (!%p21736_p3)
}
  0x6e   : > { %21163 = dma.hbm_to_vmem [thread:$0]  (!%p21987_p6), %s24872_s7, 9216, %s358_s11, [#allocation10], %s24880_s30, %s24880_s30, %s21882_s12  }
  0x6f   : > { %s21740_s15 = scalar_lea.hbm %s24874_s9, 9216 }
  0x70   : > { %p21741_p1 = scmp.ne.s32.totalorder %s24874_s9, %s21740_s15  ;;  %p21747_p0 = scmp.lt.u32.totalorder %s21740_s15, %s24874_s9 }
  0x72   : > { %p21743_p3 = pnand %p21741_p1, %p22003_p8 }
  0x74   : > { %p21744_p13 = pneg %p21743_p3 }
  0x76   : > { %p21749_p2 = pnand %p21747_p0, %p21744_p13 }
  0x78   : > { %21752 = shalt.err (!%p21749_p2)
}
  0x79   : > { %s21753_s22 = scalar_lea.vmem %s374_s14, 9216  ;;  %p21761_p4 = scmp.lt.s32.totalorder %s374_s14, %s374_s14 }
  0x7a   : > { %p21754_p5 = scmp.ne.s32.totalorder %s374_s14, %s21753_s22  ;;  %p21762_p10 = scmp.lt.s32.totalorder %s21753_s22, %s21753_s22 }
  0x7c   : > { %p21756_p7 = pnand %p21754_p5, %p22003_p8  ;;  %p21763_p11 = por %p21762_p10, %p21761_p4 }
  0x7e   : > { %p21757_p9 = pneg %p21756_p7 }
  0x80   : > { %p21764_p12 = pnand %p21763_p11, %p21757_p9 }
  0x82   : > { %21767 = shalt.err (!%p21764_p12)
}
  0x83   : > { %21166 = dma.hbm_to_vmem [thread:$0]  (!%p21987_p6), %s24874_s9, 9216, %s374_s14, [#allocation13], %s24880_s30, %s24880_s30, %s21882_s12  }
  0x84   : > { %s16025_s27 = sadd.s32 4294967294, %s21876_s20   ;;  %s22123_s16 = sadd.s32 1, %s21876_s20  }
  0x85   : > { %s37_s1 = sadd.s32 1, %s21872_s19  ;;  %s34_s8 = ssub.s32 %s21876_s20, %s22123_s16 }
  0x86   : > { %p44_p8 = scmp.ne.s32.totalorder %s21872_s19, %s21868_s18  ;;  %p35_p1 = scmp.eq.s32.totalorder %s34_s8, 0 }
  0x87   : > { %p45_p3 = scmp.eq.s32.totalorder %s21876_s20, 0  ;;  %p50_p13 = scmp.ne.s32.totalorder %s21868_s18, %s21864_s17 }
  0x88   : > { %p284_p0 = scmp.eq.s32.totalorder %s21971_s23, 1  ;;  %p24945_p5 = scmp.eq.s32.totalorder %s21971_s23, 0 }
  0x89   : > { %s22135_s10 = scalar_select %p35_p1, %s21872_s19, %s37_s1  }
  0x8a   : > { %p46_p2 = por %p45_p3, %p44_p8  ;;  %p22139_p7 = por %p24945_p5, %p50_p13 }
  0x8b   : > { %p22143_p6 = por %p284_p0, %p44_p8  ;;  %p290_p9 = scmp.eq.s32.totalorder %s16025_s27, 1 }
  0x8c   : > { %p21180_p4 = scmp.lt.s32.totalorder %s21876_s20, 2  ;;  %s390_s15 = sand.u32 1, %s21872_s19  }
  0x8d   : > { %s24947_s14 = scalar_select %p22143_p6, 1, 0 }
  0x8e   : > { %p22149_p10 = por %p290_p9, %p50_p13  ;;  %s16033_s25 = sshll.u32 %s390_s15, 7 }
  0x8f   : > { %s16462_s28 = sshll.u32 %s21876_s20, 11  ;;  %s394_s29 = scalar_lea.vmem [#allocation3], %s16033_s25 }
  0x90   : > { %s24948_s21 = scalar_select %p22149_p10, 1, 0 }
  0x91   : > { %s22157_s11 = scalar_lea.hbm %s24865_s0, %s16462_s28  ;;  %s401_s1 = sshll.u32 %s394_s29, 4  ;;  %s22163_s1 = int_to_ptr.vmem [resolvable:$true] %s401_s1 }
  0x92   : > { %p22159_p11 = pnand %p21180_p4, %p46_p2  ;;  %s22165_s8 = scalar_lea.sflag [#allocation4], %s390_s15 }
  0x93   : > { %s21768_s30 = scalar_lea.hbm %s22157_s11, 2048  ;;  %s21773_s26 = scalar_lea.hbm %s24865_s0, 4096 }
  0x94   : > { %p21769_p12 = scmp.ne.s32.totalorder %s22157_s11, %s21768_s30  ;;  %p21770_p8 = pneg %p22159_p11 }
  0x95   : > { %p21774_p13 = scmp.lt.u32.totalorder %s22157_s11, %s24865_s0  ;;  %p21775_p0 = scmp.lt.u32.totalorder %s21773_s26, %s21768_s30 }
  0x96   : > { %p21771_p1 = pnand %p21770_p8, %p21769_p12  ;;  %p21777_p5 = scmp.lt.u32.totalorder %s21768_s30, %s22157_s11 }
  0x97   : > { %p21776_p2 = por %p21775_p0, %p21774_p13 }
  0x98   : > { %p21772_p3 = pneg %p21771_p1 }
  0x99   : > { %p21778_p9 = por %p21777_p5, %p21776_p2 }
  0x9b   : > { %p21779_p4 = pnand %p21778_p9, %p21772_p3 }
  0x9d   : > { %21782 = shalt.err (!%p21779_p4)
}
  0x9e   : > { %s21783_s15 = scalar_lea.vmem %s22163_s1, 2048  ;;  %s21885_s25 = smov [#allocation3]  }
  0x9f   : > { %p21784_p12 = scmp.ne.s32.totalorder %s22163_s1, %s21783_s15  ;;  %s21788_s28 = sshll.u32 %s21885_s25, 4  ;;  %s21789_s28 = int_to_ptr.vmem [resolvable:$false] %s21788_s28 }
  0xa0   : > { %s21790_s22 = scalar_lea.vmem %s21789_s28, 4096  ;;  %p21791_p6 = scmp.lt.s32.totalorder %s22163_s1, %s21789_s28 }
  0xa1   : > { %p21786_p1 = pnand %p21784_p12, %p21770_p8  ;;  %p21792_p13 = scmp.lt.s32.totalorder %s21790_s22, %s21783_s15 }
  0xa3   : > { %p21787_p10 = pneg %p21786_p1  ;;  %p21793_p0 = por %p21792_p13, %p21791_p6 }
  0xa5   : > { %p21794_p2 = pnand %p21793_p0, %p21787_p10 }
  0xa7   : > { %21797 = shalt.err (!%p21794_p2)
}
  0xa8   : > { %s24950_s30 = smov 64   ;;  %p24951_p8 = scmp.ne.s32.totalorder %s24941_s24, 0 }
  0xa9   : > { %21170 = dma.hbm_to_vmem [thread:$0]  (!%p22159_p11), %s22157_s11, 2048, %s22163_s1, %s22165_s8, %s24950_s30, %s24950_s30, %s21882_s12  }
  0xaa   : > { %413 = sbr.rel (%p24951_p8) target bundleno = 3670 (0xe56), region = 64  ;;  %s22199_s26 = sand.u32 (!%p24951_p8), 1, %s21868_s18  }
  0xab   : > { %s16037_s29 = sshll.u32 (!%p24951_p8), %s22199_s26, 7  ;;  %s416_s15 = scalar_lea.sflag (!%p24951_p8), [#allocation4], %s22199_s26 }
  0xac   : > { %s22205_s27 = scalar_lea.vmem (!%p24951_p8), [#allocation3], %s16037_s29 }
  0xb1   : > { %21843 = dma.done.wait (%p22139_p7), %s416_s15, 2048  }
  0xb2   : > { %21845 = vsyncadd (%p22139_p7), %s416_s15, 4294965248  ;;  %p24952_p6 = scmp.eq.s32.totalorder %s21971_s23, 0 }
  0xb4   : > { %21847 = dma.done.wait (%p24952_p6), [#allocation7], 18432   ;;  %p24953_p10 = pmov %p24952_p6 }
  0xb5   : > { %p24954_p11 = pmov %p24952_p6 }
  0xb6   : > { %21849 = vsyncadd (%p24953_p10), [#allocation7], 4294948864 }
  0xb7   : > { %21851 = dma.done.wait (%p24954_p11), [#allocation10], 18432   ;;  %p24955_p3 = pmov %p24952_p6 }
  0xb9   : > { %21853 = vsyncadd (%p24955_p3), [#allocation10], 4294948864  ;;  %p24956_p5 = pmov %p24955_p3 }
  0xba   : > { %p24957_p9 = pmov %p24955_p3 }
  0xbb   : > { %21855 = dma.done.wait (%p24956_p5), [#allocation13], 9216  }
  0xbc   : > { %21857 = vsyncadd (%p24957_p9), [#allocation13], 4294958080  ;;  %v24883_v0 = vmov 0   ;;  %v21229_v1 = vld [vmem:[#allocation6 + $0x40] sm:$0xff]   ;;  %v21231_v3 = vld [vmem:[#allocation6 + $0x48] sm:$0xff]   ;;  %vm838_vm1 = vcmask 1047552  }
  0xbd   : > { %17687 = vmatprep.mubr.bf16.mxu1 %v24883_v0  ;;  %v21230_v2 = vld [vmem:[#allocation6 + $0x100] sm:$0xff]   ;;  %17671 = vmatprep.subr.bf16.mxu1 %v21229_v1  ;;  %v21232_v4 = vld [vmem:[#allocation6 + $0x108] sm:$0xff]   ;;  %v21233_v5 = vld [vmem:[#allocation6 + $0x50] sm:$0xff]   ;;  %vm839_vm0 = vsmask.f32 7424  ;;  %v646_v40 = vrot.slane %v24883_v0, 7 }
  0xbe   : > { %17863 = vmatprep.subr.bf16.mxu0 %v21230_v2  ;;  %17672 = vmatpush3.bf16.msra.mxu1 %v21229_v1  ;;  %v21234_v6 = vld [vmem:[#allocation6 + $0x110] sm:$0xff]   ;;  %v21235_v7 = vld [vmem:[#allocation6 + $0x58] sm:$0xff]   ;;  %v21237_v9 = vld [vmem:[#allocation6 + $0x60] sm:$0xff]   ;;  %vm771_vm2 = vcmask 1040384   ;;  %vm772_vm3 = vsmask.f32 256 }
  0xbf   : > { %17864 = vmatpush3.bf16.msra.mxu0 %v21230_v2  ;;  %17673 = vmatprep.subr.bf16.mxu1 %v21231_v3  ;;  %v21236_v8 = vld [vmem:[#allocation6 + $0x118] sm:$0xff]   ;;  %v21238_v10 = vld [vmem:[#allocation6 + $0x120] sm:$0xff]   ;;  %v21239_v11 = vld [vmem:[#allocation6 + $0x68] sm:$0xff]   ;;  %s25004_s22 = sld [smem:[#allocation21_spill]]  ;;  %s24768_s24 = scalar_lea.vmem [#allocation14], %s16037_s29 }
  0xc0   : > { %17865 = vmatprep.subr.bf16.mxu0 %v21232_v4  ;;  %v22225_v12 = vld [vmem:[%s22205_s27] sm:$0xff]   ;;  %v21240_v13 = vld [vmem:[#allocation6 + $0x128] sm:$0xff]   ;;  %v21241_v14 = vld [vmem:[#allocation6 + $0x70] sm:$0xff]   ;;  %s16495_s29 = sshll.u32 %s21971_s23, 11  ;;  %s15904_s12 = sshll.u32 %s24768_s24, 4  ;;  %s24819_s12 = int_to_ptr.vmem [resolvable:$true] %s15904_s12 }
  0xc1   : > { %17879 = vmatprep.mubr.bf16.mxu0 %v22225_v12  ;;  %v21242_v15 = vld [vmem:[#allocation6 + $0x130] sm:$0xff]   ;;  %v21243_v16 = vld [vmem:[#allocation6 + $0x78] sm:$0xff]   ;;  %v21246_v18 = vld [vmem:[#allocation6] sm:$0xff]   ;;  %v654_v30 = vshll.u32 %v22225_v12, 16  ;;  %v651_v34 = vshrl.u32 %v22225_v12, 16  ;;  %s25018_s1 = sld [smem:[#allocation23_spill]] }
  0xc2   : > { %17674 = vmatpush3.bf16.msra.mxu1 %v21231_v3  ;;  %v21244_v17 = vld [vmem:[#allocation6 + $0x138] sm:$0xff]   ;;  %v21248_v19 = vld [vmem:[#allocation6 + $0x140] sm:$0xff]   ;;  %v22229_v20 = vld [vmem:[%s22205_s27 + $0x8] sm:$0xff]   ;;  %s15891_s23 = scalar_lea.sflag [#allocation5], %s22199_s26  ;;  %s21798_s25 = scalar_lea.vmem %s24819_s12, 2048 }
  0xc3   : > { %17866 = vmatpush3.bf16.msra.mxu0 %v21232_v4  ;;  %17675 = vmatprep.subr.bf16.mxu1 %v21233_v5  ;;  %v21249_v21 = vld [vmem:[#allocation6 + $0x148] sm:$0xff]   ;;  %v22232_v22 = vld [vmem:[%s22205_s27 + $0x10] sm:$0xff]   ;;  %v22239_v26 = vld [vmem:[%s22205_s27 + $0x18] sm:$0xff]   ;;  %v792_v36 = vrot.slane %v654_v30, 1  ;;  %v661_v38 = vshll.u32 %v22229_v20, 16  ;;  %v658_v45 = vshrl.u32 %v22229_v20, 16  ;;  %p21799_p7 = scmp.ne.s32.totalorder %s24819_s12, %s21798_s25 }
  0xc4   : > { %17867 = vmatprep.subr.bf16.mxu0 %v21234_v6  ;;  %v21251_v23 = vld [vmem:[#allocation6 + $0x8] sm:$0xff]   ;;  %v21256_v24 = vld [vmem:[#allocation6 + $0x10] sm:$0xff]   ;;  %v22242_v27 = vld [vmem:[%s22205_s27 + $0x20] sm:$0xff]   ;;  %v668_v42 = vshll.u32 %v22232_v22, 16  ;;  %v665_v46 = vshrl.u32 %v22232_v22, 16  ;;  %v675_v47 = vshll.u32 %v22239_v26, 16 }
  0xc5   : > { %v21253_v25 = vld [vmem:[#allocation6 + $0x150] sm:$0xff]   ;;  %v21254_v28 = vld [vmem:[#allocation6 + $0x158] sm:$0xff]   ;;  %v21258_v31 = vld [vmem:[#allocation6 + $0x160] sm:$0xff]   ;;  %v793_v41 = vor.u32 %v792_v36, %v651_v34  ;;  %v794_v48 = vrot.slane %v661_v38, 1  ;;  %v682_v49 = vshll.u32 %v22242_v27, 16  ;;  %v672_v56 = vshrl.u32 %v22239_v26, 16 }
  0xc6   : > { %17676 = vmatpush3.bf16.msra.mxu1 %v21233_v5  ;;  %v21261_v29 = vld [vmem:[#allocation6 + $0x18] sm:$0xff]   ;;  %v21266_v32 = vld [vmem:[#allocation6 + $0x20] sm:$0xff]   ;;  %v22250_v33 = vld [vmem:[%s22205_s27 + $0x28] sm:$0xff]   ;;  %v796_v55 = vrot.slane %v668_v42, 1  ;;  %v679_v57 = vshrl.u32 %v22242_v27, 16  ;;  %v798_v61 = vrot.slane %v675_v47, 1 }
  0xc7   : > { %17868 = vmatpush3.bf16.msra.mxu0 %v21234_v6  ;;  %17677 = vmatprep.subr.bf16.mxu1 %v21235_v7  ;;  %v22254_v35 = vld [vmem:[%s22205_s27 + $0x30] sm:$0xff]   ;;  %v21259_v37 = vld [vmem:[#allocation6 + $0x168] sm:$0xff]   ;;  %vm22267_vm4 = vmand %vm838_vm1, %vm839_vm0  ;;  %v689_v51 = vshll.u32 %v22250_v33, 16  ;;  %v795_v63 = vor.u32 %v794_v48, %v658_v45  ;;  %v800_v1 = vrot.slane %v682_v49, 1  ;;  %v686_v2 = vshrl.u32 %v22250_v33, 16  ;;  %s24817_s8 = scalar_lea.hbm %s25018_s1, %s16495_s29  ;;  %p25019_p4 = scmp.ne.s32.totalorder %s24947_s14, 0 }
  0xc8   : > { %17869 = vmatprep.subr.bf16.mxu0 %v21236_v8  ;;  %v21270_v39 = vld [vmem:[#allocation6 + $0x28] sm:$0xff]   ;;  %v21263_v43 = vld [vmem:[#allocation6 + $0x170] sm:$0xff]   ;;  %v22279_v52 = vld [vmem:[%s22205_s27 + $0x38] sm:$0xff]   ;;  %v696_v53 = vshll.u32 %v22254_v35, 16  ;;  %v22284_v54 = vsel %vm22267_vm4, %v793_v41, 0  ;;  %v693_v6 = vshrl.u32 %v22254_v35, 16 }
  0xc9   : > { %v21274_v50 = vld [vmem:[#allocation6 + $0x30] sm:$0xff]   ;;  %vm22292_vm5 = vmand %vm771_vm2, %vm772_vm3  ;;  %v21264_v59 = vld [vmem:[#allocation6 + $0x178] sm:$0xff]   ;;  %v703_v62 = vshll.u32 %v22279_v52, 16  ;;  %v802_v3 = vrot.slane %v689_v51, 1  ;;  %p21800_p12 = pnand %p21799_p7, %p25019_p4  ;;  %s21887_s28 = smov [#allocation14]  }
  0xca   : > { %17678 = vmatpush3.bf16.msra.mxu1 %v21235_v7  ;;  %v22297_v60 = vld [vmem:[%s22205_s27 + $0x40] sm:$0xff]   ;;  %v21278_v4 = vld [vmem:[#allocation6 + $0x38] sm:$0xff]   ;;  %v22311_v5 = vld [vmem:[%s22205_s27 + $0x48] sm:$0xff]   ;;  %v804_v7 = vrot.slane %v696_v53, 1 }
  0xcb   : > { %17870 = vmatpush3.bf16.msra.mxu0 %v21236_v8  ;;  %17679 = vmatprep.subr.bf16.mxu1 %v21237_v9  ;;  %v710_v8 = vshll.u32 %v22297_v60, 16  ;;  %v21275_v48 = vld [vmem:[#allocation6 + $0x190] sm:$0xff]   ;;  %v21577_v58 = vld [vmem:[#allocation12 + $0x160] sm:$0xff]   ;;  %p21801_p1 = pneg %p21800_p12 }
  0xcc   : > { %17871 = vmatprep.subr.bf16.mxu0 %v21238_v10  ;;  %v21593_v44 = vld [vmem:[#allocation12 + $0x1e0] sm:$0xff]  }
  0xce   : > { %17680 = vmatpush3.bf16.msra.mxu1 %v21237_v9  ;;  %v653_v9 = vrot.slane %v651_v34, 7 }
  0xcf   : > { %17872 = vmatpush3.bf16.msra.mxu0 %v21238_v10  ;;  %17681 = vmatprep.subr.bf16.mxu1 %v21239_v11  ;;  %v797_v10 = vor.u32 %v796_v55, %v665_v46 }
  0xd0   : > { %17873 = vmatprep.subr.bf16.mxu0 %v21240_v13  ;;  %v656_v34 = vor.u32 %v654_v30, %v653_v9 }
  0xd2   : > { %17682 = vmatpush3.bf16.msra.mxu1 %v21239_v11  ;;  %v22322_v11 = vsel %vm22292_vm5, 0, %v646_v40  ;;  %v714_v40 = vshrl.u32 %v22311_v5, 16 }
  0xd3   : > { %17874 = vmatpush3.bf16.msra.mxu0 %v21240_v13  ;;  %17683 = vmatprep.subr.bf16.mxu1 %v21241_v14  ;;  %v21267_v13 = vld [vmem:[#allocation6 + $0x180] sm:$0xff]  }
  0xd4   : > { %17875 = vmatprep.subr.bf16.mxu0 %v21242_v15 }
  0xd6   : > { %17684 = vmatpush3.bf16.msra.mxu1 %v21241_v14  ;;  %v799_v14 = vor.u32 %v798_v61, %v672_v56  ;;  %v22389_v61 = vld [vmem:[%s22205_s27 + $0x60] sm:$0xff]  }
  0xd7   : > { %17876 = vmatpush3.bf16.msra.mxu0 %v21242_v15  ;;  %17685 = vmatprep.subr.bf16.mxu1 %v21243_v16  ;;  %v700_v15 = vshrl.u32 %v22279_v52, 16 }
  0xd8   : > { %17877 = vmatprep.subr.bf16.mxu0 %v21244_v17  ;;  %v22356_v36 = vsel %vm22267_vm4, %v799_v14, 0  ;;  %v674_v14 = vrot.slane %v672_v56, 7 }
  0xda   : > { %17686 = vmatpush3.bf16.msra.mxu1 %v21243_v16  ;;  %v806_v16 = vrot.slane %v703_v62, 1 }
  0xdb   : > { %17878 = vmatpush3.bf16.msra.mxu0 %v21244_v17  ;;  %17719 = vmatprep.subr.bf16.mxu1 %v21246_v18  ;;  %v24888_v17 = vshll.u32 %v22311_v5, 16 }
  0xdc   : > { %17911 = vmatprep.subr.bf16.mxu0 %v21248_v19 }
  0xdd   : > { %17688 = vmatmul.mubr.bf16.vlgmr.msra.gmra.mrb[0].mxu1 %v22225_v12  ;;  %v810_v41 = vrot.slane %v24888_v17, 1  ;;  %v22365_v12 = vld [vmem:[%s22205_s27 + $0x58] sm:$0xff]  }
  0xde   : > { %17880 = vmatmul.mubr.bf16.vlgmr.msra.gmra.mrb[0].mxu0 %v22229_v20  ;;  %17720 = vmatpush3.bf16.msra.mxu1 %v21246_v18  ;;  %v22332_v18 = vsel %vm22267_vm4, %v795_v63, 0  ;;  %v22392_v63 = vld [vmem:[%s22205_s27 + $0x68] sm:$0xff]  }
  0xdf   : > { %17912 = vmatpush3.bf16.msra.mxu0 %v21248_v19  ;;  %17691 = vmatprep.mubr.bf16.mxu1 %v22229_v20  ;;  %v801_v19 = vor.u32 %v800_v1, %v679_v57  ;;  %v22396_v1 = vsel %vm22292_vm5, 0, %v656_v34  ;;  %v811_v20 = vor.u32 %v810_v41, %v714_v40  ;;  %v21281_v41 = vld [vmem:[#allocation6 + $0x1a0] sm:$0xff]  }
  0xe0   : > { %17913 = vmatprep.subr.bf16.mxu0 %v21249_v21  ;;  %17883 = vmatprep.mubr.bf16.mxu0 %v22232_v22 }
  0xe1   : > { %17721 = vmatprep.subr.bf16.mxu1 %v21251_v23  ;;  %v22369_v30 = vsel %vm22267_vm4, %v801_v19, 0  ;;  %v22432_v56 = vsel %vm22267_vm4, %v811_v20, 0  ;;  %v688_v20 = vrot.slane %v686_v2, 7 }
  0xe2   : > { %17722 = vmatpush3.bf16.msra.mxu1 %v21251_v23  ;;  %v707_v23 = vshrl.u32 %v22297_v60, 16 }
  0xe3   : > { %17914 = vmatpush3.bf16.msra.mxu0 %v21249_v21  ;;  %17723 = vmatprep.subr.bf16.mxu1 %v21256_v24  ;;  %v803_v21 = vor.u32 %v802_v3, %v686_v2  ;;  %v695_v2 = vrot.slane %v693_v6, 7 }
  0xe4   : > { %17915 = vmatprep.subr.bf16.mxu0 %v21253_v25  ;;  %v709_v17 = vrot.slane %v707_v23, 7 }
  0xe5   : > { %17692 = vmatmul.mubr.bf16.gmra.mrb[4].mxu1 %v22232_v22 }
  0xe6   : > { %17884 = vmatmul.mubr.bf16.gmra.mrb[4].mxu0 %v22239_v26  ;;  %17695 = vmatprep.mubr.bf16.mxu1 %v22239_v26  ;;  %v716_v26 = vrot.slane %v714_v40, 7 }
  0xe7   : > { %17916 = vmatpush3.bf16.msra.mxu0 %v21253_v25  ;;  %17887 = vmatprep.mubr.bf16.mxu0 %v22242_v27  ;;  %v805_v25 = vor.u32 %v804_v7, %v693_v6  ;;  %v22407_v7 = vld [vmem:[%s22205_s27 + $0x70] sm:$0xff]  }
  0xe8   : > { %17917 = vmatprep.subr.bf16.mxu0 %v21254_v28  ;;  %17724 = vmatpush3.bf16.msra.mxu1 %v21256_v24  ;;  %v22339_v24 = vld [vmem:[#allocation6 + $0x80] sm:$0xff]   ;;  %v749_v0 = vshrl.u32 %v22407_v7, 16 }
  0xe9   : > { %17725 = vmatprep.subr.bf16.mxu1 %v21261_v29 }
  0xeb   : > { %17918 = vmatpush3.bf16.msra.mxu0 %v21254_v28  ;;  %v808_v28 = vrot.slane %v710_v8, 1 }
  0xec   : > { %17919 = vmatprep.subr.bf16.mxu0 %v21258_v31  ;;  %17726 = vmatpush3.bf16.msra.mxu1 %v21261_v29  ;;  %v660_v29 = vrot.slane %v658_v45, 7 }
  0xed   : > { %17696 = vmatmul.mubr.bf16.gmra.mrb[8].mxu1 %v22242_v27  ;;  %17727 = vmatprep.subr.bf16.mxu1 %v21266_v32  ;;  %v809_v55 = vor.u32 %v808_v28, %v707_v23  ;;  %v24886_v28 = vshll.u32 %v22389_v61, 16 }
  0xee   : > { %17888 = vmatmul.mubr.bf16.gmra.mrb[8].mxu0 %v22250_v33  ;;  %17699 = vmatprep.mubr.bf16.mxu1 %v22250_v33 }
  0xef   : > { %17920 = vmatpush3.bf16.msra.mxu0 %v21258_v31  ;;  %17891 = vmatprep.mubr.bf16.mxu0 %v22254_v35  ;;  %v22347_v31 = vsel %vm22267_vm4, %v797_v10, 0  ;;  %v667_v10 = vrot.slane %v665_v46, 7  ;;  %v22418_v19 = vsel %vm22267_vm4, %v809_v55, 0  ;;  %v24887_v46 = vshll.u32 %v22392_v63, 16 }
  0xf0   : > { %17921 = vmatprep.subr.bf16.mxu0 %v21259_v37  ;;  %17728 = vmatpush3.bf16.msra.mxu1 %v21266_v32  ;;  %v22350_v32 = vld [vmem:[%s22205_s27 + $0x50] sm:$0xff]  }
  0xf1   : > { %17729 = vmatprep.subr.bf16.mxu1 %v21270_v39  ;;  %v24885_v45 = vshll.u32 %v22350_v32, 16  ;;  %v721_v3 = vshrl.u32 %v22350_v32, 16  ;;  %v670_v55 = vor.u32 %v668_v42, %v667_v10  ;;  %v21283_v10 = vld [vmem:[#allocation6 + $0x1a8] sm:$0xff]  }
  0xf3   : > { %17922 = vmatpush3.bf16.msra.mxu0 %v21259_v37  ;;  %v21271_v37 = vld [vmem:[#allocation6 + $0x188] sm:$0xff]   ;;  %v812_v9 = vrot.slane %v24885_v45, 1 }
  0xf4   : > { %17923 = vmatprep.subr.bf16.mxu0 %v21263_v43  ;;  %17730 = vmatpush3.bf16.msra.mxu1 %v21270_v39  ;;  %v807_v39 = vor.u32 %v806_v16, %v700_v15  ;;  %v21279_v16 = vld [vmem:[#allocation6 + $0x198] sm:$0xff]  }
  0xf5   : > { %17700 = vmatmul.mubr.bf16.gmra.mrb[12].mxu1 %v22254_v35  ;;  %17731 = vmatprep.subr.bf16.mxu1 %v21274_v50  ;;  %v813_v22 = vor.u32 %v812_v9, %v721_v3  ;;  %v22468_v9 = vsel %vm22292_vm5, 0, %v670_v55  ;;  %v712_v35 = vor.u32 %v710_v8, %v709_v17  ;;  %v24963_v17 = vshll.u32 %v22350_v32, 16 }
  0xf6   : > { %17892 = vmatmul.mubr.bf16.gmra.mrb[12].mxu0 %v22279_v52  ;;  %17703 = vmatprep.mubr.bf16.mxu1 %v22279_v52 }
  0xf7   : > { %17924 = vmatpush3.bf16.msra.mxu0 %v21263_v43  ;;  %17927 = vmatprep.mubr.bf16.mxu0 %v22284_v54  ;;  %v22373_v43 = vsel %vm22267_vm4, %v803_v21, 0  ;;  %v22484_v27 = vsel %vm22267_vm4, %v813_v22, 0 }
  0xf8   : > { %17925 = vmatprep.subr.bf16.mxu0 %v21264_v59  ;;  %17732 = vmatpush3.bf16.msra.mxu1 %v21274_v50  ;;  %v22381_v50 = vsel %vm22267_vm4, %v805_v25, 0  ;;  %v735_v25 = vshrl.u32 %v22389_v61, 16 }
  0xf9   : > { %17733 = vmatprep.subr.bf16.mxu1 %v21278_v4 }
  0xfb   : > { %17926 = vmatpush3.bf16.msra.mxu0 %v21264_v59  ;;  %v663_v59 = vor.u32 %v661_v38, %v660_v29  ;;  %v24882_v38 = vshll.u32 %v22365_v12, 16  ;;  %v22428_v29 = vld [vmem:[%s22205_s27 + $0x78] sm:$0xff]  }
  0xfc   : > { %17959 = vmatprep.subr.bf16.mxu0 %v21267_v13  ;;  %17734 = vmatpush3.bf16.msra.mxu1 %v21278_v4  ;;  %v22401_v4 = vsel %vm22267_vm4, %v807_v39, 0  ;;  %v752_v39 = vshll.u32 %v22407_v7, 16  ;;  %v1691_v45 = vshll.u32 %v22428_v29, 16  ;;  %v1688_v23 = vshrl.u32 %v22428_v29, 16  ;;  %v21296_v29 = vld [vmem:[#allocation6 + $0x1d8] sm:$0xff]  }
  0xfd   : > { %17704 = vmatmul.mubr.bf16.gmra.mrb[16].mxu1 %v22297_v60  ;;  %17767 = vmatprep.subr.bf16.mxu1 %v22339_v24  ;;  %v22422_v21 = vsel %vm22292_vm5, 0, %v663_v59  ;;  %v814_v34 = vrot.slane %v24882_v38, 1  ;;  %v742_v59 = vshrl.u32 %v22392_v63, 16  ;;  %v818_v38 = vrot.slane %v24887_v46, 1 }
  0xfe   : > { %17928 = vmatmul.mubr.bf16.vlgmr.msra.gmra.mrb[0].mxu0 %v22332_v18  ;;  %17707 = vmatprep.mubr.bf16.mxu1 %v22311_v5  ;;  %v820_v42 = vrot.slane %v752_v39, 1  ;;  %v702_v46 = vrot.slane %v700_v15, 7 }
  0xff   : > { %17960 = vmatpush3.bf16.msra.mxu0 %v21267_v13  ;;  %17931 = vmatprep.mubr.bf16.mxu0 %v22347_v31  ;;  %v728_v13 = vshrl.u32 %v22365_v12, 16  ;;  %v819_v15 = vor.u32 %v818_v38, %v742_v59 }
 0x100   : > { %17961 = vmatprep.subr.bf16.mxu0 %v21271_v37  ;;  %v821_v33 = vor.u32 %v820_v42, %v749_v0 }
 0x101   : > { %v22519_v60 = vsel %vm22267_vm4, %v819_v15, 0  ;;  %v730_v42 = vrot.slane %v728_v13, 7 }
 0x102   : > { %v22525_v8 = vsel %vm22267_vm4, %v821_v33, 0  ;;  %v21284_v33 = vld [vmem:[#allocation6 + $0x90] sm:$0xff]  }
 0x103   : > { %17962 = vmatpush3.bf16.msra.mxu0 %v21271_v37  ;;  %v681_v37 = vrot.slane %v679_v57, 7  ;;  %v816_v57 = vrot.slane %v24886_v28, 1  ;;  %v677_v28 = vor.u32 %v675_v47, %v674_v14  ;;  %v1756_v14 = vrot.slane %v1691_v45, 1 }
 0x104   : > { %17963 = vmatprep.subr.bf16.mxu0 %v21275_v48 }
 0x105   : > { %17708 = vmatmul.mubr.bf16.gmra.mrb[20].mxu1 %v22350_v32  ;;  %v684_v6 = vor.u32 %v682_v49, %v681_v37  ;;  %v817_v47 = vor.u32 %v816_v57, %v735_v25  ;;  %v698_v49 = vor.u32 %v696_v53, %v695_v2  ;;  %v22496_v38 = vsel %vm22292_vm5, 0, %v677_v28 }
 0x106   : > { %17932 = vmatmul.mubr.bf16.gmra.mrb[4].mxu0 %v22356_v36  ;;  %17711 = vmatprep.mubr.bf16.mxu1 %v22365_v12  ;;  %v705_v37 = vor.u32 %v703_v62, %v702_v46  ;;  %v24962_v28 = vshll.u32 %v22311_v5, 16  ;;  %v1757_v62 = vor.u32 %v1756_v14, %v1688_v23  ;;  %v22539_v57 = vsel %vm22292_vm5, 0, %v712_v35 }
 0x107   : > { %17935 = vmatprep.mubr.bf16.mxu0 %v22369_v30  ;;  %17964 = vmatpush3.bf16.msra.mxu0 %v21275_v48  ;;  %v815_v48 = vor.u32 %v814_v34, %v728_v13  ;;  %v691_v34 = vor.u32 %v689_v51, %v688_v20  ;;  %v723_v51 = vrot.slane %v721_v3, 7  ;;  %v22505_v53 = vsel %vm22292_vm5, 0, %v684_v6  ;;  %v22560_v13 = vld [vmem:[#allocation6 + $0x1c0] sm:$0xff]  }
 0x108   : > { %17965 = vmatprep.subr.bf16.mxu0 %v21279_v16  ;;  %v719_v55 = vor.u32 %v24962_v28, %v716_v26  ;;  %v22515_v52 = vsel %vm22267_vm4, %v817_v47, 0  ;;  %v22529_v5 = vsel %vm22292_vm5, 0, %v698_v49  ;;  %v22535_v20 = vsel %vm22292_vm5, 0, %v705_v37  ;;  %v21293_v28 = vld [vmem:[#allocation6 + $0xb0] sm:$0xff]  }
 0x109   : > { %v22492_v40 = vsel %vm22267_vm4, %v815_v48, 0  ;;  %v22509_v3 = vsel %vm22292_vm5, 0, %v691_v34  ;;  %v726_v46 = vor.u32 %v24963_v17, %v723_v51  ;;  %v22549_v32 = vsel %vm22267_vm4, %v1757_v62, 0  ;;  %v21297_v17 = vld [vmem:[#allocation6 + $0xc0] sm:$0xff]  }
 0x10a   : > { %v22543_v22 = vsel %vm22292_vm5, 0, %v719_v55  ;;  %v737_v2 = vrot.slane %v735_v25, 7  ;;  %v751_v6 = vrot.slane %v749_v0, 7  ;;  %v24964_v34 = vmov 0   ;;  %v21282_v25 = vld [vmem:[#allocation6 + $0x88] sm:$0xff]  }
 0x10b   : > { %17966 = vmatpush3.bf16.msra.mxu0 %v21279_v16  ;;  %v21285_v16 = vld [vmem:[#allocation6 + $0x1b0] sm:$0xff]   ;;  %v22556_v48 = vsel %vm22292_vm5, 0, %v726_v46  ;;  %v790_v26 = vrot.slane %v24964_v34, 1  ;;  %v24965_v47 = vshll.u32 %v22365_v12, 16  ;;  %v24966_v14 = vshll.u32 %v22389_v61, 16  ;;  %v21292_v46 = vld [vmem:[#allocation6 + $0x1c8] sm:$0xff]  }
 0x10c   : > { %17967 = vmatprep.subr.bf16.mxu0 %v21281_v41  ;;  %v24967_v49 = vshll.u32 %v22392_v63, 16  ;;  %v754_v35 = vor.u32 %v752_v39, %v751_v6  ;;  %v1690_v62 = vrot.slane %v1688_v23, 7  ;;  %v21299_v6 = vld [vmem:[#allocation6 + $0xc8] sm:$0xff]  }
 0x10d   : > { %17712 = vmatmul.mubr.bf16.gmra.mrb[24].mxu1 %v22389_v61  ;;  %v733_v15 = vor.u32 %v24965_v47, %v730_v42  ;;  %v21286_v61 = vld [vmem:[#allocation6 + $0x98] sm:$0xff]   ;;  %v22593_v37 = vsel %vm22267_vm4, %v790_v26, 0  ;;  %v21300_v42 = vld [vmem:[#allocation6 + $0x1e8] sm:$0xff]   ;;  %v21301_v26 = vld [vmem:[#allocation6 + $0xd0] sm:$0xff]  }
 0x10e   : > { %17936 = vmatmul.mubr.bf16.gmra.mrb[8].mxu0 %v22373_v43  ;;  %17715 = vmatprep.mubr.bf16.mxu1 %v22392_v63  ;;  %v21291_v63 = vld [vmem:[#allocation6 + $0xa8] sm:$0xff]   ;;  %v22603_v55 = vsel %vm22292_vm5, 0, %v754_v35  ;;  %v1693_v39 = vor.u32 %v1691_v45, %v1690_v62  ;;  %v21294_v45 = vld [vmem:[#allocation6 + $0x1d0] sm:$0xff]   ;;  %v21305_v47 = vld [vmem:[#allocation6 + $0xe0] sm:$0xff]  }
 0x10f   : > { %17939 = vmatprep.mubr.bf16.mxu0 %v22381_v50  ;;  %17968 = vmatpush3.bf16.msra.mxu0 %v21281_v41  ;;  %v21288_v41 = vld [vmem:[#allocation6 + $0x1b8] sm:$0xff]   ;;  %v22574_v0 = vsel %vm22292_vm5, 0, %v733_v15  ;;  %v21309_v15 = vld [vmem:[#allocation6 + $0xf0] sm:$0xff]   ;;  %v21609_v35 = vld [vmem:[%s22205_s27 + $0x20] sm:$0xff]  }
 0x110   : > { %17969 = vmatprep.subr.bf16.mxu0 %v21283_v10  ;;  %v22615_v23 = vsel %vm22292_vm5, 0, %v1693_v39  ;;  %v21610_v62 = vld [vmem:[%s22205_s27 + $0x28] sm:$0xff]   ;;  %v21611_v39 = vld [vmem:[%s22205_s27 + $0x30] sm:$0xff]  }
 0x113   : > { %17970 = vmatpush3.bf16.msra.mxu0 %v21283_v10  ;;  %v744_v10 = vrot.slane %v742_v59, 7  ;;  %v740_v59 = vor.u32 %v24966_v14, %v737_v2  ;;  %v21302_v2 = vld [vmem:[#allocation6 + $0x1f0] sm:$0xff]   ;;  %v21311_v14 = vld [vmem:[#allocation6 + $0xf8] sm:$0xff]  }
 0x114   : > { %17971 = vmatprep.subr.bf16.mxu0 %v21285_v16 }
 0x115   : > { %17716 = vmatmul.mubr.bf16.gmra.mrb[28].mxu1 %v22407_v7  ;;  %v22578_v12 = vsel %vm22292_vm5, 0, %v740_v59  ;;  %v747_v51 = vor.u32 %v24967_v49, %v744_v10  ;;  %v21295_v7 = vld [vmem:[#allocation6 + $0xb8] sm:$0xff]   ;;  %v21605_v59 = vld [vmem:[%s22205_s27 + $0x8] sm:$0xff]   ;;  %v21607_v49 = vld [vmem:[%s22205_s27 + $0x10] sm:$0xff]  }
 0x116   : > { %17940 = vmatmul.mubr.bf16.gmra.mrb[12].mxu0 %v22401_v4  ;;  %17735 = vmatprep.mubr.bf16.mxu1 %v22322_v11  ;;  %v21304_v10 = vld [vmem:[#allocation6 + $0x1f8] sm:$0xff]  }
 0x117   : > { %17943 = vmatprep.mubr.bf16.mxu0 %v22418_v19  ;;  %17972 = vmatpush3.bf16.msra.mxu0 %v21285_v16  ;;  %v22589_v16 = vsel %vm22292_vm5, 0, %v747_v51  ;;  %v21310_v51 = vld [vmem:[#allocation6 + $0x210] sm:$0xff]  }
 0x118   : > { %17973 = vmatprep.subr.bf16.mxu0 %v21288_v41 }
 0x11b   : > { %17974 = vmatpush3.bf16.msra.mxu0 %v21288_v41  ;;  %v21298_v41 = vld [vmem:[#allocation6 + $0x1e0] sm:$0xff]  }
 0x11c   : > { %18007 = vmatprep.subr.bf16.mxu0 %v22560_v13 }
 0x11d   : > { %17736 = vmatmul.mubr.bf16.vlgmr.msra.gmra.mrb[0].mxu1 %v22396_v1 }
 0x11e   : > { %17944 = vmatmul.mubr.bf16.gmra.mrb[16].mxu0 %v22432_v56  ;;  %17768 = vmatpush3.bf16.msra.mxu1 %v22339_v24  ;;  %v21289_v24 = vld [vmem:[#allocation6 + $0xa0] sm:$0xff]  }
 0x11f   : > { %17739 = vmatprep.mubr.bf16.mxu1 %v22422_v21  ;;  %17947 = vmatprep.mubr.bf16.mxu0 %v22484_v27 }
 0x120   : > { %17769 = vmatprep.subr.bf16.mxu1 %v21282_v25 }
 0x122   : > { %17770 = vmatpush3.bf16.msra.mxu1 %v21282_v25  ;;  %v21303_v25 = vld [vmem:[#allocation6 + $0xd8] sm:$0xff]  }
 0x123   : > { %17771 = vmatprep.subr.bf16.mxu1 %v21284_v33 }
 0x125   : > { %17740 = vmatmul.mubr.bf16.gmra.mrb[4].mxu1 %v22468_v9 }
 0x126   : > { %17948 = vmatmul.mubr.bf16.gmra.mrb[20].mxu0 %v22492_v40  ;;  %17743 = vmatprep.mubr.bf16.mxu1 %v22496_v38 }
 0x127   : > { %17951 = vmatprep.mubr.bf16.mxu0 %v22515_v52  ;;  %17772 = vmatpush3.bf16.msra.mxu1 %v21284_v33  ;;  %v21308_v33 = vld [vmem:[#allocation6 + $0x208] sm:$0xff]  }
 0x128   : > { %17773 = vmatprep.subr.bf16.mxu1 %v21286_v61 }
 0x12b   : > { %17774 = vmatpush3.bf16.msra.mxu1 %v21286_v61  ;;  %v21606_v61 = vld [vmem:[#allocation6 + $0x100] sm:$0xff]  }
 0x12c   : > { %17775 = vmatprep.subr.bf16.mxu1 %v21289_v24 }
 0x12d   : > { %17744 = vmatmul.mubr.bf16.gmra.mrb[8].mxu1 %v22505_v53 }
 0x12e   : > { %17952 = vmatmul.mubr.bf16.gmra.mrb[24].mxu0 %v22519_v60  ;;  %17747 = vmatprep.mubr.bf16.mxu1 %v22509_v3 }
 0x12f   : > { %17955 = vmatprep.mubr.bf16.mxu0 %v22525_v8  ;;  %17776 = vmatpush3.bf16.msra.mxu1 %v21289_v24  ;;  %v21608_v24 = vld [vmem:[%s22205_s27 + $0x18] sm:$0xff]  }
 0x130   : > { %17777 = vmatprep.subr.bf16.mxu1 %v21291_v63 }
 0x133   : > { %17778 = vmatpush3.bf16.msra.mxu1 %v21291_v63  ;;  %v21312_v63 = vld [vmem:[#allocation6 + $0x218] sm:$0xff]  }
 0x134   : > { %17779 = vmatprep.subr.bf16.mxu1 %v21293_v28 }
 0x135   : > { %17748 = vmatmul.mubr.bf16.gmra.mrb[12].mxu1 %v22529_v5 }
 0x136   : > { %17956 = vmatmul.mubr.bf16.gmra.mrb[28].mxu0 %v22549_v32  ;;  %17751 = vmatprep.mubr.bf16.mxu1 %v22535_v20 }
 0x137   : > { %17975 = vmatprep.mubr.bf16.mxu0 %v22422_v21  ;;  %17780 = vmatpush3.bf16.msra.mxu1 %v21293_v28  ;;  %v21313_v28 = vld [vmem:[#allocation6 + $0x220] sm:$0xff]  }
 0x138   : > { %17781 = vmatprep.subr.bf16.mxu1 %v21295_v7 }
 0x13b   : > { %17782 = vmatpush3.bf16.msra.mxu1 %v21295_v7  ;;  %v21314_v7 = vld [vmem:[#allocation6 + $0x228] sm:$0xff]  }
 0x13c   : > { %17815 = vmatprep.subr.bf16.mxu1 %v21297_v17 }
 0x13d   : > { %17752 = vmatmul.mubr.bf16.gmra.mrb[16].mxu1 %v22539_v57 }
 0x13e   : > { %17976 = vmatmul.mubr.bf16.vlgmr.msra.gmra.mrb[0].mxu0 %v22468_v9  ;;  %17755 = vmatprep.mubr.bf16.mxu1 %v22543_v22 }
 0x13f   : > { %18008 = vmatpush3.bf16.msra.mxu0 %v22560_v13  ;;  %17979 = vmatprep.mubr.bf16.mxu0 %v22496_v38  ;;  %v21306_v13 = vld [vmem:[#allocation6 + $0x200] sm:$0xff]  }
 0x140   : > { %18009 = vmatprep.subr.bf16.mxu0 %v21292_v46 }
 0x143   : > { %18010 = vmatpush3.bf16.msra.mxu0 %v21292_v46  ;;  %v21612_v46 = vld [vmem:[%s22205_s27 + $0x38] sm:$0xff]  }
 0x144   : > { %18011 = vmatprep.subr.bf16.mxu0 %v21294_v45 }
 0x145   : > { %17756 = vmatmul.mubr.bf16.gmra.mrb[20].mxu1 %v22556_v48 }
 0x146   : > { %17980 = vmatmul.mubr.bf16.gmra.mrb[4].mxu0 %v22505_v53  ;;  %17759 = vmatprep.mubr.bf16.mxu1 %v22574_v0 }
 0x147   : > { %17983 = vmatprep.mubr.bf16.mxu0 %v22509_v3  ;;  %18012 = vmatpush3.bf16.msra.mxu0 %v21294_v45  ;;  %v21316_v45 = vld [vmem:[#allocation6 + $0x238] sm:$0xff]  }
 0x148   : > { %18013 = vmatprep.subr.bf16.mxu0 %v21296_v29 }
 0x14b   : > { %18014 = vmatpush3.bf16.msra.mxu0 %v21296_v29  ;;  %v22665_v29 = vld [vmem:[%s22205_s27 + $0x40] sm:$0xff]  }
 0x14c   : > { %18015 = vmatprep.subr.bf16.mxu0 %v21298_v41 }
 0x14d   : > { %17760 = vmatmul.mubr.bf16.gmra.mrb[24].mxu1 %v22578_v12 }
 0x14e   : > { %17984 = vmatmul.mubr.bf16.gmra.mrb[8].mxu0 %v22529_v5  ;;  %17763 = vmatprep.mubr.bf16.mxu1 %v22589_v16 }
 0x14f   : > { %17987 = vmatprep.mubr.bf16.mxu0 %v22535_v20  ;;  %18016 = vmatpush3.bf16.msra.mxu0 %v21298_v41  ;;  %v22670_v41 = vld [vmem:[%s22205_s27 + $0x48] sm:$0xff]  }
 0x150   : > { %18017 = vmatprep.subr.bf16.mxu0 %v21300_v42 }
 0x153   : > { %18018 = vmatpush3.bf16.msra.mxu0 %v21300_v42  ;;  %v21615_v42 = vld [vmem:[%s22205_s27 + $0x50] sm:$0xff]  }
 0x154   : > { %18019 = vmatprep.subr.bf16.mxu0 %v21302_v2 }
 0x155   : > { %17764 = vmatmul.mubr.bf16.gmra.mrb[28].mxu1 %v22603_v55 }
 0x156   : > { %17988 = vmatmul.mubr.bf16.gmra.mrb[12].mxu0 %v22539_v57  ;;  %17783 = vmatprep.mubr.bf16.mxu1 %v22593_v37 }
 0x157   : > { %17991 = vmatprep.mubr.bf16.mxu0 %v22543_v22  ;;  %18020 = vmatpush3.bf16.msra.mxu0 %v21302_v2  ;;  %v21616_v2 = vld [vmem:[%s22205_s27 + $0x58] sm:$0xff]  }
 0x158   : > { %18021 = vmatprep.subr.bf16.mxu0 %v21304_v10 }
 0x15b   : > { %18022 = vmatpush3.bf16.msra.mxu0 %v21304_v10  ;;  %v21617_v10 = vld [vmem:[#allocation6 + $0x108] sm:$0xff]  }
 0x15c   : > { %18055 = vmatprep.subr.bf16.mxu0 %v21306_v13 }
 0x15d   : > { %17784 = vmatmul.mubr.bf16.vlgmr.msra.gmra.mrb[0].mxu1 %v22284_v54  ;;  %v21307_v54 = vld [vmem:[#allocation6 + $0xe8] sm:$0xff]  }
 0x15e   : > { %17992 = vmatmul.mubr.bf16.gmra.mrb[16].mxu0 %v22556_v48  ;;  %17816 = vmatpush3.bf16.msra.mxu1 %v21297_v17  ;;  %v21315_v17 = vld [vmem:[#allocation6 + $0x230] sm:$0xff]  }
 0x15f   : > { %17787 = vmatprep.mubr.bf16.mxu1 %v22332_v18  ;;  %17995 = vmatprep.mubr.bf16.mxu0 %v22574_v0 }
 0x160   : > { %17817 = vmatprep.subr.bf16.mxu1 %v21299_v6 }
 0x162   : > { %17818 = vmatpush3.bf16.msra.mxu1 %v21299_v6  ;;  %v21621_v6 = vld [vmem:[#allocation6 + $0x118] sm:$0xff]  }
 0x163   : > { %17819 = vmatprep.subr.bf16.mxu1 %v21301_v26 }
 0x165   : > { %17788 = vmatmul.mubr.bf16.gmra.mrb[4].mxu1 %v22347_v31 }
 0x166   : > { %17996 = vmatmul.mubr.bf16.gmra.mrb[20].mxu0 %v22578_v12  ;;  %17791 = vmatprep.mubr.bf16.mxu1 %v22356_v36 }
 0x167   : > { %17999 = vmatprep.mubr.bf16.mxu0 %v22589_v16  ;;  %17820 = vmatpush3.bf16.msra.mxu1 %v21301_v26  ;;  %v21623_v26 = vld [vmem:[%s22205_s27 + $0x70] sm:$0xff]  }
 0x168   : > { %17821 = vmatprep.subr.bf16.mxu1 %v21303_v25 }
 0x16b   : > { %17822 = vmatpush3.bf16.msra.mxu1 %v21303_v25  ;;  %v21625_v25 = vld [vmem:[#allocation6 + $0x128] sm:$0xff]  }
 0x16c   : > { %17823 = vmatprep.subr.bf16.mxu1 %v21305_v47 }
 0x16d   : > { %17792 = vmatmul.mubr.bf16.gmra.mrb[8].mxu1 %v22369_v30 }
 0x16e   : > { %18000 = vmatmul.mubr.bf16.gmra.mrb[24].mxu0 %v22603_v55  ;;  %17795 = vmatprep.mubr.bf16.mxu1 %v22373_v43 }
 0x16f   : > { %18003 = vmatprep.mubr.bf16.mxu0 %v22615_v23  ;;  %17824 = vmatpush3.bf16.msra.mxu1 %v21305_v47 }
 0x170   : > { %17825 = vmatprep.subr.bf16.mxu1 %v21307_v54 }
 0x173   : > { %17826 = vmatpush3.bf16.msra.mxu1 %v21307_v54  ;;  %v22726_v54 = vld [vmem:[%s24867_s2] ss:$0 sm:$0xff] }
 0x174   : > { %17827 = vmatprep.subr.bf16.mxu1 %v21309_v15 }
 0x175   : > { %17796 = vmatmul.mubr.bf16.gmra.mrb[12].mxu1 %v22381_v50 }
 0x176   : > { %18004 = vmatmul.mubr.bf16.gmra.mrb[28].mxu0 %v22322_v11  ;;  %17799 = vmatprep.mubr.bf16.mxu1 %v22401_v4 }
 0x177   : > { %18023 = vmatprep.mubr.bf16.mxu0 %v21605_v59  ;;  %17828 = vmatpush3.bf16.msra.mxu1 %v21309_v15 }
 0x178   : > { %17829 = vmatprep.subr.bf16.mxu1 %v21311_v14 }
 0x17b   : > { %17830 = vmatpush3.bf16.msra.mxu1 %v21311_v14 }
 0x17c   : > { %19831 = vmatprep.subr.bf16.mxu1 %v21606_v61 }
 0x17d   : > { %17800 = vmatmul.mubr.bf16.gmra.mrb[16].mxu1 %v22418_v19 }
 0x17e   : > { %18024 = vmatmul.mubr.bf16.vlgmr.msra.gmra.mrb[0].mxu0 %v21607_v49  ;;  %17803 = vmatprep.mubr.bf16.mxu1 %v22432_v56 }
 0x17f   : > { %18056 = vmatpush3.bf16.msra.mxu0 %v21306_v13  ;;  %18027 = vmatprep.mubr.bf16.mxu0 %v21608_v24  ;;  %v21619_v13 = vld [vmem:[%s22205_s27 + $0x60] sm:$0xff]  }
 0x180   : > { %18057 = vmatprep.subr.bf16.mxu0 %v21308_v33 }
 0x183   : > { %18058 = vmatpush3.bf16.msra.mxu0 %v21308_v33 }
 0x184   : > { %18059 = vmatprep.subr.bf16.mxu0 %v21310_v51 }
 0x185   : > { %17804 = vmatmul.mubr.bf16.gmra.mrb[20].mxu1 %v22484_v27 }
 0x186   : > { %18028 = vmatmul.mubr.bf16.gmra.mrb[4].mxu0 %v21609_v35  ;;  %17807 = vmatprep.mubr.bf16.mxu1 %v22492_v40 }
 0x187   : > { %18031 = vmatprep.mubr.bf16.mxu0 %v21610_v62  ;;  %18060 = vmatpush3.bf16.msra.mxu0 %v21310_v51 }
 0x188   : > { %18061 = vmatprep.subr.bf16.mxu0 %v21312_v63 }
 0x18b   : > { %18062 = vmatpush3.bf16.msra.mxu0 %v21312_v63 }
 0x18c   : > { %18063 = vmatprep.subr.bf16.mxu0 %v21313_v28 }
 0x18d   : > { %17808 = vmatmul.mubr.bf16.gmra.mrb[24].mxu1 %v22515_v52 }
 0x18e   : > { %18032 = vmatmul.mubr.bf16.gmra.mrb[8].mxu0 %v21611_v39  ;;  %17811 = vmatprep.mubr.bf16.mxu1 %v22519_v60 }
 0x18f   : > { %18035 = vmatprep.mubr.bf16.mxu0 %v21612_v46  ;;  %18064 = vmatpush3.bf16.msra.mxu0 %v21313_v28 }
 0x190   : > { %18065 = vmatprep.subr.bf16.mxu0 %v21314_v7 }
 0x193   : > { %18066 = vmatpush3.bf16.msra.mxu0 %v21314_v7 }
 0x194   : > { %18067 = vmatprep.subr.bf16.mxu0 %v21315_v17 }
 0x195   : > { %17812 = vmatmul.mubr.bf16.gmra.mrb[28].mxu1 %v22525_v8 }
 0x196   : > { %18036 = vmatmul.mubr.bf16.gmra.mrb[12].mxu0 %v22665_v29  ;;  %17831 = vmatprep.mubr.bf16.mxu1 %v22396_v1  ;;  %v21618_v1 = vld [vmem:[#allocation6 + $0x110] sm:$0xff]  }
 0x197   : > { %18039 = vmatprep.mubr.bf16.mxu0 %v22670_v41  ;;  %18068 = vmatpush3.bf16.msra.mxu0 %v21315_v17 }
 0x198   : > { %18069 = vmatprep.subr.bf16.mxu0 %v21316_v45 }
 0x19b   : > { %18070 = vmatpush3.bf16.msra.mxu0 %v21316_v45 }
 0x19d   : > { %17832 = vmatmul.mubr.bf16.vlgmr.msra.gmra.mrb[0].mxu1 %v22422_v21  ;;  %v21620_v21 = vld [vmem:[%s22205_s27 + $0x68] sm:$0xff]  }
 0x19e   : > { %18040 = vmatmul.mubr.bf16.gmra.mrb[16].mxu0 %v21615_v42  ;;  %19839 = vmatpush3.bf16.msra.mxu1 %v21606_v61 }
 0x19f   : > { %17835 = vmatprep.mubr.bf16.mxu1 %v22468_v9  ;;  %18043 = vmatprep.mubr.bf16.mxu0 %v21616_v2  ;;  %v21622_v9 = vld [vmem:[#allocation6 + $0x120] sm:$0xff]  }
 0x1a0   : > { %19832 = vmatprep.subr.bf16.mxu1 %v21617_v10 }
 0x1a2   : > { %19840 = vmatpush3.bf16.msra.mxu1 %v21617_v10 }
 0x1a3   : > { %19833 = vmatprep.subr.bf16.mxu1 %v21618_v1 }
 0x1a5   : > { %17836 = vmatmul.mubr.bf16.gmra.mrb[4].mxu1 %v22496_v38  ;;  %v21624_v38 = vld [vmem:[%s22205_s27 + $0x78] sm:$0xff]   ;;  %s25017_s27 = sld [smem:[#allocation22_spill]] }
 0x1a6   : > { %18044 = vmatmul.mubr.bf16.gmra.mrb[20].mxu0 %v21619_v13  ;;  %17839 = vmatprep.mubr.bf16.mxu1 %v22505_v53  ;;  %v21626_v53 = vld [vmem:[#allocation6 + $0x130] sm:$0xff]  }
 0x1a7   : > { %18047 = vmatprep.mubr.bf16.mxu0 %v21620_v21  ;;  %19841 = vmatpush3.bf16.msra.mxu1 %v21618_v1  ;;  %v21326_v1 = vld [vmem:[#allocation8 + $0x8] sm:$0xff]  }
 0x1a8   : > { %19834 = vmatprep.subr.bf16.mxu1 %v21621_v6 }
 0x1ab   : > { %19842 = vmatpush3.bf16.msra.mxu1 %v21621_v6 }
 0x1ac   : > { %19835 = vmatprep.subr.bf16.mxu1 %v21622_v9 }
 0x1ad   : > { %17840 = vmatmul.mubr.bf16.gmra.mrb[8].mxu1 %v22509_v3  ;;  %v21627_v3 = vld [vmem:[#allocation6 + $0x138] sm:$0xff]  }
 0x1ae   : > { %18048 = vmatmul.mubr.bf16.gmra.mrb[24].mxu0 %v21623_v26  ;;  %17843 = vmatprep.mubr.bf16.mxu1 %v22529_v5 }
 0x1af   : > { %18051 = vmatprep.mubr.bf16.mxu0 %v21624_v38  ;;  %19843 = vmatpush3.bf16.msra.mxu1 %v21622_v9 }
 0x1b0   : > { %19836 = vmatprep.subr.bf16.mxu1 %v21625_v25 }
 0x1b3   : > { %19844 = vmatpush3.bf16.msra.mxu1 %v21625_v25 }
 0x1b4   : > { %19837 = vmatprep.subr.bf16.mxu1 %v21626_v53 }
 0x1b5   : > { %17844 = vmatmul.mubr.bf16.gmra.mrb[12].mxu1 %v22535_v20 }
 0x1b6   : > { %18052 = vmatmul.mubr.bf16.gmra.mrb[28].mxu0 %v24964_v34  ;;  %17847 = vmatprep.mubr.bf16.mxu1 %v22539_v57 }
 0x1b7   : > { %18071 = vmatprep.mubr.bf16.mxu0 %v22332_v18  ;;  %19845 = vmatpush3.bf16.msra.mxu1 %v21626_v53  ;;  %v21317_v18 = vld [vmem:[#allocation8 + $0x40] sm:$0xff]   ;;  %v21327_v53 = vld [vmem:[#allocation8 + $0x10] sm:$0xff]  }
 0x1b8   : > { %19838 = vmatprep.subr.bf16.mxu1 %v21627_v3 }
 0x1bb   : > { %19846 = vmatpush3.bf16.msra.mxu1 %v21627_v3 }
 0x1bc   : > { %18103 = vmatprep.subr.bf16.mxu1 %v21317_v18 }
 0x1bd   : > { %17848 = vmatmul.mubr.bf16.gmra.mrb[16].mxu1 %v22543_v22 }
 0x1be   : > { %18072 = vmatmul.mubr.bf16.vlgmr.msra.gmra.mrb[0].mxu0 %v22347_v31  ;;  %17851 = vmatprep.mubr.bf16.mxu1 %v22556_v48  ;;  %v21318_v31 = vld [vmem:[#allocation8 + $0x48] sm:$0xff]  }
 0x1bf   : > { %18075 = vmatprep.mubr.bf16.mxu0 %v22356_v36  ;;  %v21319_v36 = vld [vmem:[#allocation8 + $0x50] sm:$0xff]  }
 0x1c5   : > { %17852 = vmatmul.mubr.bf16.gmra.mrb[20].mxu1 %v22574_v0 }
 0x1c6   : > { %18076 = vmatmul.mubr.bf16.gmra.mrb[4].mxu0 %v22369_v30  ;;  %17855 = vmatprep.mubr.bf16.mxu1 %v22578_v12  ;;  %v21320_v30 = vld [vmem:[#allocation8 + $0x58] sm:$0xff]  }
 0x1c7   : > { %18079 = vmatprep.mubr.bf16.mxu0 %v22373_v43  ;;  %v21321_v43 = vld [vmem:[#allocation8 + $0x60] sm:$0xff]  }
 0x1cd   : > { %17856 = vmatmul.mubr.bf16.gmra.mrb[24].mxu1 %v22589_v16 }
 0x1ce   : > { %18080 = vmatmul.mubr.bf16.gmra.mrb[8].mxu0 %v22381_v50  ;;  %17859 = vmatprep.mubr.bf16.mxu1 %v22603_v55  ;;  %v21322_v50 = vld [vmem:[#allocation8 + $0x68] sm:$0xff]  }
 0x1cf   : > { %18083 = vmatprep.mubr.bf16.mxu0 %v22401_v4  ;;  %v21323_v4 = vld [vmem:[#allocation8 + $0x70] sm:$0xff]  }
 0x1d5   : > { %17860 = vmatmul.mubr.bf16.gmra.mrb[28].mxu1 %v22615_v23 }
 0x1d6   : > { %18084 = vmatmul.mubr.bf16.gmra.mrb[12].mxu0 %v22418_v19  ;;  %17895 = vmatprep.mubr.bf16.mxu1 %v22665_v29  ;;  %v21324_v19 = vld [vmem:[#allocation8 + $0x78] sm:$0xff]  }
 0x1d7   : > { %18087 = vmatprep.mubr.bf16.mxu0 %v22432_v56  ;;  %v21325_v56 = vld [vmem:[#allocation8] sm:$0xff]  }
 0x1dd   : > { %17896 = vmatmul.mubr.bf16.vlgmr.msra.gmra.mrb[16].mxu1 %v22670_v41 }
 0x1de   : > { %18088 = vmatmul.mubr.bf16.gmra.mrb[16].mxu0 %v22484_v27  ;;  %17899 = vmatprep.mubr.bf16.mxu1 %v21615_v42 }
 0x1df   : > { %18091 = vmatprep.mubr.bf16.mxu0 %v22492_v40  ;;  %18104 = vmatpush3.bf16.msra.mxu1 %v21317_v18 }
 0x1e0   : > { %18105 = vmatprep.subr.bf16.mxu1 %v21318_v31 }
 0x1e3   : > { %18106 = vmatpush3.bf16.msra.mxu1 %v21318_v31 }
 0x1e4   : > { %18107 = vmatprep.subr.bf16.mxu1 %v21319_v36 }
 0x1e5   : > { %17900 = vmatmul.mubr.bf16.gmra.mrb[20].mxu1 %v21616_v2 }
 0x1e6   : > { %18092 = vmatmul.mubr.bf16.gmra.mrb[20].mxu0 %v22515_v52  ;;  %17903 = vmatprep.mubr.bf16.mxu1 %v21619_v13 }
 0x1e7   : > { %18095 = vmatprep.mubr.bf16.mxu0 %v22519_v60  ;;  %18108 = vmatpush3.bf16.msra.mxu1 %v21319_v36 }
 0x1e8   : > { %18109 = vmatprep.subr.bf16.mxu1 %v21320_v30 }
 0x1eb   : > { %18110 = vmatpush3.bf16.msra.mxu1 %v21320_v30 }
 0x1ec   : > { %18111 = vmatprep.subr.bf16.mxu1 %v21321_v43 }
 0x1ed   : > { %17904 = vmatmul.mubr.bf16.gmra.mrb[24].mxu1 %v21620_v21 }
 0x1ee   : > { %18096 = vmatmul.mubr.bf16.gmra.mrb[24].mxu0 %v22525_v8  ;;  %17907 = vmatprep.mubr.bf16.mxu1 %v21623_v26 }
 0x1ef   : > { %18099 = vmatprep.mubr.bf16.mxu0 %v22549_v32  ;;  %18112 = vmatpush3.bf16.msra.mxu1 %v21321_v43 }
 0x1f0   : > { %18113 = vmatprep.subr.bf16.mxu1 %v21322_v50 }
 0x1f3   : > { %18114 = vmatpush3.bf16.msra.mxu1 %v21322_v50 }
 0x1f4   : > { %18115 = vmatprep.subr.bf16.mxu1 %v21323_v4 }
 0x1f5   : > { %17908 = vmatmul.mubr.bf16.gmra.mrb[28].mxu1 %v21624_v38 }
 0x1f6   : > { %18100 = vmatmul.mubr.bf16.gmra.mrb[28].mxu0 %v22593_v37  ;;  %18119 = vmatprep.mubr.bf16.mxu1 %v24964_v34 }
 0x1f7   : > { %18551 = vmatprep.mubr.bf16.mxu0 %v24964_v34  ;;  %18116 = vmatpush3.bf16.msra.mxu1 %v21323_v4 }
 0x1f8   : > { %18117 = vmatprep.subr.bf16.mxu1 %v21324_v19 }
 0x1fb   : > { %18118 = vmatpush3.bf16.msra.mxu1 %v21324_v19 }
 0x1fc   : > { %18151 = vmatprep.subr.bf16.mxu1 %v21325_v56 }
 0x270   : > { %v17833_v27 = vpop.f32.mrb[0].mxu1 }
 0x271   : > { %v1889_v40 = vpop.f32.mrb[1].mxu1 }
 0x272   : > { %v17834_v52 = vpop.f32.mrb[2].mxu1 }
 0x273   : > { %v1892_v60 = vpop.f32.mrb[3].mxu1 }
 0x278   : > { %v17837_v8 = vpop.f32.mrb[4].mxu1 }
 0x279   : > { %v1905_v5 = vpop.f32.mrb[5].mxu1 }
 0x27a   : > { %v17838_v20 = vpop.f32.mrb[6].mxu1 }
 0x27b   : > { %v1908_v57 = vpop.f32.mrb[7].mxu1 }
 0x280   : > { %v17841_v22 = vpop.f32.mrb[8].mxu1 }
 0x281   : > { %v1921_v32 = vpop.f32.mrb[9].mxu1 }
 0x282   : > { %v17842_v48 = vpop.f32.mrb[10].mxu1 }
 0x283   : > { %v1924_v0 = vpop.f32.mrb[11].mxu1 }
 0x288   : > { %v22715_v12 = vpop.f32.mrb[12].mxu1 }
 0x289   : > { %v22717_v16 = vpop.f32.mrb[13].mxu1 }
 0x28a   : > { %v22719_v55 = vpop.f32.mrb[14].mxu1 }
 0x28b   : > { %v22721_v23 = vpop.f32.mrb[15].mxu1 }
 0x291   : > { %v18073_v47 = vpop.f32.mrb[0].mxu0 }
 0x292   : > { %v19847_v15 = vadd.f32 %v18073_v47, %v17833_v27  ;;  %v3404_v14 = vpop.f32.mrb[1].mxu0 }
 0x293   : > { %v19848_v59 = vadd.f32 %v3404_v14, %v1889_v40  ;;  %v18074_v33 = vpop.f32.mrb[2].mxu0 }
 0x294   : > { %v3572_v61 = vadd.f32 %v19847_v15, %v22726_v54  ;;  %v19849_v49 = vadd.f32 %v18074_v33, %v17834_v52  ;;  %v3407_v51 = vpop.f32.mrb[3].mxu0 }
 0x295   : > { %v3570_v24 = vadd.f32 %v19848_v59, %v22726_v54  ;;  %v19850_v63 = vadd.f32 %v3407_v51, %v1892_v60 }
 0x296   : > { %v3573_v35 = vadd.f32 %v19849_v49, %v22726_v54  ;;  %v3604_v62 = vmax.f32 %v3572_v61, 0.0 }
 0x297   : > { %v3571_v28 = vadd.f32 %v19850_v63, %v22726_v54  ;;  %v3602_v39 = vmax.f32 %v3570_v24, 0.0  ;;  %v21330_v63 = vld [vmem:[#allocation8 + $0x28] sm:$0xff]  }
 0x298   : > { %v3605_v7 = vmax.f32 %v3573_v35, 0.0 }
 0x299   : > { %v3603_v17 = vmax.f32 %v3571_v28, 0.0  ;;  %v18077_v46 = vpop.f32.mrb[4].mxu0 }
 0x29a   : > { %v22732_v45 = vpack.c.bf16 %v3605_v7, %v3604_v62  ;;  %v19851_v29 = vadd.f32 %v18077_v46, %v17837_v8  ;;  %v3420_v41 = vpop.f32.mrb[5].mxu0 }
 0x29b   : > { %v22734_v42 = vpack.c.bf16 %v3603_v17, %v3602_v39  ;;  %v19852_v2 = vadd.f32 %v3420_v41, %v1905_v5  ;;  %v18078_v10 = vpop.f32.mrb[6].mxu0  ;;  %v21331_v17 = vld [vmem:[#allocation8 + $0x30] sm:$0xff]  }
 0x29c   : > { %v3576_v13 = vadd.f32 %v19851_v29, %v22726_v54  ;;  %v19853_v21 = vadd.f32 %v18078_v10, %v17838_v20  ;;  %v3423_v6 = vpop.f32.mrb[7].mxu0 }
 0x29d   : > { %v3574_v9 = vadd.f32 %v19852_v2, %v22726_v54  ;;  %v19854_v26 = vadd.f32 %v3423_v6, %v1908_v57  ;;  %18120 = vmatmul.mubr.bf16.vlgmr.msra.gmra.mrb[32].mxu1 %v22734_v42 }
 0x29e   : > { %v3577_v38 = vadd.f32 %v19853_v21, %v22726_v54  ;;  %18123 = vmatprep.mubr.bf16.mxu1 %v22732_v45  ;;  %18152 = vmatpush3.bf16.msra.mxu1 %v21325_v56  ;;  %v3608_v3 = vmax.f32 %v3576_v13, 0.0  ;;  %v21328_v56 = vld [vmem:[#allocation8 + $0x18] sm:$0xff]  }
 0x29f   : > { %v3575_v25 = vadd.f32 %v19854_v26, %v22726_v54  ;;  %18153 = vmatprep.subr.bf16.mxu1 %v21326_v1  ;;  %v3606_v31 = vmax.f32 %v3574_v9, 0.0 }
 0x2a0   : > { %v3609_v18 = vmax.f32 %v3577_v38, 0.0 }
 0x2a1   : > { %v3607_v36 = vmax.f32 %v3575_v25, 0.0  ;;  %v18081_v30 = vpop.f32.mrb[8].mxu0 }
 0x2a2   : > { %v22742_v43 = vpack.c.bf16 %v3609_v18, %v3608_v3  ;;  %v19855_v50 = vadd.f32 %v18081_v30, %v17841_v22  ;;  %v3436_v4 = vpop.f32.mrb[9].mxu0  ;;  %18154 = vmatpush3.bf16.msra.mxu1 %v21326_v1 }
 0x2a3   : > { %v22744_v19 = vpack.c.bf16 %v3607_v36, %v3606_v31  ;;  %v19856_v27 = vadd.f32 %v3436_v4, %v1921_v32  ;;  %v18082_v40 = vpop.f32.mrb[10].mxu0  ;;  %18155 = vmatprep.subr.bf16.mxu1 %v21327_v53  ;;  %v21329_v32 = vld [vmem:[#allocation8 + $0x20] sm:$0xff]  }
 0x2a4   : > { %v3580_v52 = vadd.f32 %v19855_v50, %v22726_v54  ;;  %v19857_v60 = vadd.f32 %v18082_v40, %v17842_v48  ;;  %v3439_v8 = vpop.f32.mrb[11].mxu0 }
 0x2a5   : > { %v3578_v5 = vadd.f32 %v19856_v27, %v22726_v54  ;;  %v19858_v20 = vadd.f32 %v3439_v8, %v1924_v0  ;;  %18124 = vmatmul.mubr.bf16.gmra.mrb[36].mxu1 %v22744_v19  ;;  %v22776_v27 = vld [vmem:[#allocation8 + $0x80] sm:$0xff]  }
 0x2a6   : > { %v3581_v57 = vadd.f32 %v19857_v60, %v22726_v54  ;;  %18127 = vmatprep.mubr.bf16.mxu1 %v22742_v43  ;;  %18156 = vmatpush3.bf16.msra.mxu1 %v21327_v53  ;;  %v3612_v47 = vmax.f32 %v3580_v52, 0.0  ;;  %v21332_v53 = vld [vmem:[#allocation8 + $0x38] sm:$0xff]  }
 0x2a7   : > { %v3579_v22 = vadd.f32 %v19858_v20, %v22726_v54  ;;  %18157 = vmatprep.subr.bf16.mxu1 %v21328_v56  ;;  %v3610_v14 = vmax.f32 %v3578_v5, 0.0 }
 0x2a8   : > { %v3613_v15 = vmax.f32 %v3581_v57, 0.0 }
 0x2a9   : > { %v3611_v59 = vmax.f32 %v3579_v22, 0.0  ;;  %v18085_v48 = vpop.f32.mrb[12].mxu0 }
 0x2aa   : > { %v22752_v33 = vpack.c.bf16 %v3613_v15, %v3612_v47  ;;  %v19859_v0 = vadd.f32 %v18085_v48, %v22715_v12  ;;  %v3452_v61 = vpop.f32.mrb[13].mxu0  ;;  %18158 = vmatpush3.bf16.msra.mxu1 %v21328_v56 }
 0x2ab   : > { %v22755_v49 = vpack.c.bf16 %v3611_v59, %v3610_v14  ;;  %v19860_v51 = vadd.f32 %v3452_v61, %v22717_v16  ;;  %v18086_v24 = vpop.f32.mrb[14].mxu0  ;;  %18159 = vmatprep.subr.bf16.mxu1 %v21329_v32 }
 0x2ac   : > { %v3584_v35 = vadd.f32 %v19859_v0, %v22726_v54  ;;  %v19861_v28 = vadd.f32 %v18086_v24, %v22719_v55  ;;  %v3455_v62 = vpop.f32.mrb[15].mxu0 }
 0x2ad   : > { %v3582_v7 = vadd.f32 %v19860_v51, %v22726_v54  ;;  %v19862_v39 = vadd.f32 %v3455_v62, %v22721_v23  ;;  %18128 = vmatmul.mubr.bf16.gmra.mrb[40].mxu1 %v22755_v49 }
 0x2ae   : > { %v3585_v12 = vadd.f32 %v19861_v28, %v22726_v54  ;;  %18131 = vmatprep.mubr.bf16.mxu1 %v22752_v33  ;;  %18160 = vmatpush3.bf16.msra.mxu1 %v21329_v32  ;;  %v3616_v46 = vmax.f32 %v3584_v35, 0.0 }
 0x2af   : > { %v3583_v16 = vadd.f32 %v19862_v39, %v22726_v54  ;;  %18161 = vmatprep.subr.bf16.mxu1 %v21330_v63  ;;  %v3614_v55 = vmax.f32 %v3582_v7, 0.0 }
 0x2b0   : > { %v3617_v29 = vmax.f32 %v3585_v12, 0.0  ;;  %v17897_v41 = vpop.f32.mrb[16].mxu1 }
 0x2b1   : > { %v3615_v2 = vmax.f32 %v3583_v16, 0.0  ;;  %v18089_v10 = vpop.f32.mrb[16].mxu0  ;;  %v2211_v1 = vpop.f32.mrb[17].mxu1 }
 0x2b2   : > { %v22766_v13 = vpack.c.bf16 %v3617_v29, %v3616_v46  ;;  %v19863_v23 = vadd.f32 %v18089_v10, %v17897_v41  ;;  %v3468_v21 = vpop.f32.mrb[17].mxu0  ;;  %v17898_v6 = vpop.f32.mrb[18].mxu1  ;;  %18162 = vmatpush3.bf16.msra.mxu1 %v21330_v63 }
 0x2b3   : > { %v22768_v9 = vpack.c.bf16 %v3615_v2, %v3614_v55  ;;  %v19864_v26 = vadd.f32 %v3468_v21, %v2211_v1  ;;  %v18090_v38 = vpop.f32.mrb[18].mxu0  ;;  %v2214_v25 = vpop.f32.mrb[19].mxu1  ;;  %18163 = vmatprep.subr.bf16.mxu1 %v21331_v17 }
 0x2b4   : > { %v3588_v3 = vadd.f32 %v19863_v23, %v22726_v54  ;;  %v19865_v18 = vadd.f32 %v18090_v38, %v17898_v6  ;;  %v3471_v31 = vpop.f32.mrb[19].mxu0 }
 0x2b5   : > { %v3586_v36 = vadd.f32 %v19864_v26, %v22726_v54  ;;  %v19866_v30 = vadd.f32 %v3471_v31, %v2214_v25  ;;  %18132 = vmatmul.mubr.bf16.gmra.mrb[44].mxu1 %v22768_v9 }
 0x2b6   : > { %v3589_v50 = vadd.f32 %v19865_v18, %v22726_v54  ;;  %18135 = vmatprep.mubr.bf16.mxu1 %v22766_v13  ;;  %18164 = vmatpush3.bf16.msra.mxu1 %v21331_v17  ;;  %v3620_v40 = vmax.f32 %v3588_v3, 0.0 }
 0x2b7   : > { %v3587_v4 = vadd.f32 %v19866_v30, %v22726_v54  ;;  %18165 = vmatprep.subr.bf16.mxu1 %v21332_v53  ;;  %v3618_v60 = vmax.f32 %v3586_v36, 0.0 }
 0x2b8   : > { %v3621_v56 = vmax.f32 %v3589_v50, 0.0  ;;  %v17901_v52 = vpop.f32.mrb[20].mxu1 }
 0x2b9   : > { %v3619_v8 = vmax.f32 %v3587_v4, 0.0  ;;  %v18093_v5 = vpop.f32.mrb[20].mxu0  ;;  %v2227_v20 = vpop.f32.mrb[21].mxu1 }
 0x2ba   : > { %v22778_v57 = vpack.c.bf16 %v3621_v56, %v3620_v40  ;;  %v19867_v22 = vadd.f32 %v18093_v5, %v17901_v52  ;;  %v3484_v32 = vpop.f32.mrb[21].mxu0  ;;  %v17902_v47 = vpop.f32.mrb[22].mxu1  ;;  %18166 = vmatpush3.bf16.msra.mxu1 %v21332_v53 }
 0x2bb   : > { %v22780_v15 = vpack.c.bf16 %v3619_v8, %v3618_v60  ;;  %v19868_v14 = vadd.f32 %v3484_v32, %v2227_v20  ;;  %v18094_v59 = vpop.f32.mrb[22].mxu0  ;;  %v2230_v48 = vpop.f32.mrb[23].mxu1  ;;  %18199 = vmatprep.subr.bf16.mxu1 %v22776_v27 }
 0x2bc   : > { %v3592_v0 = vadd.f32 %v19867_v22, %v22726_v54  ;;  %v19869_v61 = vadd.f32 %v18094_v59, %v17902_v47  ;;  %v3487_v51 = vpop.f32.mrb[23].mxu0 }
 0x2bd   : > { %v3590_v24 = vadd.f32 %v19868_v14, %v22726_v54  ;;  %v19870_v63 = vadd.f32 %v3487_v51, %v2230_v48  ;;  %18136 = vmatmul.mubr.bf16.gmra.mrb[48].mxu1 %v22780_v15 }
 0x2be   : > { %v3593_v35 = vadd.f32 %v19869_v61, %v22726_v54  ;;  %18139 = vmatprep.mubr.bf16.mxu1 %v22778_v57  ;;  %v3624_v62 = vmax.f32 %v3592_v0, 0.0 }
 0x2bf   : > { %v3591_v28 = vadd.f32 %v19870_v63, %v22726_v54  ;;  %v3622_v12 = vmax.f32 %v3590_v24, 0.0 }
 0x2c0   : > { %v3625_v7 = vmax.f32 %v3593_v35, 0.0  ;;  %v17905_v39 = vpop.f32.mrb[24].mxu1 }
 0x2c1   : > { %v3623_v16 = vmax.f32 %v3591_v28, 0.0  ;;  %v18097_v17 = vpop.f32.mrb[24].mxu0  ;;  %v2243_v46 = vpop.f32.mrb[25].mxu1  ;;  %v3690_v28 = vshrl.u32 %v22734_v42, 16 }
 0x2c2   : > { %v22789_v29 = vpack.c.bf16 %v3625_v7, %v3624_v62  ;;  %v19871_v41 = vadd.f32 %v18097_v17, %v17905_v39  ;;  %v3500_v55 = vpop.f32.mrb[25].mxu0  ;;  %v17906_v2 = vpop.f32.mrb[26].mxu1  ;;  %v3697_v39 = vshrl.u32 %v22732_v45, 16 }
 0x2c3   : > { %v22791_v10 = vpack.c.bf16 %v3623_v16, %v3622_v12  ;;  %v19872_v1 = vadd.f32 %v3500_v55, %v2243_v46  ;;  %v18098_v23 = vpop.f32.mrb[26].mxu0  ;;  %v2246_v21 = vpop.f32.mrb[27].mxu1  ;;  %v3692_v17 = vrot.slane %v3690_v28, 7 }
 0x2c4   : > { %v3596_v6 = vadd.f32 %v19871_v41, %v22726_v54  ;;  %v19873_v26 = vadd.f32 %v18098_v23, %v17906_v2  ;;  %v3503_v38 = vpop.f32.mrb[27].mxu0  ;;  %v3693_v41 = vshll.u32 %v22734_v42, 16 }
 0x2c5   : > { %v3594_v25 = vadd.f32 %v19872_v1, %v22726_v54  ;;  %v19874_v53 = vadd.f32 %v3503_v38, %v2246_v21  ;;  %18140 = vmatmul.mubr.bf16.gmra.mrb[52].mxu1 %v22791_v10  ;;  %v3700_v1 = vshll.u32 %v22732_v45, 16  ;;  %v3704_v21 = vshrl.u32 %v22744_v19, 16 }
 0x2c6   : > { %v3597_v3 = vadd.f32 %v19873_v26, %v22726_v54  ;;  %18143 = vmatprep.mubr.bf16.mxu1 %v22789_v29  ;;  %v3628_v31 = vmax.f32 %v3596_v6, 0.0  ;;  %v3695_v23 = vor.u32 %v3693_v41, %v3692_v17  ;;  %v3711_v38 = vshrl.u32 %v22742_v43, 16 }
 0x2c7   : > { %v3595_v18 = vadd.f32 %v19874_v53, %v22726_v54  ;;  %v3626_v50 = vmax.f32 %v3594_v25, 0.0  ;;  %v21334_v25 = vld [vmem:[#allocation8 + $0x88] sm:$0xff]   ;;  %v3735_v17 = vshll.u32 %v22768_v9, 16 }
 0x2c8   : > { %v3629_v36 = vmax.f32 %v3597_v3, 0.0  ;;  %v17909_v30 = vpop.f32.mrb[28].mxu1  ;;  %v22839_v53 = vsel %vm22292_vm5, 0, %v3695_v23  ;;  %v3706_v3 = vrot.slane %v3704_v21, 7 }
 0x2c9   : > { %v3627_v4 = vmax.f32 %v3595_v18, 0.0  ;;  %v18101_v40 = vpop.f32.mrb[28].mxu0  ;;  %v2259_v56 = vpop.f32.mrb[29].mxu1 }
 0x2ca   : > { %v22799_v52 = vpack.c.bf16 %v3629_v36, %v3628_v31  ;;  %v19875_v60 = vadd.f32 %v18101_v40, %v17909_v30  ;;  %v3516_v8 = vpop.f32.mrb[29].mxu0  ;;  %v17910_v5 = vpop.f32.mrb[30].mxu1  ;;  %v3713_v31 = vrot.slane %v3711_v38, 7  ;;  %v3707_v36 = vshll.u32 %v22744_v19, 16 }
 0x2cb   : > { %v22801_v20 = vpack.c.bf16 %v3627_v4, %v3626_v50  ;;  %v19876_v22 = vadd.f32 %v3516_v8, %v2259_v56  ;;  %v18102_v32 = vpop.f32.mrb[30].mxu0  ;;  %v2262_v47 = vpop.f32.mrb[31].mxu1  ;;  %v3714_v30 = vshll.u32 %v22742_v43, 16  ;;  %v21335_v50 = vld [vmem:[#allocation8 + $0x90] sm:$0xff]   ;;  %v3718_v40 = vshrl.u32 %v22755_v49, 16  ;;  %v21336_v8 = vld [vmem:[#allocation8 + $0x98] sm:$0xff]  }
 0x2cc   : > { %v3600_v14 = vadd.f32 %v19875_v60, %v22726_v54  ;;  %v19877_v59 = vadd.f32 %v18102_v32, %v17910_v5  ;;  %v3519_v48 = vpop.f32.mrb[31].mxu0  ;;  %v3709_v4 = vor.u32 %v3707_v36, %v3706_v3  ;;  %v3725_v60 = vshrl.u32 %v22752_v33, 16 }
 0x2cd   : > { %v3598_v0 = vadd.f32 %v19876_v22, %v22726_v54  ;;  %v19878_v61 = vadd.f32 %v3519_v48, %v2262_v47  ;;  %18144 = vmatmul.mubr.bf16.gmra.mrb[56].mxu1 %v22801_v20  ;;  %v3716_v56 = vor.u32 %v3714_v30, %v3713_v31  ;;  %v3720_v5 = vrot.slane %v3718_v40, 7  ;;  %v21340_v31 = vld [vmem:[#allocation8 + $0xb8] sm:$0xff]  }
 0x2ce   : > { %v3601_v51 = vadd.f32 %v19877_v59, %v22726_v54  ;;  %18147 = vmatprep.mubr.bf16.mxu1 %v22799_v52  ;;  %v3632_v63 = vmax.f32 %v3600_v14, 0.0  ;;  %v3727_v32 = vrot.slane %v3725_v60, 7  ;;  %v3721_v47 = vshll.u32 %v22755_v49, 16  ;;  %v21337_v59 = vld [vmem:[#allocation8 + $0xa0] sm:$0xff]  }
 0x2cf   : > { %v3599_v24 = vadd.f32 %v19878_v61, %v22726_v54  ;;  %v3630_v62 = vmax.f32 %v3598_v0, 0.0  ;;  %v3699_v54 = vrot.slane %v3697_v39, 7  ;;  %v22869_v22 = vsel %vm22292_vm5, 0, %v3716_v56 }
 0x2d0   : > { %v3633_v35 = vmax.f32 %v3601_v51, 0.0  ;;  %v3728_v14 = vshll.u32 %v22752_v33, 16  ;;  %v3723_v48 = vor.u32 %v3721_v47, %v3720_v5  ;;  %v3732_v0 = vshrl.u32 %v22768_v9, 16 }
 0x2d1   : > { %v3631_v7 = vmax.f32 %v3599_v24, 0.0  ;;  %v3702_v26 = vor.u32 %v3700_v1, %v3699_v54  ;;  %v3739_v51 = vshrl.u32 %v22766_v13, 16  ;;  %v21338_v24 = vld [vmem:[#allocation8 + $0xa8] sm:$0xff]   ;;  %v3742_v54 = vshll.u32 %v22766_v13, 16 }
 0x2d2   : > { %v22811_v12 = vpack.c.bf16 %v3633_v35, %v3632_v63  ;;  %v3730_v61 = vor.u32 %v3728_v14, %v3727_v32  ;;  %v22884_v63 = vsel %vm22292_vm5, 0, %v3723_v48  ;;  %v3734_v35 = vrot.slane %v3732_v0, 7 }
 0x2d3   : > { %v22813_v16 = vpack.c.bf16 %v3631_v7, %v3630_v62  ;;  %v22846_v18 = vsel %vm22292_vm5, 0, %v3702_v26  ;;  %v3741_v7 = vrot.slane %v3739_v51, 7  ;;  %v3746_v26 = vshrl.u32 %v22780_v15, 16 }
 0x2d4   : > { %v24889_v46 = vshll.u32 %v22811_v12, 16  ;;  %v24890_v55 = vshrl.u32 %v22811_v12, 16  ;;  %v22891_v62 = vsel %vm22292_vm5, 0, %v3730_v61  ;;  %v3737_v23 = vor.u32 %v3735_v17, %v3734_v35 }
 0x2d5   : > { %18148 = vmatmul.mubr.bf16.gmra.mrb[60].mxu1 %v22813_v16  ;;  %v24897_v3 = vshrl.u32 %v22778_v57, 16  ;;  %v3749_v5 = vshll.u32 %v22780_v15, 16  ;;  %v3756_v32 = vshll.u32 %v22778_v57, 16  ;;  %v24892_v61 = vshrl.u32 %v22791_v10, 16 }
 0x2d6   : > { %18167 = vmatprep.mubr.bf16.mxu1 %v22322_v11  ;;  %v4789_v2 = vrot.slane %v24889_v46, 1  ;;  %v24891_v35 = vshrl.u32 %v22789_v29, 16 }
 0x2d8   : > { %v22832_v6 = vor.u32 %v4789_v2, %v24890_v55  ;;  %v21339_v2 = vld [vmem:[#allocation8 + $0xb0] sm:$0xff]  }
 0x2dd   : > { %18168 = vmatmul.mubr.bf16.vlgmr.msra.gmra.mrb[32].mxu1 %v22839_v53 }
 0x2de   : > { %18171 = vmatprep.mubr.bf16.mxu1 %v22846_v18  ;;  %18200 = vmatpush3.bf16.msra.mxu1 %v22776_v27  ;;  %v22862_v27 = vsel %vm22292_vm5, 0, %v3709_v4  ;;  %v3748_v4 = vrot.slane %v3746_v26, 7 }
 0x2df   : > { %18201 = vmatprep.subr.bf16.mxu1 %v21334_v25 }
 0x2e0   : > { %v3751_v48 = vor.u32 %v3749_v5, %v3748_v4  ;;  %v24893_v4 = vshll.u32 %v22789_v29, 16 }
 0x2e2   : > { %18202 = vmatpush3.bf16.msra.mxu1 %v21334_v25  ;;  %v3744_v25 = vor.u32 %v3742_v54, %v3741_v7  ;;  %v22928_v7 = vsel %vm22292_vm5, 0, %v3751_v48  ;;  %v24894_v48 = vshrl.u32 %v22801_v20, 16 }
 0x2e3   : > { %18203 = vmatprep.subr.bf16.mxu1 %v21335_v50 }
 0x2e4   : > { %v22913_v56 = vsel %vm22292_vm5, 0, %v3744_v25  ;;  %v3769_v25 = vrot.slane %v24891_v35, 7  ;;  %v3776_v35 = vrot.slane %v24894_v48, 7  ;;  %v24898_v48 = vshrl.u32 %v22813_v16, 16 }
 0x2e5   : > { %18172 = vmatmul.mubr.bf16.gmra.mrb[36].mxu1 %v22862_v27 }
 0x2e6   : > { %18175 = vmatprep.mubr.bf16.mxu1 %v22869_v22  ;;  %18204 = vmatpush3.bf16.msra.mxu1 %v21335_v50  ;;  %v22906_v50 = vsel %vm22292_vm5, 0, %v3737_v23  ;;  %v3772_v46 = vor.u32 %v24893_v4, %v3769_v25  ;;  %v3777_v25 = vshll.u32 %v22801_v20, 16  ;;  %v24899_v4 = vshll.u32 %v22799_v52, 16 }
 0x2e7   : > { %18205 = vmatprep.subr.bf16.mxu1 %v21336_v8 }
 0x2ea   : > { %18206 = vmatpush3.bf16.msra.mxu1 %v21336_v8  ;;  %v3755_v8 = vrot.slane %v24897_v3, 7 }
 0x2eb   : > { %18207 = vmatprep.subr.bf16.mxu1 %v21337_v59 }
 0x2ed   : > { %18176 = vmatmul.mubr.bf16.gmra.mrb[40].mxu1 %v22884_v63 }
 0x2ee   : > { %18179 = vmatprep.mubr.bf16.mxu1 %v22891_v62  ;;  %18208 = vmatpush3.bf16.msra.mxu1 %v21337_v59  ;;  %v21341_v59 = vld [vmem:[#allocation8 + $0xc0] sm:$0xff]  }
 0x2ef   : > { %18209 = vmatprep.subr.bf16.mxu1 %v21338_v24 }
 0x2f2   : > { %18210 = vmatpush3.bf16.msra.mxu1 %v21338_v24  ;;  %v3758_v24 = vor.u32 %v3756_v32, %v3755_v8 }
 0x2f3   : > { %18211 = vmatprep.subr.bf16.mxu1 %v21339_v2 }
 0x2f4   : > { %v22935_v23 = vsel %vm22292_vm5, 0, %v3758_v24  ;;  %v24896_v24 = vshrl.u32 %v22799_v52, 16 }
 0x2f5   : > { %18180 = vmatmul.mubr.bf16.gmra.mrb[44].mxu1 %v22906_v50 }
 0x2f6   : > { %18183 = vmatprep.mubr.bf16.mxu1 %v22913_v56  ;;  %18212 = vmatpush3.bf16.msra.mxu1 %v21339_v2  ;;  %v3762_v2 = vrot.slane %v24892_v61, 7  ;;  %v22957_v61 = vsel %vm22292_vm5, 0, %v3772_v46 }
 0x2f7   : > { %18213 = vmatprep.subr.bf16.mxu1 %v21340_v31 }
 0x2fa   : > { %18214 = vmatpush3.bf16.msra.mxu1 %v21340_v31  ;;  %v24895_v31 = vshll.u32 %v22791_v10, 16 }
 0x2fb   : > { %18247 = vmatprep.subr.bf16.mxu1 %v21341_v59 }
 0x2fc   : > { %v3765_v8 = vor.u32 %v24895_v31, %v3762_v2  ;;  %v3783_v2 = vrot.slane %v24896_v24, 7  ;;  %v3790_v24 = vrot.slane %v24898_v48, 7  ;;  %v3828_v48 = vrot.slane %v3693_v41, 1 }
 0x2fd   : > { %18184 = vmatmul.mubr.bf16.gmra.mrb[48].mxu1 %v22928_v7  ;;  %v3832_v41 = vrot.slane %v3707_v36, 1 }
 0x2fe   : > { %18187 = vmatprep.mubr.bf16.mxu1 %v22935_v23  ;;  %v22950_v55 = vsel %vm22292_vm5, 0, %v3765_v8  ;;  %v3779_v8 = vor.u32 %v3777_v25, %v3776_v35  ;;  %v3786_v31 = vor.u32 %v24899_v4, %v3783_v2  ;;  %v24900_v35 = vshll.u32 %v22813_v16, 16 }
 0x2ff   : > { %v3829_v4 = vor.u32 %v3828_v48, %v3690_v28  ;;  %v3834_v28 = vrot.slane %v3714_v30, 1  ;;  %v21344_v48 = vld [vmem:[#allocation8 + $0xd8] sm:$0xff]   ;;  %v3836_v30 = vrot.slane %v3721_v47, 1 }
 0x300   : > { %v22971_v46 = vsel %vm22292_vm5, 0, %v3779_v8  ;;  %v22978_v3 = vsel %vm22292_vm5, 0, %v3786_v31  ;;  %v3793_v2 = vor.u32 %v24900_v35, %v3790_v24  ;;  %v3830_v31 = vrot.slane %v3700_v1, 1  ;;  %v21342_v35 = vld [vmem:[#allocation8 + $0xc8] sm:$0xff]  }
 0x301   : > { %v3835_v36 = vor.u32 %v3834_v28, %v3711_v38  ;;  %v21345_v38 = vld [vmem:[#allocation8 + $0xe0] sm:$0xff]  }
 0x302   : > { %v22986_v8 = vsel %vm22292_vm5, 0, %v3793_v2  ;;  %v3831_v24 = vor.u32 %v3830_v31, %v3697_v39  ;;  %v23000_v2 = vsel %vm22267_vm4, %v3829_v4, 0  ;;  %v21343_v39 = vld [vmem:[#allocation8 + $0xd0] sm:$0xff]   ;;  %v3833_v4 = vor.u32 %v3832_v41, %v3704_v21 }
 0x303   : > { %v3838_v21 = vrot.slane %v3728_v14, 1  ;;  %v3840_v14 = vrot.slane %v3735_v17, 1 }
 0x304   : > { %v23007_v1 = vsel %vm22267_vm4, %v3831_v24, 0  ;;  %v23018_v31 = vsel %vm22267_vm4, %v3833_v4, 0  ;;  %v21346_v24 = vld [vmem:[#allocation8 + $0xe8] sm:$0xff]   ;;  %v21348_v4 = vld [vmem:[#allocation8 + $0xf8] sm:$0xff]  }
 0x305   : > { %18188 = vmatmul.mubr.bf16.gmra.mrb[52].mxu1 %v22950_v55  ;;  %v3839_v47 = vor.u32 %v3838_v21, %v3725_v60  ;;  %v21347_v60 = vld [vmem:[#allocation8 + $0xf0] sm:$0xff]   ;;  %v24968_v21 = vshrl.u32 %v22778_v57, 16 }
 0x306   : > { %18191 = vmatprep.mubr.bf16.mxu1 %v22957_v61 }
 0x307   : > { %v23043_v28 = vsel %vm22267_vm4, %v3839_v47, 0 }
 0x30d   : > { %18192 = vmatmul.mubr.bf16.gmra.mrb[56].mxu1 %v22971_v46 }
 0x30e   : > { %18195 = vmatprep.mubr.bf16.mxu1 %v22978_v3 }
 0x315   : > { %18196 = vmatmul.mubr.bf16.gmra.mrb[60].mxu1 %v22986_v8 }
 0x316   : > { %18215 = vmatprep.mubr.bf16.mxu1 %v22593_v37 }
 0x31d   : > { %18216 = vmatmul.mubr.bf16.vlgmr.msra.gmra.mrb[32].mxu1 %v23000_v2 }
 0x31e   : > { %18219 = vmatprep.mubr.bf16.mxu1 %v23007_v1  ;;  %18248 = vmatpush3.bf16.msra.mxu1 %v21341_v59  ;;  %v23025_v59 = vsel %vm22267_vm4, %v3835_v36, 0 }
 0x31f   : > { %18249 = vmatprep.subr.bf16.mxu1 %v21342_v35 }
 0x322   : > { %18250 = vmatpush3.bf16.msra.mxu1 %v21342_v35  ;;  %v3837_v35 = vor.u32 %v3836_v30, %v3718_v40  ;;  %v3842_v40 = vrot.slane %v3742_v54, 1  ;;  %v3844_v54 = vrot.slane %v3749_v5, 1 }
 0x323   : > { %18251 = vmatprep.subr.bf16.mxu1 %v21343_v39 }
 0x324   : > { %v23036_v41 = vsel %vm22267_vm4, %v3837_v35, 0  ;;  %v3843_v17 = vor.u32 %v3842_v40, %v3739_v51  ;;  %v21349_v51 = vld [vmem:[#allocation8 + $0x100] sm:$0xff]   ;;  %v3845_v30 = vor.u32 %v3844_v54, %v3746_v26  ;;  %v24969_v35 = vshll.u32 %v22791_v10, 16 }
 0x325   : > { %18220 = vmatmul.mubr.bf16.gmra.mrb[36].mxu1 %v23018_v31  ;;  %v24970_v26 = vshll.u32 %v22789_v29, 16 }
 0x326   : > { %18223 = vmatprep.mubr.bf16.mxu1 %v23025_v59  ;;  %18252 = vmatpush3.bf16.msra.mxu1 %v21343_v39  ;;  %v3841_v39 = vor.u32 %v3840_v14, %v3732_v0  ;;  %v3846_v0 = vrot.slane %v3756_v32, 1  ;;  %v3848_v32 = vrot.slane %v24969_v35, 1  ;;  %v24971_v14 = vshrl.u32 %v22791_v10, 16 }
 0x327   : > { %18253 = vmatprep.subr.bf16.mxu1 %v21344_v48  ;;  %v24975_v35 = vshrl.u32 %v22799_v52, 16 }
 0x328   : > { %v23054_v36 = vsel %vm22267_vm4, %v3841_v39, 0  ;;  %v3847_v5 = vor.u32 %v3846_v0, %v24968_v21  ;;  %v3849_v40 = vor.u32 %v3848_v32, %v24971_v14  ;;  %v24973_v0 = vshll.u32 %v22799_v52, 16 }
 0x329   : > { %v24974_v21 = vshrl.u32 %v22801_v20, 16 }
 0x32a   : > { %18254 = vmatpush3.bf16.msra.mxu1 %v21344_v48  ;;  %v23061_v48 = vsel %vm22267_vm4, %v3843_v17, 0  ;;  %v23079_v47 = vsel %vm22267_vm4, %v3847_v5, 0  ;;  %v23090_v17 = vsel %vm22267_vm4, %v3849_v40, 0  ;;  %v24977_v40 = vshrl.u32 %v22813_v16, 16 }
 0x32b   : > { %18255 = vmatprep.subr.bf16.mxu1 %v21345_v38 }
 0x32d   : > { %18224 = vmatmul.mubr.bf16.gmra.mrb[40].mxu1 %v23036_v41 }
 0x32e   : > { %18227 = vmatprep.mubr.bf16.mxu1 %v23043_v28  ;;  %18256 = vmatpush3.bf16.msra.mxu1 %v21345_v38  ;;  %v23072_v38 = vsel %vm22267_vm4, %v3845_v30, 0  ;;  %v3854_v30 = vrot.slane %v24973_v0, 1  ;;  %v21351_v0 = vld [vmem:[#allocation8 + $0x110] sm:$0xff]  }
 0x32f   : > { %18257 = vmatprep.subr.bf16.mxu1 %v21346_v24 }
 0x330   : > { %v3855_v32 = vor.u32 %v3854_v30, %v24975_v35  ;;  %v21352_v30 = vld [vmem:[#allocation8 + $0x118] sm:$0xff]   ;;  %v21357_v35 = vld [vmem:[#allocation8 + $0x140] sm:$0xff]  }
 0x332   : > { %18258 = vmatpush3.bf16.msra.mxu1 %v21346_v24  ;;  %v3850_v24 = vrot.slane %v24970_v26, 1  ;;  %v24976_v26 = vshll.u32 %v22813_v16, 16  ;;  %v23115_v14 = vsel %vm22267_vm4, %v3855_v32, 0  ;;  %v24978_v32 = vshrl.u32 %v22811_v12, 16 }
 0x333   : > { %18259 = vmatprep.subr.bf16.mxu1 %v21347_v60 }
 0x335   : > { %18228 = vmatmul.mubr.bf16.gmra.mrb[44].mxu1 %v23054_v36 }
 0x336   : > { %18231 = vmatprep.mubr.bf16.mxu1 %v23061_v48  ;;  %18260 = vmatpush3.bf16.msra.mxu1 %v21347_v60  ;;  %v24972_v60 = vshrl.u32 %v22789_v29, 16 }
 0x337   : > { %18261 = vmatprep.subr.bf16.mxu1 %v21348_v4 }
 0x338   : > { %v3851_v39 = vor.u32 %v3850_v24, %v24972_v60  ;;  %v3856_v24 = vrot.slane %v24976_v26, 1  ;;  %v4723_v26 = vrot.slane %v24978_v32, 7  ;;  %v21367_v32 = vld [vmem:[#allocation8 + $0x190] sm:$0xff]  }
 0x33a   : > { %18262 = vmatpush3.bf16.msra.mxu1 %v21348_v4  ;;  %v3852_v4 = vrot.slane %v3777_v25, 1  ;;  %v23097_v54 = vsel %vm22267_vm4, %v3851_v39, 0  ;;  %v3857_v60 = vor.u32 %v3856_v24, %v24977_v40  ;;  %v24979_v24 = vshll.u32 %v22811_v12, 16 }
 0x33b   : > { %18295 = vmatprep.subr.bf16.mxu1 %v21349_v51 }
 0x33c   : > { %v3853_v5 = vor.u32 %v3852_v4, %v24974_v21  ;;  %v23122_v39 = vsel %vm22267_vm4, %v3857_v60, 0  ;;  %v21350_v4 = vld [vmem:[#allocation8 + $0x108] sm:$0xff]   ;;  %v21353_v21 = vld [vmem:[#allocation8 + $0x120] sm:$0xff]   ;;  %v4726_v40 = vor.u32 %v24979_v24, %v4723_v26  ;;  %v21368_v26 = vld [vmem:[#allocation8 + $0x198] sm:$0xff]  }
 0x33d   : > { %18232 = vmatmul.mubr.bf16.gmra.mrb[48].mxu1 %v23072_v38  ;;  %v21369_v24 = vld [vmem:[#allocation8 + $0x1a0] sm:$0xff]  }
 0x33e   : > { %18235 = vmatprep.mubr.bf16.mxu1 %v23079_v47  ;;  %v23108_v25 = vsel %vm22267_vm4, %v3853_v5, 0  ;;  %v21356_v5 = vld [vmem:[#allocation8 + $0x138] sm:$0xff]   ;;  %v23146_v60 = vsel %vm22292_vm5, 0, %v4726_v40  ;;  %v21371_v40 = vld [vmem:[#allocation8 + $0x1b0] sm:$0xff]  }
 0x345   : > { %18236 = vmatmul.mubr.bf16.gmra.mrb[52].mxu1 %v23090_v17 }
 0x346   : > { %18239 = vmatprep.mubr.bf16.mxu1 %v23097_v54 }
 0x34d   : > { %18240 = vmatmul.mubr.bf16.gmra.mrb[56].mxu1 %v23108_v25 }
 0x34e   : > { %18243 = vmatprep.mubr.bf16.mxu1 %v23115_v14 }
 0x355   : > { %18244 = vmatmul.mubr.bf16.gmra.mrb[60].mxu1 %v23122_v39 }
 0x356   : > { %18263 = vmatprep.mubr.bf16.mxu1 %v22839_v53  ;;  %v21354_v53 = vld [vmem:[#allocation8 + $0x128] sm:$0xff]  }
 0x35d   : > { %18264 = vmatmul.mubr.bf16.vlgmr.msra.gmra.mrb[32].mxu1 %v22846_v18 }
 0x35e   : > { %18267 = vmatprep.mubr.bf16.mxu1 %v22862_v27  ;;  %18296 = vmatpush3.bf16.msra.mxu1 %v21349_v51  ;;  %v21355_v51 = vld [vmem:[#allocation8 + $0x130] sm:$0xff]  }
 0x35f   : > { %18297 = vmatprep.subr.bf16.mxu1 %v21350_v4 }
 0x362   : > { %18298 = vmatpush3.bf16.msra.mxu1 %v21350_v4  ;;  %v21358_v4 = vld [vmem:[#allocation8 + $0x148] sm:$0xff]  }
 0x363   : > { %18299 = vmatprep.subr.bf16.mxu1 %v21351_v0 }
 0x365   : > { %18268 = vmatmul.mubr.bf16.gmra.mrb[36].mxu1 %v22869_v22 }
 0x366   : > { %18271 = vmatprep.mubr.bf16.mxu1 %v22884_v63  ;;  %18300 = vmatpush3.bf16.msra.mxu1 %v21351_v0  ;;  %v21359_v0 = vld [vmem:[#allocation8 + $0x150] sm:$0xff]  }
 0x367   : > { %18301 = vmatprep.subr.bf16.mxu1 %v21352_v30 }
 0x36a   : > { %18302 = vmatpush3.bf16.msra.mxu1 %v21352_v30  ;;  %v21360_v30 = vld [vmem:[#allocation8 + $0x158] sm:$0xff]  }
 0x36b   : > { %18303 = vmatprep.subr.bf16.mxu1 %v21353_v21 }
 0x36d   : > { %18272 = vmatmul.mubr.bf16.gmra.mrb[40].mxu1 %v22891_v62 }
 0x36e   : > { %18275 = vmatprep.mubr.bf16.mxu1 %v22906_v50  ;;  %18304 = vmatpush3.bf16.msra.mxu1 %v21353_v21  ;;  %v21361_v21 = vld [vmem:[#allocation8 + $0x160] sm:$0xff]  }
 0x36f   : > { %18305 = vmatprep.subr.bf16.mxu1 %v21354_v53 }
 0x372   : > { %18306 = vmatpush3.bf16.msra.mxu1 %v21354_v53  ;;  %v21363_v53 = vld [vmem:[#allocation8 + $0x170] sm:$0xff]  }
 0x373   : > { %18307 = vmatprep.subr.bf16.mxu1 %v21355_v51 }
 0x375   : > { %18276 = vmatmul.mubr.bf16.gmra.mrb[44].mxu1 %v22913_v56 }
 0x376   : > { %18279 = vmatprep.mubr.bf16.mxu1 %v22928_v7  ;;  %18308 = vmatpush3.bf16.msra.mxu1 %v21355_v51  ;;  %v21364_v51 = vld [vmem:[#allocation8 + $0x178] sm:$0xff]  }
 0x377   : > { %18309 = vmatprep.subr.bf16.mxu1 %v21356_v5 }
 0x37a   : > { %18310 = vmatpush3.bf16.msra.mxu1 %v21356_v5  ;;  %v21365_v5 = vld [vmem:[#allocation8 + $0x180] sm:$0xff]  }
 0x37b   : > { %18343 = vmatprep.subr.bf16.mxu1 %v21357_v35 }
 0x37d   : > { %18280 = vmatmul.mubr.bf16.gmra.mrb[48].mxu1 %v22935_v23 }
 0x37e   : > { %18283 = vmatprep.mubr.bf16.mxu1 %v22950_v55 }
 0x385   : > { %18284 = vmatmul.mubr.bf16.gmra.mrb[52].mxu1 %v22957_v61 }
 0x386   : > { %18287 = vmatprep.mubr.bf16.mxu1 %v22971_v46 }
 0x38d   : > { %18288 = vmatmul.mubr.bf16.gmra.mrb[56].mxu1 %v22978_v3 }
 0x38e   : > { %18291 = vmatprep.mubr.bf16.mxu1 %v22986_v8 }
 0x395   : > { %18292 = vmatmul.mubr.bf16.gmra.mrb[60].mxu1 %v23146_v60 }
 0x396   : > { %18311 = vmatprep.mubr.bf16.mxu1 %v22734_v42  ;;  %v21362_v42 = vld [vmem:[#allocation8 + $0x168] sm:$0xff]  }
 0x39d   : > { %18312 = vmatmul.mubr.bf16.vlgmr.msra.gmra.mrb[32].mxu1 %v22732_v45 }
 0x39e   : > { %18315 = vmatprep.mubr.bf16.mxu1 %v22744_v19  ;;  %18344 = vmatpush3.bf16.msra.mxu1 %v21357_v35  ;;  %v21366_v35 = vld [vmem:[#allocation8 + $0x188] sm:$0xff]  }
 0x39f   : > { %18345 = vmatprep.subr.bf16.mxu1 %v21358_v4 }
 0x3a2   : > { %18346 = vmatpush3.bf16.msra.mxu1 %v21358_v4  ;;  %v21372_v4 = vld [vmem:[#allocation8 + $0x1b8] sm:$0xff]  }
 0x3a3   : > { %18347 = vmatprep.subr.bf16.mxu1 %v21359_v0 }
 0x3a5   : > { %18316 = vmatmul.mubr.bf16.gmra.mrb[36].mxu1 %v22742_v43 }
 0x3a6   : > { %18319 = vmatprep.mubr.bf16.mxu1 %v22755_v49  ;;  %18348 = vmatpush3.bf16.msra.mxu1 %v21359_v0  ;;  %v21373_v0 = vld [vmem:[#allocation8 + $0x1c0] sm:$0xff]  }
 0x3a7   : > { %18349 = vmatprep.subr.bf16.mxu1 %v21360_v30 }
 0x3aa   : > { %18350 = vmatpush3.bf16.msra.mxu1 %v21360_v30  ;;  %v23183_v30 = vsel %vm22267_vm4, %v22832_v6, 0  ;;  %v21377_v6 = vld [vmem:[#allocation8 + $0x1e0] sm:$0xff]  }
 0x3ab   : > { %18351 = vmatprep.subr.bf16.mxu1 %v21361_v21 }
 0x3ad   : > { %18320 = vmatmul.mubr.bf16.gmra.mrb[40].mxu1 %v22752_v33 }
 0x3ae   : > { %18323 = vmatprep.mubr.bf16.mxu1 %v22768_v9  ;;  %18352 = vmatpush3.bf16.msra.mxu1 %v21361_v21  ;;  %v21374_v21 = vld [vmem:[#allocation8 + $0x1c8] sm:$0xff]  }
 0x3af   : > { %18353 = vmatprep.subr.bf16.mxu1 %v21362_v42 }
 0x3b2   : > { %18354 = vmatpush3.bf16.msra.mxu1 %v21362_v42  ;;  %v21375_v42 = vld [vmem:[#allocation8 + $0x1d0] sm:$0xff]  }
 0x3b3   : > { %18355 = vmatprep.subr.bf16.mxu1 %v21363_v53 }
 0x3b5   : > { %18324 = vmatmul.mubr.bf16.gmra.mrb[44].mxu1 %v22766_v13 }
 0x3b6   : > { %18327 = vmatprep.mubr.bf16.mxu1 %v22780_v15  ;;  %18356 = vmatpush3.bf16.msra.mxu1 %v21363_v53  ;;  %v21376_v53 = vld [vmem:[#allocation8 + $0x1d8] sm:$0xff]  }
 0x3b7   : > { %18357 = vmatprep.subr.bf16.mxu1 %v21364_v51 }
 0x3ba   : > { %18358 = vmatpush3.bf16.msra.mxu1 %v21364_v51  ;;  %v21399_v51 = vld [vmem:[#allocation9 + $0x10] sm:$0xff]  }
 0x3bb   : > { %18391 = vmatprep.subr.bf16.mxu1 %v21365_v5 }
 0x3bd   : > { %18328 = vmatmul.mubr.bf16.gmra.mrb[48].mxu1 %v22778_v57 }
 0x3be   : > { %18331 = vmatprep.mubr.bf16.mxu1 %v22791_v10 }
 0x3c5   : > { %18332 = vmatmul.mubr.bf16.gmra.mrb[52].mxu1 %v22789_v29 }
 0x3c6   : > { %18335 = vmatprep.mubr.bf16.mxu1 %v22801_v20 }
 0x3cd   : > { %18336 = vmatmul.mubr.bf16.gmra.mrb[56].mxu1 %v22799_v52 }
 0x3ce   : > { %18339 = vmatprep.mubr.bf16.mxu1 %v22813_v16 }
 0x3d5   : > { %18340 = vmatmul.mubr.bf16.gmra.mrb[60].mxu1 %v22811_v12 }
 0x3d6   : > { %18359 = vmatprep.mubr.bf16.mxu1 %v23000_v2  ;;  %v21370_v2 = vld [vmem:[#allocation8 + $0x1a8] sm:$0xff]  }
 0x3dd   : > { %18360 = vmatmul.mubr.bf16.vlgmr.msra.gmra.mrb[32].mxu1 %v23007_v1 }
 0x3de   : > { %18363 = vmatprep.mubr.bf16.mxu1 %v23018_v31  ;;  %18392 = vmatpush3.bf16.msra.mxu1 %v21365_v5 }
 0x3df   : > { %18393 = vmatprep.subr.bf16.mxu1 %v21366_v35 }
 0x3e2   : > { %18394 = vmatpush3.bf16.msra.mxu1 %v21366_v35 }
 0x3e3   : > { %18395 = vmatprep.subr.bf16.mxu1 %v21367_v32 }
 0x3e5   : > { %18364 = vmatmul.mubr.bf16.gmra.mrb[36].mxu1 %v23025_v59 }
 0x3e6   : > { %18367 = vmatprep.mubr.bf16.mxu1 %v23036_v41  ;;  %18396 = vmatpush3.bf16.msra.mxu1 %v21367_v32 }
 0x3e7   : > { %18397 = vmatprep.subr.bf16.mxu1 %v21368_v26 }
 0x3ea   : > { %18398 = vmatpush3.bf16.msra.mxu1 %v21368_v26 }
 0x3eb   : > { %18399 = vmatprep.subr.bf16.mxu1 %v21369_v24 }
 0x3ed   : > { %18368 = vmatmul.mubr.bf16.gmra.mrb[40].mxu1 %v23043_v28 }
 0x3ee   : > { %18371 = vmatprep.mubr.bf16.mxu1 %v23054_v36  ;;  %18400 = vmatpush3.bf16.msra.mxu1 %v21369_v24 }
 0x3ef   : > { %18401 = vmatprep.subr.bf16.mxu1 %v21370_v2 }
 0x3f2   : > { %18402 = vmatpush3.bf16.msra.mxu1 %v21370_v2 }
 0x3f3   : > { %18403 = vmatprep.subr.bf16.mxu1 %v21371_v40 }
 0x3f5   : > { %18372 = vmatmul.mubr.bf16.gmra.mrb[44].mxu1 %v23061_v48 }
 0x3f6   : > { %18375 = vmatprep.mubr.bf16.mxu1 %v23072_v38  ;;  %18404 = vmatpush3.bf16.msra.mxu1 %v21371_v40 }
 0x3f7   : > { %18405 = vmatprep.subr.bf16.mxu1 %v21372_v4 }
 0x3fa   : > { %18406 = vmatpush3.bf16.msra.mxu1 %v21372_v4  ;;  %v21400_v4 = vld [vmem:[#allocation9 + $0x18] sm:$0xff]  }
 0x3fb   : > { %18439 = vmatprep.subr.bf16.mxu1 %v21373_v0 }
 0x3fd   : > { %18376 = vmatmul.mubr.bf16.gmra.mrb[48].mxu1 %v23079_v47 }
 0x3fe   : > { %18379 = vmatprep.mubr.bf16.mxu1 %v23090_v17 }
 0x405   : > { %18380 = vmatmul.mubr.bf16.gmra.mrb[52].mxu1 %v23097_v54 }
 0x406   : > { %18383 = vmatprep.mubr.bf16.mxu1 %v23108_v25 }
 0x40d   : > { %18384 = vmatmul.mubr.bf16.gmra.mrb[56].mxu1 %v23115_v14 }
 0x40e   : > { %18387 = vmatprep.mubr.bf16.mxu1 %v23122_v39 }
 0x415   : > { %18388 = vmatmul.mubr.bf16.gmra.mrb[60].mxu1 %v23183_v30 }
 0x416   : > { %18407 = vmatprep.mubr.bf16.mxu1 %v22846_v18  ;;  %v21378_v18 = vld [vmem:[#allocation8 + $0x1e8] sm:$0xff]  }
 0x41d   : > { %18408 = vmatmul.mubr.bf16.vlgmr.msra.gmra.mrb[32].mxu1 %v22862_v27  ;;  %v21379_v27 = vld [vmem:[#allocation8 + $0x1f0] sm:$0xff]  }
 0x41e   : > { %18411 = vmatprep.mubr.bf16.mxu1 %v22869_v22  ;;  %18440 = vmatpush3.bf16.msra.mxu1 %v21373_v0  ;;  %v21380_v22 = vld [vmem:[#allocation8 + $0x1f8] sm:$0xff]  }
 0x41f   : > { %18441 = vmatprep.subr.bf16.mxu1 %v21374_v21 }
 0x422   : > { %18442 = vmatpush3.bf16.msra.mxu1 %v21374_v21 }
 0x423   : > { %18443 = vmatprep.subr.bf16.mxu1 %v21375_v42 }
 0x425   : > { %18412 = vmatmul.mubr.bf16.gmra.mrb[36].mxu1 %v22884_v63  ;;  %v21381_v63 = vld [vmem:[#allocation8 + $0x200] sm:$0xff]  }
 0x426   : > { %18415 = vmatprep.mubr.bf16.mxu1 %v22891_v62  ;;  %18444 = vmatpush3.bf16.msra.mxu1 %v21375_v42  ;;  %v21389_v62 = vld [vmem:[#allocation9 + $0x40] sm:$0xff]  }
 0x427   : > { %18445 = vmatprep.subr.bf16.mxu1 %v21376_v53  ;;  %18535 = vmatprep.subr.bf16.mxu0 %v21389_v62 }
 0x428   : > { %18536 = vmatpush3.bf16.msra.mxu0 %v21389_v62 }
 0x42a   : > { %18446 = vmatpush3.bf16.msra.mxu1 %v21376_v53 }
 0x42b   : > { %18447 = vmatprep.subr.bf16.mxu1 %v21377_v6 }
 0x42d   : > { %18416 = vmatmul.mubr.bf16.gmra.mrb[40].mxu1 %v22906_v50  ;;  %v21390_v50 = vld [vmem:[#allocation9 + $0x48] sm:$0xff]  }
 0x42e   : > { %18419 = vmatprep.mubr.bf16.mxu1 %v22913_v56  ;;  %18448 = vmatpush3.bf16.msra.mxu1 %v21377_v6  ;;  %v21382_v56 = vld [vmem:[#allocation8 + $0x208] sm:$0xff]  }
 0x42f   : > { %18449 = vmatprep.subr.bf16.mxu1 %v21378_v18  ;;  %18537 = vmatprep.subr.bf16.mxu0 %v21390_v50 }
 0x430   : > { %18538 = vmatpush3.bf16.msra.mxu0 %v21390_v50 }
 0x432   : > { %18450 = vmatpush3.bf16.msra.mxu1 %v21378_v18 }
 0x433   : > { %18451 = vmatprep.subr.bf16.mxu1 %v21379_v27 }
 0x435   : > { %18420 = vmatmul.mubr.bf16.gmra.mrb[44].mxu1 %v22928_v7  ;;  %v21393_v7 = vld [vmem:[#allocation9 + $0x60] sm:$0xff]  }
 0x436   : > { %18423 = vmatprep.mubr.bf16.mxu1 %v22935_v23  ;;  %18452 = vmatpush3.bf16.msra.mxu1 %v21379_v27  ;;  %v21394_v23 = vld [vmem:[#allocation9 + $0x68] sm:$0xff]   ;;  %v21401_v27 = vld [vmem:[#allocation9 + $0x20] sm:$0xff]  }
 0x437   : > { %18453 = vmatprep.subr.bf16.mxu1 %v21380_v22 }
 0x43a   : > { %18454 = vmatpush3.bf16.msra.mxu1 %v21380_v22 }
 0x43b   : > { %18487 = vmatprep.subr.bf16.mxu1 %v21381_v63 }
 0x43d   : > { %18424 = vmatmul.mubr.bf16.gmra.mrb[48].mxu1 %v22950_v55  ;;  %v21391_v55 = vld [vmem:[#allocation9 + $0x50] sm:$0xff]  }
 0x43e   : > { %18427 = vmatprep.mubr.bf16.mxu1 %v22957_v61  ;;  %18539 = vmatprep.subr.bf16.mxu0 %v21391_v55  ;;  %v21383_v61 = vld [vmem:[#allocation8 + $0x210] sm:$0xff]  }
 0x43f   : > { %18540 = vmatpush3.bf16.msra.mxu0 %v21391_v55 }
 0x445   : > { %18428 = vmatmul.mubr.bf16.gmra.mrb[52].mxu1 %v22971_v46  ;;  %v21386_v46 = vld [vmem:[#allocation8 + $0x228] sm:$0xff]  }
 0x446   : > { %18431 = vmatprep.mubr.bf16.mxu1 %v22978_v3  ;;  %v21392_v3 = vld [vmem:[#allocation9 + $0x58] sm:$0xff]  }
 0x447   : > { %18541 = vmatprep.subr.bf16.mxu0 %v21392_v3 }
 0x448   : > { %18542 = vmatpush3.bf16.msra.mxu0 %v21392_v3 }
 0x449   : > { %18543 = vmatprep.subr.bf16.mxu0 %v21393_v7 }
 0x44c   : > { %18544 = vmatpush3.bf16.msra.mxu0 %v21393_v7 }
 0x44d   : > { %18432 = vmatmul.mubr.bf16.gmra.mrb[56].mxu1 %v22986_v8  ;;  %18545 = vmatprep.subr.bf16.mxu0 %v21394_v23 }
 0x44e   : > { %18435 = vmatprep.mubr.bf16.mxu1 %v23146_v60 }
 0x450   : > { %18546 = vmatpush3.bf16.msra.mxu0 %v21394_v23 }
 0x455   : > { %18436 = vmatmul.mubr.bf16.gmra.mrb[60].mxu1 %v22322_v11 }
 0x456   : > { %18455 = vmatprep.mubr.bf16.mxu1 %v22732_v45  ;;  %v21384_v45 = vld [vmem:[#allocation8 + $0x218] sm:$0xff]  }
 0x45d   : > { %18456 = vmatmul.mubr.bf16.vlgmr.msra.gmra.mrb[32].mxu1 %v22744_v19  ;;  %v21385_v19 = vld [vmem:[#allocation8 + $0x220] sm:$0xff]  }
 0x45e   : > { %18459 = vmatprep.mubr.bf16.mxu1 %v22742_v43  ;;  %18488 = vmatpush3.bf16.msra.mxu1 %v21381_v63  ;;  %v21395_v43 = vld [vmem:[#allocation9 + $0x70] sm:$0xff]  }
 0x45f   : > { %18489 = vmatprep.subr.bf16.mxu1 %v21382_v56  ;;  %18547 = vmatprep.subr.bf16.mxu0 %v21395_v43 }
 0x460   : > { %18548 = vmatpush3.bf16.msra.mxu0 %v21395_v43 }
 0x462   : > { %18490 = vmatpush3.bf16.msra.mxu1 %v21382_v56 }
 0x463   : > { %18491 = vmatprep.subr.bf16.mxu1 %v21383_v61 }
 0x465   : > { %18460 = vmatmul.mubr.bf16.gmra.mrb[36].mxu1 %v22755_v49  ;;  %v21387_v49 = vld [vmem:[#allocation8 + $0x230] sm:$0xff]  }
 0x466   : > { %18463 = vmatprep.mubr.bf16.mxu1 %v22752_v33  ;;  %18492 = vmatpush3.bf16.msra.mxu1 %v21383_v61  ;;  %v21388_v33 = vld [vmem:[#allocation8 + $0x238] sm:$0xff]   ;;  %v21402_v61 = vld [vmem:[#allocation9 + $0x28] sm:$0xff]  }
 0x467   : > { %18493 = vmatprep.subr.bf16.mxu1 %v21384_v45 }
 0x46a   : > { %18494 = vmatpush3.bf16.msra.mxu1 %v21384_v45 }
 0x46b   : > { %18495 = vmatprep.subr.bf16.mxu1 %v21385_v19 }
 0x46d   : > { %18464 = vmatmul.mubr.bf16.gmra.mrb[40].mxu1 %v22768_v9  ;;  %v21397_v9 = vld [vmem:[#allocation9] sm:$0xff]  }
 0x46e   : > { %18467 = vmatprep.mubr.bf16.mxu1 %v22766_v13  ;;  %18496 = vmatpush3.bf16.msra.mxu1 %v21385_v19  ;;  %v21396_v13 = vld [vmem:[#allocation9 + $0x78] sm:$0xff]  }
 0x46f   : > { %18497 = vmatprep.subr.bf16.mxu1 %v21386_v46  ;;  %18549 = vmatprep.subr.bf16.mxu0 %v21396_v13 }
 0x470   : > { %18550 = vmatpush3.bf16.msra.mxu0 %v21396_v13 }
 0x471   : > { %18583 = vmatprep.subr.bf16.mxu0 %v21397_v9 }
 0x472   : > { %18498 = vmatpush3.bf16.msra.mxu1 %v21386_v46 }
 0x473   : > { %18499 = vmatprep.subr.bf16.mxu1 %v21387_v49 }
 0x475   : > { %18468 = vmatmul.mubr.bf16.gmra.mrb[44].mxu1 %v22780_v15 }
 0x476   : > { %18471 = vmatprep.mubr.bf16.mxu1 %v22778_v57  ;;  %18500 = vmatpush3.bf16.msra.mxu1 %v21387_v49  ;;  %v23238_v57 = vld [vmem:[%s24869_s4] ss:$0 sm:$0xff] }
 0x477   : > { %18501 = vmatprep.subr.bf16.mxu1 %v21388_v33 }
 0x47a   : > { %18502 = vmatpush3.bf16.msra.mxu1 %v21388_v33  ;;  %v21403_v33 = vld [vmem:[#allocation9 + $0x30] sm:$0xff]  }
 0x47d   : > { %18472 = vmatmul.mubr.bf16.gmra.mrb[48].mxu1 %v22791_v10 }
 0x47e   : > { %18475 = vmatprep.mubr.bf16.mxu1 %v22789_v29 }
 0x485   : > { %18476 = vmatmul.mubr.bf16.gmra.mrb[52].mxu1 %v22801_v20 }
 0x486   : > { %18479 = vmatprep.mubr.bf16.mxu1 %v22799_v52 }
 0x48d   : > { %18480 = vmatmul.mubr.bf16.gmra.mrb[56].mxu1 %v22813_v16 }
 0x48e   : > { %18483 = vmatprep.mubr.bf16.mxu1 %v22811_v12 }
 0x495   : > { %18484 = vmatmul.mubr.bf16.gmra.mrb[60].mxu1 %v24964_v34 }
 0x496   : > { %18503 = vmatprep.mubr.bf16.mxu1 %v23007_v1 }
 0x49d   : > { %18504 = vmatmul.mubr.bf16.vlgmr.msra.gmra.mrb[32].mxu1 %v23018_v31 }
 0x49e   : > { %18507 = vmatprep.mubr.bf16.mxu1 %v23025_v59 }
 0x4a5   : > { %18508 = vmatmul.mubr.bf16.gmra.mrb[36].mxu1 %v23036_v41 }
 0x4a6   : > { %18511 = vmatprep.mubr.bf16.mxu1 %v23043_v28 }
 0x4ad   : > { %18512 = vmatmul.mubr.bf16.gmra.mrb[40].mxu1 %v23054_v36 }
 0x4ae   : > { %18515 = vmatprep.mubr.bf16.mxu1 %v23061_v48 }
 0x4b5   : > { %18516 = vmatmul.mubr.bf16.gmra.mrb[44].mxu1 %v23072_v38  ;;  %v21398_v38 = vld [vmem:[#allocation9 + $0x8] sm:$0xff]  }
 0x4b6   : > { %18519 = vmatprep.mubr.bf16.mxu1 %v23079_v47 }
 0x4bd   : > { %18520 = vmatmul.mubr.bf16.gmra.mrb[48].mxu1 %v23090_v17 }
 0x4be   : > { %18523 = vmatprep.mubr.bf16.mxu1 %v23097_v54 }
 0x4c5   : > { %18524 = vmatmul.mubr.bf16.gmra.mrb[52].mxu1 %v23108_v25 }
 0x4c6   : > { %18527 = vmatprep.mubr.bf16.mxu1 %v23115_v14 }
 0x4cd   : > { %18528 = vmatmul.mubr.bf16.gmra.mrb[56].mxu1 %v23122_v39 }
 0x4ce   : > { %18531 = vmatprep.mubr.bf16.mxu1 %v23183_v30 }
 0x4d5   : > { %18532 = vmatmul.mubr.bf16.gmra.mrb[60].mxu1 %v22593_v37 }
 0x4d6   : > { %18983 = vmatprep.mubr.bf16.mxu1 %v24964_v34 }
 0x570   : > { %v18505_v15 = vpop.f32.mrb[32].mxu1 }
 0x571   : > { %v6604_v29 = vadd.f32 %v18505_v15, %v23238_v57  ;;  %v6436_v10 = vpop.f32.mrb[33].mxu1 }
 0x572   : > { %v6602_v52 = vadd.f32 %v23238_v57, %v6436_v10  ;;  %v18506_v20 = vpop.f32.mrb[34].mxu1 }
 0x573   : > { %v6605_v12 = vadd.f32 %v18506_v20, %v23238_v57  ;;  %v6439_v16 = vpop.f32.mrb[35].mxu1  ;;  %v6636_v1 = vmax.f32 %v6604_v29, 0.0 }
 0x574   : > { %v6603_v8 = vadd.f32 %v23238_v57, %v6439_v16  ;;  %v6634_v59 = vmax.f32 %v6602_v52, 0.0 }
 0x575   : > { %v6637_v31 = vmax.f32 %v6605_v12, 0.0  ;;  %v21404_v12 = vld [vmem:[#allocation9 + $0x38] sm:$0xff]  }
 0x576   : > { %v6635_v41 = vmax.f32 %v6603_v8, 0.0 }
 0x577   : > { %v23244_v28 = vpack.c.bf16 %v6637_v31, %v6636_v1 }
 0x578   : > { %v23246_v36 = vpack.c.bf16 %v6635_v41, %v6634_v59  ;;  %v18509_v48 = vpop.f32.mrb[36].mxu1 }
 0x579   : > { %v6608_v47 = vadd.f32 %v18509_v48, %v23238_v57  ;;  %v6452_v17 = vpop.f32.mrb[37].mxu1 }
 0x57a   : > { %v6606_v54 = vadd.f32 %v23238_v57, %v6452_v17  ;;  %v18510_v25 = vpop.f32.mrb[38].mxu1  ;;  %18552 = vmatmul.mubr.bf16.vlgmr.msra.gmra.mrb[32].mxu0 %v23246_v36 }
 0x57b   : > { %v6609_v14 = vadd.f32 %v18510_v25, %v23238_v57  ;;  %v6455_v39 = vpop.f32.mrb[39].mxu1  ;;  %18555 = vmatprep.mubr.bf16.mxu0 %v23244_v28  ;;  %18584 = vmatpush3.bf16.msra.mxu0 %v21397_v9  ;;  %v6640_v5 = vmax.f32 %v6608_v47, 0.0 }
 0x57c   : > { %v6607_v60 = vadd.f32 %v23238_v57, %v6455_v39  ;;  %18585 = vmatprep.subr.bf16.mxu0 %v21398_v38  ;;  %v6638_v32 = vmax.f32 %v6606_v54, 0.0 }
 0x57d   : > { %v6641_v35 = vmax.f32 %v6609_v14, 0.0 }
 0x57e   : > { %v6639_v26 = vmax.f32 %v6607_v60, 0.0 }
 0x57f   : > { %v23254_v24 = vpack.c.bf16 %v6641_v35, %v6640_v5  ;;  %18586 = vmatpush3.bf16.msra.mxu0 %v21398_v38  ;;  %v23284_v38 = vld [vmem:[#allocation9 + $0x80] sm:$0xff]  }
 0x580   : > { %v23256_v2 = vpack.c.bf16 %v6639_v26, %v6638_v32  ;;  %v18513_v40 = vpop.f32.mrb[40].mxu1  ;;  %18587 = vmatprep.subr.bf16.mxu0 %v21399_v51 }
 0x581   : > { %v6612_v0 = vadd.f32 %v18513_v40, %v23238_v57  ;;  %v6468_v30 = vpop.f32.mrb[41].mxu1 }
 0x582   : > { %v6610_v21 = vadd.f32 %v23238_v57, %v6468_v30  ;;  %v18514_v42 = vpop.f32.mrb[42].mxu1  ;;  %18556 = vmatmul.mubr.bf16.gmra.mrb[36].mxu0 %v23256_v2 }
 0x583   : > { %v6613_v53 = vadd.f32 %v18514_v42, %v23238_v57  ;;  %v6471_v6 = vpop.f32.mrb[43].mxu1  ;;  %18559 = vmatprep.mubr.bf16.mxu0 %v23254_v24  ;;  %18588 = vmatpush3.bf16.msra.mxu0 %v21399_v51  ;;  %v6644_v22 = vmax.f32 %v6612_v0, 0.0 }
 0x584   : > { %v6611_v18 = vadd.f32 %v23238_v57, %v6471_v6  ;;  %18589 = vmatprep.subr.bf16.mxu0 %v21400_v4  ;;  %v6642_v62 = vmax.f32 %v6610_v21, 0.0 }
 0x585   : > { %v6645_v63 = vmax.f32 %v6613_v53, 0.0 }
 0x586   : > { %v6643_v50 = vmax.f32 %v6611_v18, 0.0 }
 0x587   : > { %v23264_v55 = vpack.c.bf16 %v6645_v63, %v6644_v22  ;;  %18590 = vmatpush3.bf16.msra.mxu0 %v21400_v4 }
 0x588   : > { %v23266_v56 = vpack.c.bf16 %v6643_v50, %v6642_v62  ;;  %v18517_v3 = vpop.f32.mrb[44].mxu1  ;;  %18591 = vmatprep.subr.bf16.mxu0 %v21401_v27 }
 0x589   : > { %v6616_v7 = vadd.f32 %v18517_v3, %v23238_v57  ;;  %v6484_v45 = vpop.f32.mrb[45].mxu1 }
 0x58a   : > { %v6614_v23 = vadd.f32 %v23238_v57, %v6484_v45  ;;  %v18518_v19 = vpop.f32.mrb[46].mxu1  ;;  %18560 = vmatmul.mubr.bf16.gmra.mrb[40].mxu0 %v23266_v56 }
 0x58b   : > { %v6617_v43 = vadd.f32 %v18518_v19, %v23238_v57  ;;  %v6487_v46 = vpop.f32.mrb[47].mxu1  ;;  %18563 = vmatprep.mubr.bf16.mxu0 %v23264_v55  ;;  %18592 = vmatpush3.bf16.msra.mxu0 %v21401_v27  ;;  %v6648_v13 = vmax.f32 %v6616_v7, 0.0 }
 0x58c   : > { %v6615_v49 = vadd.f32 %v23238_v57, %v6487_v46  ;;  %18593 = vmatprep.subr.bf16.mxu0 %v21402_v61  ;;  %v6646_v15 = vmax.f32 %v6614_v23, 0.0 }
 0x58d   : > { %v6649_v9 = vmax.f32 %v6617_v43, 0.0 }
 0x58e   : > { %v6647_v29 = vmax.f32 %v6615_v49, 0.0 }
 0x58f   : > { %v23274_v10 = vpack.c.bf16 %v6649_v9, %v6648_v13  ;;  %18594 = vmatpush3.bf16.msra.mxu0 %v21402_v61 }
 0x590   : > { %v23276_v52 = vpack.c.bf16 %v6647_v29, %v6646_v15  ;;  %v18521_v20 = vpop.f32.mrb[48].mxu1  ;;  %18595 = vmatprep.subr.bf16.mxu0 %v21403_v33 }
 0x591   : > { %v6620_v16 = vadd.f32 %v18521_v20, %v23238_v57  ;;  %v6500_v8 = vpop.f32.mrb[49].mxu1 }
 0x592   : > { %v6618_v1 = vadd.f32 %v23238_v57, %v6500_v8  ;;  %v18522_v31 = vpop.f32.mrb[50].mxu1  ;;  %18564 = vmatmul.mubr.bf16.gmra.mrb[44].mxu0 %v23276_v52 }
 0x593   : > { %v6621_v59 = vadd.f32 %v18522_v31, %v23238_v57  ;;  %v6503_v41 = vpop.f32.mrb[51].mxu1  ;;  %18567 = vmatprep.mubr.bf16.mxu0 %v23274_v10  ;;  %18596 = vmatpush3.bf16.msra.mxu0 %v21403_v33  ;;  %v6652_v47 = vmax.f32 %v6620_v16, 0.0  ;;  %v6722_v16 = vshrl.u32 %v23246_v36, 16 }
 0x594   : > { %v6619_v48 = vadd.f32 %v23238_v57, %v6503_v41  ;;  %18597 = vmatprep.subr.bf16.mxu0 %v21404_v12  ;;  %v6650_v54 = vmax.f32 %v6618_v1, 0.0  ;;  %v6729_v41 = vshrl.u32 %v23244_v28, 16 }
 0x595   : > { %v6653_v17 = vmax.f32 %v6621_v59, 0.0 }
 0x596   : > { %v6651_v25 = vmax.f32 %v6619_v48, 0.0 }
 0x597   : > { %v23286_v14 = vpack.c.bf16 %v6653_v17, %v6652_v47  ;;  %18598 = vmatpush3.bf16.msra.mxu0 %v21404_v12  ;;  %v6724_v17 = vrot.slane %v6722_v16, 7 }
 0x598   : > { %v23288_v39 = vpack.c.bf16 %v6651_v25, %v6650_v54  ;;  %v18525_v60 = vpop.f32.mrb[52].mxu1  ;;  %18631 = vmatprep.subr.bf16.mxu0 %v23284_v38  ;;  %v6725_v25 = vshll.u32 %v23246_v36, 16 }
 0x599   : > { %v6624_v51 = vadd.f32 %v18525_v60, %v23238_v57  ;;  %v6516_v5 = vpop.f32.mrb[53].mxu1 }
 0x59a   : > { %v6622_v35 = vadd.f32 %v23238_v57, %v6516_v5  ;;  %v18526_v32 = vpop.f32.mrb[54].mxu1  ;;  %18568 = vmatmul.mubr.bf16.gmra.mrb[48].mxu0 %v23288_v39  ;;  %v6732_v5 = vshll.u32 %v23244_v28, 16 }
 0x59b   : > { %v6625_v26 = vadd.f32 %v18526_v32, %v23238_v57  ;;  %v6519_v40 = vpop.f32.mrb[55].mxu1  ;;  %18571 = vmatprep.mubr.bf16.mxu0 %v23286_v14  ;;  %v6656_v0 = vmax.f32 %v6624_v51, 0.0  ;;  %v6736_v32 = vshrl.u32 %v23256_v2, 16 }
 0x59c   : > { %v6623_v4 = vadd.f32 %v23238_v57, %v6519_v40  ;;  %v6654_v21 = vmax.f32 %v6622_v35, 0.0  ;;  %v6727_v35 = vor.u32 %v6725_v25, %v6724_v17  ;;  %v6767_v17 = vshll.u32 %v23276_v52, 16 }
 0x59d   : > { %v6657_v30 = vmax.f32 %v6625_v26, 0.0 }
 0x59e   : > { %v6655_v42 = vmax.f32 %v6623_v4, 0.0  ;;  %v6743_v4 = vshrl.u32 %v23254_v24, 16 }
 0x59f   : > { %v23297_v53 = vpack.c.bf16 %v6657_v30, %v6656_v0  ;;  %v21406_v0 = vld [vmem:[#allocation9 + $0x88] sm:$0xff]   ;;  %v23347_v30 = vsel %vm22292_vm5, 0, %v6727_v35 }
 0x5a0   : > { %v23299_v6 = vpack.c.bf16 %v6655_v42, %v6654_v21  ;;  %v18529_v18 = vpop.f32.mrb[56].mxu1  ;;  %v6738_v21 = vrot.slane %v6736_v32, 7 }
 0x5a1   : > { %v6628_v27 = vadd.f32 %v18529_v18, %v23238_v57  ;;  %v6532_v22 = vpop.f32.mrb[57].mxu1  ;;  %v6745_v18 = vrot.slane %v6743_v4, 7 }
 0x5a2   : > { %v6626_v63 = vadd.f32 %v23238_v57, %v6532_v22  ;;  %v18530_v62 = vpop.f32.mrb[58].mxu1  ;;  %18572 = vmatmul.mubr.bf16.gmra.mrb[52].mxu0 %v23299_v6  ;;  %v6746_v22 = vshll.u32 %v23254_v24, 16 }
 0x5a3   : > { %v6629_v50 = vadd.f32 %v18530_v62, %v23238_v57  ;;  %v6535_v3 = vpop.f32.mrb[59].mxu1  ;;  %18575 = vmatprep.mubr.bf16.mxu0 %v23297_v53  ;;  %v6660_v7 = vmax.f32 %v6628_v27, 0.0  ;;  %v6739_v27 = vshll.u32 %v23256_v2, 16 }
 0x5a4   : > { %v6627_v61 = vadd.f32 %v23238_v57, %v6535_v3  ;;  %v6658_v23 = vmax.f32 %v6626_v63, 0.0  ;;  %v21407_v63 = vld [vmem:[#allocation9 + $0x90] sm:$0xff]   ;;  %v6748_v3 = vor.u32 %v6746_v22, %v6745_v18  ;;  %v21412_v18 = vld [vmem:[#allocation9 + $0xb8] sm:$0xff]  }
 0x5a5   : > { %v6661_v45 = vmax.f32 %v6629_v50, 0.0  ;;  %v6741_v62 = vor.u32 %v6739_v27, %v6738_v21  ;;  %v6750_v50 = vshrl.u32 %v23266_v56, 16  ;;  %v24909_v21 = vshrl.u32 %v23286_v14, 16 }
 0x5a6   : > { %v6659_v19 = vmax.f32 %v6627_v61, 0.0  ;;  %v6757_v61 = vshrl.u32 %v23264_v55, 16 }
 0x5a7   : > { %v23307_v43 = vpack.c.bf16 %v6661_v45, %v6660_v7  ;;  %v21408_v7 = vld [vmem:[#allocation9 + $0x98] sm:$0xff]   ;;  %v6752_v45 = vrot.slane %v6750_v50, 7 }
 0x5a8   : > { %v23309_v46 = vpack.c.bf16 %v6659_v19, %v6658_v23  ;;  %v18533_v49 = vpop.f32.mrb[60].mxu1  ;;  %v23377_v23 = vsel %vm22292_vm5, 0, %v6748_v3  ;;  %v6759_v19 = vrot.slane %v6757_v61, 7 }
 0x5a9   : > { %v6632_v33 = vadd.f32 %v18533_v49, %v23238_v57  ;;  %v6548_v13 = vpop.f32.mrb[61].mxu1  ;;  %v6753_v49 = vshll.u32 %v23266_v56, 16 }
 0x5aa   : > { %v6630_v9 = vadd.f32 %v23238_v57, %v6548_v13  ;;  %v18534_v15 = vpop.f32.mrb[62].mxu1  ;;  %18576 = vmatmul.mubr.bf16.gmra.mrb[56].mxu0 %v23309_v46  ;;  %v21409_v13 = vld [vmem:[#allocation9 + $0xa0] sm:$0xff]  }
 0x5ab   : > { %v6633_v29 = vadd.f32 %v18534_v15, %v23238_v57  ;;  %v6551_v20 = vpop.f32.mrb[63].mxu1  ;;  %18579 = vmatprep.mubr.bf16.mxu0 %v23307_v43  ;;  %v6664_v8 = vmax.f32 %v6632_v33, 0.0  ;;  %v6760_v33 = vshll.u32 %v23264_v55, 16  ;;  %v6764_v15 = vshrl.u32 %v23276_v52, 16 }
 0x5ac   : > { %v6631_v12 = vadd.f32 %v23238_v57, %v6551_v20  ;;  %v6662_v31 = vmax.f32 %v6630_v9, 0.0  ;;  %v6731_v57 = vrot.slane %v6729_v41, 7  ;;  %v6755_v9 = vor.u32 %v6753_v49, %v6752_v45 }
 0x5ad   : > { %v6665_v1 = vmax.f32 %v6633_v29, 0.0  ;;  %v6762_v29 = vor.u32 %v6760_v33, %v6759_v19  ;;  %v6771_v20 = vshrl.u32 %v23274_v10, 16  ;;  %v6781_v45 = vshll.u32 %v23288_v39, 16 }
 0x5ae   : > { %v6663_v59 = vmax.f32 %v6631_v12, 0.0  ;;  %v6734_v40 = vor.u32 %v6732_v5, %v6731_v57  ;;  %v21410_v12 = vld [vmem:[#allocation9 + $0xa8] sm:$0xff]   ;;  %v6774_v57 = vshll.u32 %v23274_v10, 16  ;;  %v6788_v19 = vshll.u32 %v23286_v14, 16 }
 0x5af   : > { %v23319_v48 = vpack.c.bf16 %v6665_v1, %v6664_v8  ;;  %v23392_v8 = vsel %vm22292_vm5, 0, %v6755_v9  ;;  %v6766_v1 = vrot.slane %v6764_v15, 7 }
 0x5b0   : > { %v23321_v47 = vpack.c.bf16 %v6663_v59, %v6662_v31  ;;  %v23354_v42 = vsel %vm22292_vm5, 0, %v6734_v40  ;;  %v23399_v31 = vsel %vm22292_vm5, 0, %v6762_v29  ;;  %v6773_v59 = vrot.slane %v6771_v20, 7 }
 0x5b1   : > { %v24901_v54 = vshll.u32 %v23319_v48, 16  ;;  %v24902_v60 = vshrl.u32 %v23319_v48, 16  ;;  %v6769_v35 = vor.u32 %v6767_v17, %v6766_v1  ;;  %v6778_v40 = vshrl.u32 %v23288_v39, 16 }
 0x5b2   : > { %18580 = vmatmul.mubr.bf16.gmra.mrb[60].mxu0 %v23321_v47  ;;  %v24904_v29 = vshrl.u32 %v23299_v6, 16  ;;  %v24903_v1 = vshrl.u32 %v23297_v53, 16 }
 0x5b3   : > { %18599 = vmatprep.mubr.bf16.mxu0 %v22322_v11  ;;  %v7821_v51 = vrot.slane %v24901_v54, 1 }
 0x5b5   : > { %v23340_v26 = vor.u32 %v7821_v51, %v24902_v60  ;;  %v21411_v51 = vld [vmem:[#allocation9 + $0xb0] sm:$0xff]  }
 0x5ba   : > { %18600 = vmatmul.mubr.bf16.vlgmr.msra.gmra.mrb[32].mxu0 %v23347_v30 }
 0x5bb   : > { %18603 = vmatprep.mubr.bf16.mxu0 %v23354_v42  ;;  %18632 = vmatpush3.bf16.msra.mxu0 %v23284_v38  ;;  %v23370_v38 = vsel %vm22292_vm5, 0, %v6741_v62  ;;  %v6780_v62 = vrot.slane %v6778_v40, 7 }
 0x5bc   : > { %18633 = vmatprep.subr.bf16.mxu0 %v21406_v0 }
 0x5bd   : > { %v6783_v9 = vor.u32 %v6781_v45, %v6780_v62  ;;  %v24905_v62 = vshll.u32 %v23297_v53, 16 }
 0x5bf   : > { %18634 = vmatpush3.bf16.msra.mxu0 %v21406_v0  ;;  %v6776_v0 = vor.u32 %v6774_v57, %v6773_v59  ;;  %v23436_v59 = vsel %vm22292_vm5, 0, %v6783_v9  ;;  %v24906_v9 = vshrl.u32 %v23309_v46, 16 }
 0x5c0   : > { %18635 = vmatprep.subr.bf16.mxu0 %v21407_v63 }
 0x5c1   : > { %v23421_v3 = vsel %vm22292_vm5, 0, %v6776_v0  ;;  %v6801_v0 = vrot.slane %v24903_v1, 7  ;;  %v6808_v1 = vrot.slane %v24906_v9, 7  ;;  %v24910_v9 = vshrl.u32 %v23321_v47, 16 }
 0x5c2   : > { %18604 = vmatmul.mubr.bf16.gmra.mrb[36].mxu0 %v23370_v38 }
 0x5c3   : > { %18607 = vmatprep.mubr.bf16.mxu0 %v23377_v23  ;;  %18636 = vmatpush3.bf16.msra.mxu0 %v21407_v63  ;;  %v23414_v63 = vsel %vm22292_vm5, 0, %v6769_v35  ;;  %v6804_v54 = vor.u32 %v24905_v62, %v6801_v0  ;;  %v6809_v0 = vshll.u32 %v23309_v46, 16  ;;  %v24911_v62 = vshll.u32 %v23307_v43, 16 }
 0x5c4   : > { %18637 = vmatprep.subr.bf16.mxu0 %v21408_v7 }
 0x5c7   : > { %18638 = vmatpush3.bf16.msra.mxu0 %v21408_v7  ;;  %v6787_v7 = vrot.slane %v24909_v21, 7 }
 0x5c8   : > { %18639 = vmatprep.subr.bf16.mxu0 %v21409_v13 }
 0x5ca   : > { %18608 = vmatmul.mubr.bf16.gmra.mrb[40].mxu0 %v23392_v8 }
 0x5cb   : > { %18611 = vmatprep.mubr.bf16.mxu0 %v23399_v31  ;;  %18640 = vmatpush3.bf16.msra.mxu0 %v21409_v13  ;;  %v21413_v13 = vld [vmem:[#allocation9 + $0xc0] sm:$0xff]  }
 0x5cc   : > { %18641 = vmatprep.subr.bf16.mxu0 %v21410_v12 }
 0x5cf   : > { %18642 = vmatpush3.bf16.msra.mxu0 %v21410_v12  ;;  %v6790_v12 = vor.u32 %v6788_v19, %v6787_v7 }
 0x5d0   : > { %18643 = vmatprep.subr.bf16.mxu0 %v21411_v51 }
 0x5d1   : > { %v23443_v35 = vsel %vm22292_vm5, 0, %v6790_v12  ;;  %v24908_v12 = vshrl.u32 %v23307_v43, 16 }
 0x5d2   : > { %18612 = vmatmul.mubr.bf16.gmra.mrb[44].mxu0 %v23414_v63 }
 0x5d3   : > { %18615 = vmatprep.mubr.bf16.mxu0 %v23421_v3  ;;  %18644 = vmatpush3.bf16.msra.mxu0 %v21411_v51  ;;  %v6794_v51 = vrot.slane %v24904_v29, 7  ;;  %v23465_v29 = vsel %vm22292_vm5, 0, %v6804_v54 }
 0x5d4   : > { %18645 = vmatprep.subr.bf16.mxu0 %v21412_v18 }
 0x5d7   : > { %18646 = vmatpush3.bf16.msra.mxu0 %v21412_v18  ;;  %v24907_v18 = vshll.u32 %v23299_v6, 16 }
 0x5d8   : > { %18679 = vmatprep.subr.bf16.mxu0 %v21413_v13 }
 0x5d9   : > { %v6797_v7 = vor.u32 %v24907_v18, %v6794_v51  ;;  %v6815_v51 = vrot.slane %v24908_v12, 7  ;;  %v6822_v12 = vrot.slane %v24910_v9, 7  ;;  %v6860_v9 = vrot.slane %v6725_v25, 1 }
 0x5da   : > { %18616 = vmatmul.mubr.bf16.gmra.mrb[48].mxu0 %v23436_v59  ;;  %v6864_v25 = vrot.slane %v6739_v27, 1 }
 0x5db   : > { %18619 = vmatprep.mubr.bf16.mxu0 %v23443_v35  ;;  %v23458_v60 = vsel %vm22292_vm5, 0, %v6797_v7  ;;  %v6811_v7 = vor.u32 %v6809_v0, %v6808_v1  ;;  %v6818_v18 = vor.u32 %v24911_v62, %v6815_v51  ;;  %v24912_v1 = vshll.u32 %v23321_v47, 16 }
 0x5dc   : > { %v6861_v62 = vor.u32 %v6860_v9, %v6722_v16  ;;  %v6866_v16 = vrot.slane %v6746_v22, 1  ;;  %v21416_v9 = vld [vmem:[#allocation9 + $0xd8] sm:$0xff]   ;;  %v6868_v22 = vrot.slane %v6753_v49, 1 }
 0x5dd   : > { %v23479_v54 = vsel %vm22292_vm5, 0, %v6811_v7  ;;  %v23486_v21 = vsel %vm22292_vm5, 0, %v6818_v18  ;;  %v6825_v51 = vor.u32 %v24912_v1, %v6822_v12  ;;  %v6862_v18 = vrot.slane %v6732_v5, 1  ;;  %v21414_v1 = vld [vmem:[#allocation9 + $0xc8] sm:$0xff]  }
 0x5de   : > { %v6867_v27 = vor.u32 %v6866_v16, %v6743_v4  ;;  %v21417_v4 = vld [vmem:[#allocation9 + $0xe0] sm:$0xff]  }
 0x5df   : > { %v23494_v7 = vsel %vm22292_vm5, 0, %v6825_v51  ;;  %v6863_v12 = vor.u32 %v6862_v18, %v6729_v41  ;;  %v23508_v51 = vsel %vm22267_vm4, %v6861_v62, 0  ;;  %v21415_v41 = vld [vmem:[#allocation9 + $0xd0] sm:$0xff]   ;;  %v6865_v62 = vor.u32 %v6864_v25, %v6736_v32 }
 0x5e0   : > { %v6870_v32 = vrot.slane %v6760_v33, 1  ;;  %v6872_v33 = vrot.slane %v6767_v17, 1 }
 0x5e1   : > { %v23515_v5 = vsel %vm22267_vm4, %v6863_v12, 0  ;;  %v23526_v18 = vsel %vm22267_vm4, %v6865_v62, 0  ;;  %v21418_v12 = vld [vmem:[#allocation9 + $0xe8] sm:$0xff]   ;;  %v21420_v62 = vld [vmem:[#allocation9 + $0xf8] sm:$0xff]  }
 0x5e2   : > { %18620 = vmatmul.mubr.bf16.gmra.mrb[52].mxu0 %v23458_v60  ;;  %v6871_v49 = vor.u32 %v6870_v32, %v6757_v61  ;;  %v21419_v61 = vld [vmem:[#allocation9 + $0xf0] sm:$0xff]   ;;  %v24980_v32 = vshrl.u32 %v23286_v14, 16 }
 0x5e3   : > { %18623 = vmatprep.mubr.bf16.mxu0 %v23465_v29 }
 0x5e4   : > { %v23551_v16 = vsel %vm22267_vm4, %v6871_v49, 0 }
 0x5ea   : > { %18624 = vmatmul.mubr.bf16.gmra.mrb[56].mxu0 %v23479_v54 }
 0x5eb   : > { %18627 = vmatprep.mubr.bf16.mxu0 %v23486_v21 }
 0x5f2   : > { %18628 = vmatmul.mubr.bf16.gmra.mrb[60].mxu0 %v23494_v7 }
 0x5f3   : > { %18647 = vmatprep.mubr.bf16.mxu0 %v22593_v37 }
 0x5fa   : > { %18648 = vmatmul.mubr.bf16.vlgmr.msra.gmra.mrb[32].mxu0 %v23508_v51 }
 0x5fb   : > { %18651 = vmatprep.mubr.bf16.mxu0 %v23515_v5  ;;  %18680 = vmatpush3.bf16.msra.mxu0 %v21413_v13  ;;  %v23533_v13 = vsel %vm22267_vm4, %v6867_v27, 0 }
 0x5fc   : > { %18681 = vmatprep.subr.bf16.mxu0 %v21414_v1 }
 0x5ff   : > { %18682 = vmatpush3.bf16.msra.mxu0 %v21414_v1  ;;  %v6869_v1 = vor.u32 %v6868_v22, %v6750_v50  ;;  %v6874_v50 = vrot.slane %v6774_v57, 1  ;;  %v6876_v57 = vrot.slane %v6781_v45, 1 }
 0x600   : > { %18683 = vmatprep.subr.bf16.mxu0 %v21415_v41 }
 0x601   : > { %v23544_v25 = vsel %vm22267_vm4, %v6869_v1, 0  ;;  %v6875_v17 = vor.u32 %v6874_v50, %v6771_v20  ;;  %v21421_v20 = vld [vmem:[#allocation9 + $0x100] sm:$0xff]   ;;  %v6877_v22 = vor.u32 %v6876_v57, %v6778_v40  ;;  %v24981_v1 = vshll.u32 %v23299_v6, 16 }
 0x602   : > { %18652 = vmatmul.mubr.bf16.gmra.mrb[36].mxu0 %v23526_v18  ;;  %v24982_v40 = vshll.u32 %v23297_v53, 16 }
 0x603   : > { %18655 = vmatprep.mubr.bf16.mxu0 %v23533_v13  ;;  %18684 = vmatpush3.bf16.msra.mxu0 %v21415_v41  ;;  %v6873_v41 = vor.u32 %v6872_v33, %v6764_v15  ;;  %v6878_v15 = vrot.slane %v6788_v19, 1  ;;  %v6880_v19 = vrot.slane %v24981_v1, 1  ;;  %v24983_v33 = vshrl.u32 %v23299_v6, 16 }
 0x604   : > { %18685 = vmatprep.subr.bf16.mxu0 %v21416_v9  ;;  %v24987_v1 = vshrl.u32 %v23307_v43, 16 }
 0x605   : > { %v23562_v27 = vsel %vm22267_vm4, %v6873_v41, 0  ;;  %v6879_v45 = vor.u32 %v6878_v15, %v24980_v32  ;;  %v6881_v50 = vor.u32 %v6880_v19, %v24983_v33  ;;  %v24985_v15 = vshll.u32 %v23307_v43, 16 }
 0x606   : > { %v24986_v32 = vshrl.u32 %v23309_v46, 16 }
 0x607   : > { %18686 = vmatpush3.bf16.msra.mxu0 %v21416_v9  ;;  %v23569_v9 = vsel %vm22267_vm4, %v6875_v17, 0  ;;  %v23587_v49 = vsel %vm22267_vm4, %v6879_v45, 0  ;;  %v23598_v17 = vsel %vm22267_vm4, %v6881_v50, 0  ;;  %v24989_v50 = vshrl.u32 %v23321_v47, 16 }
 0x608   : > { %18687 = vmatprep.subr.bf16.mxu0 %v21417_v4 }
 0x60a   : > { %18656 = vmatmul.mubr.bf16.gmra.mrb[40].mxu0 %v23544_v25 }
 0x60b   : > { %18659 = vmatprep.mubr.bf16.mxu0 %v23551_v16  ;;  %18688 = vmatpush3.bf16.msra.mxu0 %v21417_v4  ;;  %v23580_v4 = vsel %vm22267_vm4, %v6877_v22, 0  ;;  %v6886_v22 = vrot.slane %v24985_v15, 1  ;;  %v21423_v15 = vld [vmem:[#allocation9 + $0x110] sm:$0xff]  }
 0x60c   : > { %18689 = vmatprep.subr.bf16.mxu0 %v21418_v12 }
 0x60d   : > { %v6887_v19 = vor.u32 %v6886_v22, %v24987_v1  ;;  %v21424_v22 = vld [vmem:[#allocation9 + $0x118] sm:$0xff]   ;;  %v21429_v1 = vld [vmem:[#allocation9 + $0x140] sm:$0xff]  }
 0x60f   : > { %18690 = vmatpush3.bf16.msra.mxu0 %v21418_v12  ;;  %v6882_v12 = vrot.slane %v24982_v40, 1  ;;  %v24988_v40 = vshll.u32 %v23321_v47, 16  ;;  %v23623_v33 = vsel %vm22267_vm4, %v6887_v19, 0  ;;  %v24990_v19 = vshrl.u32 %v23319_v48, 16 }
 0x610   : > { %18691 = vmatprep.subr.bf16.mxu0 %v21419_v61 }
 0x612   : > { %18660 = vmatmul.mubr.bf16.gmra.mrb[44].mxu0 %v23562_v27 }
 0x613   : > { %18663 = vmatprep.mubr.bf16.mxu0 %v23569_v9  ;;  %18692 = vmatpush3.bf16.msra.mxu0 %v21419_v61  ;;  %v24984_v61 = vshrl.u32 %v23297_v53, 16 }
 0x614   : > { %18693 = vmatprep.subr.bf16.mxu0 %v21420_v62 }
 0x615   : > { %v6883_v41 = vor.u32 %v6882_v12, %v24984_v61  ;;  %v6888_v12 = vrot.slane %v24988_v40, 1  ;;  %v7755_v40 = vrot.slane %v24990_v19, 7  ;;  %v21439_v19 = vld [vmem:[#allocation9 + $0x190] sm:$0xff]  }
 0x617   : > { %18694 = vmatpush3.bf16.msra.mxu0 %v21420_v62  ;;  %v6884_v62 = vrot.slane %v6809_v0, 1  ;;  %v23605_v57 = vsel %vm22267_vm4, %v6883_v41, 0  ;;  %v6889_v61 = vor.u32 %v6888_v12, %v24989_v50  ;;  %v24991_v12 = vshll.u32 %v23319_v48, 16 }
 0x618   : > { %18727 = vmatprep.subr.bf16.mxu0 %v21421_v20 }
 0x619   : > { %v6885_v45 = vor.u32 %v6884_v62, %v24986_v32  ;;  %v23630_v41 = vsel %vm22267_vm4, %v6889_v61, 0  ;;  %v21422_v62 = vld [vmem:[#allocation9 + $0x108] sm:$0xff]   ;;  %v21425_v32 = vld [vmem:[#allocation9 + $0x120] sm:$0xff]   ;;  %v7758_v50 = vor.u32 %v24991_v12, %v7755_v40  ;;  %v21440_v40 = vld [vmem:[#allocation9 + $0x198] sm:$0xff]  }
 0x61a   : > { %18664 = vmatmul.mubr.bf16.gmra.mrb[48].mxu0 %v23580_v4  ;;  %v21441_v12 = vld [vmem:[#allocation9 + $0x1a0] sm:$0xff]  }
 0x61b   : > { %18667 = vmatprep.mubr.bf16.mxu0 %v23587_v49  ;;  %v23616_v0 = vsel %vm22267_vm4, %v6885_v45, 0  ;;  %v21428_v45 = vld [vmem:[#allocation9 + $0x138] sm:$0xff]   ;;  %v23654_v61 = vsel %vm22292_vm5, 0, %v7758_v50  ;;  %v21443_v50 = vld [vmem:[#allocation9 + $0x1b0] sm:$0xff]  }
 0x622   : > { %18668 = vmatmul.mubr.bf16.gmra.mrb[52].mxu0 %v23598_v17 }
 0x623   : > { %18671 = vmatprep.mubr.bf16.mxu0 %v23605_v57 }
 0x62a   : > { %18672 = vmatmul.mubr.bf16.gmra.mrb[56].mxu0 %v23616_v0 }
 0x62b   : > { %18675 = vmatprep.mubr.bf16.mxu0 %v23623_v33 }
 0x632   : > { %18676 = vmatmul.mubr.bf16.gmra.mrb[60].mxu0 %v23630_v41 }
 0x633   : > { %18695 = vmatprep.mubr.bf16.mxu0 %v23347_v30  ;;  %v21426_v30 = vld [vmem:[#allocation9 + $0x128] sm:$0xff]  }
 0x63a   : > { %18696 = vmatmul.mubr.bf16.vlgmr.msra.gmra.mrb[32].mxu0 %v23354_v42 }
 0x63b   : > { %18699 = vmatprep.mubr.bf16.mxu0 %v23370_v38  ;;  %18728 = vmatpush3.bf16.msra.mxu0 %v21421_v20  ;;  %v21427_v20 = vld [vmem:[#allocation9 + $0x130] sm:$0xff]  }
 0x63c   : > { %18729 = vmatprep.subr.bf16.mxu0 %v21422_v62 }
 0x63f   : > { %18730 = vmatpush3.bf16.msra.mxu0 %v21422_v62  ;;  %v21430_v62 = vld [vmem:[#allocation9 + $0x148] sm:$0xff]  }
 0x640   : > { %18731 = vmatprep.subr.bf16.mxu0 %v21423_v15 }
 0x642   : > { %18700 = vmatmul.mubr.bf16.gmra.mrb[36].mxu0 %v23377_v23 }
 0x643   : > { %18703 = vmatprep.mubr.bf16.mxu0 %v23392_v8  ;;  %18732 = vmatpush3.bf16.msra.mxu0 %v21423_v15  ;;  %v21431_v15 = vld [vmem:[#allocation9 + $0x150] sm:$0xff]  }
 0x644   : > { %18733 = vmatprep.subr.bf16.mxu0 %v21424_v22 }
 0x647   : > { %18734 = vmatpush3.bf16.msra.mxu0 %v21424_v22  ;;  %v21432_v22 = vld [vmem:[#allocation9 + $0x158] sm:$0xff]  }
 0x648   : > { %18735 = vmatprep.subr.bf16.mxu0 %v21425_v32 }
 0x64a   : > { %18704 = vmatmul.mubr.bf16.gmra.mrb[40].mxu0 %v23399_v31 }
 0x64b   : > { %18707 = vmatprep.mubr.bf16.mxu0 %v23414_v63  ;;  %18736 = vmatpush3.bf16.msra.mxu0 %v21425_v32  ;;  %v21433_v32 = vld [vmem:[#allocation9 + $0x160] sm:$0xff]  }
 0x64c   : > { %18737 = vmatprep.subr.bf16.mxu0 %v21426_v30 }
 0x64f   : > { %18738 = vmatpush3.bf16.msra.mxu0 %v21426_v30  ;;  %v21435_v30 = vld [vmem:[#allocation9 + $0x170] sm:$0xff]  }
 0x650   : > { %18739 = vmatprep.subr.bf16.mxu0 %v21427_v20 }
 0x652   : > { %18708 = vmatmul.mubr.bf16.gmra.mrb[44].mxu0 %v23421_v3 }
 0x653   : > { %18711 = vmatprep.mubr.bf16.mxu0 %v23436_v59  ;;  %18740 = vmatpush3.bf16.msra.mxu0 %v21427_v20  ;;  %v21436_v20 = vld [vmem:[#allocation9 + $0x178] sm:$0xff]  }
 0x654   : > { %18741 = vmatprep.subr.bf16.mxu0 %v21428_v45 }
 0x657   : > { %18742 = vmatpush3.bf16.msra.mxu0 %v21428_v45  ;;  %v21437_v45 = vld [vmem:[#allocation9 + $0x180] sm:$0xff]  }
 0x658   : > { %18775 = vmatprep.subr.bf16.mxu0 %v21429_v1 }
 0x65a   : > { %18712 = vmatmul.mubr.bf16.gmra.mrb[48].mxu0 %v23443_v35 }
 0x65b   : > { %18715 = vmatprep.mubr.bf16.mxu0 %v23458_v60 }
 0x662   : > { %18716 = vmatmul.mubr.bf16.gmra.mrb[52].mxu0 %v23465_v29 }
 0x663   : > { %18719 = vmatprep.mubr.bf16.mxu0 %v23479_v54 }
 0x66a   : > { %18720 = vmatmul.mubr.bf16.gmra.mrb[56].mxu0 %v23486_v21 }
 0x66b   : > { %18723 = vmatprep.mubr.bf16.mxu0 %v23494_v7 }
 0x672   : > { %18724 = vmatmul.mubr.bf16.gmra.mrb[60].mxu0 %v23654_v61 }
 0x673   : > { %18743 = vmatprep.mubr.bf16.mxu0 %v23246_v36  ;;  %v21434_v36 = vld [vmem:[#allocation9 + $0x168] sm:$0xff]  }
 0x67a   : > { %18744 = vmatmul.mubr.bf16.vlgmr.msra.gmra.mrb[32].mxu0 %v23244_v28 }
 0x67b   : > { %18747 = vmatprep.mubr.bf16.mxu0 %v23256_v2  ;;  %18776 = vmatpush3.bf16.msra.mxu0 %v21429_v1  ;;  %v21438_v1 = vld [vmem:[#allocation9 + $0x188] sm:$0xff]  }
 0x67c   : > { %18777 = vmatprep.subr.bf16.mxu0 %v21430_v62 }
 0x67f   : > { %18778 = vmatpush3.bf16.msra.mxu0 %v21430_v62  ;;  %v21444_v62 = vld [vmem:[#allocation9 + $0x1b8] sm:$0xff]  }
 0x680   : > { %18779 = vmatprep.subr.bf16.mxu0 %v21431_v15 }
 0x682   : > { %18748 = vmatmul.mubr.bf16.gmra.mrb[36].mxu0 %v23254_v24 }
 0x683   : > { %18751 = vmatprep.mubr.bf16.mxu0 %v23266_v56  ;;  %18780 = vmatpush3.bf16.msra.mxu0 %v21431_v15  ;;  %v21445_v15 = vld [vmem:[#allocation9 + $0x1c0] sm:$0xff]  }
 0x684   : > { %18781 = vmatprep.subr.bf16.mxu0 %v21432_v22 }
 0x687   : > { %18782 = vmatpush3.bf16.msra.mxu0 %v21432_v22  ;;  %v23691_v22 = vsel %vm22267_vm4, %v23340_v26, 0  ;;  %v21449_v26 = vld [vmem:[#allocation9 + $0x1e0] sm:$0xff]  }
 0x688   : > { %18783 = vmatprep.subr.bf16.mxu0 %v21433_v32 }
 0x68a   : > { %18752 = vmatmul.mubr.bf16.gmra.mrb[40].mxu0 %v23264_v55 }
 0x68b   : > { %18755 = vmatprep.mubr.bf16.mxu0 %v23276_v52  ;;  %18784 = vmatpush3.bf16.msra.mxu0 %v21433_v32  ;;  %v21446_v32 = vld [vmem:[#allocation9 + $0x1c8] sm:$0xff]  }
 0x68c   : > { %18785 = vmatprep.subr.bf16.mxu0 %v21434_v36 }
 0x68f   : > { %18786 = vmatpush3.bf16.msra.mxu0 %v21434_v36  ;;  %v21447_v36 = vld [vmem:[#allocation9 + $0x1d0] sm:$0xff]  }
 0x690   : > { %18787 = vmatprep.subr.bf16.mxu0 %v21435_v30 }
 0x692   : > { %18756 = vmatmul.mubr.bf16.gmra.mrb[44].mxu0 %v23274_v10 }
 0x693   : > { %18759 = vmatprep.mubr.bf16.mxu0 %v23288_v39  ;;  %18788 = vmatpush3.bf16.msra.mxu0 %v21435_v30  ;;  %v21448_v30 = vld [vmem:[#allocation9 + $0x1d8] sm:$0xff]  }
 0x694   : > { %18789 = vmatprep.subr.bf16.mxu0 %v21436_v20 }
 0x697   : > { %18790 = vmatpush3.bf16.msra.mxu0 %v21436_v20  ;;  %v21471_v20 = vld [vmem:[#allocation11 + $0x10] sm:$0xff]  }
 0x698   : > { %18823 = vmatprep.subr.bf16.mxu0 %v21437_v45 }
 0x69a   : > { %18760 = vmatmul.mubr.bf16.gmra.mrb[48].mxu0 %v23286_v14 }
 0x69b   : > { %18763 = vmatprep.mubr.bf16.mxu0 %v23299_v6 }
 0x6a2   : > { %18764 = vmatmul.mubr.bf16.gmra.mrb[52].mxu0 %v23297_v53 }
 0x6a3   : > { %18767 = vmatprep.mubr.bf16.mxu0 %v23309_v46 }
 0x6aa   : > { %18768 = vmatmul.mubr.bf16.gmra.mrb[56].mxu0 %v23307_v43 }
 0x6ab   : > { %18771 = vmatprep.mubr.bf16.mxu0 %v23321_v47 }
 0x6b2   : > { %18772 = vmatmul.mubr.bf16.gmra.mrb[60].mxu0 %v23319_v48 }
 0x6b3   : > { %18791 = vmatprep.mubr.bf16.mxu0 %v23508_v51  ;;  %v21442_v51 = vld [vmem:[#allocation9 + $0x1a8] sm:$0xff]  }
 0x6ba   : > { %18792 = vmatmul.mubr.bf16.vlgmr.msra.gmra.mrb[32].mxu0 %v23515_v5 }
 0x6bb   : > { %18795 = vmatprep.mubr.bf16.mxu0 %v23526_v18  ;;  %18824 = vmatpush3.bf16.msra.mxu0 %v21437_v45 }
 0x6bc   : > { %18825 = vmatprep.subr.bf16.mxu0 %v21438_v1 }
 0x6bf   : > { %18826 = vmatpush3.bf16.msra.mxu0 %v21438_v1 }
 0x6c0   : > { %18827 = vmatprep.subr.bf16.mxu0 %v21439_v19 }
 0x6c2   : > { %18796 = vmatmul.mubr.bf16.gmra.mrb[36].mxu0 %v23533_v13 }
 0x6c3   : > { %18799 = vmatprep.mubr.bf16.mxu0 %v23544_v25  ;;  %18828 = vmatpush3.bf16.msra.mxu0 %v21439_v19 }
 0x6c4   : > { %18829 = vmatprep.subr.bf16.mxu0 %v21440_v40 }
 0x6c7   : > { %18830 = vmatpush3.bf16.msra.mxu0 %v21440_v40 }
 0x6c8   : > { %18831 = vmatprep.subr.bf16.mxu0 %v21441_v12 }
 0x6ca   : > { %18800 = vmatmul.mubr.bf16.gmra.mrb[40].mxu0 %v23551_v16 }
 0x6cb   : > { %18803 = vmatprep.mubr.bf16.mxu0 %v23562_v27  ;;  %18832 = vmatpush3.bf16.msra.mxu0 %v21441_v12 }
 0x6cc   : > { %18833 = vmatprep.subr.bf16.mxu0 %v21442_v51 }
 0x6cf   : > { %18834 = vmatpush3.bf16.msra.mxu0 %v21442_v51 }
 0x6d0   : > { %18835 = vmatprep.subr.bf16.mxu0 %v21443_v50 }
 0x6d2   : > { %18804 = vmatmul.mubr.bf16.gmra.mrb[44].mxu0 %v23569_v9 }
 0x6d3   : > { %18807 = vmatprep.mubr.bf16.mxu0 %v23580_v4  ;;  %18836 = vmatpush3.bf16.msra.mxu0 %v21443_v50 }
 0x6d4   : > { %18837 = vmatprep.subr.bf16.mxu0 %v21444_v62 }
 0x6d7   : > { %18838 = vmatpush3.bf16.msra.mxu0 %v21444_v62  ;;  %v21472_v62 = vld [vmem:[#allocation11 + $0x18] sm:$0xff]  }
 0x6d8   : > { %18871 = vmatprep.subr.bf16.mxu0 %v21445_v15 }
 0x6da   : > { %18808 = vmatmul.mubr.bf16.gmra.mrb[48].mxu0 %v23587_v49 }
 0x6db   : > { %18811 = vmatprep.mubr.bf16.mxu0 %v23598_v17 }
 0x6e2   : > { %18812 = vmatmul.mubr.bf16.gmra.mrb[52].mxu0 %v23605_v57 }
 0x6e3   : > { %18815 = vmatprep.mubr.bf16.mxu0 %v23616_v0 }
 0x6ea   : > { %18816 = vmatmul.mubr.bf16.gmra.mrb[56].mxu0 %v23623_v33 }
 0x6eb   : > { %18819 = vmatprep.mubr.bf16.mxu0 %v23630_v41 }
 0x6f2   : > { %18820 = vmatmul.mubr.bf16.gmra.mrb[60].mxu0 %v23691_v22 }
 0x6f3   : > { %18839 = vmatprep.mubr.bf16.mxu0 %v23354_v42  ;;  %v21450_v42 = vld [vmem:[#allocation9 + $0x1e8] sm:$0xff]  }
 0x6fa   : > { %18840 = vmatmul.mubr.bf16.vlgmr.msra.gmra.mrb[32].mxu0 %v23370_v38  ;;  %v21451_v38 = vld [vmem:[#allocation9 + $0x1f0] sm:$0xff]  }
 0x6fb   : > { %18843 = vmatprep.mubr.bf16.mxu0 %v23377_v23  ;;  %18872 = vmatpush3.bf16.msra.mxu0 %v21445_v15  ;;  %v21452_v23 = vld [vmem:[#allocation9 + $0x1f8] sm:$0xff]  }
 0x6fc   : > { %18873 = vmatprep.subr.bf16.mxu0 %v21446_v32 }
 0x6ff   : > { %18874 = vmatpush3.bf16.msra.mxu0 %v21446_v32 }
 0x700   : > { %18875 = vmatprep.subr.bf16.mxu0 %v21447_v36 }
 0x702   : > { %18844 = vmatmul.mubr.bf16.gmra.mrb[36].mxu0 %v23392_v8  ;;  %v21453_v8 = vld [vmem:[#allocation9 + $0x200] sm:$0xff]  }
 0x703   : > { %18847 = vmatprep.mubr.bf16.mxu0 %v23399_v31  ;;  %18876 = vmatpush3.bf16.msra.mxu0 %v21447_v36  ;;  %v21461_v31 = vld [vmem:[#allocation11 + $0x40] sm:$0xff]  }
 0x704   : > { %18877 = vmatprep.subr.bf16.mxu0 %v21448_v30  ;;  %18967 = vmatprep.subr.bf16.mxu1 %v21461_v31 }
 0x705   : > { %18968 = vmatpush3.bf16.msra.mxu1 %v21461_v31 }
 0x707   : > { %18878 = vmatpush3.bf16.msra.mxu0 %v21448_v30 }
 0x708   : > { %18879 = vmatprep.subr.bf16.mxu0 %v21449_v26 }
 0x70a   : > { %18848 = vmatmul.mubr.bf16.gmra.mrb[40].mxu0 %v23414_v63  ;;  %v21462_v63 = vld [vmem:[#allocation11 + $0x48] sm:$0xff]  }
 0x70b   : > { %18851 = vmatprep.mubr.bf16.mxu0 %v23421_v3  ;;  %18880 = vmatpush3.bf16.msra.mxu0 %v21449_v26  ;;  %v21454_v3 = vld [vmem:[#allocation9 + $0x208] sm:$0xff]  }
 0x70c   : > { %18881 = vmatprep.subr.bf16.mxu0 %v21450_v42  ;;  %18969 = vmatprep.subr.bf16.mxu1 %v21462_v63 }
 0x70d   : > { %18970 = vmatpush3.bf16.msra.mxu1 %v21462_v63 }
 0x70f   : > { %18882 = vmatpush3.bf16.msra.mxu0 %v21450_v42 }
 0x710   : > { %18883 = vmatprep.subr.bf16.mxu0 %v21451_v38 }
 0x712   : > { %18852 = vmatmul.mubr.bf16.gmra.mrb[44].mxu0 %v23436_v59  ;;  %v21465_v59 = vld [vmem:[#allocation11 + $0x60] sm:$0xff]  }
 0x713   : > { %18855 = vmatprep.mubr.bf16.mxu0 %v23443_v35  ;;  %18884 = vmatpush3.bf16.msra.mxu0 %v21451_v38  ;;  %v21466_v35 = vld [vmem:[#allocation11 + $0x68] sm:$0xff]   ;;  %v21473_v38 = vld [vmem:[#allocation11 + $0x20] sm:$0xff]  }
 0x714   : > { %18885 = vmatprep.subr.bf16.mxu0 %v21452_v23 }
 0x717   : > { %18886 = vmatpush3.bf16.msra.mxu0 %v21452_v23 }
 0x718   : > { %18919 = vmatprep.subr.bf16.mxu0 %v21453_v8 }
 0x71a   : > { %18856 = vmatmul.mubr.bf16.gmra.mrb[48].mxu0 %v23458_v60  ;;  %v21463_v60 = vld [vmem:[#allocation11 + $0x50] sm:$0xff]  }
 0x71b   : > { %18859 = vmatprep.mubr.bf16.mxu0 %v23465_v29  ;;  %18971 = vmatprep.subr.bf16.mxu1 %v21463_v60  ;;  %v21455_v29 = vld [vmem:[#allocation9 + $0x210] sm:$0xff]  }
 0x71c   : > { %18972 = vmatpush3.bf16.msra.mxu1 %v21463_v60 }
 0x722   : > { %18860 = vmatmul.mubr.bf16.gmra.mrb[52].mxu0 %v23479_v54  ;;  %v21458_v54 = vld [vmem:[#allocation9 + $0x228] sm:$0xff]  }
 0x723   : > { %18863 = vmatprep.mubr.bf16.mxu0 %v23486_v21  ;;  %v21464_v21 = vld [vmem:[#allocation11 + $0x58] sm:$0xff]  }
 0x724   : > { %18973 = vmatprep.subr.bf16.mxu1 %v21464_v21 }
 0x725   : > { %18974 = vmatpush3.bf16.msra.mxu1 %v21464_v21 }
 0x726   : > { %18975 = vmatprep.subr.bf16.mxu1 %v21465_v59 }
 0x729   : > { %18976 = vmatpush3.bf16.msra.mxu1 %v21465_v59 }
 0x72a   : > { %18864 = vmatmul.mubr.bf16.gmra.mrb[56].mxu0 %v23494_v7  ;;  %18977 = vmatprep.subr.bf16.mxu1 %v21466_v35 }
 0x72b   : > { %18867 = vmatprep.mubr.bf16.mxu0 %v23654_v61 }
 0x72d   : > { %18978 = vmatpush3.bf16.msra.mxu1 %v21466_v35 }
 0x732   : > { %18868 = vmatmul.mubr.bf16.gmra.mrb[60].mxu0 %v22322_v11 }
 0x733   : > { %18887 = vmatprep.mubr.bf16.mxu0 %v23244_v28  ;;  %v21456_v28 = vld [vmem:[#allocation9 + $0x218] sm:$0xff]  }
 0x73a   : > { %18888 = vmatmul.mubr.bf16.vlgmr.msra.gmra.mrb[32].mxu0 %v23256_v2  ;;  %v21457_v2 = vld [vmem:[#allocation9 + $0x220] sm:$0xff]  }
 0x73b   : > { %18891 = vmatprep.mubr.bf16.mxu0 %v23254_v24  ;;  %18920 = vmatpush3.bf16.msra.mxu0 %v21453_v8  ;;  %v21467_v24 = vld [vmem:[#allocation11 + $0x70] sm:$0xff]  }
 0x73c   : > { %18921 = vmatprep.subr.bf16.mxu0 %v21454_v3  ;;  %18979 = vmatprep.subr.bf16.mxu1 %v21467_v24 }
 0x73d   : > { %18980 = vmatpush3.bf16.msra.mxu1 %v21467_v24 }
 0x73f   : > { %18922 = vmatpush3.bf16.msra.mxu0 %v21454_v3 }
 0x740   : > { %18923 = vmatprep.subr.bf16.mxu0 %v21455_v29 }
 0x742   : > { %18892 = vmatmul.mubr.bf16.gmra.mrb[36].mxu0 %v23266_v56  ;;  %v21459_v56 = vld [vmem:[#allocation9 + $0x230] sm:$0xff]  }
 0x743   : > { %18895 = vmatprep.mubr.bf16.mxu0 %v23264_v55  ;;  %18924 = vmatpush3.bf16.msra.mxu0 %v21455_v29  ;;  %v21460_v55 = vld [vmem:[#allocation9 + $0x238] sm:$0xff]   ;;  %v21474_v29 = vld [vmem:[#allocation11 + $0x28] sm:$0xff]  }
 0x744   : > { %18925 = vmatprep.subr.bf16.mxu0 %v21456_v28 }
 0x747   : > { %18926 = vmatpush3.bf16.msra.mxu0 %v21456_v28 }
 0x748   : > { %18927 = vmatprep.subr.bf16.mxu0 %v21457_v2 }
 0x74a   : > { %18896 = vmatmul.mubr.bf16.gmra.mrb[40].mxu0 %v23276_v52  ;;  %v21469_v52 = vld [vmem:[#allocation11] sm:$0xff]  }
 0x74b   : > { %18899 = vmatprep.mubr.bf16.mxu0 %v23274_v10  ;;  %18928 = vmatpush3.bf16.msra.mxu0 %v21457_v2  ;;  %v21468_v10 = vld [vmem:[#allocation11 + $0x78] sm:$0xff]  }
 0x74c   : > { %18929 = vmatprep.subr.bf16.mxu0 %v21458_v54  ;;  %18981 = vmatprep.subr.bf16.mxu1 %v21468_v10 }
 0x74d   : > { %18982 = vmatpush3.bf16.msra.mxu1 %v21468_v10 }
 0x74e   : > { %19015 = vmatprep.subr.bf16.mxu1 %v21469_v52 }
 0x74f   : > { %18930 = vmatpush3.bf16.msra.mxu0 %v21458_v54 }
 0x750   : > { %18931 = vmatprep.subr.bf16.mxu0 %v21459_v56 }
 0x752   : > { %18900 = vmatmul.mubr.bf16.gmra.mrb[44].mxu0 %v23288_v39 }
 0x753   : > { %18903 = vmatprep.mubr.bf16.mxu0 %v23286_v14  ;;  %18932 = vmatpush3.bf16.msra.mxu0 %v21459_v56  ;;  %v23746_v14 = vld [vmem:[%s24871_s6] ss:$0 sm:$0xff] }
 0x754   : > { %18933 = vmatprep.subr.bf16.mxu0 %v21460_v55 }
 0x757   : > { %18934 = vmatpush3.bf16.msra.mxu0 %v21460_v55  ;;  %v21475_v55 = vld [vmem:[#allocation11 + $0x30] sm:$0xff]  }
 0x75a   : > { %18904 = vmatmul.mubr.bf16.gmra.mrb[48].mxu0 %v23299_v6 }
 0x75b   : > { %18907 = vmatprep.mubr.bf16.mxu0 %v23297_v53 }
 0x762   : > { %18908 = vmatmul.mubr.bf16.gmra.mrb[52].mxu0 %v23309_v46 }
 0x763   : > { %18911 = vmatprep.mubr.bf16.mxu0 %v23307_v43 }
 0x76a   : > { %18912 = vmatmul.mubr.bf16.gmra.mrb[56].mxu0 %v23321_v47 }
 0x76b   : > { %18915 = vmatprep.mubr.bf16.mxu0 %v23319_v48 }
 0x772   : > { %18916 = vmatmul.mubr.bf16.gmra.mrb[60].mxu0 %v24964_v34 }
 0x773   : > { %18935 = vmatprep.mubr.bf16.mxu0 %v23515_v5 }
 0x77a   : > { %18936 = vmatmul.mubr.bf16.vlgmr.msra.gmra.mrb[32].mxu0 %v23526_v18 }
 0x77b   : > { %18939 = vmatprep.mubr.bf16.mxu0 %v23533_v13 }
 0x782   : > { %18940 = vmatmul.mubr.bf16.gmra.mrb[36].mxu0 %v23544_v25 }
 0x783   : > { %18943 = vmatprep.mubr.bf16.mxu0 %v23551_v16 }
 0x78a   : > { %18944 = vmatmul.mubr.bf16.gmra.mrb[40].mxu0 %v23562_v27 }
 0x78b   : > { %18947 = vmatprep.mubr.bf16.mxu0 %v23569_v9 }
 0x792   : > { %18948 = vmatmul.mubr.bf16.gmra.mrb[44].mxu0 %v23580_v4  ;;  %v21470_v4 = vld [vmem:[#allocation11 + $0x8] sm:$0xff]  }
 0x793   : > { %18951 = vmatprep.mubr.bf16.mxu0 %v23587_v49 }
 0x79a   : > { %18952 = vmatmul.mubr.bf16.gmra.mrb[48].mxu0 %v23598_v17 }
 0x79b   : > { %18955 = vmatprep.mubr.bf16.mxu0 %v23605_v57 }
 0x7a2   : > { %18956 = vmatmul.mubr.bf16.gmra.mrb[52].mxu0 %v23616_v0 }
 0x7a3   : > { %18959 = vmatprep.mubr.bf16.mxu0 %v23623_v33 }
 0x7aa   : > { %18960 = vmatmul.mubr.bf16.gmra.mrb[56].mxu0 %v23630_v41 }
 0x7ab   : > { %18963 = vmatprep.mubr.bf16.mxu0 %v23691_v22 }
 0x7b2   : > { %18964 = vmatmul.mubr.bf16.gmra.mrb[60].mxu0 %v22593_v37 }
 0x7b3   : > { %19415 = vmatprep.mubr.bf16.mxu0 %v24964_v34 }
 0x84d   : > { %v18937_v39 = vpop.f32.mrb[32].mxu0 }
 0x84e   : > { %v9636_v53 = vadd.f32 %v18937_v39, %v23746_v14  ;;  %v9468_v6 = vpop.f32.mrb[33].mxu0 }
 0x84f   : > { %v9634_v43 = vadd.f32 %v23746_v14, %v9468_v6  ;;  %v18938_v46 = vpop.f32.mrb[34].mxu0 }
 0x850   : > { %v9637_v48 = vadd.f32 %v18938_v46, %v23746_v14  ;;  %v9471_v47 = vpop.f32.mrb[35].mxu0  ;;  %v9668_v5 = vmax.f32 %v9636_v53, 0.0 }
 0x851   : > { %v9635_v7 = vadd.f32 %v23746_v14, %v9471_v47  ;;  %v9666_v13 = vmax.f32 %v9634_v43, 0.0 }
 0x852   : > { %v9669_v18 = vmax.f32 %v9637_v48, 0.0  ;;  %v21476_v48 = vld [vmem:[#allocation11 + $0x38] sm:$0xff]  }
 0x853   : > { %v9667_v25 = vmax.f32 %v9635_v7, 0.0 }
 0x854   : > { %v23752_v16 = vpack.c.bf16 %v9669_v18, %v9668_v5 }
 0x855   : > { %v23754_v27 = vpack.c.bf16 %v9667_v25, %v9666_v13  ;;  %v18941_v9 = vpop.f32.mrb[36].mxu0 }
 0x856   : > { %v9640_v49 = vadd.f32 %v18941_v9, %v23746_v14  ;;  %v9484_v17 = vpop.f32.mrb[37].mxu0 }
 0x857   : > { %v9638_v57 = vadd.f32 %v23746_v14, %v9484_v17  ;;  %v18942_v0 = vpop.f32.mrb[38].mxu0  ;;  %18984 = vmatmul.mubr.bf16.vlgmr.msra.gmra.mrb[64].mxu1 %v23754_v27 }
 0x858   : > { %v9641_v33 = vadd.f32 %v18942_v0, %v23746_v14  ;;  %v9487_v41 = vpop.f32.mrb[39].mxu0  ;;  %18987 = vmatprep.mubr.bf16.mxu1 %v23752_v16  ;;  %19016 = vmatpush3.bf16.msra.mxu1 %v21469_v52  ;;  %v9672_v45 = vmax.f32 %v9640_v49, 0.0 }
 0x859   : > { %v9639_v61 = vadd.f32 %v23746_v14, %v9487_v41  ;;  %19017 = vmatprep.subr.bf16.mxu1 %v21470_v4  ;;  %v9670_v19 = vmax.f32 %v9638_v57, 0.0 }
 0x85a   : > { %v9673_v1 = vmax.f32 %v9641_v33, 0.0 }
 0x85b   : > { %v9671_v40 = vmax.f32 %v9639_v61, 0.0 }
 0x85c   : > { %v23762_v12 = vpack.c.bf16 %v9673_v1, %v9672_v45  ;;  %19018 = vmatpush3.bf16.msra.mxu1 %v21470_v4  ;;  %v23792_v4 = vld [vmem:[#allocation11 + $0x80] sm:$0xff]  }
 0x85d   : > { %v23764_v51 = vpack.c.bf16 %v9671_v40, %v9670_v19  ;;  %v18945_v50 = vpop.f32.mrb[40].mxu0  ;;  %19019 = vmatprep.subr.bf16.mxu1 %v21471_v20 }
 0x85e   : > { %v9644_v15 = vadd.f32 %v18945_v50, %v23746_v14  ;;  %v9500_v22 = vpop.f32.mrb[41].mxu0 }
 0x85f   : > { %v9642_v32 = vadd.f32 %v23746_v14, %v9500_v22  ;;  %v18946_v36 = vpop.f32.mrb[42].mxu0  ;;  %18988 = vmatmul.mubr.bf16.gmra.mrb[68].mxu1 %v23764_v51 }
 0x860   : > { %v9645_v30 = vadd.f32 %v18946_v36, %v23746_v14  ;;  %v9503_v26 = vpop.f32.mrb[43].mxu0  ;;  %18991 = vmatprep.mubr.bf16.mxu1 %v23762_v12  ;;  %19020 = vmatpush3.bf16.msra.mxu1 %v21471_v20  ;;  %v9676_v23 = vmax.f32 %v9644_v15, 0.0 }
 0x861   : > { %v9643_v42 = vadd.f32 %v23746_v14, %v9503_v26  ;;  %19021 = vmatprep.subr.bf16.mxu1 %v21472_v62  ;;  %v9674_v31 = vmax.f32 %v9642_v32, 0.0 }
 0x862   : > { %v9677_v8 = vmax.f32 %v9645_v30, 0.0 }
 0x863   : > { %v9675_v63 = vmax.f32 %v9643_v42, 0.0 }
 0x864   : > { %v23772_v60 = vpack.c.bf16 %v9677_v8, %v9676_v23  ;;  %19022 = vmatpush3.bf16.msra.mxu1 %v21472_v62 }
 0x865   : > { %v23774_v3 = vpack.c.bf16 %v9675_v63, %v9674_v31  ;;  %v18949_v21 = vpop.f32.mrb[44].mxu0  ;;  %19023 = vmatprep.subr.bf16.mxu1 %v21473_v38 }
 0x866   : > { %v9648_v59 = vadd.f32 %v18949_v21, %v23746_v14  ;;  %v9516_v28 = vpop.f32.mrb[45].mxu0 }
 0x867   : > { %v9646_v35 = vadd.f32 %v23746_v14, %v9516_v28  ;;  %v18950_v2 = vpop.f32.mrb[46].mxu0  ;;  %18992 = vmatmul.mubr.bf16.gmra.mrb[72].mxu1 %v23774_v3 }
 0x868   : > { %v9649_v24 = vadd.f32 %v18950_v2, %v23746_v14  ;;  %v9519_v54 = vpop.f32.mrb[47].mxu0  ;;  %18995 = vmatprep.mubr.bf16.mxu1 %v23772_v60  ;;  %19024 = vmatpush3.bf16.msra.mxu1 %v21473_v38  ;;  %v9680_v10 = vmax.f32 %v9648_v59, 0.0 }
 0x869   : > { %v9647_v56 = vadd.f32 %v23746_v14, %v9519_v54  ;;  %19025 = vmatprep.subr.bf16.mxu1 %v21474_v29  ;;  %v9678_v39 = vmax.f32 %v9646_v35, 0.0 }
 0x86a   : > { %v9681_v52 = vmax.f32 %v9649_v24, 0.0 }
 0x86b   : > { %v9679_v53 = vmax.f32 %v9647_v56, 0.0 }
 0x86c   : > { %v23782_v6 = vpack.c.bf16 %v9681_v52, %v9680_v10  ;;  %19026 = vmatpush3.bf16.msra.mxu1 %v21474_v29 }
 0x86d   : > { %v23784_v43 = vpack.c.bf16 %v9679_v53, %v9678_v39  ;;  %v18953_v46 = vpop.f32.mrb[48].mxu0  ;;  %19027 = vmatprep.subr.bf16.mxu1 %v21475_v55 }
 0x86e   : > { %v9652_v47 = vadd.f32 %v18953_v46, %v23746_v14  ;;  %v9532_v7 = vpop.f32.mrb[49].mxu0 }
 0x86f   : > { %v9650_v5 = vadd.f32 %v23746_v14, %v9532_v7  ;;  %v18954_v18 = vpop.f32.mrb[50].mxu0  ;;  %18996 = vmatmul.mubr.bf16.gmra.mrb[76].mxu1 %v23784_v43 }
 0x870   : > { %v9653_v13 = vadd.f32 %v18954_v18, %v23746_v14  ;;  %v9535_v25 = vpop.f32.mrb[51].mxu0  ;;  %18999 = vmatprep.mubr.bf16.mxu1 %v23782_v6  ;;  %19028 = vmatpush3.bf16.msra.mxu1 %v21475_v55  ;;  %v9684_v49 = vmax.f32 %v9652_v47, 0.0  ;;  %v9754_v47 = vshrl.u32 %v23754_v27, 16 }
 0x871   : > { %v9651_v9 = vadd.f32 %v23746_v14, %v9535_v25  ;;  %19029 = vmatprep.subr.bf16.mxu1 %v21476_v48  ;;  %v9682_v57 = vmax.f32 %v9650_v5, 0.0  ;;  %v9761_v25 = vshrl.u32 %v23752_v16, 16 }
 0x872   : > { %v9685_v17 = vmax.f32 %v9653_v13, 0.0 }
 0x873   : > { %v9683_v0 = vmax.f32 %v9651_v9, 0.0 }
 0x874   : > { %v23794_v33 = vpack.c.bf16 %v9685_v17, %v9684_v49  ;;  %19030 = vmatpush3.bf16.msra.mxu1 %v21476_v48  ;;  %v9756_v17 = vrot.slane %v9754_v47, 7 }
 0x875   : > { %v23796_v41 = vpack.c.bf16 %v9683_v0, %v9682_v57  ;;  %v18957_v61 = vpop.f32.mrb[52].mxu0  ;;  %19063 = vmatprep.subr.bf16.mxu1 %v23792_v4  ;;  %v9757_v0 = vshll.u32 %v23754_v27, 16 }
 0x876   : > { %v9656_v20 = vadd.f32 %v18957_v61, %v23746_v14  ;;  %v9548_v45 = vpop.f32.mrb[53].mxu0 }
 0x877   : > { %v9654_v1 = vadd.f32 %v23746_v14, %v9548_v45  ;;  %v18958_v19 = vpop.f32.mrb[54].mxu0  ;;  %19000 = vmatmul.mubr.bf16.gmra.mrb[80].mxu1 %v23796_v41  ;;  %v9764_v45 = vshll.u32 %v23752_v16, 16 }
 0x878   : > { %v9657_v40 = vadd.f32 %v18958_v19, %v23746_v14  ;;  %v9551_v50 = vpop.f32.mrb[55].mxu0  ;;  %19003 = vmatprep.mubr.bf16.mxu1 %v23794_v33  ;;  %v9688_v15 = vmax.f32 %v9656_v20, 0.0  ;;  %v9768_v19 = vshrl.u32 %v23764_v51, 16 }
 0x879   : > { %v9655_v62 = vadd.f32 %v23746_v14, %v9551_v50  ;;  %v9686_v32 = vmax.f32 %v9654_v1, 0.0  ;;  %v9759_v1 = vor.u32 %v9757_v0, %v9756_v17  ;;  %v9799_v17 = vshll.u32 %v23784_v43, 16 }
 0x87a   : > { %v9689_v22 = vmax.f32 %v9657_v40, 0.0 }
 0x87b   : > { %v9687_v36 = vmax.f32 %v9655_v62, 0.0  ;;  %v9775_v62 = vshrl.u32 %v23762_v12, 16 }
 0x87c   : > { %v23805_v30 = vpack.c.bf16 %v9689_v22, %v9688_v15  ;;  %v21478_v15 = vld [vmem:[#allocation11 + $0x88] sm:$0xff]   ;;  %v23855_v22 = vsel %vm22292_vm5, 0, %v9759_v1 }
 0x87d   : > { %v23807_v26 = vpack.c.bf16 %v9687_v36, %v9686_v32  ;;  %v18961_v42 = vpop.f32.mrb[56].mxu0  ;;  %v9770_v32 = vrot.slane %v9768_v19, 7 }
 0x87e   : > { %v9660_v38 = vadd.f32 %v18961_v42, %v23746_v14  ;;  %v9564_v23 = vpop.f32.mrb[57].mxu0  ;;  %v9777_v42 = vrot.slane %v9775_v62, 7 }
 0x87f   : > { %v9658_v8 = vadd.f32 %v23746_v14, %v9564_v23  ;;  %v18962_v31 = vpop.f32.mrb[58].mxu0  ;;  %19004 = vmatmul.mubr.bf16.gmra.mrb[84].mxu1 %v23807_v26  ;;  %v9778_v23 = vshll.u32 %v23762_v12, 16 }
 0x880   : > { %v9661_v63 = vadd.f32 %v18962_v31, %v23746_v14  ;;  %v9567_v21 = vpop.f32.mrb[59].mxu0  ;;  %19007 = vmatprep.mubr.bf16.mxu1 %v23805_v30  ;;  %v9692_v59 = vmax.f32 %v9660_v38, 0.0  ;;  %v9771_v38 = vshll.u32 %v23764_v51, 16 }
 0x881   : > { %v9659_v29 = vadd.f32 %v23746_v14, %v9567_v21  ;;  %v9690_v35 = vmax.f32 %v9658_v8, 0.0  ;;  %v21479_v8 = vld [vmem:[#allocation11 + $0x90] sm:$0xff]   ;;  %v9780_v21 = vor.u32 %v9778_v23, %v9777_v42  ;;  %v21484_v42 = vld [vmem:[#allocation11 + $0xb8] sm:$0xff]  }
 0x882   : > { %v9693_v28 = vmax.f32 %v9661_v63, 0.0  ;;  %v9773_v31 = vor.u32 %v9771_v38, %v9770_v32  ;;  %v9782_v63 = vshrl.u32 %v23774_v3, 16  ;;  %v24921_v32 = vshrl.u32 %v23794_v33, 16 }
 0x883   : > { %v9691_v2 = vmax.f32 %v9659_v29, 0.0  ;;  %v9789_v29 = vshrl.u32 %v23772_v60, 16 }
 0x884   : > { %v23815_v24 = vpack.c.bf16 %v9693_v28, %v9692_v59  ;;  %v21480_v59 = vld [vmem:[#allocation11 + $0x98] sm:$0xff]   ;;  %v9784_v28 = vrot.slane %v9782_v63, 7 }
 0x885   : > { %v23817_v54 = vpack.c.bf16 %v9691_v2, %v9690_v35  ;;  %v18965_v56 = vpop.f32.mrb[60].mxu0  ;;  %v23885_v35 = vsel %vm22292_vm5, 0, %v9780_v21  ;;  %v9791_v2 = vrot.slane %v9789_v29, 7 }
 0x886   : > { %v9664_v55 = vadd.f32 %v18965_v56, %v23746_v14  ;;  %v9580_v10 = vpop.f32.mrb[61].mxu0  ;;  %v9785_v56 = vshll.u32 %v23774_v3, 16 }
 0x887   : > { %v9662_v52 = vadd.f32 %v23746_v14, %v9580_v10  ;;  %v18966_v39 = vpop.f32.mrb[62].mxu0  ;;  %19008 = vmatmul.mubr.bf16.gmra.mrb[88].mxu1 %v23817_v54  ;;  %v21481_v10 = vld [vmem:[#allocation11 + $0xa0] sm:$0xff]  }
 0x888   : > { %v9665_v53 = vadd.f32 %v18966_v39, %v23746_v14  ;;  %v9583_v46 = vpop.f32.mrb[63].mxu0  ;;  %19011 = vmatprep.mubr.bf16.mxu1 %v23815_v24  ;;  %v9696_v7 = vmax.f32 %v9664_v55, 0.0  ;;  %v9792_v55 = vshll.u32 %v23772_v60, 16  ;;  %v9796_v39 = vshrl.u32 %v23784_v43, 16 }
 0x889   : > { %v9663_v48 = vadd.f32 %v23746_v14, %v9583_v46  ;;  %v9694_v18 = vmax.f32 %v9662_v52, 0.0  ;;  %v9763_v14 = vrot.slane %v9761_v25, 7  ;;  %v9787_v52 = vor.u32 %v9785_v56, %v9784_v28 }
 0x88a   : > { %v9697_v5 = vmax.f32 %v9665_v53, 0.0  ;;  %v9794_v53 = vor.u32 %v9792_v55, %v9791_v2  ;;  %v9803_v46 = vshrl.u32 %v23782_v6, 16  ;;  %v9813_v28 = vshll.u32 %v23796_v41, 16 }
 0x88b   : > { %v9695_v13 = vmax.f32 %v9663_v48, 0.0  ;;  %v9766_v50 = vor.u32 %v9764_v45, %v9763_v14  ;;  %v21482_v48 = vld [vmem:[#allocation11 + $0xa8] sm:$0xff]   ;;  %v9806_v14 = vshll.u32 %v23782_v6, 16  ;;  %v9820_v2 = vshll.u32 %v23794_v33, 16 }
 0x88c   : > { %v23827_v9 = vpack.c.bf16 %v9697_v5, %v9696_v7  ;;  %v23900_v7 = vsel %vm22292_vm5, 0, %v9787_v52  ;;  %v9798_v5 = vrot.slane %v9796_v39, 7 }
 0x88d   : > { %v23829_v49 = vpack.c.bf16 %v9695_v13, %v9694_v18  ;;  %v23862_v36 = vsel %vm22292_vm5, 0, %v9766_v50  ;;  %v23907_v18 = vsel %vm22292_vm5, 0, %v9794_v53  ;;  %v9805_v13 = vrot.slane %v9803_v46, 7 }
 0x88e   : > { %v24913_v57 = vshll.u32 %v23827_v9, 16  ;;  %v24914_v61 = vshrl.u32 %v23827_v9, 16  ;;  %v9801_v1 = vor.u32 %v9799_v17, %v9798_v5  ;;  %v9810_v50 = vshrl.u32 %v23796_v41, 16 }
 0x88f   : > { %19012 = vmatmul.mubr.bf16.gmra.mrb[92].mxu1 %v23829_v49  ;;  %v24916_v53 = vshrl.u32 %v23807_v26, 16  ;;  %v24915_v5 = vshrl.u32 %v23805_v30, 16 }
 0x890   : > { %19031 = vmatprep.mubr.bf16.mxu1 %v22322_v11  ;;  %v10853_v20 = vrot.slane %v24913_v57, 1 }
 0x892   : > { %v23848_v40 = vor.u32 %v10853_v20, %v24914_v61  ;;  %v21483_v20 = vld [vmem:[#allocation11 + $0xb0] sm:$0xff]  }
 0x897   : > { %19032 = vmatmul.mubr.bf16.vlgmr.msra.gmra.mrb[64].mxu1 %v23855_v22 }
 0x898   : > { %19035 = vmatprep.mubr.bf16.mxu1 %v23862_v36  ;;  %19064 = vmatpush3.bf16.msra.mxu1 %v23792_v4  ;;  %v23878_v4 = vsel %vm22292_vm5, 0, %v9773_v31  ;;  %v9812_v31 = vrot.slane %v9810_v50, 7 }
 0x899   : > { %19065 = vmatprep.subr.bf16.mxu1 %v21478_v15 }
 0x89a   : > { %v9815_v52 = vor.u32 %v9813_v28, %v9812_v31  ;;  %v24917_v31 = vshll.u32 %v23805_v30, 16 }
 0x89c   : > { %19066 = vmatpush3.bf16.msra.mxu1 %v21478_v15  ;;  %v9808_v15 = vor.u32 %v9806_v14, %v9805_v13  ;;  %v23944_v13 = vsel %vm22292_vm5, 0, %v9815_v52  ;;  %v24918_v52 = vshrl.u32 %v23817_v54, 16 }
 0x89d   : > { %19067 = vmatprep.subr.bf16.mxu1 %v21479_v8 }
 0x89e   : > { %v23929_v21 = vsel %vm22292_vm5, 0, %v9808_v15  ;;  %v9833_v15 = vrot.slane %v24915_v5, 7  ;;  %v9840_v5 = vrot.slane %v24918_v52, 7  ;;  %v24922_v52 = vshrl.u32 %v23829_v49, 16 }
 0x89f   : > { %19036 = vmatmul.mubr.bf16.gmra.mrb[68].mxu1 %v23878_v4 }
 0x8a0   : > { %19039 = vmatprep.mubr.bf16.mxu1 %v23885_v35  ;;  %19068 = vmatpush3.bf16.msra.mxu1 %v21479_v8  ;;  %v23922_v8 = vsel %vm22292_vm5, 0, %v9801_v1  ;;  %v9836_v57 = vor.u32 %v24917_v31, %v9833_v15  ;;  %v9841_v15 = vshll.u32 %v23817_v54, 16  ;;  %v24923_v31 = vshll.u32 %v23815_v24, 16 }
 0x8a1   : > { %19069 = vmatprep.subr.bf16.mxu1 %v21480_v59 }
 0x8a4   : > { %19070 = vmatpush3.bf16.msra.mxu1 %v21480_v59  ;;  %v9819_v59 = vrot.slane %v24921_v32, 7 }
 0x8a5   : > { %19071 = vmatprep.subr.bf16.mxu1 %v21481_v10 }
 0x8a7   : > { %19040 = vmatmul.mubr.bf16.gmra.mrb[72].mxu1 %v23900_v7 }
 0x8a8   : > { %19043 = vmatprep.mubr.bf16.mxu1 %v23907_v18  ;;  %19072 = vmatpush3.bf16.msra.mxu1 %v21481_v10  ;;  %v21485_v10 = vld [vmem:[#allocation11 + $0xc0] sm:$0xff]  }
 0x8a9   : > { %19073 = vmatprep.subr.bf16.mxu1 %v21482_v48 }
 0x8ac   : > { %19074 = vmatpush3.bf16.msra.mxu1 %v21482_v48  ;;  %v9822_v48 = vor.u32 %v9820_v2, %v9819_v59 }
 0x8ad   : > { %19075 = vmatprep.subr.bf16.mxu1 %v21483_v20 }
 0x8ae   : > { %v23951_v1 = vsel %vm22292_vm5, 0, %v9822_v48  ;;  %v24920_v48 = vshrl.u32 %v23815_v24, 16 }
 0x8af   : > { %19044 = vmatmul.mubr.bf16.gmra.mrb[76].mxu1 %v23922_v8 }
 0x8b0   : > { %19047 = vmatprep.mubr.bf16.mxu1 %v23929_v21  ;;  %19076 = vmatpush3.bf16.msra.mxu1 %v21483_v20  ;;  %v9826_v20 = vrot.slane %v24916_v53, 7  ;;  %v23973_v53 = vsel %vm22292_vm5, 0, %v9836_v57 }
 0x8b1   : > { %19077 = vmatprep.subr.bf16.mxu1 %v21484_v42 }
 0x8b4   : > { %19078 = vmatpush3.bf16.msra.mxu1 %v21484_v42  ;;  %v24919_v42 = vshll.u32 %v23807_v26, 16 }
 0x8b5   : > { %19111 = vmatprep.subr.bf16.mxu1 %v21485_v10 }
 0x8b6   : > { %v9829_v59 = vor.u32 %v24919_v42, %v9826_v20  ;;  %v9847_v20 = vrot.slane %v24920_v48, 7  ;;  %v9854_v48 = vrot.slane %v24922_v52, 7  ;;  %v9892_v52 = vrot.slane %v9757_v0, 1 }
 0x8b7   : > { %19048 = vmatmul.mubr.bf16.gmra.mrb[80].mxu1 %v23944_v13  ;;  %v9896_v0 = vrot.slane %v9771_v38, 1 }
 0x8b8   : > { %19051 = vmatprep.mubr.bf16.mxu1 %v23951_v1  ;;  %v23966_v61 = vsel %vm22292_vm5, 0, %v9829_v59  ;;  %v9843_v59 = vor.u32 %v9841_v15, %v9840_v5  ;;  %v9850_v42 = vor.u32 %v24923_v31, %v9847_v20  ;;  %v24924_v5 = vshll.u32 %v23829_v49, 16 }
 0x8b9   : > { %v9893_v31 = vor.u32 %v9892_v52, %v9754_v47  ;;  %v9898_v47 = vrot.slane %v9778_v23, 1  ;;  %v21488_v52 = vld [vmem:[#allocation11 + $0xd8] sm:$0xff]   ;;  %v9900_v23 = vrot.slane %v9785_v56, 1 }
 0x8ba   : > { %v23987_v57 = vsel %vm22292_vm5, 0, %v9843_v59  ;;  %v23994_v32 = vsel %vm22292_vm5, 0, %v9850_v42  ;;  %v9857_v20 = vor.u32 %v24924_v5, %v9854_v48  ;;  %v9894_v42 = vrot.slane %v9764_v45, 1  ;;  %v21486_v5 = vld [vmem:[#allocation11 + $0xc8] sm:$0xff]  }
 0x8bb   : > { %v9899_v38 = vor.u32 %v9898_v47, %v9775_v62  ;;  %v21489_v62 = vld [vmem:[#allocation11 + $0xe0] sm:$0xff]  }
 0x8bc   : > { %v24002_v59 = vsel %vm22292_vm5, 0, %v9857_v20  ;;  %v9895_v48 = vor.u32 %v9894_v42, %v9761_v25  ;;  %v24016_v20 = vsel %vm22267_vm4, %v9893_v31, 0  ;;  %v21487_v25 = vld [vmem:[#allocation11 + $0xd0] sm:$0xff]   ;;  %v9897_v31 = vor.u32 %v9896_v0, %v9768_v19 }
 0x8bd   : > { %v9902_v19 = vrot.slane %v9792_v55, 1  ;;  %v9904_v55 = vrot.slane %v9799_v17, 1 }
 0x8be   : > { %v24023_v45 = vsel %vm22267_vm4, %v9895_v48, 0  ;;  %v24034_v42 = vsel %vm22267_vm4, %v9897_v31, 0  ;;  %v21490_v48 = vld [vmem:[#allocation11 + $0xe8] sm:$0xff]   ;;  %v21492_v31 = vld [vmem:[#allocation11 + $0xf8] sm:$0xff]  }
 0x8bf   : > { %19052 = vmatmul.mubr.bf16.gmra.mrb[84].mxu1 %v23966_v61  ;;  %v9903_v56 = vor.u32 %v9902_v19, %v9789_v29  ;;  %v21491_v29 = vld [vmem:[#allocation11 + $0xf0] sm:$0xff]   ;;  %v24992_v19 = vshrl.u32 %v23794_v33, 16 }
 0x8c0   : > { %19055 = vmatprep.mubr.bf16.mxu1 %v23973_v53 }
 0x8c1   : > { %v24059_v47 = vsel %vm22267_vm4, %v9903_v56, 0 }
 0x8c7   : > { %19056 = vmatmul.mubr.bf16.gmra.mrb[88].mxu1 %v23987_v57 }
 0x8c8   : > { %19059 = vmatprep.mubr.bf16.mxu1 %v23994_v32 }
 0x8cf   : > { %19060 = vmatmul.mubr.bf16.gmra.mrb[92].mxu1 %v24002_v59 }
 0x8d0   : > { %19079 = vmatprep.mubr.bf16.mxu1 %v22593_v37 }
 0x8d7   : > { %19080 = vmatmul.mubr.bf16.vlgmr.msra.gmra.mrb[64].mxu1 %v24016_v20 }
 0x8d8   : > { %19083 = vmatprep.mubr.bf16.mxu1 %v24023_v45  ;;  %19112 = vmatpush3.bf16.msra.mxu1 %v21485_v10  ;;  %v24041_v10 = vsel %vm22267_vm4, %v9899_v38, 0 }
 0x8d9   : > { %19113 = vmatprep.subr.bf16.mxu1 %v21486_v5 }
 0x8dc   : > { %19114 = vmatpush3.bf16.msra.mxu1 %v21486_v5  ;;  %v9901_v5 = vor.u32 %v9900_v23, %v9782_v63  ;;  %v9906_v63 = vrot.slane %v9806_v14, 1  ;;  %v9908_v14 = vrot.slane %v9813_v28, 1 }
 0x8dd   : > { %19115 = vmatprep.subr.bf16.mxu1 %v21487_v25 }
 0x8de   : > { %v24052_v0 = vsel %vm22267_vm4, %v9901_v5, 0  ;;  %v9907_v17 = vor.u32 %v9906_v63, %v9803_v46  ;;  %v21493_v46 = vld [vmem:[#allocation11 + $0x100] sm:$0xff]   ;;  %v9909_v23 = vor.u32 %v9908_v14, %v9810_v50  ;;  %v24993_v5 = vshll.u32 %v23807_v26, 16 }
 0x8df   : > { %19084 = vmatmul.mubr.bf16.gmra.mrb[68].mxu1 %v24034_v42  ;;  %v24994_v50 = vshll.u32 %v23805_v30, 16 }
 0x8e0   : > { %19087 = vmatprep.mubr.bf16.mxu1 %v24041_v10  ;;  %19116 = vmatpush3.bf16.msra.mxu1 %v21487_v25  ;;  %v9905_v25 = vor.u32 %v9904_v55, %v9796_v39  ;;  %v9910_v39 = vrot.slane %v9820_v2, 1  ;;  %v9912_v2 = vrot.slane %v24993_v5, 1  ;;  %v24995_v55 = vshrl.u32 %v23807_v26, 16 }
 0x8e1   : > { %19117 = vmatprep.subr.bf16.mxu1 %v21488_v52  ;;  %v24999_v5 = vshrl.u32 %v23815_v24, 16 }
 0x8e2   : > { %v24070_v38 = vsel %vm22267_vm4, %v9905_v25, 0  ;;  %v9911_v28 = vor.u32 %v9910_v39, %v24992_v19  ;;  %v9913_v63 = vor.u32 %v9912_v2, %v24995_v55  ;;  %v24997_v39 = vshll.u32 %v23815_v24, 16 }
 0x8e3   : > { %v24998_v19 = vshrl.u32 %v23817_v54, 16 }
 0x8e4   : > { %19118 = vmatpush3.bf16.msra.mxu1 %v21488_v52  ;;  %v24077_v52 = vsel %vm22267_vm4, %v9907_v17, 0  ;;  %v24095_v56 = vsel %vm22267_vm4, %v9911_v28, 0  ;;  %v24106_v17 = vsel %vm22267_vm4, %v9913_v63, 0  ;;  %v25001_v63 = vshrl.u32 %v23829_v49, 16 }
 0x8e5   : > { %19119 = vmatprep.subr.bf16.mxu1 %v21489_v62 }
 0x8e7   : > { %19088 = vmatmul.mubr.bf16.gmra.mrb[72].mxu1 %v24052_v0 }
 0x8e8   : > { %19091 = vmatprep.mubr.bf16.mxu1 %v24059_v47  ;;  %19120 = vmatpush3.bf16.msra.mxu1 %v21489_v62  ;;  %v24088_v62 = vsel %vm22267_vm4, %v9909_v23, 0  ;;  %v9918_v23 = vrot.slane %v24997_v39, 1  ;;  %v21495_v39 = vld [vmem:[#allocation11 + $0x110] sm:$0xff]  }
 0x8e9   : > { %19121 = vmatprep.subr.bf16.mxu1 %v21490_v48 }
 0x8ea   : > { %v9919_v2 = vor.u32 %v9918_v23, %v24999_v5  ;;  %v21496_v23 = vld [vmem:[#allocation11 + $0x118] sm:$0xff]   ;;  %v21501_v5 = vld [vmem:[#allocation11 + $0x140] sm:$0xff]  }
 0x8ec   : > { %19122 = vmatpush3.bf16.msra.mxu1 %v21490_v48  ;;  %v9914_v48 = vrot.slane %v24994_v50, 1  ;;  %v25000_v50 = vshll.u32 %v23829_v49, 16  ;;  %v24131_v55 = vsel %vm22267_vm4, %v9919_v2, 0  ;;  %v25002_v2 = vshrl.u32 %v23827_v9, 16 }
 0x8ed   : > { %19123 = vmatprep.subr.bf16.mxu1 %v21491_v29 }
 0x8ef   : > { %19092 = vmatmul.mubr.bf16.gmra.mrb[76].mxu1 %v24070_v38 }
 0x8f0   : > { %19095 = vmatprep.mubr.bf16.mxu1 %v24077_v52  ;;  %19124 = vmatpush3.bf16.msra.mxu1 %v21491_v29  ;;  %v24996_v29 = vshrl.u32 %v23805_v30, 16 }
 0x8f1   : > { %19125 = vmatprep.subr.bf16.mxu1 %v21492_v31 }
 0x8f2   : > { %v9915_v25 = vor.u32 %v9914_v48, %v24996_v29  ;;  %v9920_v48 = vrot.slane %v25000_v50, 1  ;;  %v10787_v50 = vrot.slane %v25002_v2, 7  ;;  %v21511_v2 = vld [vmem:[#allocation11 + $0x190] sm:$0xff]  }
 0x8f4   : > { %19126 = vmatpush3.bf16.msra.mxu1 %v21492_v31  ;;  %v9916_v31 = vrot.slane %v9841_v15, 1  ;;  %v24113_v14 = vsel %vm22267_vm4, %v9915_v25, 0  ;;  %v9921_v29 = vor.u32 %v9920_v48, %v25001_v63  ;;  %v25003_v48 = vshll.u32 %v23827_v9, 16 }
 0x8f5   : > { %19159 = vmatprep.subr.bf16.mxu1 %v21493_v46 }
 0x8f6   : > { %v9917_v28 = vor.u32 %v9916_v31, %v24998_v19  ;;  %v24138_v25 = vsel %vm22267_vm4, %v9921_v29, 0  ;;  %v21494_v31 = vld [vmem:[#allocation11 + $0x108] sm:$0xff]   ;;  %v21497_v19 = vld [vmem:[#allocation11 + $0x120] sm:$0xff]   ;;  %v10790_v63 = vor.u32 %v25003_v48, %v10787_v50  ;;  %v21512_v50 = vld [vmem:[#allocation11 + $0x198] sm:$0xff]  }
 0x8f7   : > { %19096 = vmatmul.mubr.bf16.gmra.mrb[80].mxu1 %v24088_v62  ;;  %v21513_v48 = vld [vmem:[#allocation11 + $0x1a0] sm:$0xff]  }
 0x8f8   : > { %19099 = vmatprep.mubr.bf16.mxu1 %v24095_v56  ;;  %v24124_v15 = vsel %vm22267_vm4, %v9917_v28, 0  ;;  %v21500_v28 = vld [vmem:[#allocation11 + $0x138] sm:$0xff]   ;;  %v24162_v29 = vsel %vm22292_vm5, 0, %v10790_v63  ;;  %v21515_v63 = vld [vmem:[#allocation11 + $0x1b0] sm:$0xff]  }
 0x8ff   : > { %19100 = vmatmul.mubr.bf16.gmra.mrb[84].mxu1 %v24106_v17 }
 0x900   : > { %19103 = vmatprep.mubr.bf16.mxu1 %v24113_v14 }
 0x907   : > { %19104 = vmatmul.mubr.bf16.gmra.mrb[88].mxu1 %v24124_v15 }
 0x908   : > { %19107 = vmatprep.mubr.bf16.mxu1 %v24131_v55 }
 0x90f   : > { %19108 = vmatmul.mubr.bf16.gmra.mrb[92].mxu1 %v24138_v25 }
 0x910   : > { %19127 = vmatprep.mubr.bf16.mxu1 %v23855_v22  ;;  %v21498_v22 = vld [vmem:[#allocation11 + $0x128] sm:$0xff]  }
 0x917   : > { %19128 = vmatmul.mubr.bf16.vlgmr.msra.gmra.mrb[64].mxu1 %v23862_v36 }
 0x918   : > { %19131 = vmatprep.mubr.bf16.mxu1 %v23878_v4  ;;  %19160 = vmatpush3.bf16.msra.mxu1 %v21493_v46  ;;  %v21499_v46 = vld [vmem:[#allocation11 + $0x130] sm:$0xff]  }
 0x919   : > { %19161 = vmatprep.subr.bf16.mxu1 %v21494_v31 }
 0x91c   : > { %19162 = vmatpush3.bf16.msra.mxu1 %v21494_v31  ;;  %v21502_v31 = vld [vmem:[#allocation11 + $0x148] sm:$0xff]  }
 0x91d   : > { %19163 = vmatprep.subr.bf16.mxu1 %v21495_v39 }
 0x91f   : > { %19132 = vmatmul.mubr.bf16.gmra.mrb[68].mxu1 %v23885_v35 }
 0x920   : > { %19135 = vmatprep.mubr.bf16.mxu1 %v23900_v7  ;;  %19164 = vmatpush3.bf16.msra.mxu1 %v21495_v39  ;;  %v21503_v39 = vld [vmem:[#allocation11 + $0x150] sm:$0xff]  }
 0x921   : > { %19165 = vmatprep.subr.bf16.mxu1 %v21496_v23 }
 0x924   : > { %19166 = vmatpush3.bf16.msra.mxu1 %v21496_v23  ;;  %v21504_v23 = vld [vmem:[#allocation11 + $0x158] sm:$0xff]  }
 0x925   : > { %19167 = vmatprep.subr.bf16.mxu1 %v21497_v19 }
 0x927   : > { %19136 = vmatmul.mubr.bf16.gmra.mrb[72].mxu1 %v23907_v18 }
 0x928   : > { %19139 = vmatprep.mubr.bf16.mxu1 %v23922_v8  ;;  %19168 = vmatpush3.bf16.msra.mxu1 %v21497_v19  ;;  %v21505_v19 = vld [vmem:[#allocation11 + $0x160] sm:$0xff]  }
 0x929   : > { %19169 = vmatprep.subr.bf16.mxu1 %v21498_v22 }
 0x92c   : > { %19170 = vmatpush3.bf16.msra.mxu1 %v21498_v22  ;;  %v21507_v22 = vld [vmem:[#allocation11 + $0x170] sm:$0xff]  }
 0x92d   : > { %19171 = vmatprep.subr.bf16.mxu1 %v21499_v46 }
 0x92f   : > { %19140 = vmatmul.mubr.bf16.gmra.mrb[76].mxu1 %v23929_v21 }
 0x930   : > { %19143 = vmatprep.mubr.bf16.mxu1 %v23944_v13  ;;  %19172 = vmatpush3.bf16.msra.mxu1 %v21499_v46  ;;  %v21508_v46 = vld [vmem:[#allocation11 + $0x178] sm:$0xff]  }
 0x931   : > { %19173 = vmatprep.subr.bf16.mxu1 %v21500_v28 }
 0x934   : > { %19174 = vmatpush3.bf16.msra.mxu1 %v21500_v28  ;;  %v21509_v28 = vld [vmem:[#allocation11 + $0x180] sm:$0xff]  }
 0x935   : > { %19207 = vmatprep.subr.bf16.mxu1 %v21501_v5 }
 0x937   : > { %19144 = vmatmul.mubr.bf16.gmra.mrb[80].mxu1 %v23951_v1 }
 0x938   : > { %19147 = vmatprep.mubr.bf16.mxu1 %v23966_v61 }
 0x93f   : > { %19148 = vmatmul.mubr.bf16.gmra.mrb[84].mxu1 %v23973_v53 }
 0x940   : > { %19151 = vmatprep.mubr.bf16.mxu1 %v23987_v57 }
 0x947   : > { %19152 = vmatmul.mubr.bf16.gmra.mrb[88].mxu1 %v23994_v32 }
 0x948   : > { %19155 = vmatprep.mubr.bf16.mxu1 %v24002_v59 }
 0x94f   : > { %19156 = vmatmul.mubr.bf16.gmra.mrb[92].mxu1 %v24162_v29 }
 0x950   : > { %19175 = vmatprep.mubr.bf16.mxu1 %v23754_v27  ;;  %v21506_v27 = vld [vmem:[#allocation11 + $0x168] sm:$0xff]  }
 0x957   : > { %19176 = vmatmul.mubr.bf16.vlgmr.msra.gmra.mrb[64].mxu1 %v23752_v16 }
 0x958   : > { %19179 = vmatprep.mubr.bf16.mxu1 %v23764_v51  ;;  %19208 = vmatpush3.bf16.msra.mxu1 %v21501_v5  ;;  %v21510_v5 = vld [vmem:[#allocation11 + $0x188] sm:$0xff]  }
 0x959   : > { %19209 = vmatprep.subr.bf16.mxu1 %v21502_v31 }
 0x95c   : > { %19210 = vmatpush3.bf16.msra.mxu1 %v21502_v31  ;;  %v21516_v31 = vld [vmem:[#allocation11 + $0x1b8] sm:$0xff]  }
 0x95d   : > { %19211 = vmatprep.subr.bf16.mxu1 %v21503_v39 }
 0x95f   : > { %19180 = vmatmul.mubr.bf16.gmra.mrb[68].mxu1 %v23762_v12 }
 0x960   : > { %19183 = vmatprep.mubr.bf16.mxu1 %v23774_v3  ;;  %19212 = vmatpush3.bf16.msra.mxu1 %v21503_v39  ;;  %v21517_v39 = vld [vmem:[#allocation11 + $0x1c0] sm:$0xff]  }
 0x961   : > { %19213 = vmatprep.subr.bf16.mxu1 %v21504_v23 }
 0x964   : > { %19214 = vmatpush3.bf16.msra.mxu1 %v21504_v23  ;;  %v24199_v23 = vsel %vm22267_vm4, %v23848_v40, 0  ;;  %v21521_v40 = vld [vmem:[#allocation11 + $0x1e0] sm:$0xff]  }
 0x965   : > { %19215 = vmatprep.subr.bf16.mxu1 %v21505_v19 }
 0x967   : > { %19184 = vmatmul.mubr.bf16.gmra.mrb[72].mxu1 %v23772_v60 }
 0x968   : > { %19187 = vmatprep.mubr.bf16.mxu1 %v23784_v43  ;;  %19216 = vmatpush3.bf16.msra.mxu1 %v21505_v19  ;;  %v21518_v19 = vld [vmem:[#allocation11 + $0x1c8] sm:$0xff]  }
 0x969   : > { %19217 = vmatprep.subr.bf16.mxu1 %v21506_v27 }
 0x96c   : > { %19218 = vmatpush3.bf16.msra.mxu1 %v21506_v27  ;;  %v21519_v27 = vld [vmem:[#allocation11 + $0x1d0] sm:$0xff]  }
 0x96d   : > { %19219 = vmatprep.subr.bf16.mxu1 %v21507_v22 }
 0x96f   : > { %19188 = vmatmul.mubr.bf16.gmra.mrb[76].mxu1 %v23782_v6 }
 0x970   : > { %19191 = vmatprep.mubr.bf16.mxu1 %v23796_v41  ;;  %19220 = vmatpush3.bf16.msra.mxu1 %v21507_v22  ;;  %v21520_v22 = vld [vmem:[#allocation11 + $0x1d8] sm:$0xff]  }
 0x971   : > { %19221 = vmatprep.subr.bf16.mxu1 %v21508_v46 }
 0x974   : > { %19222 = vmatpush3.bf16.msra.mxu1 %v21508_v46  ;;  %v21543_v46 = vld [vmem:[#allocation12 + $0x10] sm:$0xff]  }
 0x975   : > { %19255 = vmatprep.subr.bf16.mxu1 %v21509_v28 }
 0x977   : > { %19192 = vmatmul.mubr.bf16.gmra.mrb[80].mxu1 %v23794_v33 }
 0x978   : > { %19195 = vmatprep.mubr.bf16.mxu1 %v23807_v26 }
 0x97f   : > { %19196 = vmatmul.mubr.bf16.gmra.mrb[84].mxu1 %v23805_v30 }
 0x980   : > { %19199 = vmatprep.mubr.bf16.mxu1 %v23817_v54 }
 0x987   : > { %19200 = vmatmul.mubr.bf16.gmra.mrb[88].mxu1 %v23815_v24 }
 0x988   : > { %19203 = vmatprep.mubr.bf16.mxu1 %v23829_v49 }
 0x98f   : > { %19204 = vmatmul.mubr.bf16.gmra.mrb[92].mxu1 %v23827_v9 }
 0x990   : > { %19223 = vmatprep.mubr.bf16.mxu1 %v24016_v20  ;;  %v21514_v20 = vld [vmem:[#allocation11 + $0x1a8] sm:$0xff]  }
 0x997   : > { %19224 = vmatmul.mubr.bf16.vlgmr.msra.gmra.mrb[64].mxu1 %v24023_v45 }
 0x998   : > { %19227 = vmatprep.mubr.bf16.mxu1 %v24034_v42  ;;  %19256 = vmatpush3.bf16.msra.mxu1 %v21509_v28 }
 0x999   : > { %19257 = vmatprep.subr.bf16.mxu1 %v21510_v5 }
 0x99c   : > { %19258 = vmatpush3.bf16.msra.mxu1 %v21510_v5 }
 0x99d   : > { %19259 = vmatprep.subr.bf16.mxu1 %v21511_v2 }
 0x99f   : > { %19228 = vmatmul.mubr.bf16.gmra.mrb[68].mxu1 %v24041_v10 }
 0x9a0   : > { %19231 = vmatprep.mubr.bf16.mxu1 %v24052_v0  ;;  %19260 = vmatpush3.bf16.msra.mxu1 %v21511_v2 }
 0x9a1   : > { %19261 = vmatprep.subr.bf16.mxu1 %v21512_v50 }
 0x9a4   : > { %19262 = vmatpush3.bf16.msra.mxu1 %v21512_v50 }
 0x9a5   : > { %19263 = vmatprep.subr.bf16.mxu1 %v21513_v48 }
 0x9a7   : > { %19232 = vmatmul.mubr.bf16.gmra.mrb[72].mxu1 %v24059_v47 }
 0x9a8   : > { %19235 = vmatprep.mubr.bf16.mxu1 %v24070_v38  ;;  %19264 = vmatpush3.bf16.msra.mxu1 %v21513_v48 }
 0x9a9   : > { %19265 = vmatprep.subr.bf16.mxu1 %v21514_v20 }
 0x9ac   : > { %19266 = vmatpush3.bf16.msra.mxu1 %v21514_v20 }
 0x9ad   : > { %19267 = vmatprep.subr.bf16.mxu1 %v21515_v63 }
 0x9af   : > { %19236 = vmatmul.mubr.bf16.gmra.mrb[76].mxu1 %v24077_v52 }
 0x9b0   : > { %19239 = vmatprep.mubr.bf16.mxu1 %v24088_v62  ;;  %19268 = vmatpush3.bf16.msra.mxu1 %v21515_v63 }
 0x9b1   : > { %19269 = vmatprep.subr.bf16.mxu1 %v21516_v31 }
 0x9b4   : > { %19270 = vmatpush3.bf16.msra.mxu1 %v21516_v31  ;;  %v21544_v31 = vld [vmem:[#allocation12 + $0x18] sm:$0xff]  }
 0x9b5   : > { %19303 = vmatprep.subr.bf16.mxu1 %v21517_v39 }
 0x9b7   : > { %19240 = vmatmul.mubr.bf16.gmra.mrb[80].mxu1 %v24095_v56 }
 0x9b8   : > { %19243 = vmatprep.mubr.bf16.mxu1 %v24106_v17 }
 0x9bf   : > { %19244 = vmatmul.mubr.bf16.gmra.mrb[84].mxu1 %v24113_v14 }
 0x9c0   : > { %19247 = vmatprep.mubr.bf16.mxu1 %v24124_v15 }
 0x9c7   : > { %19248 = vmatmul.mubr.bf16.gmra.mrb[88].mxu1 %v24131_v55 }
 0x9c8   : > { %19251 = vmatprep.mubr.bf16.mxu1 %v24138_v25 }
 0x9cf   : > { %19252 = vmatmul.mubr.bf16.gmra.mrb[92].mxu1 %v24199_v23 }
 0x9d0   : > { %19271 = vmatprep.mubr.bf16.mxu1 %v23862_v36  ;;  %v21522_v36 = vld [vmem:[#allocation11 + $0x1e8] sm:$0xff]  }
 0x9d7   : > { %19272 = vmatmul.mubr.bf16.vlgmr.msra.gmra.mrb[64].mxu1 %v23878_v4  ;;  %v21523_v4 = vld [vmem:[#allocation11 + $0x1f0] sm:$0xff]  }
 0x9d8   : > { %19275 = vmatprep.mubr.bf16.mxu1 %v23885_v35  ;;  %19304 = vmatpush3.bf16.msra.mxu1 %v21517_v39  ;;  %v21524_v35 = vld [vmem:[#allocation11 + $0x1f8] sm:$0xff]  }
 0x9d9   : > { %19305 = vmatprep.subr.bf16.mxu1 %v21518_v19 }
 0x9dc   : > { %19306 = vmatpush3.bf16.msra.mxu1 %v21518_v19 }
 0x9dd   : > { %19307 = vmatprep.subr.bf16.mxu1 %v21519_v27 }
 0x9df   : > { %19276 = vmatmul.mubr.bf16.gmra.mrb[68].mxu1 %v23900_v7  ;;  %v21525_v7 = vld [vmem:[#allocation11 + $0x200] sm:$0xff]  }
 0x9e0   : > { %19279 = vmatprep.mubr.bf16.mxu1 %v23907_v18  ;;  %19308 = vmatpush3.bf16.msra.mxu1 %v21519_v27  ;;  %v21533_v18 = vld [vmem:[#allocation12 + $0x40] sm:$0xff]  }
 0x9e1   : > { %19309 = vmatprep.subr.bf16.mxu1 %v21520_v22  ;;  %19399 = vmatprep.subr.bf16.mxu0 %v21533_v18 }
 0x9e2   : > { %19400 = vmatpush3.bf16.msra.mxu0 %v21533_v18 }
 0x9e4   : > { %19310 = vmatpush3.bf16.msra.mxu1 %v21520_v22 }
 0x9e5   : > { %19311 = vmatprep.subr.bf16.mxu1 %v21521_v40 }
 0x9e7   : > { %19280 = vmatmul.mubr.bf16.gmra.mrb[72].mxu1 %v23922_v8  ;;  %v21534_v8 = vld [vmem:[#allocation12 + $0x48] sm:$0xff]  }
 0x9e8   : > { %19283 = vmatprep.mubr.bf16.mxu1 %v23929_v21  ;;  %19312 = vmatpush3.bf16.msra.mxu1 %v21521_v40  ;;  %v21526_v21 = vld [vmem:[#allocation11 + $0x208] sm:$0xff]  }
 0x9e9   : > { %19313 = vmatprep.subr.bf16.mxu1 %v21522_v36  ;;  %19401 = vmatprep.subr.bf16.mxu0 %v21534_v8 }
 0x9ea   : > { %19402 = vmatpush3.bf16.msra.mxu0 %v21534_v8 }
 0x9ec   : > { %19314 = vmatpush3.bf16.msra.mxu1 %v21522_v36 }
 0x9ed   : > { %19315 = vmatprep.subr.bf16.mxu1 %v21523_v4 }
 0x9ef   : > { %19284 = vmatmul.mubr.bf16.gmra.mrb[76].mxu1 %v23944_v13  ;;  %v21537_v13 = vld [vmem:[#allocation12 + $0x60] sm:$0xff]  }
 0x9f0   : > { %19287 = vmatprep.mubr.bf16.mxu1 %v23951_v1  ;;  %19316 = vmatpush3.bf16.msra.mxu1 %v21523_v4  ;;  %v21538_v1 = vld [vmem:[#allocation12 + $0x68] sm:$0xff]   ;;  %v21545_v4 = vld [vmem:[#allocation12 + $0x20] sm:$0xff]  }
 0x9f1   : > { %19317 = vmatprep.subr.bf16.mxu1 %v21524_v35 }
 0x9f4   : > { %19318 = vmatpush3.bf16.msra.mxu1 %v21524_v35 }
 0x9f5   : > { %19351 = vmatprep.subr.bf16.mxu1 %v21525_v7 }
 0x9f7   : > { %19288 = vmatmul.mubr.bf16.gmra.mrb[80].mxu1 %v23966_v61  ;;  %v21535_v61 = vld [vmem:[#allocation12 + $0x50] sm:$0xff]  }
 0x9f8   : > { %19291 = vmatprep.mubr.bf16.mxu1 %v23973_v53  ;;  %19403 = vmatprep.subr.bf16.mxu0 %v21535_v61  ;;  %v21527_v53 = vld [vmem:[#allocation11 + $0x210] sm:$0xff]  }
 0x9f9   : > { %19404 = vmatpush3.bf16.msra.mxu0 %v21535_v61 }
 0x9ff   : > { %19292 = vmatmul.mubr.bf16.gmra.mrb[84].mxu1 %v23987_v57  ;;  %v21530_v57 = vld [vmem:[#allocation11 + $0x228] sm:$0xff]  }
 0xa00   : > { %19295 = vmatprep.mubr.bf16.mxu1 %v23994_v32  ;;  %v21536_v32 = vld [vmem:[#allocation12 + $0x58] sm:$0xff]  }
 0xa01   : > { %19405 = vmatprep.subr.bf16.mxu0 %v21536_v32 }
 0xa02   : > { %19406 = vmatpush3.bf16.msra.mxu0 %v21536_v32 }
 0xa03   : > { %19407 = vmatprep.subr.bf16.mxu0 %v21537_v13 }
 0xa06   : > { %19408 = vmatpush3.bf16.msra.mxu0 %v21537_v13 }
 0xa07   : > { %19296 = vmatmul.mubr.bf16.gmra.mrb[88].mxu1 %v24002_v59  ;;  %19409 = vmatprep.subr.bf16.mxu0 %v21538_v1 }
 0xa08   : > { %19299 = vmatprep.mubr.bf16.mxu1 %v24162_v29 }
 0xa0a   : > { %19410 = vmatpush3.bf16.msra.mxu0 %v21538_v1 }
 0xa0f   : > { %19300 = vmatmul.mubr.bf16.gmra.mrb[92].mxu1 %v22322_v11 }
 0xa10   : > { %19319 = vmatprep.mubr.bf16.mxu1 %v23752_v16  ;;  %v21528_v16 = vld [vmem:[#allocation11 + $0x218] sm:$0xff]  }
 0xa17   : > { %19320 = vmatmul.mubr.bf16.vlgmr.msra.gmra.mrb[64].mxu1 %v23764_v51  ;;  %v21529_v51 = vld [vmem:[#allocation11 + $0x220] sm:$0xff]  }
 0xa18   : > { %19323 = vmatprep.mubr.bf16.mxu1 %v23762_v12  ;;  %19352 = vmatpush3.bf16.msra.mxu1 %v21525_v7  ;;  %v21539_v12 = vld [vmem:[#allocation12 + $0x70] sm:$0xff]  }
 0xa19   : > { %19353 = vmatprep.subr.bf16.mxu1 %v21526_v21  ;;  %19411 = vmatprep.subr.bf16.mxu0 %v21539_v12 }
 0xa1a   : > { %19412 = vmatpush3.bf16.msra.mxu0 %v21539_v12 }
 0xa1c   : > { %19354 = vmatpush3.bf16.msra.mxu1 %v21526_v21 }
 0xa1d   : > { %19355 = vmatprep.subr.bf16.mxu1 %v21527_v53 }
 0xa1f   : > { %19324 = vmatmul.mubr.bf16.gmra.mrb[68].mxu1 %v23774_v3  ;;  %v21531_v3 = vld [vmem:[#allocation11 + $0x230] sm:$0xff]  }
 0xa20   : > { %19327 = vmatprep.mubr.bf16.mxu1 %v23772_v60  ;;  %19356 = vmatpush3.bf16.msra.mxu1 %v21527_v53  ;;  %v21532_v60 = vld [vmem:[#allocation11 + $0x238] sm:$0xff]   ;;  %v21546_v53 = vld [vmem:[#allocation12 + $0x28] sm:$0xff]  }
 0xa21   : > { %19357 = vmatprep.subr.bf16.mxu1 %v21528_v16 }
 0xa24   : > { %19358 = vmatpush3.bf16.msra.mxu1 %v21528_v16 }
 0xa25   : > { %19359 = vmatprep.subr.bf16.mxu1 %v21529_v51 }
 0xa27   : > { %19328 = vmatmul.mubr.bf16.gmra.mrb[72].mxu1 %v23784_v43  ;;  %v21541_v43 = vld [vmem:[#allocation12] sm:$0xff]  }
 0xa28   : > { %19331 = vmatprep.mubr.bf16.mxu1 %v23782_v6  ;;  %19360 = vmatpush3.bf16.msra.mxu1 %v21529_v51  ;;  %v21540_v6 = vld [vmem:[#allocation12 + $0x78] sm:$0xff]  }
 0xa29   : > { %19361 = vmatprep.subr.bf16.mxu1 %v21530_v57  ;;  %19413 = vmatprep.subr.bf16.mxu0 %v21540_v6 }
 0xa2a   : > { %19414 = vmatpush3.bf16.msra.mxu0 %v21540_v6 }
 0xa2b   : > { %19447 = vmatprep.subr.bf16.mxu0 %v21541_v43 }
 0xa2c   : > { %19362 = vmatpush3.bf16.msra.mxu1 %v21530_v57 }
 0xa2d   : > { %19363 = vmatprep.subr.bf16.mxu1 %v21531_v3 }
 0xa2f   : > { %19332 = vmatmul.mubr.bf16.gmra.mrb[76].mxu1 %v23796_v41 }
 0xa30   : > { %19335 = vmatprep.mubr.bf16.mxu1 %v23794_v33  ;;  %19364 = vmatpush3.bf16.msra.mxu1 %v21531_v3  ;;  %v24253_v33 = vld [vmem:[%s25004_s22] ss:$0 sm:$0xff]  ;;  %s21802_s22 = sshll.u32 %s21887_s28, 4  ;;  %s21803_s22 = int_to_ptr.vmem [resolvable:$false] %s21802_s22 }
 0xa31   : > { %19365 = vmatprep.subr.bf16.mxu1 %v21532_v60  ;;  %s21804_s30 = scalar_lea.vmem %s21803_s22, 4096  ;;  %p21805_p13 = scmp.lt.s32.totalorder %s24819_s12, %s21803_s22 }
 0xa32   : > { %p21806_p0 = scmp.lt.s32.totalorder %s21804_s30, %s21798_s25 }
 0xa34   : > { %19366 = vmatpush3.bf16.msra.mxu1 %v21532_v60  ;;  %v21547_v60 = vld [vmem:[#allocation12 + $0x30] sm:$0xff]   ;;  %p21807_p2 = por %p21806_p0, %p21805_p13 }
 0xa36   : > { %p21808_p8 = pnand %p21807_p2, %p21801_p1 }
 0xa37   : > { %19336 = vmatmul.mubr.bf16.gmra.mrb[80].mxu1 %v23807_v26 }
 0xa38   : > { %19339 = vmatprep.mubr.bf16.mxu1 %v23805_v30 }
 0xa3f   : > { %19340 = vmatmul.mubr.bf16.gmra.mrb[84].mxu1 %v23817_v54 }
 0xa40   : > { %19343 = vmatprep.mubr.bf16.mxu1 %v23815_v24 }
 0xa47   : > { %19344 = vmatmul.mubr.bf16.gmra.mrb[88].mxu1 %v23829_v49 }
 0xa48   : > { %19347 = vmatprep.mubr.bf16.mxu1 %v23827_v9 }
 0xa4f   : > { %19348 = vmatmul.mubr.bf16.gmra.mrb[92].mxu1 %v24964_v34 }
 0xa50   : > { %19367 = vmatprep.mubr.bf16.mxu1 %v24023_v45 }
 0xa57   : > { %19368 = vmatmul.mubr.bf16.vlgmr.msra.gmra.mrb[64].mxu1 %v24034_v42 }
 0xa58   : > { %19371 = vmatprep.mubr.bf16.mxu1 %v24041_v10 }
 0xa5f   : > { %19372 = vmatmul.mubr.bf16.gmra.mrb[68].mxu1 %v24052_v0 }
 0xa60   : > { %19375 = vmatprep.mubr.bf16.mxu1 %v24059_v47 }
 0xa67   : > { %19376 = vmatmul.mubr.bf16.gmra.mrb[72].mxu1 %v24070_v38 }
 0xa68   : > { %19379 = vmatprep.mubr.bf16.mxu1 %v24077_v52 }
 0xa6f   : > { %19380 = vmatmul.mubr.bf16.gmra.mrb[76].mxu1 %v24088_v62  ;;  %v21542_v62 = vld [vmem:[#allocation12 + $0x8] sm:$0xff]  }
 0xa70   : > { %19383 = vmatprep.mubr.bf16.mxu1 %v24095_v56 }
 0xa77   : > { %19384 = vmatmul.mubr.bf16.gmra.mrb[80].mxu1 %v24106_v17 }
 0xa78   : > { %19387 = vmatprep.mubr.bf16.mxu1 %v24113_v14 }
 0xa7f   : > { %19388 = vmatmul.mubr.bf16.gmra.mrb[84].mxu1 %v24124_v15 }
 0xa80   : > { %19391 = vmatprep.mubr.bf16.mxu1 %v24131_v55 }
 0xa87   : > { %19392 = vmatmul.mubr.bf16.gmra.mrb[88].mxu1 %v24138_v25 }
 0xa88   : > { %19395 = vmatprep.mubr.bf16.mxu1 %v24199_v23 }
 0xa8f   : > { %19396 = vmatmul.mubr.bf16.gmra.mrb[92].mxu1 %v22593_v37 }
 0xb2a   : > { %v19369_v41 = vpop.f32.mrb[64].mxu1 }
 0xb2b   : > { %v12668_v30 = vadd.f32 %v19369_v41, %v24253_v33  ;;  %v12500_v26 = vpop.f32.mrb[65].mxu1 }
 0xb2c   : > { %v12666_v24 = vadd.f32 %v24253_v33, %v12500_v26  ;;  %v19370_v54 = vpop.f32.mrb[66].mxu1 }
 0xb2d   : > { %v12669_v9 = vadd.f32 %v19370_v54, %v24253_v33  ;;  %v12503_v49 = vpop.f32.mrb[67].mxu1  ;;  %v12700_v45 = vmax.f32 %v12668_v30, 0.0 }
 0xb2e   : > { %v12667_v59 = vadd.f32 %v24253_v33, %v12503_v49  ;;  %v12698_v10 = vmax.f32 %v12666_v24, 0.0 }
 0xb2f   : > { %v12701_v42 = vmax.f32 %v12669_v9, 0.0  ;;  %v21548_v9 = vld [vmem:[#allocation12 + $0x38] sm:$0xff]  }
 0xb30   : > { %v12699_v0 = vmax.f32 %v12667_v59, 0.0 }
 0xb31   : > { %v24259_v47 = vpack.c.bf16 %v12701_v42, %v12700_v45 }
 0xb32   : > { %v24261_v38 = vpack.c.bf16 %v12699_v0, %v12698_v10  ;;  %v19373_v52 = vpop.f32.mrb[68].mxu1 }
 0xb33   : > { %v12672_v56 = vadd.f32 %v19373_v52, %v24253_v33  ;;  %v12516_v17 = vpop.f32.mrb[69].mxu1 }
 0xb34   : > { %v12670_v14 = vadd.f32 %v24253_v33, %v12516_v17  ;;  %v19374_v15 = vpop.f32.mrb[70].mxu1  ;;  %19416 = vmatmul.mubr.bf16.vlgmr.msra.gmra.mrb[64].mxu0 %v24261_v38 }
 0xb35   : > { %v12673_v55 = vadd.f32 %v19374_v15, %v24253_v33  ;;  %v12519_v25 = vpop.f32.mrb[71].mxu1  ;;  %19419 = vmatprep.mubr.bf16.mxu0 %v24259_v47  ;;  %19448 = vmatpush3.bf16.msra.mxu0 %v21541_v43  ;;  %v12704_v28 = vmax.f32 %v12672_v56, 0.0 }
 0xb36   : > { %v12671_v29 = vadd.f32 %v24253_v33, %v12519_v25  ;;  %19449 = vmatprep.subr.bf16.mxu0 %v21542_v62  ;;  %v12702_v2 = vmax.f32 %v12670_v14, 0.0 }
 0xb37   : > { %v12705_v5 = vmax.f32 %v12673_v55, 0.0 }
 0xb38   : > { %v12703_v50 = vmax.f32 %v12671_v29, 0.0 }
 0xb39   : > { %v24269_v48 = vpack.c.bf16 %v12705_v5, %v12704_v28  ;;  %19450 = vmatpush3.bf16.msra.mxu0 %v21542_v62  ;;  %v24299_v62 = vld [vmem:[#allocation12 + $0x80] sm:$0xff]  }
 0xb3a   : > { %v24271_v20 = vpack.c.bf16 %v12703_v50, %v12702_v2  ;;  %v19377_v63 = vpop.f32.mrb[72].mxu1  ;;  %19451 = vmatprep.subr.bf16.mxu0 %v21543_v46 }
 0xb3b   : > { %v12676_v39 = vadd.f32 %v19377_v63, %v24253_v33  ;;  %v12532_v23 = vpop.f32.mrb[73].mxu1 }
 0xb3c   : > { %v12674_v19 = vadd.f32 %v24253_v33, %v12532_v23  ;;  %v19378_v27 = vpop.f32.mrb[74].mxu1  ;;  %19420 = vmatmul.mubr.bf16.gmra.mrb[68].mxu0 %v24271_v20 }
 0xb3d   : > { %v12677_v22 = vadd.f32 %v19378_v27, %v24253_v33  ;;  %v12535_v40 = vpop.f32.mrb[75].mxu1  ;;  %19423 = vmatprep.mubr.bf16.mxu0 %v24269_v48  ;;  %19452 = vmatpush3.bf16.msra.mxu0 %v21543_v46  ;;  %v12708_v35 = vmax.f32 %v12676_v39, 0.0 }
 0xb3e   : > { %v12675_v36 = vadd.f32 %v24253_v33, %v12535_v40  ;;  %19453 = vmatprep.subr.bf16.mxu0 %v21544_v31  ;;  %v12706_v18 = vmax.f32 %v12674_v19, 0.0 }
 0xb3f   : > { %v12709_v7 = vmax.f32 %v12677_v22, 0.0 }
 0xb40   : > { %v12707_v8 = vmax.f32 %v12675_v36, 0.0 }
 0xb41   : > { %v24279_v61 = vpack.c.bf16 %v12709_v7, %v12708_v35  ;;  %19454 = vmatpush3.bf16.msra.mxu0 %v21544_v31 }
 0xb42   : > { %v24281_v21 = vpack.c.bf16 %v12707_v8, %v12706_v18  ;;  %v19381_v32 = vpop.f32.mrb[76].mxu1  ;;  %19455 = vmatprep.subr.bf16.mxu0 %v21545_v4 }
 0xb43   : > { %v12680_v13 = vadd.f32 %v19381_v32, %v24253_v33  ;;  %v12548_v16 = vpop.f32.mrb[77].mxu1 }
 0xb44   : > { %v12678_v1 = vadd.f32 %v24253_v33, %v12548_v16  ;;  %v19382_v51 = vpop.f32.mrb[78].mxu1  ;;  %19424 = vmatmul.mubr.bf16.gmra.mrb[72].mxu0 %v24281_v21 }
 0xb45   : > { %v12681_v12 = vadd.f32 %v19382_v51, %v24253_v33  ;;  %v12551_v57 = vpop.f32.mrb[79].mxu1  ;;  %19427 = vmatprep.mubr.bf16.mxu0 %v24279_v61  ;;  %19456 = vmatpush3.bf16.msra.mxu0 %v21545_v4  ;;  %v12712_v6 = vmax.f32 %v12680_v13, 0.0 }
 0xb46   : > { %v12679_v3 = vadd.f32 %v24253_v33, %v12551_v57  ;;  %19457 = vmatprep.subr.bf16.mxu0 %v21546_v53  ;;  %v12710_v41 = vmax.f32 %v12678_v1, 0.0 }
 0xb47   : > { %v12713_v43 = vmax.f32 %v12681_v12, 0.0 }
 0xb48   : > { %v12711_v30 = vmax.f32 %v12679_v3, 0.0 }
 0xb49   : > { %v24289_v26 = vpack.c.bf16 %v12713_v43, %v12712_v6  ;;  %19458 = vmatpush3.bf16.msra.mxu0 %v21546_v53 }
 0xb4a   : > { %v24291_v24 = vpack.c.bf16 %v12711_v30, %v12710_v41  ;;  %v19385_v54 = vpop.f32.mrb[80].mxu1  ;;  %19459 = vmatprep.subr.bf16.mxu0 %v21547_v60 }
 0xb4b   : > { %v12684_v49 = vadd.f32 %v19385_v54, %v24253_v33  ;;  %v12564_v59 = vpop.f32.mrb[81].mxu1 }
 0xb4c   : > { %v12682_v45 = vadd.f32 %v24253_v33, %v12564_v59  ;;  %v19386_v42 = vpop.f32.mrb[82].mxu1  ;;  %19428 = vmatmul.mubr.bf16.gmra.mrb[76].mxu0 %v24291_v24 }
 0xb4d   : > { %v12685_v10 = vadd.f32 %v19386_v42, %v24253_v33  ;;  %v12567_v0 = vpop.f32.mrb[83].mxu1  ;;  %19431 = vmatprep.mubr.bf16.mxu0 %v24289_v26  ;;  %19460 = vmatpush3.bf16.msra.mxu0 %v21547_v60  ;;  %v12716_v56 = vmax.f32 %v12684_v49, 0.0  ;;  %v12786_v49 = vshrl.u32 %v24261_v38, 16 }
 0xb4e   : > { %v12683_v52 = vadd.f32 %v24253_v33, %v12567_v0  ;;  %19461 = vmatprep.subr.bf16.mxu0 %v21548_v9  ;;  %v12714_v14 = vmax.f32 %v12682_v45, 0.0  ;;  %v12793_v0 = vshrl.u32 %v24259_v47, 16 }
 0xb4f   : > { %v12717_v17 = vmax.f32 %v12685_v10, 0.0 }
 0xb50   : > { %v12715_v15 = vmax.f32 %v12683_v52, 0.0 }
 0xb51   : > { %v24301_v55 = vpack.c.bf16 %v12717_v17, %v12716_v56  ;;  %19462 = vmatpush3.bf16.msra.mxu0 %v21548_v9  ;;  %v12788_v17 = vrot.slane %v12786_v49, 7 }
 0xb52   : > { %v24303_v25 = vpack.c.bf16 %v12715_v15, %v12714_v14  ;;  %v19389_v29 = vpop.f32.mrb[84].mxu1  ;;  %19495 = vmatprep.subr.bf16.mxu0 %v24299_v62  ;;  %v12789_v15 = vshll.u32 %v24261_v38, 16 }
 0xb53   : > { %v12688_v46 = vadd.f32 %v19389_v29, %v24253_v33  ;;  %v12580_v28 = vpop.f32.mrb[85].mxu1 }
 0xb54   : > { %v12686_v5 = vadd.f32 %v24253_v33, %v12580_v28  ;;  %v19390_v2 = vpop.f32.mrb[86].mxu1  ;;  %19432 = vmatmul.mubr.bf16.gmra.mrb[80].mxu0 %v24303_v25  ;;  %v12796_v28 = vshll.u32 %v24259_v47, 16 }
 0xb55   : > { %v12689_v50 = vadd.f32 %v19390_v2, %v24253_v33  ;;  %v12583_v63 = vpop.f32.mrb[87].mxu1  ;;  %19435 = vmatprep.mubr.bf16.mxu0 %v24301_v55  ;;  %v12720_v39 = vmax.f32 %v12688_v46, 0.0  ;;  %v12800_v2 = vshrl.u32 %v24271_v20, 16 }
 0xb56   : > { %v12687_v31 = vadd.f32 %v24253_v33, %v12583_v63  ;;  %v12718_v19 = vmax.f32 %v12686_v5, 0.0  ;;  %v12791_v5 = vor.u32 %v12789_v15, %v12788_v17  ;;  %v12831_v17 = vshll.u32 %v24291_v24, 16 }
 0xb57   : > { %v12721_v23 = vmax.f32 %v12689_v50, 0.0 }
 0xb58   : > { %v12719_v27 = vmax.f32 %v12687_v31, 0.0  ;;  %v12807_v31 = vshrl.u32 %v24269_v48, 16 }
 0xb59   : > { %v24312_v22 = vpack.c.bf16 %v12721_v23, %v12720_v39  ;;  %v21550_v39 = vld [vmem:[#allocation12 + $0x88] sm:$0xff]   ;;  %v24362_v23 = vsel %vm22292_vm5, 0, %v12791_v5 }
 0xb5a   : > { %v24314_v40 = vpack.c.bf16 %v12719_v27, %v12718_v19  ;;  %v19393_v36 = vpop.f32.mrb[88].mxu1  ;;  %v12802_v19 = vrot.slane %v12800_v2, 7 }
 0xb5b   : > { %v12692_v4 = vadd.f32 %v19393_v36, %v24253_v33  ;;  %v12596_v35 = vpop.f32.mrb[89].mxu1  ;;  %v12809_v36 = vrot.slane %v12807_v31, 7 }
 0xb5c   : > { %v12690_v7 = vadd.f32 %v24253_v33, %v12596_v35  ;;  %v19394_v18 = vpop.f32.mrb[90].mxu1  ;;  %19436 = vmatmul.mubr.bf16.gmra.mrb[84].mxu0 %v24314_v40  ;;  %v12810_v35 = vshll.u32 %v24269_v48, 16 }
 0xb5d   : > { %v12693_v8 = vadd.f32 %v19394_v18, %v24253_v33  ;;  %v12599_v32 = vpop.f32.mrb[91].mxu1  ;;  %19439 = vmatprep.mubr.bf16.mxu0 %v24312_v22  ;;  %v12724_v13 = vmax.f32 %v12692_v4, 0.0  ;;  %v12803_v4 = vshll.u32 %v24271_v20, 16 }
 0xb5e   : > { %v12691_v53 = vadd.f32 %v24253_v33, %v12599_v32  ;;  %v12722_v1 = vmax.f32 %v12690_v7, 0.0  ;;  %v21551_v7 = vld [vmem:[#allocation12 + $0x90] sm:$0xff]   ;;  %v12812_v32 = vor.u32 %v12810_v35, %v12809_v36  ;;  %v21556_v36 = vld [vmem:[#allocation12 + $0xb8] sm:$0xff]  }
 0xb5f   : > { %v12725_v16 = vmax.f32 %v12693_v8, 0.0  ;;  %v12805_v18 = vor.u32 %v12803_v4, %v12802_v19  ;;  %v12814_v8 = vshrl.u32 %v24281_v21, 16  ;;  %v24933_v19 = vshrl.u32 %v24301_v55, 16 }
 0xb60   : > { %v12723_v51 = vmax.f32 %v12691_v53, 0.0  ;;  %v12821_v53 = vshrl.u32 %v24279_v61, 16 }
 0xb61   : > { %v24322_v12 = vpack.c.bf16 %v12725_v16, %v12724_v13  ;;  %v21552_v13 = vld [vmem:[#allocation12 + $0x98] sm:$0xff]   ;;  %v12816_v16 = vrot.slane %v12814_v8, 7 }
 0xb62   : > { %v24324_v57 = vpack.c.bf16 %v12723_v51, %v12722_v1  ;;  %v19397_v3 = vpop.f32.mrb[92].mxu1  ;;  %v24392_v1 = vsel %vm22292_vm5, 0, %v12812_v32  ;;  %v12823_v51 = vrot.slane %v12821_v53, 7 }
 0xb63   : > { %v12696_v60 = vadd.f32 %v19397_v3, %v24253_v33  ;;  %v12612_v6 = vpop.f32.mrb[93].mxu1  ;;  %v12817_v3 = vshll.u32 %v24281_v21, 16 }
 0xb64   : > { %v12694_v43 = vadd.f32 %v24253_v33, %v12612_v6  ;;  %v19398_v41 = vpop.f32.mrb[94].mxu1  ;;  %19440 = vmatmul.mubr.bf16.gmra.mrb[88].mxu0 %v24324_v57  ;;  %v21553_v6 = vld [vmem:[#allocation12 + $0xa0] sm:$0xff]  }
 0xb65   : > { %v12697_v30 = vadd.f32 %v19398_v41, %v24253_v33  ;;  %v12615_v54 = vpop.f32.mrb[95].mxu1  ;;  %19443 = vmatprep.mubr.bf16.mxu0 %v24322_v12  ;;  %v12728_v59 = vmax.f32 %v12696_v60, 0.0  ;;  %v12824_v60 = vshll.u32 %v24279_v61, 16  ;;  %v12828_v41 = vshrl.u32 %v24291_v24, 16 }
 0xb66   : > { %v12695_v9 = vadd.f32 %v24253_v33, %v12615_v54  ;;  %v12726_v42 = vmax.f32 %v12694_v43, 0.0  ;;  %v12795_v33 = vrot.slane %v12793_v0, 7  ;;  %v12819_v43 = vor.u32 %v12817_v3, %v12816_v16 }
 0xb67   : > { %v12729_v45 = vmax.f32 %v12697_v30, 0.0  ;;  %v12826_v30 = vor.u32 %v12824_v60, %v12823_v51  ;;  %v12835_v54 = vshrl.u32 %v24289_v26, 16  ;;  %v12845_v16 = vshll.u32 %v24303_v25, 16 }
 0xb68   : > { %v12727_v10 = vmax.f32 %v12695_v9, 0.0  ;;  %v12798_v63 = vor.u32 %v12796_v28, %v12795_v33  ;;  %v21554_v9 = vld [vmem:[#allocation12 + $0xa8] sm:$0xff]   ;;  %v12838_v33 = vshll.u32 %v24289_v26, 16  ;;  %v12852_v51 = vshll.u32 %v24301_v55, 16 }
 0xb69   : > { %v24334_v52 = vpack.c.bf16 %v12729_v45, %v12728_v59  ;;  %v24407_v59 = vsel %vm22292_vm5, 0, %v12819_v43  ;;  %v12830_v45 = vrot.slane %v12828_v41, 7 }
 0xb6a   : > { %v24336_v56 = vpack.c.bf16 %v12727_v10, %v12726_v42  ;;  %v24369_v27 = vsel %vm22292_vm5, 0, %v12798_v63  ;;  %v24414_v42 = vsel %vm22292_vm5, 0, %v12826_v30  ;;  %v12837_v10 = vrot.slane %v12835_v54, 7 }
 0xb6b   : > { %v24925_v14 = vshll.u32 %v24334_v52, 16  ;;  %v24926_v29 = vshrl.u32 %v24334_v52, 16  ;;  %v12833_v5 = vor.u32 %v12831_v17, %v12830_v45  ;;  %v12842_v63 = vshrl.u32 %v24303_v25, 16 }
 0xb6c   : > { %19444 = vmatmul.mubr.bf16.gmra.mrb[92].mxu0 %v24336_v56  ;;  %v24928_v30 = vshrl.u32 %v24314_v40, 16  ;;  %v24927_v45 = vshrl.u32 %v24312_v22, 16 }
 0xb6d   : > { %19463 = vmatprep.mubr.bf16.mxu0 %v22322_v11  ;;  %v13885_v46 = vrot.slane %v24925_v14, 1 }
 0xb6f   : > { %v24355_v50 = vor.u32 %v13885_v46, %v24926_v29  ;;  %v21555_v46 = vld [vmem:[#allocation12 + $0xb0] sm:$0xff]  }
 0xb74   : > { %19464 = vmatmul.mubr.bf16.vlgmr.msra.gmra.mrb[64].mxu0 %v24362_v23 }
 0xb75   : > { %19467 = vmatprep.mubr.bf16.mxu0 %v24369_v27  ;;  %19496 = vmatpush3.bf16.msra.mxu0 %v24299_v62  ;;  %v24385_v62 = vsel %vm22292_vm5, 0, %v12805_v18  ;;  %v12844_v18 = vrot.slane %v12842_v63, 7 }
 0xb76   : > { %19497 = vmatprep.subr.bf16.mxu0 %v21550_v39 }
 0xb77   : > { %v12847_v43 = vor.u32 %v12845_v16, %v12844_v18  ;;  %v24929_v18 = vshll.u32 %v24312_v22, 16 }
 0xb79   : > { %19498 = vmatpush3.bf16.msra.mxu0 %v21550_v39  ;;  %v12840_v39 = vor.u32 %v12838_v33, %v12837_v10  ;;  %v24451_v10 = vsel %vm22292_vm5, 0, %v12847_v43  ;;  %v24930_v43 = vshrl.u32 %v24324_v57, 16 }
 0xb7a   : > { %19499 = vmatprep.subr.bf16.mxu0 %v21551_v7 }
 0xb7b   : > { %v24436_v32 = vsel %vm22292_vm5, 0, %v12840_v39  ;;  %v12865_v39 = vrot.slane %v24927_v45, 7  ;;  %v12872_v45 = vrot.slane %v24930_v43, 7  ;;  %v24934_v43 = vshrl.u32 %v24336_v56, 16 }
 0xb7c   : > { %19468 = vmatmul.mubr.bf16.gmra.mrb[68].mxu0 %v24385_v62 }
 0xb7d   : > { %19471 = vmatprep.mubr.bf16.mxu0 %v24392_v1  ;;  %19500 = vmatpush3.bf16.msra.mxu0 %v21551_v7  ;;  %v24429_v7 = vsel %vm22292_vm5, 0, %v12833_v5  ;;  %v12868_v14 = vor.u32 %v24929_v18, %v12865_v39  ;;  %v12873_v39 = vshll.u32 %v24324_v57, 16  ;;  %v24935_v18 = vshll.u32 %v24322_v12, 16 }
 0xb7e   : > { %19501 = vmatprep.subr.bf16.mxu0 %v21552_v13 }
 0xb81   : > { %19502 = vmatpush3.bf16.msra.mxu0 %v21552_v13  ;;  %v12851_v13 = vrot.slane %v24933_v19, 7 }
 0xb82   : > { %19503 = vmatprep.subr.bf16.mxu0 %v21553_v6 }
 0xb84   : > { %19472 = vmatmul.mubr.bf16.gmra.mrb[72].mxu0 %v24407_v59 }
 0xb85   : > { %19475 = vmatprep.mubr.bf16.mxu0 %v24414_v42  ;;  %19504 = vmatpush3.bf16.msra.mxu0 %v21553_v6  ;;  %v21557_v6 = vld [vmem:[#allocation12 + $0xc0] sm:$0xff]  }
 0xb86   : > { %19505 = vmatprep.subr.bf16.mxu0 %v21554_v9 }
 0xb89   : > { %19506 = vmatpush3.bf16.msra.mxu0 %v21554_v9  ;;  %v12854_v9 = vor.u32 %v12852_v51, %v12851_v13 }
 0xb8a   : > { %19507 = vmatprep.subr.bf16.mxu0 %v21555_v46 }
 0xb8b   : > { %v24458_v5 = vsel %vm22292_vm5, 0, %v12854_v9  ;;  %v24932_v9 = vshrl.u32 %v24322_v12, 16 }
 0xb8c   : > { %19476 = vmatmul.mubr.bf16.gmra.mrb[76].mxu0 %v24429_v7 }
 0xb8d   : > { %19479 = vmatprep.mubr.bf16.mxu0 %v24436_v32  ;;  %19508 = vmatpush3.bf16.msra.mxu0 %v21555_v46  ;;  %v12858_v46 = vrot.slane %v24928_v30, 7  ;;  %v24480_v30 = vsel %vm22292_vm5, 0, %v12868_v14 }
 0xb8e   : > { %19509 = vmatprep.subr.bf16.mxu0 %v21556_v36 }
 0xb91   : > { %19510 = vmatpush3.bf16.msra.mxu0 %v21556_v36  ;;  %v24931_v36 = vshll.u32 %v24314_v40, 16 }
 0xb92   : > { %19543 = vmatprep.subr.bf16.mxu0 %v21557_v6 }
 0xb93   : > { %v12861_v13 = vor.u32 %v24931_v36, %v12858_v46  ;;  %v12879_v46 = vrot.slane %v24932_v9, 7  ;;  %v12886_v9 = vrot.slane %v24934_v43, 7  ;;  %v12924_v43 = vrot.slane %v12789_v15, 1 }
 0xb94   : > { %19480 = vmatmul.mubr.bf16.gmra.mrb[80].mxu0 %v24451_v10  ;;  %v12928_v15 = vrot.slane %v12803_v4, 1 }
 0xb95   : > { %19483 = vmatprep.mubr.bf16.mxu0 %v24458_v5  ;;  %v24473_v29 = vsel %vm22292_vm5, 0, %v12861_v13  ;;  %v12875_v13 = vor.u32 %v12873_v39, %v12872_v45  ;;  %v12882_v36 = vor.u32 %v24935_v18, %v12879_v46  ;;  %v24936_v45 = vshll.u32 %v24336_v56, 16 }
 0xb96   : > { %v12925_v18 = vor.u32 %v12924_v43, %v12786_v49  ;;  %v12930_v49 = vrot.slane %v12810_v35, 1  ;;  %v21560_v43 = vld [vmem:[#allocation12 + $0xd8] sm:$0xff]   ;;  %v12932_v35 = vrot.slane %v12817_v3, 1 }
 0xb97   : > { %v24494_v14 = vsel %vm22292_vm5, 0, %v12875_v13  ;;  %v24501_v19 = vsel %vm22292_vm5, 0, %v12882_v36  ;;  %v12889_v46 = vor.u32 %v24936_v45, %v12886_v9  ;;  %v12926_v36 = vrot.slane %v12796_v28, 1  ;;  %v21558_v45 = vld [vmem:[#allocation12 + $0xc8] sm:$0xff]  }
 0xb98   : > { %v12931_v4 = vor.u32 %v12930_v49, %v12807_v31  ;;  %v21561_v31 = vld [vmem:[#allocation12 + $0xe0] sm:$0xff]  }
 0xb99   : > { %v24509_v13 = vsel %vm22292_vm5, 0, %v12889_v46  ;;  %v12927_v9 = vor.u32 %v12926_v36, %v12793_v0  ;;  %v24523_v46 = vsel %vm22267_vm4, %v12925_v18, 0  ;;  %v21559_v0 = vld [vmem:[#allocation12 + $0xd0] sm:$0xff]   ;;  %v12929_v18 = vor.u32 %v12928_v15, %v12800_v2 }
 0xb9a   : > { %v12934_v2 = vrot.slane %v12824_v60, 1  ;;  %v12936_v60 = vrot.slane %v12831_v17, 1 }
 0xb9b   : > { %v24530_v28 = vsel %vm22267_vm4, %v12927_v9, 0  ;;  %v24541_v36 = vsel %vm22267_vm4, %v12929_v18, 0  ;;  %v21562_v9 = vld [vmem:[#allocation12 + $0xe8] sm:$0xff]   ;;  %v21564_v18 = vld [vmem:[#allocation12 + $0xf8] sm:$0xff]  }
 0xb9c   : > { %19484 = vmatmul.mubr.bf16.gmra.mrb[84].mxu0 %v24473_v29  ;;  %v12935_v3 = vor.u32 %v12934_v2, %v12821_v53  ;;  %v21563_v53 = vld [vmem:[#allocation12 + $0xf0] sm:$0xff]   ;;  %v25005_v2 = vshrl.u32 %v24301_v55, 16 }
 0xb9d   : > { %19487 = vmatprep.mubr.bf16.mxu0 %v24480_v30 }
 0xb9e   : > { %v24566_v49 = vsel %vm22267_vm4, %v12935_v3, 0 }
 0xba4   : > { %19488 = vmatmul.mubr.bf16.gmra.mrb[88].mxu0 %v24494_v14 }
 0xba5   : > { %19491 = vmatprep.mubr.bf16.mxu0 %v24501_v19 }
 0xbac   : > { %19492 = vmatmul.mubr.bf16.gmra.mrb[92].mxu0 %v24509_v13 }
 0xbad   : > { %19511 = vmatprep.mubr.bf16.mxu0 %v22593_v37 }
 0xbb4   : > { %19512 = vmatmul.mubr.bf16.vlgmr.msra.gmra.mrb[64].mxu0 %v24523_v46 }
 0xbb5   : > { %19515 = vmatprep.mubr.bf16.mxu0 %v24530_v28  ;;  %19544 = vmatpush3.bf16.msra.mxu0 %v21557_v6  ;;  %v24548_v6 = vsel %vm22267_vm4, %v12931_v4, 0 }
 0xbb6   : > { %19545 = vmatprep.subr.bf16.mxu0 %v21558_v45 }
 0xbb9   : > { %19546 = vmatpush3.bf16.msra.mxu0 %v21558_v45  ;;  %v12933_v45 = vor.u32 %v12932_v35, %v12814_v8  ;;  %v12938_v8 = vrot.slane %v12838_v33, 1  ;;  %v12940_v33 = vrot.slane %v12845_v16, 1 }
 0xbba   : > { %19547 = vmatprep.subr.bf16.mxu0 %v21559_v0 }
 0xbbb   : > { %v24559_v15 = vsel %vm22267_vm4, %v12933_v45, 0  ;;  %v12939_v17 = vor.u32 %v12938_v8, %v12835_v54  ;;  %v21565_v54 = vld [vmem:[#allocation12 + $0x100] sm:$0xff]   ;;  %v12941_v35 = vor.u32 %v12940_v33, %v12842_v63  ;;  %v25006_v45 = vshll.u32 %v24314_v40, 16 }
 0xbbc   : > { %19516 = vmatmul.mubr.bf16.gmra.mrb[68].mxu0 %v24541_v36  ;;  %v25007_v63 = vshll.u32 %v24312_v22, 16 }
 0xbbd   : > { %19519 = vmatprep.mubr.bf16.mxu0 %v24548_v6  ;;  %19548 = vmatpush3.bf16.msra.mxu0 %v21559_v0  ;;  %v12937_v0 = vor.u32 %v12936_v60, %v12828_v41  ;;  %v12942_v41 = vrot.slane %v12852_v51, 1  ;;  %v12944_v51 = vrot.slane %v25006_v45, 1  ;;  %v25008_v60 = vshrl.u32 %v24314_v40, 16 }
 0xbbe   : > { %19549 = vmatprep.subr.bf16.mxu0 %v21560_v43  ;;  %v25012_v45 = vshrl.u32 %v24322_v12, 16 }
 0xbbf   : > { %v24577_v4 = vsel %vm22267_vm4, %v12937_v0, 0  ;;  %v12943_v16 = vor.u32 %v12942_v41, %v25005_v2  ;;  %v12945_v8 = vor.u32 %v12944_v51, %v25008_v60  ;;  %v25010_v41 = vshll.u32 %v24322_v12, 16 }
 0xbc0   : > { %v25011_v2 = vshrl.u32 %v24324_v57, 16 }
 0xbc1   : > { %19550 = vmatpush3.bf16.msra.mxu0 %v21560_v43  ;;  %v24584_v43 = vsel %vm22267_vm4, %v12939_v17, 0  ;;  %v24602_v3 = vsel %vm22267_vm4, %v12943_v16, 0  ;;  %v24613_v17 = vsel %vm22267_vm4, %v12945_v8, 0  ;;  %v25014_v8 = vshrl.u32 %v24336_v56, 16 }
 0xbc2   : > { %19551 = vmatprep.subr.bf16.mxu0 %v21561_v31 }
 0xbc4   : > { %19520 = vmatmul.mubr.bf16.gmra.mrb[72].mxu0 %v24559_v15 }
 0xbc5   : > { %19523 = vmatprep.mubr.bf16.mxu0 %v24566_v49  ;;  %19552 = vmatpush3.bf16.msra.mxu0 %v21561_v31  ;;  %v24595_v31 = vsel %vm22267_vm4, %v12941_v35, 0  ;;  %v12950_v35 = vrot.slane %v25010_v41, 1  ;;  %v21567_v41 = vld [vmem:[#allocation12 + $0x110] sm:$0xff]  }
 0xbc6   : > { %19553 = vmatprep.subr.bf16.mxu0 %v21562_v9 }
 0xbc7   : > { %v12951_v51 = vor.u32 %v12950_v35, %v25012_v45  ;;  %v21568_v35 = vld [vmem:[#allocation12 + $0x118] sm:$0xff]   ;;  %v21573_v45 = vld [vmem:[#allocation12 + $0x140] sm:$0xff]  }
 0xbc9   : > { %19554 = vmatpush3.bf16.msra.mxu0 %v21562_v9  ;;  %v12946_v9 = vrot.slane %v25007_v63, 1  ;;  %v25013_v63 = vshll.u32 %v24336_v56, 16  ;;  %v24638_v60 = vsel %vm22267_vm4, %v12951_v51, 0  ;;  %v25015_v51 = vshrl.u32 %v24334_v52, 16 }
 0xbca   : > { %19555 = vmatprep.subr.bf16.mxu0 %v21563_v53 }
 0xbcc   : > { %19524 = vmatmul.mubr.bf16.gmra.mrb[76].mxu0 %v24577_v4 }
 0xbcd   : > { %19527 = vmatprep.mubr.bf16.mxu0 %v24584_v43  ;;  %19556 = vmatpush3.bf16.msra.mxu0 %v21563_v53  ;;  %v25009_v53 = vshrl.u32 %v24312_v22, 16 }
 0xbce   : > { %19557 = vmatprep.subr.bf16.mxu0 %v21564_v18 }
 0xbcf   : > { %v12947_v0 = vor.u32 %v12946_v9, %v25009_v53  ;;  %v12952_v9 = vrot.slane %v25013_v63, 1  ;;  %v13819_v63 = vrot.slane %v25015_v51, 7  ;;  %v21584_v51 = vld [vmem:[#allocation12 + $0x198] sm:$0xff]  }
 0xbd1   : > { %19558 = vmatpush3.bf16.msra.mxu0 %v21564_v18  ;;  %v12948_v18 = vrot.slane %v12873_v39, 1  ;;  %v24620_v33 = vsel %vm22267_vm4, %v12947_v0, 0  ;;  %v12953_v53 = vor.u32 %v12952_v9, %v25014_v8  ;;  %v25016_v9 = vshll.u32 %v24334_v52, 16 }
 0xbd2   : > { %19591 = vmatprep.subr.bf16.mxu0 %v21565_v54 }
 0xbd3   : > { %v12949_v16 = vor.u32 %v12948_v18, %v25011_v2  ;;  %v24645_v0 = vsel %vm22267_vm4, %v12953_v53, 0  ;;  %v21566_v18 = vld [vmem:[#allocation12 + $0x108] sm:$0xff]   ;;  %v21569_v2 = vld [vmem:[#allocation12 + $0x120] sm:$0xff]   ;;  %v13822_v8 = vor.u32 %v25016_v9, %v13819_v63  ;;  %v21587_v9 = vld [vmem:[#allocation12 + $0x1b0] sm:$0xff]  }
 0xbd4   : > { %19528 = vmatmul.mubr.bf16.gmra.mrb[80].mxu0 %v24595_v31  ;;  %v21585_v63 = vld [vmem:[#allocation12 + $0x1a0] sm:$0xff]  }
 0xbd5   : > { %19531 = vmatprep.mubr.bf16.mxu0 %v24602_v3  ;;  %v24631_v39 = vsel %vm22267_vm4, %v12949_v16, 0  ;;  %v21572_v16 = vld [vmem:[#allocation12 + $0x138] sm:$0xff]   ;;  %v24669_v53 = vsel %vm22292_vm5, 0, %v13822_v8 }
 0xbd6   : > { %v21588_v8 = vld [vmem:[#allocation12 + $0x1b8] sm:$0xff]  }
 0xbdc   : > { %19532 = vmatmul.mubr.bf16.gmra.mrb[84].mxu0 %v24613_v17 }
 0xbdd   : > { %19535 = vmatprep.mubr.bf16.mxu0 %v24620_v33 }
 0xbe4   : > { %19536 = vmatmul.mubr.bf16.gmra.mrb[88].mxu0 %v24631_v39 }
 0xbe5   : > { %19539 = vmatprep.mubr.bf16.mxu0 %v24638_v60 }
 0xbec   : > { %19540 = vmatmul.mubr.bf16.gmra.mrb[92].mxu0 %v24645_v0 }
 0xbed   : > { %19559 = vmatprep.mubr.bf16.mxu0 %v24362_v23  ;;  %v21570_v23 = vld [vmem:[#allocation12 + $0x128] sm:$0xff]  }
 0xbf4   : > { %19560 = vmatmul.mubr.bf16.vlgmr.msra.gmra.mrb[64].mxu0 %v24369_v27 }
 0xbf5   : > { %19563 = vmatprep.mubr.bf16.mxu0 %v24385_v62  ;;  %19592 = vmatpush3.bf16.msra.mxu0 %v21565_v54  ;;  %v21571_v54 = vld [vmem:[#allocation12 + $0x130] sm:$0xff]  }
 0xbf6   : > { %19593 = vmatprep.subr.bf16.mxu0 %v21566_v18 }
 0xbf9   : > { %19594 = vmatpush3.bf16.msra.mxu0 %v21566_v18  ;;  %v21574_v18 = vld [vmem:[#allocation12 + $0x148] sm:$0xff]  }
 0xbfa   : > { %19595 = vmatprep.subr.bf16.mxu0 %v21567_v41 }
 0xbfc   : > { %19564 = vmatmul.mubr.bf16.gmra.mrb[68].mxu0 %v24392_v1 }
 0xbfd   : > { %19567 = vmatprep.mubr.bf16.mxu0 %v24407_v59  ;;  %19596 = vmatpush3.bf16.msra.mxu0 %v21567_v41  ;;  %v21575_v41 = vld [vmem:[#allocation12 + $0x150] sm:$0xff]  }
 0xbfe   : > { %19597 = vmatprep.subr.bf16.mxu0 %v21568_v35 }
 0xc01   : > { %19598 = vmatpush3.bf16.msra.mxu0 %v21568_v35  ;;  %v21576_v35 = vld [vmem:[#allocation12 + $0x158] sm:$0xff]  }
 0xc02   : > { %19599 = vmatprep.subr.bf16.mxu0 %v21569_v2 }
 0xc04   : > { %19568 = vmatmul.mubr.bf16.gmra.mrb[72].mxu0 %v24414_v42 }
 0xc05   : > { %19571 = vmatprep.mubr.bf16.mxu0 %v24429_v7  ;;  %19600 = vmatpush3.bf16.msra.mxu0 %v21569_v2  ;;  %v21579_v2 = vld [vmem:[#allocation12 + $0x170] sm:$0xff]  }
 0xc06   : > { %19601 = vmatprep.subr.bf16.mxu0 %v21570_v23 }
 0xc09   : > { %19602 = vmatpush3.bf16.msra.mxu0 %v21570_v23  ;;  %v21580_v23 = vld [vmem:[#allocation12 + $0x178] sm:$0xff]  }
 0xc0a   : > { %19603 = vmatprep.subr.bf16.mxu0 %v21571_v54 }
 0xc0c   : > { %19572 = vmatmul.mubr.bf16.gmra.mrb[76].mxu0 %v24436_v32 }
 0xc0d   : > { %19575 = vmatprep.mubr.bf16.mxu0 %v24451_v10  ;;  %19604 = vmatpush3.bf16.msra.mxu0 %v21571_v54  ;;  %v21581_v54 = vld [vmem:[#allocation12 + $0x180] sm:$0xff]  }
 0xc0e   : > { %19605 = vmatprep.subr.bf16.mxu0 %v21572_v16 }
 0xc11   : > { %19606 = vmatpush3.bf16.msra.mxu0 %v21572_v16  ;;  %v21582_v16 = vld [vmem:[#allocation12 + $0x188] sm:$0xff]  }
 0xc12   : > { %19639 = vmatprep.subr.bf16.mxu0 %v21573_v45 }
 0xc14   : > { %19576 = vmatmul.mubr.bf16.gmra.mrb[80].mxu0 %v24458_v5 }
 0xc15   : > { %19579 = vmatprep.mubr.bf16.mxu0 %v24473_v29 }
 0xc1c   : > { %19580 = vmatmul.mubr.bf16.gmra.mrb[84].mxu0 %v24480_v30 }
 0xc1d   : > { %19583 = vmatprep.mubr.bf16.mxu0 %v24494_v14 }
 0xc24   : > { %19584 = vmatmul.mubr.bf16.gmra.mrb[88].mxu0 %v24501_v19 }
 0xc25   : > { %19587 = vmatprep.mubr.bf16.mxu0 %v24509_v13 }
 0xc2c   : > { %19588 = vmatmul.mubr.bf16.gmra.mrb[92].mxu0 %v24669_v53 }
 0xc2d   : > { %19607 = vmatprep.mubr.bf16.mxu0 %v24261_v38  ;;  %v21578_v38 = vld [vmem:[#allocation12 + $0x168] sm:$0xff]  }
 0xc34   : > { %19608 = vmatmul.mubr.bf16.vlgmr.msra.gmra.mrb[64].mxu0 %v24259_v47 }
 0xc35   : > { %19611 = vmatprep.mubr.bf16.mxu0 %v24271_v20  ;;  %19640 = vmatpush3.bf16.msra.mxu0 %v21573_v45  ;;  %v21583_v45 = vld [vmem:[#allocation12 + $0x190] sm:$0xff]  }
 0xc36   : > { %19641 = vmatprep.subr.bf16.mxu0 %v21574_v18 }
 0xc39   : > { %19642 = vmatpush3.bf16.msra.mxu0 %v21574_v18  ;;  %v21589_v18 = vld [vmem:[#allocation12 + $0x1c0] sm:$0xff]  }
 0xc3a   : > { %19643 = vmatprep.subr.bf16.mxu0 %v21575_v41 }
 0xc3c   : > { %19612 = vmatmul.mubr.bf16.gmra.mrb[68].mxu0 %v24269_v48 }
 0xc3d   : > { %19615 = vmatprep.mubr.bf16.mxu0 %v24281_v21  ;;  %19644 = vmatpush3.bf16.msra.mxu0 %v21575_v41  ;;  %v24706_v41 = vsel %vm22267_vm4, %v24355_v50, 0  ;;  %v21594_v50 = vld [vmem:[#allocation12 + $0x1e8] sm:$0xff]  }
 0xc3e   : > { %19645 = vmatprep.subr.bf16.mxu0 %v21576_v35 }
 0xc41   : > { %19646 = vmatpush3.bf16.msra.mxu0 %v21576_v35  ;;  %v21590_v35 = vld [vmem:[#allocation12 + $0x1c8] sm:$0xff]  }
 0xc42   : > { %19647 = vmatprep.subr.bf16.mxu0 %v21577_v58 }
 0xc44   : > { %19616 = vmatmul.mubr.bf16.gmra.mrb[72].mxu0 %v24279_v61 }
 0xc45   : > { %19619 = vmatprep.mubr.bf16.mxu0 %v24291_v24  ;;  %19648 = vmatpush3.bf16.msra.mxu0 %v21577_v58  ;;  %v21591_v58 = vld [vmem:[#allocation12 + $0x1d0] sm:$0xff]  }
 0xc46   : > { %19649 = vmatprep.subr.bf16.mxu0 %v21578_v38 }
 0xc49   : > { %19650 = vmatpush3.bf16.msra.mxu0 %v21578_v38  ;;  %v21592_v38 = vld [vmem:[#allocation12 + $0x1d8] sm:$0xff]  }
 0xc4a   : > { %19651 = vmatprep.subr.bf16.mxu0 %v21579_v2 }
 0xc4c   : > { %19620 = vmatmul.mubr.bf16.gmra.mrb[76].mxu0 %v24289_v26 }
 0xc4d   : > { %19623 = vmatprep.mubr.bf16.mxu0 %v24303_v25  ;;  %19652 = vmatpush3.bf16.msra.mxu0 %v21579_v2 }
 0xc4e   : > { %19653 = vmatprep.subr.bf16.mxu0 %v21580_v23 }
 0xc51   : > { %19654 = vmatpush3.bf16.msra.mxu0 %v21580_v23 }
 0xc52   : > { %19687 = vmatprep.subr.bf16.mxu0 %v21581_v54 }
 0xc54   : > { %19624 = vmatmul.mubr.bf16.gmra.mrb[80].mxu0 %v24301_v55 }
 0xc55   : > { %19627 = vmatprep.mubr.bf16.mxu0 %v24314_v40 }
 0xc5c   : > { %19628 = vmatmul.mubr.bf16.gmra.mrb[84].mxu0 %v24312_v22 }
 0xc5d   : > { %19631 = vmatprep.mubr.bf16.mxu0 %v24324_v57 }
 0xc64   : > { %19632 = vmatmul.mubr.bf16.gmra.mrb[88].mxu0 %v24322_v12 }
 0xc65   : > { %19635 = vmatprep.mubr.bf16.mxu0 %v24336_v56 }
 0xc6c   : > { %19636 = vmatmul.mubr.bf16.gmra.mrb[92].mxu0 %v24334_v52 }
 0xc6d   : > { %19655 = vmatprep.mubr.bf16.mxu0 %v24523_v46  ;;  %v21586_v46 = vld [vmem:[#allocation12 + $0x1a8] sm:$0xff]  }
 0xc74   : > { %19656 = vmatmul.mubr.bf16.vlgmr.msra.gmra.mrb[64].mxu0 %v24530_v28 }
 0xc75   : > { %19659 = vmatprep.mubr.bf16.mxu0 %v24541_v36  ;;  %19688 = vmatpush3.bf16.msra.mxu0 %v21581_v54 }
 0xc76   : > { %19689 = vmatprep.subr.bf16.mxu0 %v21582_v16 }
 0xc79   : > { %19690 = vmatpush3.bf16.msra.mxu0 %v21582_v16 }
 0xc7a   : > { %19691 = vmatprep.subr.bf16.mxu0 %v21583_v45 }
 0xc7c   : > { %19660 = vmatmul.mubr.bf16.gmra.mrb[68].mxu0 %v24548_v6 }
 0xc7d   : > { %19663 = vmatprep.mubr.bf16.mxu0 %v24559_v15  ;;  %19692 = vmatpush3.bf16.msra.mxu0 %v21583_v45 }
 0xc7e   : > { %19693 = vmatprep.subr.bf16.mxu0 %v21584_v51 }
 0xc81   : > { %19694 = vmatpush3.bf16.msra.mxu0 %v21584_v51 }
 0xc82   : > { %19695 = vmatprep.subr.bf16.mxu0 %v21585_v63 }
 0xc84   : > { %19664 = vmatmul.mubr.bf16.gmra.mrb[72].mxu0 %v24566_v49 }
 0xc85   : > { %19667 = vmatprep.mubr.bf16.mxu0 %v24577_v4  ;;  %19696 = vmatpush3.bf16.msra.mxu0 %v21585_v63 }
 0xc86   : > { %19697 = vmatprep.subr.bf16.mxu0 %v21586_v46 }
 0xc89   : > { %19698 = vmatpush3.bf16.msra.mxu0 %v21586_v46 }
 0xc8a   : > { %19699 = vmatprep.subr.bf16.mxu0 %v21587_v9 }
 0xc8c   : > { %19668 = vmatmul.mubr.bf16.gmra.mrb[76].mxu0 %v24584_v43 }
 0xc8d   : > { %19671 = vmatprep.mubr.bf16.mxu0 %v24595_v31  ;;  %19700 = vmatpush3.bf16.msra.mxu0 %v21587_v9 }
 0xc8e   : > { %19701 = vmatprep.subr.bf16.mxu0 %v21588_v8 }
 0xc91   : > { %19702 = vmatpush3.bf16.msra.mxu0 %v21588_v8 }
 0xc92   : > { %19735 = vmatprep.subr.bf16.mxu0 %v21589_v18 }
 0xc94   : > { %19672 = vmatmul.mubr.bf16.gmra.mrb[80].mxu0 %v24602_v3 }
 0xc95   : > { %19675 = vmatprep.mubr.bf16.mxu0 %v24613_v17 }
 0xc9c   : > { %19676 = vmatmul.mubr.bf16.gmra.mrb[84].mxu0 %v24620_v33 }
 0xc9d   : > { %19679 = vmatprep.mubr.bf16.mxu0 %v24631_v39 }
 0xca4   : > { %19680 = vmatmul.mubr.bf16.gmra.mrb[88].mxu0 %v24638_v60 }
 0xca5   : > { %19683 = vmatprep.mubr.bf16.mxu0 %v24645_v0 }
 0xcac   : > { %19684 = vmatmul.mubr.bf16.gmra.mrb[92].mxu0 %v24706_v41 }
 0xcad   : > { %19703 = vmatprep.mubr.bf16.mxu0 %v24369_v27  ;;  %v21595_v27 = vld [vmem:[#allocation12 + $0x1f0] sm:$0xff]  }
 0xcb4   : > { %19704 = vmatmul.mubr.bf16.vlgmr.msra.gmra.mrb[64].mxu0 %v24385_v62  ;;  %v21596_v62 = vld [vmem:[#allocation12 + $0x1f8] sm:$0xff]  }
 0xcb5   : > { %19707 = vmatprep.mubr.bf16.mxu0 %v24392_v1  ;;  %19736 = vmatpush3.bf16.msra.mxu0 %v21589_v18  ;;  %v21597_v1 = vld [vmem:[#allocation12 + $0x200] sm:$0xff]  }
 0xcb6   : > { %19737 = vmatprep.subr.bf16.mxu0 %v21590_v35 }
 0xcb9   : > { %19738 = vmatpush3.bf16.msra.mxu0 %v21590_v35 }
 0xcba   : > { %19739 = vmatprep.subr.bf16.mxu0 %v21591_v58 }
 0xcbc   : > { %19708 = vmatmul.mubr.bf16.gmra.mrb[68].mxu0 %v24407_v59  ;;  %v21598_v59 = vld [vmem:[#allocation12 + $0x208] sm:$0xff]  }
 0xcbd   : > { %19711 = vmatprep.mubr.bf16.mxu0 %v24414_v42  ;;  %19740 = vmatpush3.bf16.msra.mxu0 %v21591_v58  ;;  %v21600_v42 = vld [vmem:[#allocation12 + $0x218] sm:$0xff]  }
 0xcbe   : > { %19741 = vmatprep.subr.bf16.mxu0 %v21592_v38 }
 0xcc1   : > { %19742 = vmatpush3.bf16.msra.mxu0 %v21592_v38 }
 0xcc2   : > { %19743 = vmatprep.subr.bf16.mxu0 %v21593_v44 }
 0xcc4   : > { %19712 = vmatmul.mubr.bf16.gmra.mrb[72].mxu0 %v24429_v7 }
 0xcc5   : > { %19715 = vmatprep.mubr.bf16.mxu0 %v24436_v32  ;;  %19744 = vmatpush3.bf16.msra.mxu0 %v21593_v44 }
 0xcc6   : > { %19745 = vmatprep.subr.bf16.mxu0 %v21594_v50 }
 0xcc9   : > { %19746 = vmatpush3.bf16.msra.mxu0 %v21594_v50 }
 0xcca   : > { %19747 = vmatprep.subr.bf16.mxu0 %v21595_v27 }
 0xccc   : > { %19716 = vmatmul.mubr.bf16.gmra.mrb[76].mxu0 %v24451_v10 }
 0xccd   : > { %19719 = vmatprep.mubr.bf16.mxu0 %v24458_v5  ;;  %19748 = vmatpush3.bf16.msra.mxu0 %v21595_v27 }
 0xcce   : > { %19749 = vmatprep.subr.bf16.mxu0 %v21596_v62 }
 0xcd1   : > { %19750 = vmatpush3.bf16.msra.mxu0 %v21596_v62 }
 0xcd2   : > { %19783 = vmatprep.subr.bf16.mxu0 %v21597_v1 }
 0xcd4   : > { %19720 = vmatmul.mubr.bf16.gmra.mrb[80].mxu0 %v24473_v29  ;;  %v21599_v29 = vld [vmem:[#allocation12 + $0x210] sm:$0xff]  }
 0xcd5   : > { %19723 = vmatprep.mubr.bf16.mxu0 %v24480_v30 }
 0xcdc   : > { %19724 = vmatmul.mubr.bf16.gmra.mrb[84].mxu0 %v24494_v14 }
 0xcdd   : > { %19727 = vmatprep.mubr.bf16.mxu0 %v24501_v19 }
 0xce4   : > { %19728 = vmatmul.mubr.bf16.gmra.mrb[88].mxu0 %v24509_v13 }
 0xce5   : > { %19731 = vmatprep.mubr.bf16.mxu0 %v24669_v53 }
 0xcec   : > { %19732 = vmatmul.mubr.bf16.gmra.mrb[92].mxu0 %v22322_v11  ;;  %v21601_v11 = vld [vmem:[#allocation12 + $0x220] sm:$0xff]  }
 0xced   : > { %19751 = vmatprep.mubr.bf16.mxu0 %v24259_v47  ;;  %v21602_v47 = vld [vmem:[#allocation12 + $0x228] sm:$0xff]  }
 0xcf4   : > { %19752 = vmatmul.mubr.bf16.vlgmr.msra.gmra.mrb[64].mxu0 %v24271_v20  ;;  %v21604_v20 = vld [vmem:[#allocation12 + $0x238] sm:$0xff]  }
 0xcf5   : > { %19755 = vmatprep.mubr.bf16.mxu0 %v24269_v48  ;;  %19784 = vmatpush3.bf16.msra.mxu0 %v21597_v1  ;;  %v21603_v48 = vld [vmem:[#allocation12 + $0x230] sm:$0xff]  }
 0xcf6   : > { %19785 = vmatprep.subr.bf16.mxu0 %v21598_v59 }
 0xcf9   : > { %19786 = vmatpush3.bf16.msra.mxu0 %v21598_v59 }
 0xcfa   : > { %19787 = vmatprep.subr.bf16.mxu0 %v21599_v29 }
 0xcfc   : > { %19756 = vmatmul.mubr.bf16.gmra.mrb[68].mxu0 %v24281_v21 }
 0xcfd   : > { %19759 = vmatprep.mubr.bf16.mxu0 %v24279_v61  ;;  %19788 = vmatpush3.bf16.msra.mxu0 %v21599_v29  ;;  %v24760_v61 = vld [vmem:[%s25017_s27] ss:$0 sm:$0xff] }
 0xcfe   : > { %19789 = vmatprep.subr.bf16.mxu0 %v21600_v42 }
 0xd01   : > { %19790 = vmatpush3.bf16.msra.mxu0 %v21600_v42 }
 0xd02   : > { %19791 = vmatprep.subr.bf16.mxu0 %v21601_v11 }
 0xd04   : > { %19760 = vmatmul.mubr.bf16.gmra.mrb[72].mxu0 %v24291_v24 }
 0xd05   : > { %19763 = vmatprep.mubr.bf16.mxu0 %v24289_v26  ;;  %19792 = vmatpush3.bf16.msra.mxu0 %v21601_v11 }
 0xd06   : > { %19793 = vmatprep.subr.bf16.mxu0 %v21602_v47 }
 0xd09   : > { %19794 = vmatpush3.bf16.msra.mxu0 %v21602_v47 }
 0xd0a   : > { %19795 = vmatprep.subr.bf16.mxu0 %v21603_v48 }
 0xd0c   : > { %19764 = vmatmul.mubr.bf16.gmra.mrb[76].mxu0 %v24303_v25 }
 0xd0d   : > { %19767 = vmatprep.mubr.bf16.mxu0 %v24301_v55  ;;  %19796 = vmatpush3.bf16.msra.mxu0 %v21603_v48 }
 0xd0e   : > { %19797 = vmatprep.subr.bf16.mxu0 %v21604_v20 }
 0xd11   : > { %19798 = vmatpush3.bf16.msra.mxu0 %v21604_v20 }
 0xd14   : > { %19768 = vmatmul.mubr.bf16.gmra.mrb[80].mxu0 %v24314_v40 }
 0xd15   : > { %19771 = vmatprep.mubr.bf16.mxu0 %v24312_v22 }
 0xd1c   : > { %19772 = vmatmul.mubr.bf16.gmra.mrb[84].mxu0 %v24324_v57 }
 0xd1d   : > { %19775 = vmatprep.mubr.bf16.mxu0 %v24322_v12 }
 0xd24   : > { %19776 = vmatmul.mubr.bf16.gmra.mrb[88].mxu0 %v24336_v56 }
 0xd25   : > { %19779 = vmatprep.mubr.bf16.mxu0 %v24334_v52 }
 0xd2c   : > { %19780 = vmatmul.mubr.bf16.gmra.mrb[92].mxu0 %v24964_v34 }
 0xd2d   : > { %19799 = vmatprep.mubr.bf16.mxu0 %v24530_v28 }
 0xd34   : > { %19800 = vmatmul.mubr.bf16.vlgmr.msra.gmra.mrb[64].mxu0 %v24541_v36 }
 0xd35   : > { %19803 = vmatprep.mubr.bf16.mxu0 %v24548_v6 }
 0xd3c   : > { %19804 = vmatmul.mubr.bf16.gmra.mrb[68].mxu0 %v24559_v15 }
 0xd3d   : > { %19807 = vmatprep.mubr.bf16.mxu0 %v24566_v49 }
 0xd44   : > { %19808 = vmatmul.mubr.bf16.gmra.mrb[72].mxu0 %v24577_v4 }
 0xd45   : > { %19811 = vmatprep.mubr.bf16.mxu0 %v24584_v43 }
 0xd4c   : > { %19812 = vmatmul.mubr.bf16.gmra.mrb[76].mxu0 %v24595_v31 }
 0xd4d   : > { %19815 = vmatprep.mubr.bf16.mxu0 %v24602_v3 }
 0xd54   : > { %19816 = vmatmul.mubr.bf16.gmra.mrb[80].mxu0 %v24613_v17 }
 0xd55   : > { %19819 = vmatprep.mubr.bf16.mxu0 %v24620_v33 }
 0xd5c   : > { %19820 = vmatmul.mubr.bf16.gmra.mrb[84].mxu0 %v24631_v39 }
 0xd5d   : > { %19823 = vmatprep.mubr.bf16.mxu0 %v24638_v60 }
 0xd64   : > { %19824 = vmatmul.mubr.bf16.gmra.mrb[88].mxu0 %v24645_v0 }
 0xd65   : > { %19827 = vmatprep.mubr.bf16.mxu0 %v24706_v41 }
 0xd6c   : > { %19828 = vmatmul.mubr.bf16.gmra.mrb[92].mxu0 %v22593_v37 }
 0xe07   : > { %v19801_v34 = vpop.f32.mrb[64].mxu0 }
 0xe08   : > { %v15532_v21 = vpop.f32.mrb[65].mxu0  ;;  %v15700_v24 = vadd.f32 %v19801_v34, %v24760_v61 }
 0xe09   : > { %v19802_v26 = vpop.f32.mrb[66].mxu0  ;;  %v15698_v22 = vadd.f32 %v24760_v61, %v15532_v21 }
 0xe0a   : > { %v15701_v55 = vadd.f32 %v19802_v26, %v24760_v61  ;;  %v15535_v25 = vpop.f32.mrb[67].mxu0 }
 0xe0b   : > { %v15699_v40 = vadd.f32 %v24760_v61, %v15535_v25 }
 0xe0c   : > { %v16504_v12 = vpack.c.bf16 %v15701_v55, %v15700_v24 }
 0xe0d   : > { %v16499_v57 = vpack.c.bf16 %v15699_v40, %v15698_v22 }
 0xe0e   : > { %16576 = vst [vmem:[%s24768_s24 + $0x8] sm:$0xff] %v16504_v12  }
 0xe0f   : > { %16500 = vst [vmem:[%s24768_s24] sm:$0xff] %v16499_v57   ;;  %v19805_v37 = vpop.f32.mrb[68].mxu0 }
 0xe10   : > { %v15548_v52 = vpop.f32.mrb[69].mxu0  ;;  %v15704_v19 = vadd.f32 %v19805_v37, %v24760_v61 }
 0xe11   : > { %v19806_v56 = vpop.f32.mrb[70].mxu0  ;;  %v15702_v30 = vadd.f32 %v24760_v61, %v15548_v52 }
 0xe12   : > { %v15705_v7 = vadd.f32 %v19806_v56, %v24760_v61  ;;  %v15551_v32 = vpop.f32.mrb[71].mxu0 }
 0xe13   : > { %v15703_v10 = vadd.f32 %v24760_v61, %v15551_v32 }
 0xe14   : > { %v16514_v5 = vpack.c.bf16 %v15705_v7, %v15704_v19 }
 0xe15   : > { %v16509_v14 = vpack.c.bf16 %v15703_v10, %v15702_v30 }
 0xe16   : > { %16578 = vst [vmem:[%s24768_s24 + $0x18] sm:$0xff] %v16514_v5  }
 0xe17   : > { %16577 = vst [vmem:[%s24768_s24 + $0x10] sm:$0xff] %v16509_v14   ;;  %v19809_v13 = vpop.f32.mrb[72].mxu0 }
 0xe18   : > { %v15564_v28 = vpop.f32.mrb[73].mxu0  ;;  %v15708_v6 = vadd.f32 %v19809_v13, %v24760_v61 }
 0xe19   : > { %v19810_v36 = vpop.f32.mrb[74].mxu0  ;;  %v15706_v4 = vadd.f32 %v24760_v61, %v15564_v28 }
 0xe1a   : > { %v15709_v15 = vadd.f32 %v19810_v36, %v24760_v61  ;;  %v15567_v49 = vpop.f32.mrb[75].mxu0 }
 0xe1b   : > { %v15707_v43 = vadd.f32 %v24760_v61, %v15567_v49 }
 0xe1c   : > { %v16524_v31 = vpack.c.bf16 %v15709_v15, %v15708_v6 }
 0xe1d   : > { %v16519_v3 = vpack.c.bf16 %v15707_v43, %v15706_v4 }
 0xe1e   : > { %16580 = vst [vmem:[%s24768_s24 + $0x28] sm:$0xff] %v16524_v31  }
 0xe1f   : > { %16579 = vst [vmem:[%s24768_s24 + $0x20] sm:$0xff] %v16519_v3   ;;  %v19813_v17 = vpop.f32.mrb[76].mxu0 }
 0xe20   : > { %v15580_v33 = vpop.f32.mrb[77].mxu0  ;;  %v15712_v60 = vadd.f32 %v19813_v17, %v24760_v61 }
 0xe21   : > { %v19814_v39 = vpop.f32.mrb[78].mxu0  ;;  %v15710_v2 = vadd.f32 %v24760_v61, %v15580_v33 }
 0xe22   : > { %v15713_v0 = vadd.f32 %v19814_v39, %v24760_v61  ;;  %v15583_v53 = vpop.f32.mrb[79].mxu0 }
 0xe23   : > { %v15711_v23 = vadd.f32 %v24760_v61, %v15583_v53 }
 0xe24   : > { %v16534_v54 = vpack.c.bf16 %v15713_v0, %v15712_v60 }
 0xe25   : > { %v16529_v16 = vpack.c.bf16 %v15711_v23, %v15710_v2 }
 0xe26   : > { %16582 = vst [vmem:[%s24768_s24 + $0x38] sm:$0xff] %v16534_v54  }
 0xe27   : > { %16581 = vst [vmem:[%s24768_s24 + $0x30] sm:$0xff] %v16529_v16   ;;  %v19817_v45 = vpop.f32.mrb[80].mxu0 }
 0xe28   : > { %v15596_v51 = vpop.f32.mrb[81].mxu0  ;;  %v15716_v46 = vadd.f32 %v19817_v45, %v24760_v61 }
 0xe29   : > { %v19818_v63 = vpop.f32.mrb[82].mxu0  ;;  %v15714_v18 = vadd.f32 %v24760_v61, %v15596_v51 }
 0xe2a   : > { %v15717_v9 = vadd.f32 %v19818_v63, %v24760_v61  ;;  %v15599_v8 = vpop.f32.mrb[83].mxu0 }
 0xe2b   : > { %v15715_v41 = vadd.f32 %v24760_v61, %v15599_v8 }
 0xe2c   : > { %v16544_v35 = vpack.c.bf16 %v15717_v9, %v15716_v46 }
 0xe2d   : > { %v16539_v58 = vpack.c.bf16 %v15715_v41, %v15714_v18 }
 0xe2e   : > { %16584 = vst [vmem:[%s24768_s24 + $0x48] sm:$0xff] %v16544_v35  }
 0xe2f   : > { %16583 = vst [vmem:[%s24768_s24 + $0x40] sm:$0xff] %v16539_v58   ;;  %v19821_v38 = vpop.f32.mrb[84].mxu0 }
 0xe30   : > { %v15612_v44 = vpop.f32.mrb[85].mxu0  ;;  %v15720_v27 = vadd.f32 %v19821_v38, %v24760_v61 }
 0xe31   : > { %v19822_v50 = vpop.f32.mrb[86].mxu0  ;;  %v15718_v59 = vadd.f32 %v24760_v61, %v15612_v44 }
 0xe32   : > { %v15721_v62 = vadd.f32 %v19822_v50, %v24760_v61  ;;  %v15615_v1 = vpop.f32.mrb[87].mxu0 }
 0xe33   : > { %v15719_v29 = vadd.f32 %v24760_v61, %v15615_v1 }
 0xe34   : > { %v16554_v42 = vpack.c.bf16 %v15721_v62, %v15720_v27 }
 0xe35   : > { %v16549_v11 = vpack.c.bf16 %v15719_v29, %v15718_v59 }
 0xe36   : > { %16586 = vst [vmem:[%s24768_s24 + $0x58] sm:$0xff] %v16554_v42  }
 0xe37   : > { %16585 = vst [vmem:[%s24768_s24 + $0x50] sm:$0xff] %v16549_v11   ;;  %v19825_v47 = vpop.f32.mrb[88].mxu0 }
 0xe38   : > { %v15628_v48 = vpop.f32.mrb[89].mxu0  ;;  %v15724_v34 = vadd.f32 %v19825_v47, %v24760_v61 }
 0xe39   : > { %v19826_v20 = vpop.f32.mrb[90].mxu0  ;;  %v15722_v24 = vadd.f32 %v24760_v61, %v15628_v48 }
 0xe3a   : > { %v15725_v21 = vadd.f32 %v19826_v20, %v24760_v61  ;;  %v15631_v26 = vpop.f32.mrb[91].mxu0 }
 0xe3b   : > { %v15723_v55 = vadd.f32 %v24760_v61, %v15631_v26 }
 0xe3c   : > { %v16564_v25 = vpack.c.bf16 %v15725_v21, %v15724_v34 }
 0xe3d   : > { %v16559_v22 = vpack.c.bf16 %v15723_v55, %v15722_v24 }
 0xe3e   : > { %16588 = vst [vmem:[%s24768_s24 + $0x68] sm:$0xff] %v16564_v25  }
 0xe3f   : > { %16587 = vst [vmem:[%s24768_s24 + $0x60] sm:$0xff] %v16559_v22   ;;  %v19829_v40 = vpop.f32.mrb[92].mxu0 }
 0xe40   : > { %v15644_v12 = vpop.f32.mrb[93].mxu0  ;;  %v15728_v37 = vadd.f32 %v19829_v40, %v24760_v61 }
 0xe41   : > { %v19830_v57 = vpop.f32.mrb[94].mxu0  ;;  %v15726_v19 = vadd.f32 %v24760_v61, %v15644_v12 }
 0xe42   : > { %v15729_v52 = vadd.f32 %v19830_v57, %v24760_v61  ;;  %v15647_v56 = vpop.f32.mrb[95].mxu0 }
 0xe43   : > { %v15727_v7 = vadd.f32 %v24760_v61, %v15647_v56 }
 0xe44   : > { %v16574_v32 = vpack.c.bf16 %v15729_v52, %v15728_v37 }
 0xe45   : > { %v16569_v30 = vpack.c.bf16 %v15727_v7, %v15726_v19 }
 0xe46   : > { %16590 = vst [vmem:[%s24768_s24 + $0x78] sm:$0xff] %v16574_v32  }
 0xe47   : > { %16589 = vst [vmem:[%s24768_s24 + $0x70] sm:$0xff] %v16569_v30  }
 0xe48   : > { %21811 = shalt.err (!%p21808_p8)
}
 0xe49   : > { %s21812_s15 = scalar_lea.hbm %s24817_s8, 2048  ;;  %s21816_s29 = scalar_lea.hbm %s25018_s1, 4096 }
 0xe4a   : > { %p21813_p6 = scmp.ne.s32.totalorder %s24817_s8, %s21812_s15  ;;  %p21817_p3 = scmp.lt.u32.totalorder %s24817_s8, %s25018_s1 }
 0xe4b   : > { %p21818_p5 = scmp.lt.u32.totalorder %s21816_s29, %s21812_s15  ;;  %p21820_p7 = scmp.lt.u32.totalorder %s21812_s15, %s24817_s8 }
 0xe4c   : > { %p21814_p10 = pnand %p21813_p6, %p25019_p4 }
 0xe4d   : > { %p21819_p9 = por %p21818_p5, %p21817_p3 }
 0xe4e   : > { %p21815_p11 = pneg %p21814_p10 }
 0xe4f   : > { %p21821_p12 = por %p21820_p7, %p21819_p9 }
 0xe51   : > { %p21822_p1 = pnand %p21821_p12, %p21815_p11 }
 0xe53   : > { %21825 = shalt.err (!%p21822_p1)
}
 0xe54   : > { %s21888_s25 = smov 64   ;;  %s21889_s28 = smov 4  }
 0xe55   : > { %21149 = dma.vmem_to_hbm [thread:$0]  (%p25019_p4), %s24819_s12, 2048, %s24817_s8, %s15891_s23, %s21888_s25, %s21888_s25, %s21889_s28  }
 0xe56 PF: > { %s15919_s22 = sand.u32 1, %s21864_s17   ;;  %p25020_p13 = scmp.ne.s32.totalorder %s24948_s21, 0 }
 0xe57   : > { %p25021_p0 = scmp.ge.s32.totalorder %s21876_s20, 2  ;;  %s15920_s30 = scalar_lea.sflag [#allocation5], %s15919_s22 }
 0xe59   : > { %p21172_p2 = pnand %p25021_p0, %p25020_p13 }
 0xe5b   : > { %21859 = dma.done.wait (!%p21172_p2), %s15920_s30, 2048  }
 0xe5c   : > { %21861 = vsyncadd (!%p21172_p2), %s15920_s30, 4294965248  ;;  %p27_p8 = scmp.ge.s32.totalorder %s22123_s16, 4   ;;  %s25022_s17 = smov %s21868_s18 }
 0xe5d   : > { %s25023_s18 = smov %s21872_s19  ;;  %s25024_s19 = smov %s22135_s10 }
 0xe5e   : > { %s25025_s20 = smov %s22123_s16  ;;  %29 = sbr.rel (!%p27_p8) target bundleno = 13 (0xd), region = 172 }
 0xe65   :  { %15925 = vsyncpa [#allocation4], 1 }
 0xe66   :  { %15927 = vsyncpa [#allocation4 + $0x1], 1 }
 0xe67   :  { %15928 = vsyncpa [#allocation7], 1 }
 0xe68   :  { %15929 = vsyncpa [#allocation10], 1 }
 0xe69   :  { %15930 = vsyncpa [#allocation13], 1 }
 0xe6a   :  { %15931 = vsyncpa [#allocation5], 1 }
 0xe6b   :  { %15933 = vsyncpa [#allocation5 + $0x1], 1 }

</bundles_post_ra>
